<compile_context>
chip_gen: v5e
topology: v5e:2x2
jax: 0.10.0
libtpu: 0.0.40
codegen_flags: <defaults>
</compile_context>

<pallas_src>
import functools

import jax
import jax.numpy as jnp
from jax import lax
from jax.experimental import pallas as pl
from jax.experimental.pallas import tpu as pltpu


# ---------------------------------------------------------------------------
# Wrapper-side 3x3 im2col (layout plumbing done in plain XLA; the Pallas
# kernel then sees a dense (rows, 9*Cin) matmul problem).
# ---------------------------------------------------------------------------
def _im2col_3x3(x_nhwc, dtype):
    """x_nhwc: (N, H, W, C) -> (N, H, W, 9*C) zero-padded 3x3 patches,
    tap-major (ky, kx, c) channel order."""
    N, H, W, C = x_nhwc.shape
    xp = jnp.pad(x_nhwc.astype(dtype), ((0, 0), (1, 1), (1, 1), (0, 0)))
    cols = [xp[:, ky:ky + H, kx:kx + W, :] for ky in range(3) for kx in range(3)]
    return jnp.concatenate(cols, axis=-1)


# ---------------------------------------------------------------------------
# Fused (im2col-matmul) Conv3x3 + bias + ReLU + MaxPool2x2 kernel.
# One grid step = one (image, H-block).  Inside, loop over chunks of R conv
# output rows: one (R*W, K) x (K, Cout) bf16 MXU matmul (f32 acc), bias+ReLU,
# then 2x2 pooling via a VMEM scratch and strided column slices.
# ---------------------------------------------------------------------------
def _conv_relu_pool_kernel(x_ref, w_ref, b_ref, o_ref, t_ref, *, Hb, W, K, Cout, R):
    # x_ref: (1, Hb, W, K)        im2col patches (bf16), K = 9*Cin
    # w_ref: (K, Cout)            conv weights (bf16)
    # b_ref: (1, Cout)            bias (f32)
    # o_ref: (1, Hb//2, W//2, Cout)  pooled output (bf16)
    # t_ref: VMEM scratch (R//2, W, Cout) f32
    Wh = W // 2
    Rh = R // 2
    n_chunks = Hb // R
    bias = b_ref[...]          # (1, Cout) f32
    w = w_ref[...]             # (K, Cout) bf16  (hoisted out of the loop)

    def chunk_body(c, carry):
        r0 = pl.multiple_of(c * R, R)                    # first conv row of chunk
        xs = x_ref[0, pl.ds(r0, R), :, :]                # (R, W, K)
        acc = jnp.dot(xs.reshape(R * W, K), w,
                      preferred_element_type=jnp.float32)  # (R*W, Cout) f32
        y = jnp.maximum(acc + bias, 0.0)                 # bias + ReLU
        y = y.reshape(Rh, 2, W, Cout)
        t_ref[...] = jnp.maximum(y[:, 0], y[:, 1])       # pool row pairs
        p_even = t_ref[:, pl.ds(0, Wh, stride=2), :]     # pool col pairs
        p_odd = t_ref[:, pl.ds(1, Wh, stride=2), :]
        ro = pl.multiple_of(c * Rh, Rh)
        o_ref[0, pl.ds(ro, Rh), :, :] = jnp.maximum(p_even, p_odd).astype(o_ref.dtype)
        return carry

    lax.fori_loop(0, n_chunks, chunk_body, 0, unroll=True)


def conv3x3_relu_pool(x_nhwc, w, b, *, h_block, row_chunk):
    """x_nhwc: (N, H, W, Cin); w: (3, 3, Cin, Cout) bf16; b: (Cout,) f32."""
    N, H, W, Cin = x_nhwc.shape
    Cout = w.shape[-1]
    K = 9 * Cin
    assert H % h_block == 0 and h_block % row_chunk == 0
    assert row_chunk % 2 == 0 and W % 2 == 0

    cols = _im2col_3x3(x_nhwc, w.dtype)                  # (N, H, W, 9*Cin)
    w2 = w.reshape(K, Cout)                              # (ky, kx, cin)-major rows
    b2 = b.reshape(1, Cout).astype(jnp.float32)

    kernel = functools.partial(_conv_relu_pool_kernel, Hb=h_block, W=W, K=K,
                               Cout=Cout, R=row_chunk)
    return pl.pallas_call(
        kernel,
        out_shape=jax.ShapeDtypeStruct((N, H // 2, W // 2, Cout), jnp.bfloat16),
        grid=(N, H // h_block),
        in_specs=[
            pl.BlockSpec((1, h_block, W, K), lambda n, h: (n, h, 0, 0)),
            pl.BlockSpec((K, Cout), lambda n, h: (0, 0)),
            pl.BlockSpec((1, Cout), lambda n, h: (0, 0)),
        ],
        out_specs=pl.BlockSpec((1, h_block // 2, W // 2, Cout),
                               lambda n, h: (n, h, 0, 0)),
        scratch_shapes=[pltpu.VMEM((row_chunk // 2, W, Cout), jnp.float32)],
        compiler_params=pltpu.CompilerParams(
            dimension_semantics=("parallel", "parallel"),
            vmem_limit_bytes=32 * 1024 * 1024),
    )(cols, w2, b2)


# ---------------------------------------------------------------------------
# Linear (+ optional ReLU) kernel: 2-D grid = (output-column blocks, K blocks).
# The N axis is "parallel" (lets v7x's 2 TensorCores each stream half of the
# fc1 weight); the K axis is "arbitrary" and accumulates into a VMEM scratch.
# ---------------------------------------------------------------------------
def _linear_kernel(x_ref, w_ref, b_ref, o_ref, acc_ref, *, relu):
    k = pl.program_id(1)

    @pl.when(k == 0)
    def _():
        acc_ref[...] = jnp.zeros_like(acc_ref)

    acc_ref[...] += jnp.dot(x_ref[...], w_ref[...],
                            preferred_element_type=jnp.float32)

    @pl.when(k == pl.num_programs(1) - 1)
    def _():
        out = acc_ref[...] + b_ref[...]
        if relu:
            out = jnp.maximum(out, 0.0)
        o_ref[...] = out.astype(o_ref.dtype)


def linear(x, w_t, b, *, relu, k_tile, n_tile=None, out_dtype=jnp.float32):
    """x: (M, K); w_t: (K, N) bf16 (torch weight.T layout); b: (N,) f32."""
    M, K = x.shape
    Kw, N = w_t.shape
    if n_tile is None:
        n_tile = N
    assert K == Kw and K % k_tile == 0 and N % n_tile == 0
    x = x.astype(w_t.dtype)
    kernel = functools.partial(_linear_kernel, relu=relu)
    return pl.pallas_call(
        kernel,
        out_shape=jax.ShapeDtypeStruct((M, N), out_dtype),
        grid=(N // n_tile, K // k_tile),
        in_specs=[
            pl.BlockSpec((M, k_tile), lambda n, k: (0, k)),
            pl.BlockSpec((k_tile, n_tile), lambda n, k: (k, n)),
            pl.BlockSpec((1, n_tile), lambda n, k: (0, n)),
        ],
        out_specs=pl.BlockSpec((M, n_tile), lambda n, k: (0, n)),
        scratch_shapes=[pltpu.VMEM((M, n_tile), jnp.float32)],
        compiler_params=pltpu.CompilerParams(
            dimension_semantics=("parallel", "arbitrary"),
            vmem_limit_bytes=32 * 1024 * 1024),
    )(x, w_t, b.reshape(1, N).astype(jnp.float32))


# ---------------------------------------------------------------------------
# Full CNN forward (matches the PyTorch module's forward).
# ---------------------------------------------------------------------------
def cnn_forward(x_nchw, params):
    x = jnp.transpose(x_nchw, (0, 2, 3, 1)).astype(jnp.bfloat16)       # NCHW -> NHWC
    x = conv3x3_relu_pool(x, params["w1"], params["b1"],
                          h_block=32, row_chunk=8)                      # (N,112,112,16)
    x = conv3x3_relu_pool(x, params["w2"], params["b2"],
                          h_block=28, row_chunk=4)                      # (N, 56, 56,32)
    x = conv3x3_relu_pool(x, params["w3"], params["b3"],
                          h_block=28, row_chunk=4)                      # (N, 28, 28,64)
    # Flatten directly in NHWC (h, w, c) order; fc1_wt rows are stored in the
    # same order (== torch fc1.weight with its columns permuted CHW->HWC), so
    # no runtime transpose is needed and the math matches torch.flatten + fc1.
    x = x.reshape(x.shape[0], -1)                                       # (N, 28*28*64)
    x = linear(x, params["fc1_wt"], params["fc1_b"], relu=True,
               k_tile=7168, n_tile=512, out_dtype=jnp.bfloat16)
    x = linear(x, params["fc2_wt"], params["fc2_b"], relu=False,
               k_tile=1024, out_dtype=jnp.float32)
    return x


def init_params(key, num_classes):
    ks = jax.random.split(key, 5)

    def conv_w(k, cin, cout):
        # stored as (3, 3, Cin, Cout) == torch weight (Cout,Cin,3,3).permute(2,3,1,0)
        w = (jax.random.normal(k, (3, 3, cin, cout), jnp.float32)
             * (1.0 / jnp.sqrt(9.0 * cin)))
        return w.astype(jnp.bfloat16)

    def lin_w(k, fin, fout):
        # stored as (in, out) == torch weight (out, in).T ; for fc1 the row
        # (input-feature) order is the NHWC flatten order (h, w, c).
        w = (jax.random.normal(k, (fin, fout), jnp.float32)
             * (1.0 / jnp.sqrt(float(fin))))
        return w.astype(jnp.bfloat16)

    return {
        "w1": conv_w(ks[0], 3, 16),   "b1": jnp.zeros((16,), jnp.float32),
        "w2": conv_w(ks[1], 16, 32),  "b2": jnp.zeros((32,), jnp.float32),
        "w3": conv_w(ks[2], 32, 64),  "b3": jnp.zeros((64,), jnp.float32),
        "fc1_wt": lin_w(ks[3], 64 * 28 * 28, 1024),
        "fc1_b": jnp.zeros((1024,), jnp.float32),
        "fc2_wt": lin_w(ks[4], 1024, num_classes),
        "fc2_b": jnp.zeros((num_classes,), jnp.float32),
    }


if __name__ == "__main__":
    num_classes = 10
    key = jax.random.PRNGKey(0)
    kx, kp = jax.random.split(key)
    # fc1 = Linear(64*28*28, 1024) pins the input spatial size to 224x224
    # (224 -> 112 -> 56 -> 28 through the three 2x2 max-pools).
    x = jax.random.normal(kx, (2, 3, 224, 224), jnp.float32)
    params = init_params(kp, num_classes)

    out = cnn_forward(x, params)
    out = jax.block_until_ready(out)

    assert out.shape == (2, num_classes)
    assert bool(jnp.all(jnp.isfinite(out)))
    print("KERNEL_OK")
</pallas_src>

<mosaic_0001>
module attributes {stable_mosaic.version = 11 : i64} {
  func.func @_conv_relu_pool_kernel(%arg0: i32, %arg1: i32, %arg2: memref<1x32x224x27xbf16, #tpu.memory_space<vmem>>, %arg3: memref<27x16xbf16, #tpu.memory_space<vmem>>, %arg4: memref<1x16xf32, #tpu.memory_space<vmem>>, %arg5: memref<1x16x112x16xbf16, #tpu.memory_space<vmem>>, %arg6: memref<4x224x16xf32, #tpu.memory_space<vmem>>) attributes {dimension_semantics = [#tpu.dimension_semantics<parallel>, #tpu.dimension_semantics<parallel>], iteration_bounds = array<i64: 2, 7>, scalar_prefetch = 0 : i64, scratch_operands = 1 : i64, tpu.core_type = #tpu.core_type<tc>, window_params = [{transform_indices = @transform_0, window_bounds = array<i64: 1, 32, 224, 27>}, {pipeline_mode = #tpu.pipeline_mode<synchronous>, transform_indices = @transform_1, window_bounds = array<i64: 27, 16>}, {pipeline_mode = #tpu.pipeline_mode<synchronous>, transform_indices = @transform_2, window_bounds = array<i64: 1, 16>}, {transform_indices = @transform_3, window_bounds = array<i64: 1, 16, 112, 16>}]} {
    %c0 = arith.constant 0 : index
    %c0_0 = arith.constant 0 : index
    %0 = vector.load %arg4[%c0, %c0_0] : memref<1x16xf32, #tpu.memory_space<vmem>>, vector<1x16xf32>
    %c0_1 = arith.constant 0 : index
    %c0_2 = arith.constant 0 : index
    %1 = vector.load %arg3[%c0_1, %c0_2] : memref<27x16xbf16, #tpu.memory_space<vmem>>, vector<27x16xbf16>
    %c0_i32 = arith.constant 0 : i32
    %c8_i32 = arith.constant 8 : i32
    %2 = arith.muli %c0_i32, %c8_i32 : i32
    %3 = tpu.assume_multiple %2, 8 : i32
    %c0_3 = arith.constant 0 : index
    %4 = arith.index_cast %3 : i32 to index
    %c0_4 = arith.constant 0 : index
    %c0_5 = arith.constant 0 : index
    %5 = vector.load %arg2[%c0_3, %4, %c0_4, %c0_5] : memref<1x32x224x27xbf16, #tpu.memory_space<vmem>>, vector<1x8x224x27xbf16>
    %6 = vector.shape_cast %5 : vector<1x8x224x27xbf16> to vector<8x224x27xbf16>
    %7 = vector.shape_cast %6 : vector<8x224x27xbf16> to vector<1792x27xbf16>
    %cst = arith.constant dense<0.000000e+00> : vector<1792x16xf32>
    %8 = tpu.matmul %7, %1, %cst {dimension_numbers = #tpu.dot_dimension_numbers<[1], [0], [0], [1], [0, 0, 1, 1], [], []>} : vector<1792x27xbf16>, vector<27x16xbf16>, vector<1792x16xf32> -> vector<1792x16xf32>
    %9 = vector.broadcast %0 : vector<1x16xf32> to vector<1792x16xf32>
    %10 = arith.addf %8, %9 : vector<1792x16xf32>
    %cst_6 = arith.constant 0.000000e+00 : f32
    %11 = vector.broadcast %cst_6 : f32 to vector<1792x16xf32>
    %12 = arith.maximumf %10, %11 : vector<1792x16xf32>
    %13 = vector.shape_cast %12 : vector<1792x16xf32> to vector<4x2x224x16xf32>
    %14 = vector.extract_strided_slice %13 {offsets = [0, 0, 0, 0], sizes = [4, 1, 224, 16], strides = [1, 1, 1, 1]} : vector<4x2x224x16xf32> to vector<4x1x224x16xf32>
    %15 = vector.shape_cast %14 : vector<4x1x224x16xf32> to vector<4x224x16xf32>
    %16 = vector.extract_strided_slice %13 {offsets = [0, 1, 0, 0], sizes = [4, 1, 224, 16], strides = [1, 1, 1, 1]} : vector<4x2x224x16xf32> to vector<4x1x224x16xf32>
    %17 = vector.shape_cast %16 : vector<4x1x224x16xf32> to vector<4x224x16xf32>
    %18 = arith.maximumf %15, %17 : vector<4x224x16xf32>
    %c0_7 = arith.constant 0 : index
    %c0_8 = arith.constant 0 : index
    %c0_9 = arith.constant 0 : index
    %19 = vector.load %arg6[%c0_7, %c0_8, %c0_9] : memref<4x224x16xf32, #tpu.memory_space<vmem>>, vector<4x224x16xf32>
    tpu.vector_store %arg6[%c0_7, %c0_8, %c0_9], %18 {strides = array<i32>} : memref<4x224x16xf32, #tpu.memory_space<vmem>>, vector<4x224x16xf32>,
    %c0_10 = arith.constant 0 : index
    %c0_11 = arith.constant 0 : index
    %c0_12 = arith.constant 0 : index
    %20 = tpu.strided_load %arg6[%c0_10, %c0_11, %c0_12] {strides = array<i32: 1, 2, 1>} : memref<4x224x16xf32, #tpu.memory_space<vmem>>, vector<4x112x16xf32>
    %c0_13 = arith.constant 0 : index
    %c1 = arith.constant 1 : index
    %c0_14 = arith.constant 0 : index
    %21 = tpu.strided_load %arg6[%c0_13, %c1, %c0_14] {strides = array<i32: 1, 2, 1>} : memref<4x224x16xf32, #tpu.memory_space<vmem>>, vector<4x112x16xf32>
    %c4_i32 = arith.constant 4 : i32
    %22 = arith.muli %c0_i32, %c4_i32 : i32
    %23 = tpu.assume_multiple %22, 4 : i32
    %24 = arith.maximumf %20, %21 : vector<4x112x16xf32>
    %25 = arith.truncf %24 : vector<4x112x16xf32> to vector<4x112x16xbf16>
    %c0_15 = arith.constant 0 : index
    %26 = arith.index_cast %23 : i32 to index
    %c0_16 = arith.constant 0 : index
    %c0_17 = arith.constant 0 : index
    %27 = vector.load %arg5[%c0_15, %26, %c0_16, %c0_17] : memref<1x16x112x16xbf16, #tpu.memory_space<vmem>>, vector<1x4x112x16xbf16>
    %28 = vector.shape_cast %27 : vector<1x4x112x16xbf16> to vector<4x112x16xbf16>
    %29 = vector.shape_cast %25 : vector<4x112x16xbf16> to vector<1x4x112x16xbf16>
    tpu.vector_store %arg5[%c0_15, %26, %c0_16, %c0_17], %29 {strides = array<i32>} : memref<1x16x112x16xbf16, #tpu.memory_space<vmem>>, vector<1x4x112x16xbf16>,
    %c1_i32 = arith.constant 1 : i32
    %c8_i32_18 = arith.constant 8 : i32
    %30 = arith.muli %c1_i32, %c8_i32_18 : i32
    %31 = tpu.assume_multiple %30, 8 : i32
    %c0_19 = arith.constant 0 : index
    %32 = arith.index_cast %31 : i32 to index
    %c0_20 = arith.constant 0 : index
    %c0_21 = arith.constant 0 : index
    %33 = vector.load %arg2[%c0_19, %32, %c0_20, %c0_21] : memref<1x32x224x27xbf16, #tpu.memory_space<vmem>>, vector<1x8x224x27xbf16>
    %34 = vector.shape_cast %33 : vector<1x8x224x27xbf16> to vector<8x224x27xbf16>
    %35 = vector.shape_cast %34 : vector<8x224x27xbf16> to vector<1792x27xbf16>
    %cst_22 = arith.constant dense<0.000000e+00> : vector<1792x16xf32>
    %36 = tpu.matmul %35, %1, %cst_22 {dimension_numbers = #tpu.dot_dimension_numbers<[1], [0], [0], [1], [0, 0, 1, 1], [], []>} : vector<1792x27xbf16>, vector<27x16xbf16>, vector<1792x16xf32> -> vector<1792x16xf32>
    %37 = vector.broadcast %0 : vector<1x16xf32> to vector<1792x16xf32>
    %38 = arith.addf %36, %37 : vector<1792x16xf32>
    %cst_23 = arith.constant 0.000000e+00 : f32
    %39 = vector.broadcast %cst_23 : f32 to vector<1792x16xf32>
    %40 = arith.maximumf %38, %39 : vector<1792x16xf32>
    %41 = vector.shape_cast %40 : vector<1792x16xf32> to vector<4x2x224x16xf32>
    %42 = vector.extract_strided_slice %41 {offsets = [0, 0, 0, 0], sizes = [4, 1, 224, 16], strides = [1, 1, 1, 1]} : vector<4x2x224x16xf32> to vector<4x1x224x16xf32>
    %43 = vector.shape_cast %42 : vector<4x1x224x16xf32> to vector<4x224x16xf32>
    %44 = vector.extract_strided_slice %41 {offsets = [0, 1, 0, 0], sizes = [4, 1, 224, 16], strides = [1, 1, 1, 1]} : vector<4x2x224x16xf32> to vector<4x1x224x16xf32>
    %45 = vector.shape_cast %44 : vector<4x1x224x16xf32> to vector<4x224x16xf32>
    %46 = arith.maximumf %43, %45 : vector<4x224x16xf32>
    %c0_24 = arith.constant 0 : index
    %c0_25 = arith.constant 0 : index
    %c0_26 = arith.constant 0 : index
    %47 = vector.load %arg6[%c0_24, %c0_25, %c0_26] : memref<4x224x16xf32, #tpu.memory_space<vmem>>, vector<4x224x16xf32>
    tpu.vector_store %arg6[%c0_24, %c0_25, %c0_26], %46 {strides = array<i32>} : memref<4x224x16xf32, #tpu.memory_space<vmem>>, vector<4x224x16xf32>,
    %c0_27 = arith.constant 0 : index
    %c0_28 = arith.constant 0 : index
    %c0_29 = arith.constant 0 : index
    %48 = tpu.strided_load %arg6[%c0_27, %c0_28, %c0_29] {strides = array<i32: 1, 2, 1>} : memref<4x224x16xf32, #tpu.memory_space<vmem>>, vector<4x112x16xf32>
    %c0_30 = arith.constant 0 : index
    %c1_31 = arith.constant 1 : index
    %c0_32 = arith.constant 0 : index
    %49 = tpu.strided_load %arg6[%c0_30, %c1_31, %c0_32] {strides = array<i32: 1, 2, 1>} : memref<4x224x16xf32, #tpu.memory_space<vmem>>, vector<4x112x16xf32>
    %c4_i32_33 = arith.constant 4 : i32
    %50 = arith.muli %c1_i32, %c4_i32_33 : i32
    %51 = tpu.assume_multiple %50, 4 : i32
    %52 = arith.maximumf %48, %49 : vector<4x112x16xf32>
    %53 = arith.truncf %52 : vector<4x112x16xf32> to vector<4x112x16xbf16>
    %c0_34 = arith.constant 0 : index
    %54 = arith.index_cast %51 : i32 to index
    %c0_35 = arith.constant 0 : index
    %c0_36 = arith.constant 0 : index
    %55 = vector.load %arg5[%c0_34, %54, %c0_35, %c0_36] : memref<1x16x112x16xbf16, #tpu.memory_space<vmem>>, vector<1x4x112x16xbf16>
    %56 = vector.shape_cast %55 : vector<1x4x112x16xbf16> to vector<4x112x16xbf16>
    %57 = vector.shape_cast %53 : vector<4x112x16xbf16> to vector<1x4x112x16xbf16>
    tpu.vector_store %arg5[%c0_34, %54, %c0_35, %c0_36], %57 {strides = array<i32>} : memref<1x16x112x16xbf16, #tpu.memory_space<vmem>>, vector<1x4x112x16xbf16>,
    %c2_i32 = arith.constant 2 : i32
    %c8_i32_37 = arith.constant 8 : i32
    %58 = arith.muli %c2_i32, %c8_i32_37 : i32
    %59 = tpu.assume_multiple %58, 8 : i32
    %c0_38 = arith.constant 0 : index
    %60 = arith.index_cast %59 : i32 to index
    %c0_39 = arith.constant 0 : index
    %c0_40 = arith.constant 0 : index
    %61 = vector.load %arg2[%c0_38, %60, %c0_39, %c0_40] : memref<1x32x224x27xbf16, #tpu.memory_space<vmem>>, vector<1x8x224x27xbf16>
    %62 = vector.shape_cast %61 : vector<1x8x224x27xbf16> to vector<8x224x27xbf16>
    %63 = vector.shape_cast %62 : vector<8x224x27xbf16> to vector<1792x27xbf16>
    %cst_41 = arith.constant dense<0.000000e+00> : vector<1792x16xf32>
    %64 = tpu.matmul %63, %1, %cst_41 {dimension_numbers = #tpu.dot_dimension_numbers<[1], [0], [0], [1], [0, 0, 1, 1], [], []>} : vector<1792x27xbf16>, vector<27x16xbf16>, vector<1792x16xf32> -> vector<1792x16xf32>
    %65 = vector.broadcast %0 : vector<1x16xf32> to vector<1792x16xf32>
    %66 = arith.addf %64, %65 : vector<1792x16xf32>
    %cst_42 = arith.constant 0.000000e+00 : f32
    %67 = vector.broadcast %cst_42 : f32 to vector<1792x16xf32>
    %68 = arith.maximumf %66, %67 : vector<1792x16xf32>
    %69 = vector.shape_cast %68 : vector<1792x16xf32> to vector<4x2x224x16xf32>
    %70 = vector.extract_strided_slice %69 {offsets = [0, 0, 0, 0], sizes = [4, 1, 224, 16], strides = [1, 1, 1, 1]} : vector<4x2x224x16xf32> to vector<4x1x224x16xf32>
    %71 = vector.shape_cast %70 : vector<4x1x224x16xf32> to vector<4x224x16xf32>
    %72 = vector.extract_strided_slice %69 {offsets = [0, 1, 0, 0], sizes = [4, 1, 224, 16], strides = [1, 1, 1, 1]} : vector<4x2x224x16xf32> to vector<4x1x224x16xf32>
    %73 = vector.shape_cast %72 : vector<4x1x224x16xf32> to vector<4x224x16xf32>
    %74 = arith.maximumf %71, %73 : vector<4x224x16xf32>
    %c0_43 = arith.constant 0 : index
    %c0_44 = arith.constant 0 : index
    %c0_45 = arith.constant 0 : index
    %75 = vector.load %arg6[%c0_43, %c0_44, %c0_45] : memref<4x224x16xf32, #tpu.memory_space<vmem>>, vector<4x224x16xf32>
    tpu.vector_store %arg6[%c0_43, %c0_44, %c0_45], %74 {strides = array<i32>} : memref<4x224x16xf32, #tpu.memory_space<vmem>>, vector<4x224x16xf32>,
    %c0_46 = arith.constant 0 : index
    %c0_47 = arith.constant 0 : index
    %c0_48 = arith.constant 0 : index
    %76 = tpu.strided_load %arg6[%c0_46, %c0_47, %c0_48] {strides = array<i32: 1, 2, 1>} : memref<4x224x16xf32, #tpu.memory_space<vmem>>, vector<4x112x16xf32>
    %c0_49 = arith.constant 0 : index
    %c1_50 = arith.constant 1 : index
    %c0_51 = arith.constant 0 : index
    %77 = tpu.strided_load %arg6[%c0_49, %c1_50, %c0_51] {strides = array<i32: 1, 2, 1>} : memref<4x224x16xf32, #tpu.memory_space<vmem>>, vector<4x112x16xf32>
    %c4_i32_52 = arith.constant 4 : i32
    %78 = arith.muli %c2_i32, %c4_i32_52 : i32
    %79 = tpu.assume_multiple %78, 4 : i32
    %80 = arith.maximumf %76, %77 : vector<4x112x16xf32>
    %81 = arith.truncf %80 : vector<4x112x16xf32> to vector<4x112x16xbf16>
    %c0_53 = arith.constant 0 : index
    %82 = arith.index_cast %79 : i32 to index
    %c0_54 = arith.constant 0 : index
    %c0_55 = arith.constant 0 : index
    %83 = vector.load %arg5[%c0_53, %82, %c0_54, %c0_55] : memref<1x16x112x16xbf16, #tpu.memory_space<vmem>>, vector<1x4x112x16xbf16>
    %84 = vector.shape_cast %83 : vector<1x4x112x16xbf16> to vector<4x112x16xbf16>
    %85 = vector.shape_cast %81 : vector<4x112x16xbf16> to vector<1x4x112x16xbf16>
    tpu.vector_store %arg5[%c0_53, %82, %c0_54, %c0_55], %85 {strides = array<i32>} : memref<1x16x112x16xbf16, #tpu.memory_space<vmem>>, vector<1x4x112x16xbf16>,
    %c3_i32 = arith.constant 3 : i32
    %c8_i32_56 = arith.constant 8 : i32
    %86 = arith.muli %c3_i32, %c8_i32_56 : i32
    %87 = tpu.assume_multiple %86, 8 : i32
    %c0_57 = arith.constant 0 : index
    %88 = arith.index_cast %87 : i32 to index
    %c0_58 = arith.constant 0 : index
    %c0_59 = arith.constant 0 : index
    %89 = vector.load %arg2[%c0_57, %88, %c0_58, %c0_59] : memref<1x32x224x27xbf16, #tpu.memory_space<vmem>>, vector<1x8x224x27xbf16>
    %90 = vector.shape_cast %89 : vector<1x8x224x27xbf16> to vector<8x224x27xbf16>
    %91 = vector.shape_cast %90 : vector<8x224x27xbf16> to vector<1792x27xbf16>
    %cst_60 = arith.constant dense<0.000000e+00> : vector<1792x16xf32>
    %92 = tpu.matmul %91, %1, %cst_60 {dimension_numbers = #tpu.dot_dimension_numbers<[1], [0], [0], [1], [0, 0, 1, 1], [], []>} : vector<1792x27xbf16>, vector<27x16xbf16>, vector<1792x16xf32> -> vector<1792x16xf32>
    %93 = vector.broadcast %0 : vector<1x16xf32> to vector<1792x16xf32>
    %94 = arith.addf %92, %93 : vector<1792x16xf32>
    %cst_61 = arith.constant 0.000000e+00 : f32
    %95 = vector.broadcast %cst_61 : f32 to vector<1792x16xf32>
    %96 = arith.maximumf %94, %95 : vector<1792x16xf32>
    %97 = vector.shape_cast %96 : vector<1792x16xf32> to vector<4x2x224x16xf32>
    %98 = vector.extract_strided_slice %97 {offsets = [0, 0, 0, 0], sizes = [4, 1, 224, 16], strides = [1, 1, 1, 1]} : vector<4x2x224x16xf32> to vector<4x1x224x16xf32>
    %99 = vector.shape_cast %98 : vector<4x1x224x16xf32> to vector<4x224x16xf32>
    %100 = vector.extract_strided_slice %97 {offsets = [0, 1, 0, 0], sizes = [4, 1, 224, 16], strides = [1, 1, 1, 1]} : vector<4x2x224x16xf32> to vector<4x1x224x16xf32>
    %101 = vector.shape_cast %100 : vector<4x1x224x16xf32> to vector<4x224x16xf32>
    %102 = arith.maximumf %99, %101 : vector<4x224x16xf32>
    %c0_62 = arith.constant 0 : index
    %c0_63 = arith.constant 0 : index
    %c0_64 = arith.constant 0 : index
    %103 = vector.load %arg6[%c0_62, %c0_63, %c0_64] : memref<4x224x16xf32, #tpu.memory_space<vmem>>, vector<4x224x16xf32>
    tpu.vector_store %arg6[%c0_62, %c0_63, %c0_64], %102 {strides = array<i32>} : memref<4x224x16xf32, #tpu.memory_space<vmem>>, vector<4x224x16xf32>,
    %c0_65 = arith.constant 0 : index
    %c0_66 = arith.constant 0 : index
    %c0_67 = arith.constant 0 : index
    %104 = tpu.strided_load %arg6[%c0_65, %c0_66, %c0_67] {strides = array<i32: 1, 2, 1>} : memref<4x224x16xf32, #tpu.memory_space<vmem>>, vector<4x112x16xf32>
    %c0_68 = arith.constant 0 : index
    %c1_69 = arith.constant 1 : index
    %c0_70 = arith.constant 0 : index
    %105 = tpu.strided_load %arg6[%c0_68, %c1_69, %c0_70] {strides = array<i32: 1, 2, 1>} : memref<4x224x16xf32, #tpu.memory_space<vmem>>, vector<4x112x16xf32>
    %c4_i32_71 = arith.constant 4 : i32
    %106 = arith.muli %c3_i32, %c4_i32_71 : i32
    %107 = tpu.assume_multiple %106, 4 : i32
    %108 = arith.maximumf %104, %105 : vector<4x112x16xf32>
    %109 = arith.truncf %108 : vector<4x112x16xf32> to vector<4x112x16xbf16>
    %c0_72 = arith.constant 0 : index
    %110 = arith.index_cast %107 : i32 to index
    %c0_73 = arith.constant 0 : index
    %c0_74 = arith.constant 0 : index
    %111 = vector.load %arg5[%c0_72, %110, %c0_73, %c0_74] : memref<1x16x112x16xbf16, #tpu.memory_space<vmem>>, vector<1x4x112x16xbf16>
    %112 = vector.shape_cast %111 : vector<1x4x112x16xbf16> to vector<4x112x16xbf16>
    %113 = vector.shape_cast %109 : vector<4x112x16xbf16> to vector<1x4x112x16xbf16>
    tpu.vector_store %arg5[%c0_72, %110, %c0_73, %c0_74], %113 {strides = array<i32>} : memref<1x16x112x16xbf16, #tpu.memory_space<vmem>>, vector<1x4x112x16xbf16>,
    %c4_i32_75 = arith.constant 4 : i32
    return
  }
  func.func @transform_0(%arg0: i32, %arg1: i32) -> (i32, i32, i32, i32) {
    %c0_i32 = arith.constant 0 : i32
    %c0_i32_0 = arith.constant 0 : i32
    %c0_i32_1 = arith.constant 0 : i32
    return %arg0, %arg1, %c0_i32, %c0_i32_0 : i32, i32, i32, i32
  }
  func.func @transform_1(%arg0: i32, %arg1: i32) -> (i32, i32) {
    %c0_i32 = arith.constant 0 : i32
    %c0_i32_0 = arith.constant 0 : i32
    %c0_i32_1 = arith.constant 0 : i32
    return %c0_i32, %c0_i32_0 : i32, i32
  }
  func.func @transform_2(%arg0: i32, %arg1: i32) -> (i32, i32) {
    %c0_i32 = arith.constant 0 : i32
    %c0_i32_0 = arith.constant 0 : i32
    %c0_i32_1 = arith.constant 0 : i32
    return %c0_i32, %c0_i32_0 : i32, i32
  }
  func.func @transform_3(%arg0: i32, %arg1: i32) -> (i32, i32, i32, i32) {
    %c0_i32 = arith.constant 0 : i32
    %c0_i32_0 = arith.constant 0 : i32
    %c0_i32_1 = arith.constant 0 : i32
    return %arg0, %arg1, %c0_i32, %c0_i32_0 : i32, i32, i32, i32
  }
}

</mosaic_0001>

<bundles_post_ra>
// kernel: tpu_custom_call.1
= control target key start
LH: loop header
LB: loop body
LE: loop exit
PB: predicated region body
PF: predicated region fallthrough
CT: control target
= control target key end

     0   :  { %s13819_s12 = smov 0   ;;  %s13821_s13 = smov 0   ;;  %s18544_s0 = inlined_call_operand.vmem [shape: bf16[2,224,224,27], index: 0, kind: input, shape index: {}]   ;;  %s18545_s1 = inlined_call_operand.vmem [shape: bf16[27,16], index: 1, kind: input, shape index: {}]   ;;  %s18546_s2 = inlined_call_operand.vmem [shape: f32[1,16], index: 2, kind: input, shape index: {}]   ;;  %s18547_s3 = inlined_call_operand.vmem [shape: bf16[2,112,112,16], index: 3, kind: output, shape index: {}]  }
   0x1   :  { %s13823_s14 = smov 0   ;;  %s13825_s15 = smov 0  }
   0x2   :  { %s13827_s16 = smov 0  }
   0x3 LB: > { %s22_s17 = sadd.s32 1, %s13788_s14  ;;  %s25_s18 = sadd.s32 1, %s13792_s15  ;;  %s13796_s16 = sphi %s13827_s16, %s13_s16   ;;  %s13792_s15 = sphi %s13825_s15, %s19109_s15   ;;  %s13788_s14 = sphi %s13823_s14, %s19108_s14   ;;  %s13784_s13 = sphi %s13821_s13, %s19107_s13   ;;  %s13780_s12 = sphi %s13819_s12, %s19106_s12  }
   0x4   : > { %p23_p0 = scmp.ge.s32.totalorder %s22_s17, 7  ;;  %p10157_p1 = scmp.ge.s32.totalorder %s13796_s16, 1 }
   0x5   : > { %p159_p2 = scmp.lt.s32.totalorder %s13796_s16, 15 }
   0x6   : > { %s19111_s17 = smov (%p23_p0, %s22_s17), 0  ;;  %s19113_s18 = smov (!%p23_p0, %s25_s18), %s13792_s15 }
   0x7   : > { %p160_p3 = pnand %p10157_p1, %p159_p2  ;;  %p27_p4 = scmp.ge.s32.totalorder %s19113_s18, 2 }
   0x9   : > { %s19115_s18 = smov (%p27_p4, %s19113_s18), 0  ;;  %163 = sbr.rel (%p160_p3) target bundleno = 1983 (0x7bf), region = 32 }
   0xe   : > { %v10616_v0 = vld [vmem:[%s18545_s1 + $0x8] sm:$0xf]  ;;  %v13253_v1 = vld [vmem:[%s18545_s1 + $0x8] sm:$0x30]  ;;  %vm1359_vm0 = vcmask 1044480   ;;  %vm1360_vm1 = vcmask 1045504  }
   0xf   : > { %v10617_v2 = vor.u32 %v13253_v1, %v10616_v0  ;;  %s10158_s23 = sshll.u32 %s13780_s12, 5  ;;  %p194_p5 = scmp.lt.s32.totalorder %s13784_s13, 1  ;;  %v13798_v3 = vmov 65535   ;;  %v13252_v7 = vld [vmem:[%s18545_s1] sm:$0xff]  ;;  %vm1022_vm2 = vcmask 220160   ;;  %vm2271_vm3 = vcmask 130048  }
  0x10   : > { %v1361_v4 = vsel %vm1359_vm0, 4294967295, %v13798_v3  ;;  %p196_p6 = scmp.lt.s32.totalorder %s10158_s23, 223  ;;  %s10160_s8 = sshll.u32 %s13780_s12, 4  ;;  %vm2722_vm4 = vcmask 125952  }
  0x11   : > { %v1362_v5 = vsel %vm1360_vm1, %v1361_v4, 0  ;;  %s19117_s13 = smov (!%p194_p5, %s13784_s13), 1  ;;  %p207_p7 = scmp.lt.s32.totalorder %s10160_s8, 111 }
  0x12   : > { %v1364_v6 = vand.u32 %v10617_v2, %v1362_v5  ;;  %s19119_s23 = smov (!%p196_p6, %s10158_s23), 223  ;;  %s13703_s24 = smul.u32 6272, %s19117_s13 }
  0x13   : > { %s13702_s27 = smul.u32 28, %s19119_s23  ;;  %s19121_s8 = smov (!%p207_p7, %s10160_s8), 111 }
  0x14   : > { %1372 = vmatpush.bf16.msra.mxu0 %v1364_v6  ;;  %3908 = vmatpush.bf16.msra.mxu1 %v1364_v6  ;;  %s13705_s9 = smul.u32 1568, %s19117_s13 }
  0x15   : > { %6331 = vmatpush.bf16.msra.mxu2 %v1364_v6  ;;  %8754 = vmatpush.bf16.msra.mxu3 %v1364_v6  ;;  %s200_s28 = sadd.s32 %s13703_s24, %s13702_s27  ;;  %s13704_s10 = smul.u32 14, %s19121_s8 }
  0x16   : > { %s10159_s29 = sshll.u32 %s200_s28, 2 }
  0x17   : > { %s13867_s5 = scalar_lea.vmem %s18544_s0, %s10159_s29  ;;  %s211_s11 = sadd.s32 %s13705_s9, %s13704_s10 }
  0x18   : > { %1373 = vmatpush.bf16.msra.mxu0 %v13252_v7  ;;  %3909 = vmatpush.bf16.msra.mxu1 %v13252_v7  ;;  %v13254_v8 = vld [vmem:[%s13867_s5] sm:$0xff]  ;;  %v13255_v12 = vld [vmem:[%s13867_s5 + $0x8] sm:$0xff]  ;;  %v13256_v16 = vld [vmem:[%s13867_s5 + $0x10] sm:$0xff]  ;;  %s10161_s12 = sshll.u32 %s211_s11, 2 }
  0x19   : > { %6332 = vmatpush.bf16.msra.mxu2 %v13252_v7  ;;  %8755 = vmatpush.bf16.msra.mxu3 %v13252_v7  ;;  %v13366_v9 = vld [vmem:[%s13867_s5 + $0x380] sm:$0xff]  ;;  %v13367_v13 = vld [vmem:[%s13867_s5 + $0x388] sm:$0xff]  ;;  %v13368_v17 = vld [vmem:[%s13867_s5 + $0x390] sm:$0xff]  ;;  %s14327_s20 = scalar_lea.vmem %s18547_s3, %s10161_s12 }
  0x1a   : > { %v13478_v10 = vld [vmem:[%s13867_s5 + $0x700] sm:$0xff]  ;;  %v13479_v14 = vld [vmem:[%s13867_s5 + $0x708] sm:$0xff]  ;;  %v13480_v18 = vld [vmem:[%s13867_s5 + $0x710] sm:$0xff] }
  0x1b   : > { %v13590_v11 = vld [vmem:[%s13867_s5 + $0xa80] sm:$0xff]  ;;  %10618 = vmatmul.msk.bf16.vlgmr.msra.gmra.mxu0 %vm1022_vm2, %v13254_v8  ;;  %11402 = vmatmul.msk.bf16.vlgmr.msra.gmra.mxu1 %vm1022_vm2, %v13366_v9  ;;  %v13591_v15 = vld [vmem:[%s13867_s5 + $0xa88] sm:$0xff]  ;;  %v13592_v19 = vld [vmem:[%s13867_s5 + $0xa90] sm:$0xff] }
  0x1c   : > { %12242 = vmatmul.msk.bf16.vlgmr.msra.gmra.mxu2 %vm1022_vm2, %v13478_v10  ;;  %13082 = vmatmul.msk.bf16.vlgmr.msra.gmra.mxu3 %vm1022_vm2, %v13590_v11  ;;  %v13257_v20 = vld [vmem:[%s13867_s5 + $0x18] sm:$0xff]  ;;  %v13258_v24 = vld [vmem:[%s13867_s5 + $0x20] sm:$0xff]  ;;  %v13259_v28 = vld [vmem:[%s13867_s5 + $0x28] sm:$0xff] }
  0x1d   : > { %v13369_v21 = vld [vmem:[%s13867_s5 + $0x398] sm:$0xff]  ;;  %v13370_v25 = vld [vmem:[%s13867_s5 + $0x3a0] sm:$0xff]  ;;  %v13371_v29 = vld [vmem:[%s13867_s5 + $0x3a8] sm:$0xff] }
  0x1e   : > { %v13481_v22 = vld [vmem:[%s13867_s5 + $0x718] sm:$0xff]  ;;  %v13482_v26 = vld [vmem:[%s13867_s5 + $0x720] sm:$0xff]  ;;  %v13483_v30 = vld [vmem:[%s13867_s5 + $0x728] sm:$0xff] }
  0x1f   : > { %v13593_v23 = vld [vmem:[%s13867_s5 + $0xa98] sm:$0xff]  ;;  %v13594_v27 = vld [vmem:[%s13867_s5 + $0xaa0] sm:$0xff]  ;;  %v13595_v31 = vld [vmem:[%s13867_s5 + $0xaa8] sm:$0xff] }
  0x20   : > { %v13260_v32 = vld [vmem:[%s13867_s5 + $0x30] sm:$0xff]  ;;  %v13261_v36 = vld [vmem:[%s13867_s5 + $0x38] sm:$0xff]  ;;  %v13262_v40 = vld [vmem:[%s13867_s5 + $0x40] sm:$0xff] }
  0x21   : > { %v13372_v33 = vld [vmem:[%s13867_s5 + $0x3b0] sm:$0xff]  ;;  %v13373_v37 = vld [vmem:[%s13867_s5 + $0x3b8] sm:$0xff]  ;;  %v13374_v41 = vld [vmem:[%s13867_s5 + $0x3c0] sm:$0xff] }
  0x22   : > { %v13484_v34 = vld [vmem:[%s13867_s5 + $0x730] sm:$0xff]  ;;  %v13485_v38 = vld [vmem:[%s13867_s5 + $0x738] sm:$0xff]  ;;  %v13486_v44 = vld [vmem:[%s13867_s5 + $0x740] sm:$0xff] }
  0x23   : > { %v13596_v35 = vld [vmem:[%s13867_s5 + $0xab0] sm:$0xff]  ;;  %v13597_v39 = vld [vmem:[%s13867_s5 + $0xab8] sm:$0xff]  ;;  %v13598_v45 = vld [vmem:[%s13867_s5 + $0xac0] sm:$0xff] }
  0x24   : > { %v13263_v52 = vld [vmem:[%s13867_s5 + $0x48] sm:$0xff]  ;;  %v13264_v0 = vld [vmem:[%s13867_s5 + $0x50] sm:$0xff] }
  0x25   : > { %v13375_v53 = vld [vmem:[%s13867_s5 + $0x3c8] sm:$0xff]  ;;  %v13376_v1 = vld [vmem:[%s13867_s5 + $0x3d0] sm:$0xff] }
  0x26   : > { %v13487_v56 = vld [vmem:[%s13867_s5 + $0x748] sm:$0xff]  ;;  %v13488_v4 = vld [vmem:[%s13867_s5 + $0x750] sm:$0xff] }
  0x27   : > { %v13599_v57 = vld [vmem:[%s13867_s5 + $0xac8] sm:$0xff]  ;;  %v13600_v5 = vld [vmem:[%s13867_s5 + $0xad0] sm:$0xff] }
  0x2b   : > { %10619 = vmatmul.msk.bf16.gmra.mxu0 %vm1022_vm2, %v13255_v12  ;;  %11403 = vmatmul.msk.bf16.gmra.mxu1 %vm1022_vm2, %v13367_v13  ;;  %v13265_v12 = vld [vmem:[%s13867_s5 + $0x58] sm:$0xff] }
  0x2c   : > { %12243 = vmatmul.msk.bf16.gmra.mxu2 %vm1022_vm2, %v13479_v14  ;;  %13083 = vmatmul.msk.bf16.gmra.mxu3 %vm1022_vm2, %v13591_v15  ;;  %v13377_v13 = vld [vmem:[%s13867_s5 + $0x3d8] sm:$0xff] }
  0x3b   : > { %10620 = vmatmul.msk.bf16.gmra.mxu0 %vm1022_vm2, %v13256_v16  ;;  %11404 = vmatmul.msk.bf16.gmra.mxu1 %vm1022_vm2, %v13368_v17  ;;  %v13489_v16 = vld [vmem:[%s13867_s5 + $0x758] sm:$0xff] }
  0x3c   : > { %12244 = vmatmul.msk.bf16.gmra.mxu2 %vm1022_vm2, %v13480_v18  ;;  %13084 = vmatmul.msk.bf16.gmra.mxu3 %vm1022_vm2, %v13592_v19  ;;  %v13601_v17 = vld [vmem:[%s13867_s5 + $0xad8] sm:$0xff] }
  0x4b   : > { %10621 = vmatmul.msk.bf16.gmra.mxu0 %vm1022_vm2, %v13257_v20  ;;  %11405 = vmatmul.msk.bf16.gmra.mxu1 %vm1022_vm2, %v13369_v21 }
  0x4c   : > { %12245 = vmatmul.msk.bf16.gmra.mxu2 %vm1022_vm2, %v13481_v22  ;;  %13085 = vmatmul.msk.bf16.gmra.mxu3 %vm1022_vm2, %v13593_v23 }
  0x5b   : > { %10622 = vmatmul.msk.bf16.gmra.mxu0 %vm1022_vm2, %v13258_v24  ;;  %11406 = vmatmul.msk.bf16.gmra.mxu1 %vm1022_vm2, %v13370_v25  ;;  %v13266_v24 = vld [vmem:[%s13867_s5 + $0x60] sm:$0xff] }
  0x5c   : > { %12246 = vmatmul.msk.bf16.gmra.mxu2 %vm1022_vm2, %v13482_v26  ;;  %13086 = vmatmul.msk.bf16.gmra.mxu3 %vm1022_vm2, %v13594_v27  ;;  %v13378_v25 = vld [vmem:[%s13867_s5 + $0x3e0] sm:$0xff] }
  0x6b   : > { %10623 = vmatmul.msk.bf16.gmra.mxu0 %vm1022_vm2, %v13259_v28  ;;  %11407 = vmatmul.msk.bf16.gmra.mxu1 %vm1022_vm2, %v13371_v29  ;;  %v13490_v28 = vld [vmem:[%s13867_s5 + $0x760] sm:$0xff] }
  0x6c   : > { %12247 = vmatmul.msk.bf16.gmra.mxu2 %vm1022_vm2, %v13483_v30  ;;  %13087 = vmatmul.msk.bf16.gmra.mxu3 %vm1022_vm2, %v13595_v31  ;;  %v13602_v29 = vld [vmem:[%s13867_s5 + $0xae0] sm:$0xff] }
  0x7b   : > { %10624 = vmatmul.msk.bf16.gmra.mxu0 %vm1022_vm2, %v13260_v32  ;;  %11408 = vmatmul.msk.bf16.gmra.mxu1 %vm1022_vm2, %v13372_v33 }
  0x7c   : > { %12248 = vmatmul.msk.bf16.gmra.mxu2 %vm1022_vm2, %v13484_v34  ;;  %13088 = vmatmul.msk.bf16.gmra.mxu3 %vm1022_vm2, %v13596_v35 }
  0x8b   : > { %10625 = vmatmul.msk.bf16.gmra.mxu0 %vm1022_vm2, %v13261_v36  ;;  %11409 = vmatmul.msk.bf16.gmra.mxu1 %vm1022_vm2, %v13373_v37  ;;  %v13267_v36 = vld [vmem:[%s13867_s5 + $0x68] sm:$0xff] }
  0x8c   : > { %12249 = vmatmul.msk.bf16.gmra.mxu2 %vm1022_vm2, %v13485_v38  ;;  %13089 = vmatmul.msk.bf16.gmra.mxu3 %vm1022_vm2, %v13597_v39  ;;  %v13379_v37 = vld [vmem:[%s13867_s5 + $0x3e8] sm:$0xff] }
  0x98   : > { %v13935_v42 = vpop.f32.mrf.mxu0  ;;  %v13937_v43 = vpop.f32.mrf.mxu1 }
  0x9b   : > { %10626 = vmatmul.msk.bf16.gmra.mxu0 %vm1022_vm2, %v13262_v40  ;;  %11410 = vmatmul.msk.bf16.gmra.mxu1 %vm1022_vm2, %v13374_v41  ;;  %v13491_v40 = vld [vmem:[%s13867_s5 + $0x768] sm:$0xff] }
  0x9c   : > { %12250 = vmatmul.msk.bf16.gmra.mxu2 %vm1022_vm2, %v13486_v44  ;;  %13090 = vmatmul.msk.bf16.gmra.mxu3 %vm1022_vm2, %v13598_v45  ;;  %v13603_v41 = vld [vmem:[%s13867_s5 + $0xae8] sm:$0xff] }
  0x9f   : > { %v13945_v46 = vpop.f32.mrf.mxu2  ;;  %v13947_v47 = vpop.f32.mrf.mxu3 }
  0xa0   : > { %v13949_v48 = vpop.f32.mrf.mxu0  ;;  %v13951_v49 = vpop.f32.mrf.mxu1 }
  0xa7   : > { %v13953_v50 = vpop.f32.mrf.mxu2  ;;  %v13955_v51 = vpop.f32.mrf.mxu3 }
  0xa8   : > { %v13959_v54 = vpop.f32.mrf.mxu0  ;;  %v13961_v55 = vpop.f32.mrf.mxu1 }
  0xab   : > { %10627 = vmatmul.msk.bf16.gmra.mxu0 %vm1022_vm2, %v13263_v52  ;;  %11411 = vmatmul.msk.bf16.gmra.mxu1 %vm1022_vm2, %v13375_v53 }
  0xac   : > { %12251 = vmatmul.msk.bf16.gmra.mxu2 %vm1022_vm2, %v13487_v56  ;;  %13091 = vmatmul.msk.bf16.gmra.mxu3 %vm1022_vm2, %v13599_v57 }
  0xaf   : > { %v13969_v58 = vpop.f32.mrf.mxu2  ;;  %v13971_v59 = vpop.f32.mrf.mxu3 }
  0xb0   : > { %v13973_v60 = vpop.f32.mrf.mxu0  ;;  %v13975_v61 = vpop.f32.mrf.mxu1 }
  0xb7   : > { %v13977_v62 = vpop.f32.mrf.mxu2  ;;  %v13979_v63 = vpop.f32.mrf.mxu3 }
  0xb8   : > { %v13983_v2 = vpop.f32.mrf.mxu0  ;;  %v13985_v3 = vpop.f32.mrf.mxu1 }
  0xbb   : > { %10628 = vmatmul.msk.bf16.gmra.mxu0 %vm1022_vm2, %v13264_v0  ;;  %11412 = vmatmul.msk.bf16.gmra.mxu1 %vm1022_vm2, %v13376_v1  ;;  %v13268_v0 = vld [vmem:[%s13867_s5 + $0x70] sm:$0xff] }
  0xbc   : > { %12252 = vmatmul.msk.bf16.gmra.mxu2 %vm1022_vm2, %v13488_v4  ;;  %13092 = vmatmul.msk.bf16.gmra.mxu3 %vm1022_vm2, %v13600_v5  ;;  %v13380_v1 = vld [vmem:[%s13867_s5 + $0x3f0] sm:$0xff] }
  0xbf   : > { %v13993_v6 = vpop.f32.mrf.mxu2  ;;  %v13995_v7 = vpop.f32.mrf.mxu3 }
  0xc0   : > { %v13997_v8 = vpop.f32.mrf.mxu0  ;;  %v13999_v9 = vpop.f32.mrf.mxu1 }
  0xc7   : > { %v14001_v10 = vpop.f32.mrf.mxu2  ;;  %v14003_v11 = vpop.f32.mrf.mxu3 }
  0xc8   : > { %v14007_v14 = vpop.f32.mrf.mxu0  ;;  %v14009_v15 = vpop.f32.mrf.mxu1 }
  0xcb   : > { %10629 = vmatmul.msk.bf16.gmra.mxu0 %vm1022_vm2, %v13265_v12  ;;  %11413 = vmatmul.msk.bf16.gmra.mxu1 %vm1022_vm2, %v13377_v13  ;;  %v13492_v12 = vld [vmem:[%s13867_s5 + $0x770] sm:$0xff] }
  0xcc   : > { %12253 = vmatmul.msk.bf16.gmra.mxu2 %vm1022_vm2, %v13489_v16  ;;  %13093 = vmatmul.msk.bf16.gmra.mxu3 %vm1022_vm2, %v13601_v17  ;;  %v13604_v13 = vld [vmem:[%s13867_s5 + $0xaf0] sm:$0xff] }
  0xcf   : > { %v14017_v18 = vpop.f32.mrf.mxu2  ;;  %v14019_v19 = vpop.f32.mrf.mxu3 }
  0xd0   : > { %v14021_v20 = vpop.f32.mrf.mxu0  ;;  %v14023_v21 = vpop.f32.mrf.mxu1 }
  0xd7   : > { %v14025_v22 = vpop.f32.mrf.mxu2  ;;  %v14027_v23 = vpop.f32.mrf.mxu3 }
  0xd8   : > { %v14031_v26 = vpop.f32.mrf.mxu0  ;;  %v14033_v27 = vpop.f32.mrf.mxu1 }
  0xdb   : > { %10630 = vmatmul.msk.bf16.gmra.mxu0 %vm1022_vm2, %v13266_v24  ;;  %11414 = vmatmul.msk.bf16.gmra.mxu1 %vm1022_vm2, %v13378_v25 }
  0xdc   : > { %12254 = vmatmul.msk.bf16.gmra.mxu2 %vm1022_vm2, %v13490_v28  ;;  %13094 = vmatmul.msk.bf16.gmra.mxu3 %vm1022_vm2, %v13602_v29 }
  0xdf   : > { %v14041_v30 = vpop.f32.mrf.mxu2  ;;  %v14043_v31 = vpop.f32.mrf.mxu3 }
  0xe0   : > { %v14045_v32 = vpop.f32.mrf.mxu0  ;;  %v14047_v33 = vpop.f32.mrf.mxu1 }
  0xe7   : > { %v14049_v34 = vpop.f32.mrf.mxu2  ;;  %v14051_v35 = vpop.f32.mrf.mxu3 }
  0xe8   : > { %18548 = vst [vmem:[#allocation3_spill] sm:$0xff] %v14051_v35  ;;  %v14055_v38 = vpop.f32.mrf.mxu0  ;;  %v14057_v39 = vpop.f32.mrf.mxu1 }
  0xeb   : > { %10631 = vmatmul.msk.bf16.gmra.mxu0 %vm1022_vm2, %v13267_v36  ;;  %11415 = vmatmul.msk.bf16.gmra.mxu1 %vm1022_vm2, %v13379_v37  ;;  %v13269_v36 = vld [vmem:[%s13867_s5 + $0x78] sm:$0xff] }
  0xec   : > { %12255 = vmatmul.msk.bf16.gmra.mxu2 %vm1022_vm2, %v13491_v40  ;;  %13095 = vmatmul.msk.bf16.gmra.mxu3 %vm1022_vm2, %v13603_v41  ;;  %v13381_v37 = vld [vmem:[%s13867_s5 + $0x3f8] sm:$0xff] }
  0xef   : > { %v14065_v44 = vpop.f32.mrf.mxu2  ;;  %v14067_v45 = vpop.f32.mrf.mxu3 }
  0xf0   : > { %18549 = vst [vmem:[#allocation4_spill] sm:$0xff] %v14065_v44  ;;  %v14069_v52 = vpop.f32.mrf.mxu0  ;;  %v14071_v53 = vpop.f32.mrf.mxu1 }
  0xf1   : > { %18550 = vst [vmem:[#allocation5_spill] sm:$0xff] %v14067_v45  ;;  %v13501_v45 = vld [vmem:[%s13867_s5 + $0x7b8] sm:$0xff] }
  0xf7   : > { %v14073_v56 = vpop.f32.mrf.mxu2  ;;  %v14075_v57 = vpop.f32.mrf.mxu3 }
  0xf8   : > { %18551 = vst [vmem:[#allocation6_spill] sm:$0xff] %v14073_v56  ;;  %v14079_v4 = vpop.f32.mrf.mxu0  ;;  %v14081_v5 = vpop.f32.mrf.mxu1 }
  0xf9   : > { %18552 = vst [vmem:[#allocation7_spill] sm:$0xff] %v14075_v57 }
  0xfa   : > { %18553 = vst [vmem:[#allocation8_spill] sm:$0xff] %v14079_v4 }
  0xfb   : > { %18554 = vst [vmem:[#allocation9_spill] sm:$0xff] %v14081_v5  ;;  %10632 = vmatmul.msk.bf16.gmra.mxu0 %vm1022_vm2, %v13268_v0  ;;  %11416 = vmatmul.msk.bf16.gmra.mxu1 %vm1022_vm2, %v13380_v1  ;;  %v13493_v0 = vld [vmem:[%s13867_s5 + $0x778] sm:$0xff] }
  0xfc   : > { %12256 = vmatmul.msk.bf16.gmra.mxu2 %vm1022_vm2, %v13492_v12  ;;  %13096 = vmatmul.msk.bf16.gmra.mxu3 %vm1022_vm2, %v13604_v13  ;;  %v13605_v1 = vld [vmem:[%s13867_s5 + $0xaf8] sm:$0xff] }
  0xff   : > { %v14089_v16 = vpop.f32.mrf.mxu2  ;;  %v14091_v17 = vpop.f32.mrf.mxu3 }
 0x100   : > { %18555 = vst [vmem:[#allocation10_spill] sm:$0xff] %v14089_v16  ;;  %v14093_v24 = vpop.f32.mrf.mxu0  ;;  %v14095_v25 = vpop.f32.mrf.mxu1  ;;  %v13270_v16 = vld [vmem:[%s13867_s5 + $0x80] sm:$0xff] }
 0x101   : > { %18556 = vst [vmem:[#allocation11_spill] sm:$0xff] %v14091_v17 }
 0x102   : > { %18557 = vst [vmem:[#allocation12_spill] sm:$0xff] %v14093_v24 }
 0x103   : > { %18558 = vst [vmem:[#allocation13_spill] sm:$0xff] %v14095_v25  ;;  %v13389_v25 = vld [vmem:[%s13867_s5 + $0x438] sm:$0xff] }
 0x107   : > { %v14097_v28 = vpop.f32.mrf.mxu2  ;;  %v14099_v29 = vpop.f32.mrf.mxu3 }
 0x108   : > { %18559 = vst [vmem:[#allocation14_spill] sm:$0xff] %v14097_v28  ;;  %v14103_v40 = vpop.f32.mrf.mxu0  ;;  %v14105_v41 = vpop.f32.mrf.mxu1 }
 0x109   : > { %18560 = vst [vmem:[#allocation15_spill] sm:$0xff] %v14099_v29 }
 0x10a   : > { %18561 = vst [vmem:[#allocation16_spill] sm:$0xff] %v14103_v40 }
 0x10b   : > { %18562 = vst [vmem:[#allocation17_spill] sm:$0xff] %v14105_v41  ;;  %10633 = vmatmul.msk.bf16.gmra.mxu0 %vm1022_vm2, %v13269_v36  ;;  %11417 = vmatmul.msk.bf16.gmra.mxu1 %vm1022_vm2, %v13381_v37  ;;  %v13382_v36 = vld [vmem:[%s13867_s5 + $0x400] sm:$0xff] }
 0x10c   : > { %12257 = vmatmul.msk.bf16.gmra.mxu2 %vm1022_vm2, %v13493_v0  ;;  %13097 = vmatmul.msk.bf16.gmra.mxu3 %vm1022_vm2, %v13605_v1  ;;  %v13494_v1 = vld [vmem:[%s13867_s5 + $0x780] sm:$0xff] }
 0x10f   : > { %v14113_v12 = vpop.f32.mrf.mxu2  ;;  %v14115_v13 = vpop.f32.mrf.mxu3 }
 0x110   : > { %18563 = vst [vmem:[#allocation18_spill] sm:$0xff] %v14113_v12  ;;  %v14117_v29 = vpop.f32.mrf.mxu0  ;;  %v14119_v17 = vpop.f32.mrf.mxu1  ;;  %v13606_v12 = vld [vmem:[%s13867_s5 + $0xb00] sm:$0xff] }
 0x111   : > { %18564 = vst [vmem:[#allocation19_spill] sm:$0xff] %v14115_v13 }
 0x112   : > { %18565 = vst [vmem:[#allocation20_spill] sm:$0xff] %v14117_v29  ;;  %v13271_v29 = vld [vmem:[%s13867_s5 + $0x88] sm:$0xff] }
 0x113   : > { %18566 = vst [vmem:[#allocation21_spill] sm:$0xff] %v14119_v17 }
 0x117   : > { %v14121_v41 = vpop.f32.mrf.mxu2  ;;  %v14123_v28 = vpop.f32.mrf.mxu3 }
 0x118   : > { %18567 = vst [vmem:[#allocation22_spill] sm:$0xff] %v14121_v41  ;;  %v14127_v37 = vpop.f32.mrf.mxu0  ;;  %v14129_v0 = vpop.f32.mrf.mxu1 }
 0x119   : > { %18568 = vst [vmem:[#allocation23_spill] sm:$0xff] %v14123_v28 }
 0x11a   : > { %18569 = vst [vmem:[#allocation24_spill] sm:$0xff] %v14127_v37 }
 0x11b   : > { %18570 = vst [vmem:[#allocation25_spill] sm:$0xff] %v14129_v0  ;;  %10634 = vmatmul.msk.bf16.gmra.mxu0 %vm1022_vm2, %v13270_v16  ;;  %11418 = vmatmul.msk.bf16.gmra.mxu1 %vm1022_vm2, %v13382_v36  ;;  %v13383_v16 = vld [vmem:[%s13867_s5 + $0x408] sm:$0xff] }
 0x11c   : > { %12258 = vmatmul.msk.bf16.gmra.mxu2 %vm1022_vm2, %v13494_v1  ;;  %13098 = vmatmul.msk.bf16.gmra.mxu3 %vm1022_vm2, %v13606_v12  ;;  %v13495_v12 = vld [vmem:[%s13867_s5 + $0x788] sm:$0xff] }
 0x11f   : > { %v14137_v28 = vpop.f32.mrf.mxu2  ;;  %v14139_v13 = vpop.f32.mrf.mxu3 }
 0x120   : > { %18571 = vst [vmem:[#allocation26_spill] sm:$0xff] %v14137_v28  ;;  %v14141_v41 = vpop.f32.mrf.mxu0  ;;  %v14143_v37 = vpop.f32.mrf.mxu1  ;;  %v13607_v28 = vld [vmem:[%s13867_s5 + $0xb08] sm:$0xff] }
 0x121   : > { %18572 = vst [vmem:[#allocation27_spill] sm:$0xff] %v14139_v13 }
 0x122   : > { %18573 = vst [vmem:[#allocation28_spill] sm:$0xff] %v14141_v41  ;;  %v13272_v41 = vld [vmem:[%s13867_s5 + $0x90] sm:$0xff] }
 0x123   : > { %18574 = vst [vmem:[#allocation29_spill] sm:$0xff] %v14143_v37 }
 0x127   : > { %v14145_v0 = vpop.f32.mrf.mxu2  ;;  %v14147_v17 = vpop.f32.mrf.mxu3 }
 0x128   : > { %18575 = vst [vmem:[#allocation30_spill] sm:$0xff] %v14145_v0  ;;  %v14151_v36 = vpop.f32.mrf.mxu0  ;;  %v14153_v1 = vpop.f32.mrf.mxu1 }
 0x129   : > { %18576 = vst [vmem:[#allocation31_spill] sm:$0xff] %v14147_v17 }
 0x12a   : > { %18577 = vst [vmem:[#allocation32_spill] sm:$0xff] %v14151_v36 }
 0x12b   : > { %18578 = vst [vmem:[#allocation33_spill] sm:$0xff] %v14153_v1  ;;  %10635 = vmatmul.msk.bf16.gmra.mxu0 %vm1022_vm2, %v13271_v29  ;;  %11419 = vmatmul.msk.bf16.gmra.mxu1 %vm1022_vm2, %v13383_v16  ;;  %v13384_v29 = vld [vmem:[%s13867_s5 + $0x410] sm:$0xff] }
 0x12c   : > { %12259 = vmatmul.msk.bf16.gmra.mxu2 %vm1022_vm2, %v13495_v12  ;;  %13099 = vmatmul.msk.bf16.gmra.mxu3 %vm1022_vm2, %v13607_v28  ;;  %v13496_v28 = vld [vmem:[%s13867_s5 + $0x790] sm:$0xff] }
 0x12f   : > { %v14161_v17 = vpop.f32.mrf.mxu2  ;;  %v14163_v13 = vpop.f32.mrf.mxu3 }
 0x130   : > { %18579 = vst [vmem:[#allocation34_spill] sm:$0xff] %v14161_v17  ;;  %v14165_v0 = vpop.f32.mrf.mxu0  ;;  %v14167_v36 = vpop.f32.mrf.mxu1  ;;  %v13608_v17 = vld [vmem:[%s13867_s5 + $0xb10] sm:$0xff] }
 0x131   : > { %18580 = vst [vmem:[#allocation35_spill] sm:$0xff] %v14163_v13 }
 0x132   : > { %18581 = vst [vmem:[#allocation36_spill] sm:$0xff] %v14165_v0  ;;  %v13273_v0 = vld [vmem:[%s13867_s5 + $0x98] sm:$0xff] }
 0x133   : > { %18582 = vst [vmem:[#allocation37_spill] sm:$0xff] %v14167_v36 }
 0x137   : > { %v14169_v1 = vpop.f32.mrf.mxu2  ;;  %v14171_v37 = vpop.f32.mrf.mxu3 }
 0x138   : > { %18583 = vst [vmem:[#allocation38_spill] sm:$0xff] %v14169_v1  ;;  %v14175_v16 = vpop.f32.mrf.mxu0  ;;  %v14177_v12 = vpop.f32.mrf.mxu1 }
 0x139   : > { %18584 = vst [vmem:[#allocation39_spill] sm:$0xff] %v14171_v37 }
 0x13a   : > { %18585 = vst [vmem:[#allocation40_spill] sm:$0xff] %v14175_v16 }
 0x13b   : > { %18586 = vst [vmem:[#allocation41_spill] sm:$0xff] %v14177_v12  ;;  %10636 = vmatmul.msk.bf16.gmra.mxu0 %vm1022_vm2, %v13272_v41  ;;  %11420 = vmatmul.msk.bf16.gmra.mxu1 %vm1022_vm2, %v13384_v29  ;;  %v13385_v41 = vld [vmem:[%s13867_s5 + $0x418] sm:$0xff] }
 0x13c   : > { %12260 = vmatmul.msk.bf16.gmra.mxu2 %vm1022_vm2, %v13496_v28  ;;  %13100 = vmatmul.msk.bf16.gmra.mxu3 %vm1022_vm2, %v13608_v17  ;;  %v13497_v17 = vld [vmem:[%s13867_s5 + $0x798] sm:$0xff] }
 0x13f   : > { %v14185_v37 = vpop.f32.mrf.mxu2  ;;  %v14187_v13 = vpop.f32.mrf.mxu3 }
 0x140   : > { %18587 = vst [vmem:[#allocation42_spill] sm:$0xff] %v14185_v37  ;;  %v14189_v1 = vpop.f32.mrf.mxu0  ;;  %v14191_v16 = vpop.f32.mrf.mxu1  ;;  %v13609_v37 = vld [vmem:[%s13867_s5 + $0xb18] sm:$0xff] }
 0x141   : > { %18588 = vst [vmem:[#allocation43_spill] sm:$0xff] %v14187_v13 }
 0x142   : > { %18589 = vst [vmem:[#allocation44_spill] sm:$0xff] %v14189_v1  ;;  %v13274_v1 = vld [vmem:[%s13867_s5 + $0xa0] sm:$0xff] }
 0x143   : > { %18590 = vst [vmem:[#allocation45_spill] sm:$0xff] %v14191_v16 }
 0x147   : > { %v14193_v12 = vpop.f32.mrf.mxu2  ;;  %v14195_v36 = vpop.f32.mrf.mxu3 }
 0x148   : > { %18591 = vst [vmem:[#allocation46_spill] sm:$0xff] %v14193_v12  ;;  %v14199_v29 = vpop.f32.mrf.mxu0  ;;  %v14201_v28 = vpop.f32.mrf.mxu1 }
 0x149   : > { %18592 = vst [vmem:[#allocation47_spill] sm:$0xff] %v14195_v36 }
 0x14a   : > { %18593 = vst [vmem:[#allocation48_spill] sm:$0xff] %v14199_v29 }
 0x14b   : > { %18594 = vst [vmem:[#allocation49_spill] sm:$0xff] %v14201_v28  ;;  %10637 = vmatmul.msk.bf16.gmra.mxu0 %vm1022_vm2, %v13273_v0  ;;  %11421 = vmatmul.msk.bf16.gmra.mxu1 %vm1022_vm2, %v13385_v41  ;;  %v13386_v0 = vld [vmem:[%s13867_s5 + $0x420] sm:$0xff] }
 0x14c   : > { %12261 = vmatmul.msk.bf16.gmra.mxu2 %vm1022_vm2, %v13497_v17  ;;  %13101 = vmatmul.msk.bf16.gmra.mxu3 %vm1022_vm2, %v13609_v37  ;;  %v13498_v37 = vld [vmem:[%s13867_s5 + $0x7a0] sm:$0xff] }
 0x14f   : > { %v14209_v36 = vpop.f32.mrf.mxu2  ;;  %v14211_v13 = vpop.f32.mrf.mxu3 }
 0x150   : > { %18595 = vst [vmem:[#allocation50_spill] sm:$0xff] %v14209_v36  ;;  %v14213_v12 = vpop.f32.mrf.mxu0  ;;  %v14215_v29 = vpop.f32.mrf.mxu1  ;;  %v13610_v36 = vld [vmem:[%s13867_s5 + $0xb20] sm:$0xff] }
 0x151   : > { %18596 = vst [vmem:[#allocation51_spill] sm:$0xff] %v14211_v13 }
 0x152   : > { %18597 = vst [vmem:[#allocation52_spill] sm:$0xff] %v14213_v12  ;;  %v13275_v12 = vld [vmem:[%s13867_s5 + $0xa8] sm:$0xff] }
 0x153   : > { %18598 = vst [vmem:[#allocation53_spill] sm:$0xff] %v14215_v29 }
 0x157   : > { %v14217_v28 = vpop.f32.mrf.mxu2  ;;  %v14219_v16 = vpop.f32.mrf.mxu3 }
 0x158   : > { %18599 = vst [vmem:[#allocation54_spill] sm:$0xff] %v14217_v28  ;;  %v14223_v41 = vpop.f32.mrf.mxu0  ;;  %v14225_v17 = vpop.f32.mrf.mxu1 }
 0x159   : > { %18600 = vst [vmem:[#allocation55_spill] sm:$0xff] %v14219_v16 }
 0x15a   : > { %18601 = vst [vmem:[#allocation56_spill] sm:$0xff] %v14223_v41 }
 0x15b   : > { %18602 = vst [vmem:[#allocation57_spill] sm:$0xff] %v14225_v17  ;;  %10638 = vmatmul.msk.bf16.gmra.mxu0 %vm1022_vm2, %v13274_v1  ;;  %11422 = vmatmul.msk.bf16.gmra.mxu1 %vm1022_vm2, %v13386_v0  ;;  %v13387_v1 = vld [vmem:[%s13867_s5 + $0x428] sm:$0xff] }
 0x15c   : > { %12262 = vmatmul.msk.bf16.gmra.mxu2 %vm1022_vm2, %v13498_v37  ;;  %13102 = vmatmul.msk.bf16.gmra.mxu3 %vm1022_vm2, %v13610_v36  ;;  %v13499_v36 = vld [vmem:[%s13867_s5 + $0x7a8] sm:$0xff] }
 0x15d   : > { %v13611_v37 = vld [vmem:[%s13867_s5 + $0xb28] sm:$0xff] }
 0x15f   : > { %v14233_v16 = vpop.f32.mrf.mxu2  ;;  %v14235_v13 = vpop.f32.mrf.mxu3 }
 0x160   : > { %18603 = vst [vmem:[#allocation58_spill] sm:$0xff] %v14233_v16  ;;  %v14237_v28 = vpop.f32.mrf.mxu0  ;;  %v14239_v41 = vpop.f32.mrf.mxu1  ;;  %v13388_v16 = vld [vmem:[%s13867_s5 + $0x430] sm:$0xff] }
 0x161   : > { %18604 = vst [vmem:[#allocation59_spill] sm:$0xff] %v14235_v13 }
 0x162   : > { %18605 = vst [vmem:[#allocation60_spill] sm:$0xff] %v14237_v28 }
 0x163   : > { %18606 = vst [vmem:[#allocation61_spill] sm:$0xff] %v14239_v41  ;;  %v13612_v41 = vld [vmem:[%s13867_s5 + $0xb30] sm:$0xff] }
 0x167   : > { %v14241_v17 = vpop.f32.mrf.mxu2  ;;  %v14243_v29 = vpop.f32.mrf.mxu3 }
 0x168   : > { %18607 = vst [vmem:[#allocation62_spill] sm:$0xff] %v14241_v17  ;;  %v14247_v40 = vpop.f32.mrf.mxu0  ;;  %v14249_v0 = vpop.f32.mrf.mxu1 }
 0x169   : > { %18608 = vst [vmem:[#allocation63_spill] sm:$0xff] %v14243_v29 }
 0x16a   : > { %18609 = vst [vmem:[#allocation64_spill] sm:$0xff] %v14247_v40 }
 0x16b   : > { %18610 = vst [vmem:[#allocation65_spill] sm:$0xff] %v14249_v0  ;;  %10639 = vmatmul.msk.bf16.gmra.mxu0 %vm1022_vm2, %v13275_v12  ;;  %11423 = vmatmul.msk.bf16.gmra.mxu1 %vm1022_vm2, %v13387_v1  ;;  %v14268_v12 = vld [vmem:[%s18546_s2] ss:$0 sm:$0xff] }
 0x16c   : > { %12263 = vmatmul.msk.bf16.gmra.mxu2 %vm1022_vm2, %v13499_v36  ;;  %13103 = vmatmul.msk.bf16.gmra.mxu3 %vm1022_vm2, %v13611_v37  ;;  %v1376_v1 = vadd.f32 %v14268_v12, %v13935_v42 }
 0x16e   : > { %v1935_v28 = vmax.f32 %v1376_v1, 0.0 }
 0x16f   : > { %v14257_v29 = vpop.f32.mrf.mxu2  ;;  %v14259_v13 = vpop.f32.mrf.mxu3 }
 0x170   : > { %18611 = vst [vmem:[#allocation66_spill] sm:$0xff] %v14257_v29  ;;  %v14261_v17 = vpop.f32.mrf.mxu0  ;;  %v14263_v0 = vpop.f32.mrf.mxu1  ;;  %v13276_v29 = vld [vmem:[%s13867_s5 + $0xb0] sm:$0xff] }
 0x171   : > { %18612 = vst [vmem:[#allocation67_spill] sm:$0xff] %v14259_v13 }
 0x172   : > { %18613 = vst [vmem:[#allocation68_spill] sm:$0xff] %v14261_v17  ;;  %v13500_v17 = vld [vmem:[%s13867_s5 + $0x7b0] sm:$0xff] }
 0x173   : > { %18614 = vst [vmem:[#allocation69_spill] sm:$0xff] %v14263_v0 }
 0x177   : > { %v14272_v36 = vpop.f32.mrf.mxu2  ;;  %v14274_v37 = vpop.f32.mrf.mxu3 }
 0x178   : > { %18615 = vst [vmem:[#allocation70_spill] sm:$0xff] %v14272_v36  ;;  %v1445_v13 = vpop.f32.mrf.mxu0  ;;  %v3981_v40 = vpop.f32.mrf.mxu1 }
 0x179   : > { %18616 = vst [vmem:[#allocation71_spill] sm:$0xff] %v14274_v37  ;;  %v1446_v0 = vadd.f32 %v14268_v12, %v1445_v13  ;;  %v1378_v37 = vadd.f32 %v14268_v12, %v13949_v48 }
 0x17b   : > { %v1963_v57 = vmax.f32 %v1446_v0, 0.0  ;;  %10640 = vmatmul.msk.bf16.gmra.mxu0 %vm1022_vm2, %v13276_v29  ;;  %11424 = vmatmul.msk.bf16.gmra.mxu1 %vm1022_vm2, %v13388_v16 }
 0x17c   : > { %12264 = vmatmul.msk.bf16.gmra.mxu2 %vm1022_vm2, %v13500_v17  ;;  %13104 = vmatmul.msk.bf16.gmra.mxu3 %vm1022_vm2, %v13612_v41  ;;  %v1936_v17 = vmax.f32 %v1378_v37, 0.0  ;;  %v3912_v41 = vadd.f32 %v14268_v12, %v13937_v43 }
 0x17d   : > { %v2159_v42 = vmax.f32 %v1935_v28, %v1963_v57  ;;  %v3982_v57 = vadd.f32 %v14268_v12, %v3981_v40  ;;  %v3914_v40 = vadd.f32 %v14268_v12, %v13951_v49 }
 0x17f   : > { %2272 = vst.msk [vmem:[#allocation2] sm:$0xff] %vm2271_vm3, %v2159_v42  ;;  %v6404_v13 = vpop.f32.mrf.mxu2  ;;  %v14289_v0 = vpop.f32.mrf.mxu3  ;;  %v1381_v42 = vadd.f32 %v14268_v12, %v13959_v54  ;;  %v4499_v5 = vmax.f32 %v3982_v57, 0.0  ;;  %v4471_v54 = vmax.f32 %v3912_v41, 0.0  ;;  %v4472_v24 = vmax.f32 %v3914_v40, 0.0 }
 0x180   : > { %v1447_v29 = vpop.f32.mrf.mxu0  ;;  %v3983_v16 = vpop.f32.mrf.mxu1  ;;  %v6405_v57 = vadd.f32 %v14268_v12, %v6404_v13  ;;  %v1383_v41 = vadd.f32 %v14268_v12, %v13973_v60 }
 0x181   : > { %v1448_v1 = vadd.f32 %v14268_v12, %v1447_v29  ;;  %v3984_v48 = vadd.f32 %v14268_v12, %v3983_v16  ;;  %v13613_v16 = vld [vmem:[%s13867_s5 + $0xb38] sm:$0xff]  ;;  %v1937_v44 = vmax.f32 %v1381_v42, 0.0  ;;  %v4695_v49 = vmax.f32 %v4471_v54, %v4499_v5 }
 0x182   : > { %v1938_v13 = vmax.f32 %v1383_v41, 0.0 }
 0x183   : > { %v1964_v36 = vmax.f32 %v1448_v1, 0.0  ;;  %v13277_v1 = vld [vmem:[%s13867_s5 + $0xb8] sm:$0xff]  ;;  %v4500_v56 = vmax.f32 %v3984_v48, 0.0 }
 0x185   : > { %v2160_v28 = vmax.f32 %v1936_v17, %v1964_v36  ;;  %v4696_v48 = vmax.f32 %v4472_v24, %v4500_v56  ;;  %v6337_v56 = vadd.f32 %v14268_v12, %v13953_v50  ;;  %v6922_v24 = vmax.f32 %v6405_v57, 0.0 }
 0x186   : > { %v8828_v57 = vadd.f32 %v14268_v12, %v14289_v0 }
 0x187   : > { %2273 = vst.msk [vmem:[#allocation2 + $0x8] sm:$0xff] %vm2271_vm3, %v2160_v28  ;;  %v6406_v29 = vpop.f32.mrf.mxu2  ;;  %v14300_v37 = vpop.f32.mrf.mxu3 }
 0x188   : > { %v1450_v36 = vpop.f32.mrf.mxu0  ;;  %v3986_v17 = vpop.f32.mrf.mxu1 }
 0x189   : > { %v1451_v43 = vadd.f32 %v14268_v12, %v1450_v36  ;;  %v3987_v54 = vadd.f32 %v14268_v12, %v3986_v17 }
 0x18b   : > { %v1965_v28 = vmax.f32 %v1451_v43, 0.0  ;;  %10641 = vmatmul.msk.bf16.gmra.mxu0 %vm1022_vm2, %v13277_v1  ;;  %11425 = vmatmul.msk.bf16.gmra.mxu1 %vm1022_vm2, %v13389_v25  ;;  %v6407_v25 = vadd.f32 %v14268_v12, %v6406_v29  ;;  %v6895_v43 = vmax.f32 %v6337_v56, 0.0 }
 0x18c   : > { %12265 = vmatmul.msk.bf16.gmra.mxu2 %vm1022_vm2, %v13501_v45  ;;  %13105 = vmatmul.msk.bf16.gmra.mxu3 %vm1022_vm2, %v13613_v16 }
 0x18d   : > { %v2161_v4 = vmax.f32 %v1937_v44, %v1965_v28  ;;  %v6335_v44 = vadd.f32 %v14268_v12, %v13945_v46  ;;  %v6923_v29 = vmax.f32 %v6407_v25, 0.0 }
 0x18e   : > { %v2384_v36 = vld [vmem:[#allocation2] ss:$2 sm:$0xff]  ;;  %v2496_v35 = vld [vmem:[#allocation2 + $0x1] ss:$2 sm:$0xff] }
 0x18f   : > { %v2607_v42 = vmax.f32 %v2384_v36, %v2496_v35  ;;  %4807 = vst.msk [vmem:[#allocation2] sm:$0xff] %vm2271_vm3, %v4695_v49  ;;  %v14318_v1 = vpop.f32.mrf.mxu2  ;;  %v14320_v45 = vpop.f32.mrf.mxu3  ;;  %v6894_v16 = vmax.f32 %v6335_v44, 0.0  ;;  %v13278_v36 = vld [vmem:[%s13867_s5 + $0xc0] sm:$0xff] }
 0x190   : > { %4808 = vst.msk [vmem:[#allocation2 + $0x8] sm:$0xff] %vm2271_vm3, %v4696_v48  ;;  %v1452_v60 = vpop.f32.mrf.mxu0  ;;  %v3988_v35 = vpop.f32.mrf.mxu1  ;;  %v13390_v44 = vld [vmem:[%s13867_s5 + $0x440] sm:$0xff] }
 0x191   : > { %v2663_v5 = vpack.c.bf16 %v2607_v42, %v2607_v42  ;;  %2274 = vst.msk [vmem:[#allocation2 + $0x10] sm:$0xff] %vm2271_vm3, %v2161_v4  ;;  %v1453_v46 = vadd.f32 %v14268_v12, %v1452_v60  ;;  %v7118_v49 = vmax.f32 %v6894_v16, %v6922_v24  ;;  %v3989_v50 = vadd.f32 %v14268_v12, %v3988_v35 }
 0x192   : > { %v3917_v4 = vadd.f32 %v14268_v12, %v13961_v55  ;;  %v7119_v42 = vmax.f32 %v6895_v43, %v6923_v29  ;;  %v3919_v60 = vadd.f32 %v14268_v12, %v13975_v61  ;;  %v8830_v55 = vadd.f32 %v14268_v12, %v14300_v37 }
 0x193   : > { %2723 = vst.msk [vmem:[%s14327_s20] sm:$0xf] %vm2722_vm4, %v2663_v5  ;;  %v1966_v40 = vmax.f32 %v1453_v46, 0.0  ;;  %v13502_v5 = vld [vmem:[%s13867_s5 + $0x7c0] sm:$0xff]  ;;  %v8758_v24 = vadd.f32 %v14268_v12, %v13947_v47  ;;  %v8760_v61 = vadd.f32 %v14268_v12, %v13955_v51  ;;  %v4502_v16 = vmax.f32 %v3989_v50, 0.0 }
 0x194   : > { %v13614_v46 = vld [vmem:[%s13867_s5 + $0xb40] sm:$0xff]  ;;  %v4473_v43 = vmax.f32 %v3917_v4, 0.0  ;;  %v4474_v47 = vmax.f32 %v3919_v60, 0.0  ;;  %v6410_v50 = vadd.f32 %v14268_v12, %v14318_v1 }
 0x195   : > { %v2162_v28 = vmax.f32 %v1938_v13, %v1966_v40  ;;  %v4501_v13 = vmax.f32 %v3987_v54, 0.0  ;;  %v1386_v40 = vadd.f32 %v14268_v12, %v13983_v2  ;;  %v9346_v54 = vmax.f32 %v8830_v55, 0.0 }
 0x196   : > { %v9317_v51 = vmax.f32 %v8758_v24, 0.0  ;;  %v9318_v2 = vmax.f32 %v8760_v61, 0.0 }
 0x197   : > { %v4919_v48 = vld [vmem:[#allocation2] ss:$2 sm:$0xff]  ;;  %v4975_v41 = vld [vmem:[#allocation2 + $0x1] ss:$2 sm:$0xff]  ;;  %2275 = vst.msk [vmem:[#allocation2 + $0x18] sm:$0xff] %vm2271_vm3, %v2162_v28  ;;  %v6411_v25 = vpop.f32.mrf.mxu2  ;;  %v14344_v17 = vpop.f32.mrf.mxu3  ;;  %v9345_v28 = vmax.f32 %v8828_v57, 0.0  ;;  %v4698_v57 = vmax.f32 %v4474_v47, %v4502_v16 }
 0x198   : > { %v5031_v35 = vmax.f32 %v4919_v48, %v4975_v41  ;;  %7230 = vst.msk [vmem:[#allocation2] sm:$0xff] %vm2271_vm3, %v7118_v49  ;;  %v1455_v56 = vpop.f32.mrf.mxu0  ;;  %v3991_v0 = vpop.f32.mrf.mxu1  ;;  %v4697_v48 = vmax.f32 %v4473_v43, %v4501_v13  ;;  %v1939_v41 = vmax.f32 %v1386_v40, 0.0  ;;  %v9542_v24 = vmax.f32 %v9318_v2, %v9346_v54 }
 0x199   : > { %7231 = vst.msk [vmem:[#allocation2 + $0x8] sm:$0xff] %vm2271_vm3, %v7119_v42  ;;  %v1456_v29 = vadd.f32 %v14268_v12, %v1455_v56  ;;  %v1388_v42 = vadd.f32 %v14268_v12, %v13997_v8 }
 0x19a   : > { %v5087_v37 = vpack.c.bf16 %v5031_v35, %v5031_v35  ;;  %v6412_v35 = vadd.f32 %v14268_v12, %v6411_v25  ;;  %v6342_v25 = vadd.f32 %v14268_v12, %v13977_v62 }
 0x19b   : > { %10642 = vmatmul.msk.bf16.gmra.mxu0 %vm1022_vm2, %v13278_v36  ;;  %11426 = vmatmul.msk.bf16.gmra.mxu1 %vm1022_vm2, %v13390_v44  ;;  %v1967_v49 = vmax.f32 %v1456_v29, 0.0  ;;  %v9541_v44 = vmax.f32 %v9317_v51, %v9345_v28  ;;  %v1940_v16 = vmax.f32 %v1388_v42, 0.0 }
 0x19c   : > { %11514 = vst.msk [vmem:[%s14327_s20 + $0xe0] sm:$0xf] %vm2722_vm4, %v5087_v37  ;;  %12266 = vmatmul.msk.bf16.gmra.mxu2 %vm1022_vm2, %v13502_v5  ;;  %13106 = vmatmul.msk.bf16.gmra.mxu3 %vm1022_vm2, %v13614_v46  ;;  %v6340_v5 = vadd.f32 %v14268_v12, %v13969_v58  ;;  %v6924_v58 = vmax.f32 %v6410_v50, 0.0  ;;  %v6925_v28 = vmax.f32 %v6412_v35, 0.0  ;;  %v6897_v62 = vmax.f32 %v6342_v25, 0.0 }
 0x19d   : > { %v2163_v8 = vmax.f32 %v1939_v41, %v1967_v49  ;;  %v3992_v49 = vadd.f32 %v14268_v12, %v3991_v0  ;;  %v13279_v41 = vld [vmem:[%s13867_s5 + $0xc8] sm:$0xff]  ;;  %v3922_v50 = vadd.f32 %v14268_v12, %v13985_v3  ;;  %v8763_v35 = vadd.f32 %v14268_v12, %v13971_v59 }
 0x19e   : > { %v2386_v4 = vld [vmem:[#allocation2 + $0x10] ss:$2 sm:$0xff]  ;;  %v2498_v36 = vld [vmem:[#allocation2 + $0x11] ss:$2 sm:$0xff]  ;;  %v6896_v54 = vmax.f32 %v6340_v5, 0.0  ;;  %v7121_v42 = vmax.f32 %v6897_v62, %v6925_v28  ;;  %v3924_v3 = vadd.f32 %v14268_v12, %v13999_v9  ;;  %v1391_v59 = vadd.f32 %v14268_v12, %v14007_v14 }
 0x19f   : > { %v2608_v60 = vmax.f32 %v2386_v4, %v2498_v36  ;;  %4809 = vst.msk [vmem:[#allocation2 + $0x10] sm:$0xff] %vm2271_vm3, %v4697_v48  ;;  %v14374_v55 = vpop.f32.mrf.mxu2  ;;  %v14376_v56 = vpop.f32.mrf.mxu3  ;;  %v8833_v4 = vadd.f32 %v14268_v12, %v14320_v45  ;;  %v8835_v45 = vadd.f32 %v14268_v12, %v14344_v17  ;;  %v4503_v25 = vmax.f32 %v3992_v49, 0.0 }
 0x1a0   : > { %v7342_v1 = vld [vmem:[#allocation2] ss:$2 sm:$0xff]  ;;  %v7398_v46 = vld [vmem:[#allocation2 + $0x1] ss:$2 sm:$0xff]  ;;  %4810 = vst.msk [vmem:[#allocation2 + $0x18] sm:$0xff] %vm2271_vm3, %v4698_v57  ;;  %v1457_v13 = vpop.f32.mrf.mxu0  ;;  %v3993_v29 = vpop.f32.mrf.mxu1  ;;  %v7120_v48 = vmax.f32 %v6896_v54, %v6924_v58  ;;  %v4475_v58 = vmax.f32 %v3922_v50, 0.0  ;;  %v1393_v50 = vadd.f32 %v14268_v12, %v14021_v20 }
 0x1a1   : > { %v7454_v61 = vmax.f32 %v7342_v1, %v7398_v46  ;;  %9653 = vst.msk [vmem:[#allocation2] sm:$0xff] %vm2271_vm3, %v9541_v44  ;;  %v2664_v40 = vpack.c.bf16 %v2608_v60, %v2608_v60  ;;  %v1458_v37 = vadd.f32 %v14268_v12, %v1457_v13  ;;  %v3994_v2 = vadd.f32 %v14268_v12, %v3993_v29  ;;  %v13391_v60 = vld [vmem:[%s13867_s5 + $0x448] sm:$0xff] }
 0x1a2   : > { %9654 = vst.msk [vmem:[#allocation2 + $0x8] sm:$0xff] %vm2271_vm3, %v9542_v24  ;;  %v13503_v24 = vld [vmem:[%s13867_s5 + $0x7c8] sm:$0xff]  ;;  %v8765_v13 = vadd.f32 %v14268_v12, %v13979_v63  ;;  %v4476_v63 = vmax.f32 %v3924_v3, 0.0  ;;  %v9348_v14 = vmax.f32 %v8835_v45, 0.0  ;;  %v1941_v62 = vmax.f32 %v1391_v59, 0.0 }
 0x1a3   : > { %v7510_v43 = vpack.c.bf16 %v7454_v61, %v7454_v61  ;;  %2724 = vst.msk [vmem:[%s14327_s20 + $0x4] sm:$0xf] %vm2722_vm4, %v2664_v40  ;;  %v1968_v47 = vmax.f32 %v1458_v37, 0.0  ;;  %v4504_v37 = vmax.f32 %v3994_v2, 0.0  ;;  %v4699_v49 = vmax.f32 %v4475_v58, %v4503_v25 }
 0x1a4   : > { %2276 = vst.msk [vmem:[#allocation2 + $0x20] sm:$0xff] %vm2271_vm3, %v2163_v8  ;;  %v13615_v8 = vld [vmem:[%s13867_s5 + $0xb48] sm:$0xff]  ;;  %v9320_v54 = vmax.f32 %v8765_v13, 0.0  ;;  %v1942_v59 = vmax.f32 %v1393_v50, 0.0  ;;  %v13616_v50 = vld [vmem:[%s13867_s5 + $0xb50] sm:$0xff] }
 0x1a5   : > { %12354 = vst.msk [vmem:[%s14327_s20 + $0x1c0] sm:$0xf] %vm2722_vm4, %v7510_v43  ;;  %v2164_v51 = vmax.f32 %v1940_v16, %v1968_v47  ;;  %v9347_v16 = vmax.f32 %v8833_v4, 0.0  ;;  %v9319_v47 = vmax.f32 %v8763_v35, 0.0  ;;  %v6345_v35 = vadd.f32 %v14268_v12, %v13993_v6 }
 0x1a7   : > { %v4920_v36 = vld [vmem:[#allocation2 + $0x10] ss:$2 sm:$0xff]  ;;  %v4976_v57 = vld [vmem:[#allocation2 + $0x11] ss:$2 sm:$0xff]  ;;  %2277 = vst.msk [vmem:[#allocation2 + $0x28] sm:$0xff] %vm2271_vm3, %v2164_v51  ;;  %v6416_v44 = vpop.f32.mrf.mxu2  ;;  %v14399_v0 = vpop.f32.mrf.mxu3  ;;  %v6415_v51 = vadd.f32 %v14268_v12, %v14374_v55  ;;  %v9543_v4 = vmax.f32 %v9319_v47, %v9347_v16 }
 0x1a8   : > { %v5032_v5 = vmax.f32 %v4920_v36, %v4976_v57  ;;  %7232 = vst.msk [vmem:[#allocation2 + $0x10] sm:$0xff] %vm2271_vm3, %v7120_v48  ;;  %v1460_v1 = vpop.f32.mrf.mxu0  ;;  %v14409_v46 = vpop.f32.mrf.mxu1  ;;  %v6417_v57 = vadd.f32 %v14268_v12, %v6416_v44  ;;  %v6347_v44 = vadd.f32 %v14268_v12, %v14001_v10  ;;  %v13280_v16 = vld [vmem:[%s13867_s5 + $0xd0] sm:$0xff] }
 0x1a9   : > { %v9765_v29 = vld [vmem:[#allocation2] ss:$2 sm:$0xff]  ;;  %v9821_v9 = vld [vmem:[#allocation2 + $0x1] ss:$2 sm:$0xff]  ;;  %7233 = vst.msk [vmem:[#allocation2 + $0x18] sm:$0xff] %vm2271_vm3, %v7121_v42  ;;  %v1461_v61 = vadd.f32 %v14268_v12, %v1460_v1  ;;  %v6926_v6 = vmax.f32 %v6415_v51, 0.0 }
 0x1aa   : > { %v9877_v17 = vmax.f32 %v9765_v29, %v9821_v9  ;;  %v5088_v40 = vpack.c.bf16 %v5032_v5, %v5032_v5  ;;  %v9544_v5 = vmax.f32 %v9320_v54, %v9348_v14  ;;  %v6927_v9 = vmax.f32 %v6417_v57, 0.0 }
 0x1ab   : > { %10643 = vmatmul.msk.bf16.gmra.mxu0 %vm1022_vm2, %v13279_v41  ;;  %11427 = vmatmul.msk.bf16.gmra.mxu1 %vm1022_vm2, %v13391_v60  ;;  %v1969_v28 = vmax.f32 %v1461_v61, 0.0  ;;  %v4700_v41 = vmax.f32 %v4476_v63, %v4504_v37  ;;  %v6898_v61 = vmax.f32 %v6345_v35, 0.0  ;;  %v6899_v10 = vmax.f32 %v6347_v44, 0.0 }
 0x1ac   : > { %v9933_v43 = vpack.c.bf16 %v9877_v17, %v9877_v17  ;;  %11515 = vst.msk [vmem:[%s14327_s20 + $0xe4] sm:$0xf] %vm2722_vm4, %v5088_v40  ;;  %12267 = vmatmul.msk.bf16.gmra.mxu2 %vm1022_vm2, %v13503_v24  ;;  %13107 = vmatmul.msk.bf16.gmra.mxu3 %vm1022_vm2, %v13615_v8  ;;  %v3997_v17 = vadd.f32 %v14268_v12, %v14409_v46 }
 0x1ad   : > { %v2165_v20 = vmax.f32 %v1941_v62, %v1969_v28  ;;  %v7122_v37 = vmax.f32 %v6898_v61, %v6926_v6  ;;  %v3927_v63 = vadd.f32 %v14268_v12, %v14009_v15  ;;  %v7123_v47 = vmax.f32 %v6899_v10, %v6927_v9  ;;  %v13392_v62 = vld [vmem:[%s13867_s5 + $0x450] sm:$0xff] }
 0x1ae   : > { %13194 = vst.msk [vmem:[%s14327_s20 + $0x2a0] sm:$0xf] %vm2722_vm4, %v9933_v43  ;;  %v2388_v48 = vld [vmem:[#allocation2 + $0x20] ss:$2 sm:$0xff]  ;;  %v2500_v2 = vld [vmem:[#allocation2 + $0x21] ss:$2 sm:$0xff]  ;;  %v8838_v43 = vadd.f32 %v14268_v12, %v14376_v56  ;;  %v3929_v15 = vadd.f32 %v14268_v12, %v14023_v21  ;;  %v8840_v56 = vadd.f32 %v14268_v12, %v14399_v0 }
 0x1af   : > { %v2609_v36 = vmax.f32 %v2388_v48, %v2500_v2  ;;  %4811 = vst.msk [vmem:[#allocation2 + $0x20] sm:$0xff] %vm2271_vm3, %v4699_v49  ;;  %v14433_v42 = vpop.f32.mrf.mxu2  ;;  %v14435_v60 = vpop.f32.mrf.mxu3  ;;  %v8768_v49 = vadd.f32 %v14268_v12, %v13995_v7  ;;  %v1396_v7 = vadd.f32 %v14268_v12, %v14031_v26  ;;  %v4505_v57 = vmax.f32 %v3997_v17, 0.0 }
 0x1b0   : > { %v7343_v55 = vld [vmem:[#allocation2 + $0x10] ss:$2 sm:$0xff]  ;;  %v7399_v3 = vld [vmem:[#allocation2 + $0x11] ss:$2 sm:$0xff]  ;;  %4812 = vst.msk [vmem:[#allocation2 + $0x28] sm:$0xff] %vm2271_vm3, %v4700_v41  ;;  %v1462_v45 = vpop.f32.mrf.mxu0  ;;  %v3998_v1 = vpop.f32.mrf.mxu1  ;;  %v9350_v26 = vmax.f32 %v8840_v56, 0.0  ;;  %v6420_v6 = vadd.f32 %v14268_v12, %v14433_v42 }
 0x1b1   : > { %v7455_v24 = vmax.f32 %v7343_v55, %v7399_v3  ;;  %9655 = vst.msk [vmem:[#allocation2 + $0x10] sm:$0xff] %vm2271_vm3, %v9543_v4  ;;  %v2665_v8 = vpack.c.bf16 %v2609_v36, %v2609_v36  ;;  %v1463_v13 = vadd.f32 %v14268_v12, %v1462_v45  ;;  %v3999_v58 = vadd.f32 %v14268_v12, %v3998_v1  ;;  %v13504_v41 = vld [vmem:[%s13867_s5 + $0x7d0] sm:$0xff] }
 0x1b2   : > { %9656 = vst.msk [vmem:[#allocation2 + $0x18] sm:$0xff] %vm2271_vm3, %v9544_v5  ;;  %v8770_v4 = vadd.f32 %v14268_v12, %v14003_v11  ;;  %v4477_v5 = vmax.f32 %v3927_v63, 0.0  ;;  %v4478_v11 = vmax.f32 %v3929_v15, 0.0  ;;  %v9321_v44 = vmax.f32 %v8768_v49, 0.0 }
 0x1b3   : > { %v7511_v29 = vpack.c.bf16 %v7455_v24, %v7455_v24  ;;  %2725 = vst.msk [vmem:[%s14327_s20 + $0x8] sm:$0xf] %vm2722_vm4, %v2665_v8  ;;  %v1970_v25 = vmax.f32 %v1463_v13, 0.0  ;;  %v4506_v3 = vmax.f32 %v3999_v58, 0.0  ;;  %v1943_v8 = vmax.f32 %v1396_v7, 0.0 }
 0x1b4   : > { %2278 = vst.msk [vmem:[#allocation2 + $0x30] sm:$0xff] %vm2271_vm3, %v2165_v20  ;;  %v9349_v20 = vmax.f32 %v8838_v43, 0.0  ;;  %v9322_v24 = vmax.f32 %v8770_v4, 0.0  ;;  %v4701_v13 = vmax.f32 %v4477_v5, %v4505_v57  ;;  %v6350_v58 = vadd.f32 %v14268_v12, %v14017_v18  ;;  %v13393_v5 = vld [vmem:[%s13867_s5 + $0x458] sm:$0xff] }
 0x1b5   : > { %12355 = vst.msk [vmem:[%s14327_s20 + $0x1c4] sm:$0xf] %vm2722_vm4, %v7511_v29  ;;  %v2166_v40 = vmax.f32 %v1942_v59, %v1970_v25  ;;  %v4702_v9 = vmax.f32 %v4478_v11, %v4506_v3  ;;  %v1398_v25 = vadd.f32 %v14268_v12, %v14045_v32  ;;  %v6928_v18 = vmax.f32 %v6420_v6, 0.0 }
 0x1b6   : > { %v9545_v61 = vmax.f32 %v9321_v44, %v9349_v20  ;;  %v9546_v63 = vmax.f32 %v9322_v24, %v9350_v26  ;;  %v8843_v57 = vadd.f32 %v14268_v12, %v14435_v60  ;;  %v8773_v20 = vadd.f32 %v14268_v12, %v14019_v19  ;;  %v13617_v44 = vld [vmem:[%s13867_s5 + $0xb58] sm:$0xff] }
 0x1b7   : > { %v4921_v14 = vld [vmem:[#allocation2 + $0x20] ss:$2 sm:$0xff]  ;;  %v4977_v28 = vld [vmem:[#allocation2 + $0x21] ss:$2 sm:$0xff]  ;;  %2279 = vst.msk [vmem:[#allocation2 + $0x38] sm:$0xff] %vm2271_vm3, %v2166_v40  ;;  %v6421_v54 = vpop.f32.mrf.mxu2  ;;  %v14459_v46 = vpop.f32.mrf.mxu3  ;;  %v1944_v49 = vmax.f32 %v1398_v25, 0.0  ;;  %v8775_v24 = vadd.f32 %v14268_v12, %v14027_v23  ;;  %v1401_v19 = vadd.f32 %v14268_v12, %v14055_v38 }
 0x1b8   : > { %v5033_v51 = vmax.f32 %v4921_v14, %v4977_v28  ;;  %7234 = vst.msk [vmem:[#allocation2 + $0x20] sm:$0xff] %vm2271_vm3, %v7122_v37  ;;  %v1465_v48 = vpop.f32.mrf.mxu0  ;;  %v14469_v2 = vpop.f32.mrf.mxu1  ;;  %v6422_v17 = vadd.f32 %v14268_v12, %v6421_v54  ;;  %v6352_v28 = vadd.f32 %v14268_v12, %v14025_v22  ;;  %v8845_v60 = vadd.f32 %v14268_v12, %v14459_v46 }
 0x1b9   : > { %v9766_v36 = vld [vmem:[#allocation2 + $0x10] ss:$2 sm:$0xff]  ;;  %v9822_v21 = vld [vmem:[#allocation2 + $0x11] ss:$2 sm:$0xff]  ;;  %7235 = vst.msk [vmem:[#allocation2 + $0x28] sm:$0xff] %vm2271_vm3, %v7123_v47  ;;  %v1466_v35 = vadd.f32 %v14268_v12, %v1465_v48  ;;  %v6900_v48 = vmax.f32 %v6350_v58, 0.0 }
 0x1ba   : > { %v9878_v0 = vmax.f32 %v9766_v36, %v9822_v21  ;;  %v5089_v55 = vpack.c.bf16 %v5033_v51, %v5033_v51  ;;  %v6929_v51 = vmax.f32 %v6422_v17, 0.0  ;;  %v6901_v22 = vmax.f32 %v6352_v28, 0.0  ;;  %v13281_v36 = vld [vmem:[%s13867_s5 + $0xd8] sm:$0xff] }
 0x1bb   : > { %10644 = vmatmul.msk.bf16.gmra.mxu0 %vm1022_vm2, %v13280_v16  ;;  %11428 = vmatmul.msk.bf16.gmra.mxu1 %vm1022_vm2, %v13392_v62  ;;  %v1971_v1 = vmax.f32 %v1466_v35, 0.0  ;;  %v7124_v4 = vmax.f32 %v6900_v48, %v6928_v18  ;;  %v3932_v21 = vadd.f32 %v14268_v12, %v14033_v27  ;;  %v3934_v27 = vadd.f32 %v14268_v12, %v14047_v33 }
 0x1bc   : > { %v9934_v45 = vpack.c.bf16 %v9878_v0, %v9878_v0  ;;  %11516 = vst.msk [vmem:[%s14327_s20 + $0xe8] sm:$0xf] %vm2722_vm4, %v5089_v55  ;;  %12268 = vmatmul.msk.bf16.gmra.mxu2 %vm1022_vm2, %v13504_v41  ;;  %13108 = vmatmul.msk.bf16.gmra.mxu3 %vm1022_vm2, %v13616_v50  ;;  %v4002_v41 = vadd.f32 %v14268_v12, %v14469_v2  ;;  %v9351_v25 = vmax.f32 %v8843_v57, 0.0  ;;  %v9352_v38 = vmax.f32 %v8845_v60, 0.0 }
 0x1bd   : > { %v2167_v32 = vmax.f32 %v1943_v8, %v1971_v1  ;;  %v7125_v55 = vmax.f32 %v6901_v22, %v6929_v51  ;;  %v13505_v1 = vld [vmem:[%s13867_s5 + $0x7d8] sm:$0xff]  ;;  %v4480_v23 = vmax.f32 %v3934_v27, 0.0  ;;  %v9323_v17 = vmax.f32 %v8773_v20, 0.0  ;;  %v13282_v27 = vld [vmem:[%s13867_s5 + $0xe0] sm:$0xff] }
 0x1be   : > { %13195 = vst.msk [vmem:[%s14327_s20 + $0x2a4] sm:$0xf] %vm2722_vm4, %v9934_v45  ;;  %v2390_v59 = vld [vmem:[#allocation2 + $0x30] ss:$2 sm:$0xff]  ;;  %v2502_v29 = vld [vmem:[#allocation2 + $0x31] ss:$2 sm:$0xff]  ;;  %v1403_v28 = vadd.f32 %v14268_v12, %v14069_v52 }
 0x1bf   : > { %v2610_v10 = vmax.f32 %v2390_v59, %v2502_v29  ;;  %4813 = vst.msk [vmem:[#allocation2 + $0x30] sm:$0xff] %vm2271_vm3, %v4701_v13  ;;  %v14493_v40 = vpop.f32.mrf.mxu2  ;;  %v14495_v37 = vpop.f32.mrf.mxu3  ;;  %v4507_v13 = vmax.f32 %v4002_v41, 0.0  ;;  %v9324_v58 = vmax.f32 %v8775_v24, 0.0  ;;  %v6357_v41 = vadd.f32 %v14268_v12, %v14049_v34 }
 0x1c0   : > { %v7344_v42 = vld [vmem:[#allocation2 + $0x20] ss:$2 sm:$0xff]  ;;  %v7400_v16 = vld [vmem:[#allocation2 + $0x21] ss:$2 sm:$0xff]  ;;  %4814 = vst.msk [vmem:[#allocation2 + $0x38] sm:$0xff] %vm2271_vm3, %v4702_v9  ;;  %v1467_v43 = vpop.f32.mrf.mxu0  ;;  %v4003_v14 = vpop.f32.mrf.mxu1  ;;  %v4479_v9 = vmax.f32 %v3932_v21, 0.0  ;;  %v8848_v60 = vadd.f32 %v14268_v12, %v14495_v37 }
 0x1c1   : > { %v7456_v47 = vmax.f32 %v7344_v42, %v7400_v16  ;;  %9657 = vst.msk [vmem:[#allocation2 + $0x20] sm:$0xff] %vm2271_vm3, %v9545_v61  ;;  %v2666_v54 = vpack.c.bf16 %v2610_v10, %v2610_v10  ;;  %v1468_v62 = vadd.f32 %v14268_v12, %v1467_v43  ;;  %v4004_v7 = vadd.f32 %v14268_v12, %v4003_v14 }
 0x1c2   : > { %9658 = vst.msk [vmem:[#allocation2 + $0x28] sm:$0xff] %vm2271_vm3, %v9546_v63  ;;  %v1945_v42 = vmax.f32 %v1401_v19, 0.0  ;;  %v4703_v16 = vmax.f32 %v4479_v9, %v4507_v13  ;;  %v6425_v63 = vadd.f32 %v14268_v12, %v14493_v40  ;;  %v6903_v34 = vmax.f32 %v6357_v41, 0.0  ;;  %v13394_v19 = vld [vmem:[%s13867_s5 + $0x460] sm:$0xff] }
 0x1c3   : > { %v7512_v15 = vpack.c.bf16 %v7456_v47, %v7456_v47  ;;  %2726 = vst.msk [vmem:[%s14327_s20 + $0xc] sm:$0xf] %vm2722_vm4, %v2666_v54  ;;  %v1972_v56 = vmax.f32 %v1468_v62, 0.0  ;;  %v4508_v29 = vmax.f32 %v4004_v7, 0.0  ;;  %v9547_v47 = vmax.f32 %v9323_v17, %v9351_v25  ;;  %v18618_v25 = vld [vmem:[#allocation8_spill] sm:$0xff] }
 0x1c4   : > { %2280 = vst.msk [vmem:[#allocation2 + $0x40] sm:$0xff] %vm2271_vm3, %v2167_v32 }
 0x1c5   : > { %12356 = vst.msk [vmem:[%s14327_s20 + $0x1c8] sm:$0xf] %vm2722_vm4, %v7512_v15  ;;  %v2168_v50 = vmax.f32 %v1944_v49, %v1972_v56  ;;  %v4704_v14 = vmax.f32 %v4480_v23, %v4508_v29  ;;  %v6355_v15 = vadd.f32 %v14268_v12, %v14041_v30  ;;  %v9548_v56 = vmax.f32 %v9324_v58, %v9352_v38  ;;  %v18617_v29 = vld [vmem:[#allocation3_spill] sm:$0xff] }
 0x1c6   : > { %v6930_v30 = vmax.f32 %v6425_v63, 0.0  ;;  %v8780_v9 = vadd.f32 %v14268_v12, %v18617_v29 }
 0x1c7   : > { %v4922_v35 = vld [vmem:[#allocation2 + $0x30] ss:$2 sm:$0xff]  ;;  %v4978_v0 = vld [vmem:[#allocation2 + $0x31] ss:$2 sm:$0xff]  ;;  %2281 = vst.msk [vmem:[#allocation2 + $0x48] sm:$0xff] %vm2271_vm3, %v2168_v50  ;;  %v6426_v3 = vpop.f32.mrf.mxu2  ;;  %v14519_v2 = vpop.f32.mrf.mxu3 }
 0x1c8   : > { %v5034_v11 = vmax.f32 %v4922_v35, %v4978_v0  ;;  %7236 = vst.msk [vmem:[#allocation2 + $0x30] sm:$0xff] %vm2271_vm3, %v7124_v4  ;;  %v1470_v45 = vpop.f32.mrf.mxu0  ;;  %v14529_v26 = vpop.f32.mrf.mxu1  ;;  %v6427_v62 = vadd.f32 %v14268_v12, %v6426_v3  ;;  %v6902_v0 = vmax.f32 %v6355_v15, 0.0  ;;  %v8850_v37 = vadd.f32 %v14268_v12, %v14519_v2 }
 0x1c9   : > { %v9767_v8 = vld [vmem:[#allocation2 + $0x20] ss:$2 sm:$0xff]  ;;  %v9823_v33 = vld [vmem:[#allocation2 + $0x21] ss:$2 sm:$0xff]  ;;  %7237 = vst.msk [vmem:[#allocation2 + $0x38] sm:$0xff] %vm2271_vm3, %v7125_v55  ;;  %v1471_v6 = vadd.f32 %v14268_v12, %v1470_v45  ;;  %v4007_v55 = vadd.f32 %v14268_v12, %v14529_v26 }
 0x1ca   : > { %v9879_v46 = vmax.f32 %v9767_v8, %v9823_v33  ;;  %v5090_v59 = vpack.c.bf16 %v5034_v11, %v5034_v11  ;;  %v6931_v57 = vmax.f32 %v6427_v62, 0.0  ;;  %v3937_v11 = vadd.f32 %v14268_v12, %v14057_v39 }
 0x1cb   : > { %10645 = vmatmul.msk.bf16.gmra.mxu0 %vm1022_vm2, %v13281_v36  ;;  %11429 = vmatmul.msk.bf16.gmra.mxu1 %vm1022_vm2, %v13393_v5  ;;  %v1973_v10 = vmax.f32 %v1471_v6, 0.0  ;;  %v1946_v36 = vmax.f32 %v1403_v28, 0.0  ;;  %v7126_v5 = vmax.f32 %v6902_v0, %v6930_v30  ;;  %v8778_v8 = vadd.f32 %v14268_v12, %v14043_v31 }
 0x1cc   : > { %v9935_v61 = vpack.c.bf16 %v9879_v46, %v9879_v46  ;;  %11517 = vst.msk [vmem:[%s14327_s20 + $0xec] sm:$0xf] %vm2722_vm4, %v5090_v59  ;;  %12269 = vmatmul.msk.bf16.gmra.mxu2 %vm1022_vm2, %v13505_v1  ;;  %13109 = vmatmul.msk.bf16.gmra.mxu3 %vm1022_vm2, %v13617_v44  ;;  %v7127_v44 = vmax.f32 %v6903_v34, %v6931_v57  ;;  %v13506_v46 = vld [vmem:[%s13867_s5 + $0x7e0] sm:$0xff]  ;;  %v4481_v58 = vmax.f32 %v3937_v11, 0.0  ;;  %v9326_v28 = vmax.f32 %v8780_v9, 0.0  ;;  %v18621_v34 = vld [vmem:[#allocation6_spill] sm:$0xff] }
 0x1cd   : > { %v2169_v52 = vmax.f32 %v1945_v42, %v1973_v10  ;;  %v3939_v39 = vadd.f32 %v14268_v12, %v14071_v53  ;;  %v13618_v59 = vld [vmem:[%s13867_s5 + $0xb60] sm:$0xff]  ;;  %v1406_v31 = vadd.f32 %v14268_v12, %v18618_v25  ;;  %v9353_v42 = vmax.f32 %v8848_v60, 0.0 }
 0x1ce   : > { %13196 = vst.msk [vmem:[%s14327_s20 + $0x2a8] sm:$0xf] %vm2722_vm4, %v9935_v61  ;;  %v2392_v32 = vld [vmem:[#allocation2 + $0x40] ss:$2 sm:$0xff]  ;;  %v2504_v43 = vld [vmem:[#allocation2 + $0x41] ss:$2 sm:$0xff] }
 0x1cf   : > { %v2611_v54 = vmax.f32 %v2392_v32, %v2504_v43  ;;  %4815 = vst.msk [vmem:[#allocation2 + $0x40] sm:$0xff] %vm2271_vm3, %v4703_v16  ;;  %v14553_v18 = vpop.f32.mrf.mxu2  ;;  %v14555_v49 = vpop.f32.mrf.mxu3  ;;  %v4509_v61 = vmax.f32 %v4007_v55, 0.0  ;;  %v4482_v16 = vmax.f32 %v3939_v39, 0.0  ;;  %v9354_v32 = vmax.f32 %v8850_v37, 0.0  ;;  %v13283_v37 = vld [vmem:[%s13867_s5 + $0xe8] sm:$0xff] }
 0x1d0   : > { %v7345_v40 = vld [vmem:[#allocation2 + $0x30] ss:$2 sm:$0xff]  ;;  %v7401_v51 = vld [vmem:[#allocation2 + $0x31] ss:$2 sm:$0xff]  ;;  %4816 = vst.msk [vmem:[#allocation2 + $0x48] sm:$0xff] %vm2271_vm3, %v4704_v14  ;;  %v1472_v48 = vpop.f32.mrf.mxu0  ;;  %v4008_v22 = vpop.f32.mrf.mxu1  ;;  %v9325_v14 = vmax.f32 %v8778_v8, 0.0  ;;  %v6430_v62 = vadd.f32 %v14268_v12, %v14553_v18  ;;  %v6362_v55 = vadd.f32 %v14268_v12, %v18621_v34 }
 0x1d1   : > { %v7457_v50 = vmax.f32 %v7345_v40, %v7401_v51  ;;  %9659 = vst.msk [vmem:[#allocation2 + $0x30] sm:$0xff] %vm2271_vm3, %v9547_v47  ;;  %v2667_v4 = vpack.c.bf16 %v2611_v54, %v2611_v54  ;;  %v1473_v7 = vadd.f32 %v14268_v12, %v1472_v48  ;;  %v4009_v20 = vadd.f32 %v14268_v12, %v4008_v22  ;;  %v18627_v34 = vld [vmem:[#allocation20_spill] sm:$0xff] }
 0x1d2   : > { %9660 = vst.msk [vmem:[#allocation2 + $0x38] sm:$0xff] %vm2271_vm3, %v9548_v56  ;;  %v1947_v47 = vmax.f32 %v1406_v31, 0.0  ;;  %v4705_v54 = vmax.f32 %v4481_v58, %v4509_v61  ;;  %v18619_v56 = vld [vmem:[#allocation12_spill] sm:$0xff]  ;;  %v9549_v48 = vmax.f32 %v9325_v14, %v9353_v42  ;;  %v18623_v61 = vld [vmem:[#allocation5_spill] sm:$0xff] }
 0x1d3   : > { %v7513_v21 = vpack.c.bf16 %v7457_v50, %v7457_v50  ;;  %2727 = vst.msk [vmem:[%s14327_s20 + $0x10] sm:$0xf] %vm2722_vm4, %v2667_v4  ;;  %v1974_v35 = vmax.f32 %v1473_v7, 0.0  ;;  %v4510_v17 = vmax.f32 %v4009_v20, 0.0  ;;  %v18620_v7 = vld [vmem:[#allocation4_spill] sm:$0xff] }
 0x1d4   : > { %2282 = vst.msk [vmem:[#allocation2 + $0x50] sm:$0xff] %vm2271_vm3, %v2169_v52  ;;  %v1408_v52 = vadd.f32 %v14268_v12, %v18619_v56  ;;  %v6360_v30 = vadd.f32 %v14268_v12, %v18620_v7  ;;  %v13507_v42 = vld [vmem:[%s13867_s5 + $0x7e8] sm:$0xff] }
 0x1d5   : > { %12357 = vst.msk [vmem:[%s14327_s20 + $0x1cc] sm:$0xf] %vm2722_vm4, %v7513_v21  ;;  %v2170_v3 = vmax.f32 %v1946_v36, %v1974_v35  ;;  %v4706_v51 = vmax.f32 %v4482_v16, %v4510_v17  ;;  %v9550_v21 = vmax.f32 %v9326_v28, %v9354_v32  ;;  %v13619_v16 = vld [vmem:[%s13867_s5 + $0xb68] sm:$0xff] }
 0x1d6   : > { %v1948_v11 = vmax.f32 %v1408_v52, 0.0 }
 0x1d7   : > { %v4923_v45 = vld [vmem:[#allocation2 + $0x40] ss:$2 sm:$0xff]  ;;  %v4979_v1 = vld [vmem:[#allocation2 + $0x41] ss:$2 sm:$0xff]  ;;  %2283 = vst.msk [vmem:[#allocation2 + $0x58] sm:$0xff] %vm2271_vm3, %v2170_v3  ;;  %v6431_v24 = vpop.f32.mrf.mxu2  ;;  %v14579_v26 = vpop.f32.mrf.mxu3 }
 0x1d8   : > { %v5035_v33 = vmax.f32 %v4923_v45, %v4979_v1  ;;  %7238 = vst.msk [vmem:[#allocation2 + $0x40] sm:$0xff] %vm2271_vm3, %v7126_v5  ;;  %v1475_v13 = vpop.f32.mrf.mxu0  ;;  %v14589_v6 = vpop.f32.mrf.mxu1  ;;  %v6432_v41 = vadd.f32 %v14268_v12, %v6431_v24  ;;  %v6905_v24 = vmax.f32 %v6362_v55, 0.0 }
 0x1d9   : > { %v9768_v23 = vld [vmem:[#allocation2 + $0x30] ss:$2 sm:$0xff]  ;;  %v9824_v53 = vld [vmem:[#allocation2 + $0x31] ss:$2 sm:$0xff]  ;;  %7239 = vst.msk [vmem:[#allocation2 + $0x48] sm:$0xff] %vm2271_vm3, %v7127_v44  ;;  %v1476_v38 = vadd.f32 %v14268_v12, %v1475_v13  ;;  %v6904_v44 = vmax.f32 %v6360_v30, 0.0 }
 0x1da   : > { %v9880_v2 = vmax.f32 %v9768_v23, %v9824_v53  ;;  %v5091_v10 = vpack.c.bf16 %v5035_v33, %v5035_v33  ;;  %v6933_v45 = vmax.f32 %v6432_v41, 0.0  ;;  %v18622_v13 = vld [vmem:[#allocation9_spill] sm:$0xff]  ;;  %v13395_v23 = vld [vmem:[%s13867_s5 + $0x468] sm:$0xff]  ;;  %v14645_v53 = vld [vmem:[%s18546_s2] ss:$0 sm:$0xff] }
 0x1db   : > { %10646 = vmatmul.msk.bf16.gmra.mxu0 %vm1022_vm2, %v13282_v27  ;;  %11430 = vmatmul.msk.bf16.gmra.mxu1 %vm1022_vm2, %v13394_v19  ;;  %v1975_v43 = vmax.f32 %v1476_v38, 0.0  ;;  %v6932_v27 = vmax.f32 %v6430_v62, 0.0  ;;  %v4012_v19 = vadd.f32 %v14268_v12, %v14589_v6  ;;  %v8783_v38 = vadd.f32 %v14645_v53, %v18623_v61 }
 0x1dc   : > { %v9936_v63 = vpack.c.bf16 %v9880_v2, %v9880_v2  ;;  %11518 = vst.msk [vmem:[%s14327_s20 + $0xf0] sm:$0xf] %vm2722_vm4, %v5091_v10  ;;  %12270 = vmatmul.msk.bf16.gmra.mxu2 %vm1022_vm2, %v13506_v46  ;;  %13110 = vmatmul.msk.bf16.gmra.mxu3 %vm1022_vm2, %v13618_v59  ;;  %v3942_v46 = vadd.f32 %v14268_v12, %v18622_v13 }
 0x1dd   : > { %v2171_v57 = vmax.f32 %v1947_v47, %v1975_v43  ;;  %v7128_v39 = vmax.f32 %v6904_v44, %v6932_v27  ;;  %v8853_v59 = vadd.f32 %v14268_v12, %v14555_v49  ;;  %v7129_v25 = vmax.f32 %v6905_v24, %v6933_v45  ;;  %v18626_v43 = vld [vmem:[#allocation16_spill] sm:$0xff] }
 0x1de   : > { %13197 = vst.msk [vmem:[%s14327_s20 + $0x2ac] sm:$0xf] %vm2722_vm4, %v9936_v63  ;;  %v2394_v15 = vld [vmem:[#allocation2 + $0x50] ss:$2 sm:$0xff]  ;;  %v2506_v40 = vld [vmem:[#allocation2 + $0x51] ss:$2 sm:$0xff]  ;;  %v8855_v10 = vadd.f32 %v14645_v53, %v14579_v26  ;;  %v1411_v14 = vadd.f32 %v14645_v53, %v18626_v43  ;;  %v1413_v55 = vadd.f32 %v14645_v53, %v18627_v34 }
 0x1df   : > { %v2612_v22 = vmax.f32 %v2394_v15, %v2506_v40  ;;  %4817 = vst.msk [vmem:[#allocation2 + $0x50] sm:$0xff] %vm2271_vm3, %v4705_v54  ;;  %v14613_v50 = vpop.f32.mrf.mxu2  ;;  %v14615_v4 = vpop.f32.mrf.mxu3  ;;  %v18625_v63 = vld [vmem:[#allocation7_spill] sm:$0xff]  ;;  %v4511_v54 = vmax.f32 %v4012_v19, 0.0  ;;  %v9355_v56 = vmax.f32 %v8853_v59, 0.0  ;;  %v9327_v7 = vmax.f32 %v8783_v38, 0.0 }
 0x1e0   : > { %v7346_v18 = vld [vmem:[#allocation2 + $0x40] ss:$2 sm:$0xff]  ;;  %v7402_v36 = vld [vmem:[#allocation2 + $0x41] ss:$2 sm:$0xff]  ;;  %4818 = vst.msk [vmem:[#allocation2 + $0x58] sm:$0xff] %vm2271_vm3, %v4706_v51  ;;  %v1477_v35 = vpop.f32.mrf.mxu0  ;;  %v4013_v0 = vpop.f32.mrf.mxu1  ;;  %v8785_v32 = vadd.f32 %v14645_v53, %v18625_v63  ;;  %v4483_v51 = vmax.f32 %v3942_v46, 0.0 }
 0x1e1   : > { %v7458_v3 = vmax.f32 %v7346_v18, %v7402_v36  ;;  %9661 = vst.msk [vmem:[#allocation2 + $0x40] sm:$0xff] %vm2271_vm3, %v9549_v48  ;;  %v2668_v5 = vpack.c.bf16 %v2612_v22, %v2612_v22  ;;  %v1478_v20 = vadd.f32 %v14268_v12, %v1477_v35  ;;  %v4014_v33 = vadd.f32 %v14268_v12, %v4013_v0  ;;  %v18624_v12 = vld [vmem:[#allocation13_spill] sm:$0xff] }
 0x1e2   : > { %9662 = vst.msk [vmem:[#allocation2 + $0x48] sm:$0xff] %vm2271_vm3, %v9550_v21  ;;  %v3944_v49 = vadd.f32 %v14645_v53, %v18624_v12  ;;  %v9356_v22 = vmax.f32 %v8855_v10, 0.0  ;;  %v9328_v30 = vmax.f32 %v8785_v32, 0.0  ;;  %v1949_v18 = vmax.f32 %v1411_v14, 0.0  ;;  %v13284_v10 = vld [vmem:[%s13867_s5 + $0xf0] sm:$0xff] }
 0x1e3   : > { %v7514_v60 = vpack.c.bf16 %v7458_v3, %v7458_v3  ;;  %2728 = vst.msk [vmem:[%s14327_s20 + $0x14] sm:$0xf] %vm2722_vm4, %v2668_v5  ;;  %v1976_v1 = vmax.f32 %v1478_v20, 0.0  ;;  %v4512_v40 = vmax.f32 %v4014_v33, 0.0  ;;  %v4707_v36 = vmax.f32 %v4483_v51, %v4511_v54 }
 0x1e4   : > { %2284 = vst.msk [vmem:[#allocation2 + $0x60] sm:$0xff] %vm2271_vm3, %v2171_v57  ;;  %v4484_v52 = vmax.f32 %v3944_v49, 0.0  ;;  %v6435_v21 = vadd.f32 %v14645_v53, %v14613_v50  ;;  %v9551_v3 = vmax.f32 %v9327_v7, %v9355_v56  ;;  %v9552_v44 = vmax.f32 %v9328_v30, %v9356_v22  ;;  %v13508_v56 = vld [vmem:[%s13867_s5 + $0x7f0] sm:$0xff] }
 0x1e5   : > { %12358 = vst.msk [vmem:[%s14327_s20 + $0x1d0] sm:$0xf] %vm2722_vm4, %v7514_v60  ;;  %v2172_v8 = vmax.f32 %v1948_v11, %v1976_v1  ;;  %v18628_v60 = vld [vmem:[#allocation10_spill] sm:$0xff] }
 0x1e6   : > { %v4708_v0 = vmax.f32 %v4484_v52, %v4512_v40  ;;  %v6365_v45 = vadd.f32 %v14645_v53, %v18628_v60  ;;  %v6934_v59 = vmax.f32 %v6435_v21, 0.0  ;;  %v13620_v52 = vld [vmem:[%s13867_s5 + $0xb70] sm:$0xff] }
 0x1e7   : > { %v4924_v29 = vld [vmem:[#allocation2 + $0x50] ss:$2 sm:$0xff]  ;;  %v4980_v9 = vld [vmem:[#allocation2 + $0x51] ss:$2 sm:$0xff]  ;;  %2285 = vst.msk [vmem:[#allocation2 + $0x68] sm:$0xff] %vm2271_vm3, %v2172_v8  ;;  %v6436_v31 = vpop.f32.mrf.mxu2  ;;  %v14639_v6 = vpop.f32.mrf.mxu3 }
 0x1e8   : > { %v5036_v2 = vmax.f32 %v4924_v29, %v4980_v9  ;;  %7240 = vst.msk [vmem:[#allocation2 + $0x50] sm:$0xff] %vm2271_vm3, %v7128_v39  ;;  %v1480_v17 = vpop.f32.mrf.mxu0  ;;  %v14654_v58 = vpop.f32.mrf.mxu1  ;;  %v6437_v20 = vadd.f32 %v14645_v53, %v6436_v31  ;;  %v18629_v39 = vld [vmem:[#allocation14_spill] sm:$0xff]  ;;  %v1950_v29 = vmax.f32 %v1413_v55, 0.0 }
 0x1e9   : > { %v9769_v28 = vld [vmem:[#allocation2 + $0x40] ss:$2 sm:$0xff]  ;;  %v9825_v47 = vld [vmem:[#allocation2 + $0x41] ss:$2 sm:$0xff]  ;;  %7241 = vst.msk [vmem:[#allocation2 + $0x58] sm:$0xff] %vm2271_vm3, %v7129_v25  ;;  %v1481_v62 = vadd.f32 %v14645_v53, %v1480_v17  ;;  %v6367_v33 = vadd.f32 %v14645_v53, %v18629_v39  ;;  %v4017_v38 = vadd.f32 %v14645_v53, %v14654_v58  ;;  %v18630_v17 = vld [vmem:[#allocation17_spill] sm:$0xff] }
 0x1ea   : > { %v9881_v26 = vmax.f32 %v9769_v28, %v9825_v47  ;;  %v5092_v15 = vpack.c.bf16 %v5036_v2, %v5036_v2  ;;  %v6935_v25 = vmax.f32 %v6437_v20, 0.0  ;;  %v13396_v28 = vld [vmem:[%s13867_s5 + $0x470] sm:$0xff]  ;;  %v18631_v47 = vld [vmem:[#allocation11_spill] sm:$0xff]  ;;  %v18635_v39 = vld [vmem:[#allocation28_spill] sm:$0xff] }
 0x1eb   : > { %10647 = vmatmul.msk.bf16.gmra.mxu0 %vm1022_vm2, %v13283_v37  ;;  %11431 = vmatmul.msk.bf16.gmra.mxu1 %vm1022_vm2, %v13395_v23  ;;  %v1977_v41 = vmax.f32 %v1481_v62, 0.0  ;;  %v6906_v23 = vmax.f32 %v6365_v45, 0.0  ;;  %v6907_v61 = vmax.f32 %v6367_v33, 0.0  ;;  %v8788_v54 = vadd.f32 %v14645_v53, %v18631_v47  ;;  %v18632_v62 = vld [vmem:[#allocation21_spill] sm:$0xff] }
 0x1ec   : > { %v9937_v48 = vpack.c.bf16 %v9881_v26, %v9881_v26  ;;  %11519 = vst.msk [vmem:[%s14327_s20 + $0xf4] sm:$0xf] %vm2722_vm4, %v5092_v15  ;;  %12271 = vmatmul.msk.bf16.gmra.mxu2 %vm1022_vm2, %v13507_v42  ;;  %13111 = vmatmul.msk.bf16.gmra.mxu3 %vm1022_vm2, %v13619_v16  ;;  %v3947_v42 = vadd.f32 %v14645_v53, %v18630_v17 }
 0x1ed   : > { %v2173_v24 = vmax.f32 %v1949_v18, %v1977_v41  ;;  %v7130_v49 = vmax.f32 %v6906_v23, %v6934_v59  ;;  %v8858_v16 = vadd.f32 %v14645_v53, %v14615_v4  ;;  %v7131_v43 = vmax.f32 %v6907_v61, %v6935_v25  ;;  %v18634_v41 = vld [vmem:[#allocation24_spill] sm:$0xff] }
 0x1ee   : > { %13198 = vst.msk [vmem:[%s14327_s20 + $0x2b0] sm:$0xf] %vm2722_vm4, %v9937_v48  ;;  %v2396_v57 = vld [vmem:[#allocation2 + $0x60] ss:$2 sm:$0xff]  ;;  %v2508_v35 = vld [vmem:[#allocation2 + $0x61] ss:$2 sm:$0xff]  ;;  %v3949_v26 = vadd.f32 %v14645_v53, %v18632_v62  ;;  %v8860_v4 = vadd.f32 %v14645_v53, %v14639_v6  ;;  %v1416_v7 = vadd.f32 %v14645_v53, %v18634_v41  ;;  %v1418_v33 = vadd.f32 %v14645_v53, %v18635_v39 }
 0x1ef   : > { %v2613_v5 = vmax.f32 %v2396_v57, %v2508_v35  ;;  %4819 = vst.msk [vmem:[#allocation2 + $0x60] sm:$0xff] %vm2271_vm3, %v4707_v36  ;;  %v14678_v27 = vpop.f32.mrf.mxu2  ;;  %v14680_v11 = vpop.f32.mrf.mxu3  ;;  %v18633_v48 = vld [vmem:[#allocation15_spill] sm:$0xff]  ;;  %v4513_v36 = vmax.f32 %v4017_v38, 0.0  ;;  %v9357_v34 = vmax.f32 %v8858_v16, 0.0  ;;  %v9329_v60 = vmax.f32 %v8788_v54, 0.0 }
 0x1f0   : > { %v7347_v50 = vld [vmem:[#allocation2 + $0x50] ss:$2 sm:$0xff]  ;;  %v7403_v1 = vld [vmem:[#allocation2 + $0x51] ss:$2 sm:$0xff]  ;;  %4820 = vst.msk [vmem:[#allocation2 + $0x68] sm:$0xff] %vm2271_vm3, %v4708_v0  ;;  %v1482_v19 = vpop.f32.mrf.mxu0  ;;  %v4018_v8 = vpop.f32.mrf.mxu1  ;;  %v8790_v22 = vadd.f32 %v14645_v53, %v18633_v48  ;;  %v4485_v0 = vmax.f32 %v3947_v42, 0.0 }
 0x1f1   : > { %v7459_v37 = vmax.f32 %v7347_v50, %v7403_v1  ;;  %9663 = vst.msk [vmem:[#allocation2 + $0x50] sm:$0xff] %vm2271_vm3, %v9551_v3  ;;  %v2669_v13 = vpack.c.bf16 %v2613_v5, %v2613_v5  ;;  %v1483_v46 = vadd.f32 %v14645_v53, %v1482_v19  ;;  %v4019_v2 = vadd.f32 %v14645_v53, %v4018_v8 }
 0x1f2   : > { %9664 = vst.msk [vmem:[#allocation2 + $0x58] sm:$0xff] %vm2271_vm3, %v9552_v44  ;;  %v4486_v55 = vmax.f32 %v3949_v26, 0.0  ;;  %v9358_v5 = vmax.f32 %v8860_v4, 0.0  ;;  %v9330_v45 = vmax.f32 %v8790_v22, 0.0  ;;  %v1951_v50 = vmax.f32 %v1416_v7, 0.0  ;;  %v13285_v4 = vld [vmem:[%s13867_s5 + $0xf8] sm:$0xff] }
 0x1f3   : > { %v7515_v9 = vpack.c.bf16 %v7459_v37, %v7459_v37  ;;  %2729 = vst.msk [vmem:[%s14327_s20 + $0x18] sm:$0xf] %vm2722_vm4, %v2669_v13  ;;  %v1978_v31 = vmax.f32 %v1483_v46, 0.0  ;;  %v4514_v35 = vmax.f32 %v4019_v2, 0.0  ;;  %v4709_v1 = vmax.f32 %v4485_v0, %v4513_v36 }
 0x1f4   : > { %2286 = vst.msk [vmem:[#allocation2 + $0x70] sm:$0xff] %vm2271_vm3, %v2173_v24  ;;  %v6440_v44 = vadd.f32 %v14645_v53, %v14678_v27  ;;  %v9553_v37 = vmax.f32 %v9329_v60, %v9357_v34  ;;  %v9554_v23 = vmax.f32 %v9330_v45, %v9358_v5  ;;  %v13509_v34 = vld [vmem:[%s13867_s5 + $0x7f8] sm:$0xff] }
 0x1f5   : > { %12359 = vst.msk [vmem:[%s14327_s20 + $0x1d4] sm:$0xf] %vm2722_vm4, %v7515_v9  ;;  %v2174_v12 = vmax.f32 %v1950_v29, %v1978_v31  ;;  %v4710_v8 = vmax.f32 %v4486_v55, %v4514_v35  ;;  %v18636_v9 = vld [vmem:[#allocation18_spill] sm:$0xff] }
 0x1f6   : > { %v6370_v25 = vadd.f32 %v14645_v53, %v18636_v9  ;;  %v6936_v16 = vmax.f32 %v6440_v44, 0.0  ;;  %v13621_v55 = vld [vmem:[%s13867_s5 + $0xb78] sm:$0xff] }
 0x1f7   : > { %v4925_v63 = vld [vmem:[#allocation2 + $0x60] ss:$2 sm:$0xff]  ;;  %v4981_v32 = vld [vmem:[#allocation2 + $0x61] ss:$2 sm:$0xff]  ;;  %2287 = vst.msk [vmem:[#allocation2 + $0x78] sm:$0xff] %vm2271_vm3, %v2174_v12  ;;  %v6441_v14 = vpop.f32.mrf.mxu2  ;;  %v14704_v58 = vpop.f32.mrf.mxu3 }
 0x1f8   : > { %v5037_v15 = vmax.f32 %v4925_v63, %v4981_v32  ;;  %7242 = vst.msk [vmem:[#allocation2 + $0x60] sm:$0xff] %vm2271_vm3, %v7130_v49  ;;  %v1485_v40 = vpop.f32.mrf.mxu0  ;;  %v14714_v51 = vpop.f32.mrf.mxu1  ;;  %v6442_v46 = vadd.f32 %v14645_v53, %v6441_v14  ;;  %v18637_v49 = vld [vmem:[#allocation22_spill] sm:$0xff]  ;;  %v1952_v63 = vmax.f32 %v1418_v33, 0.0 }
 0x1f9   : > { %v9770_v30 = vld [vmem:[#allocation2 + $0x50] ss:$2 sm:$0xff]  ;;  %v9826_v18 = vld [vmem:[#allocation2 + $0x51] ss:$2 sm:$0xff]  ;;  %7243 = vst.msk [vmem:[#allocation2 + $0x68] sm:$0xff] %vm2271_vm3, %v7131_v43  ;;  %v1486_v21 = vadd.f32 %v14645_v53, %v1485_v40  ;;  %v6372_v2 = vadd.f32 %v14645_v53, %v18637_v49  ;;  %v4022_v54 = vadd.f32 %v14645_v53, %v14714_v51  ;;  %v18643_v49 = vld [vmem:[#allocation36_spill] sm:$0xff] }
 0x1fa   : > { %v9882_v6 = vmax.f32 %v9770_v30, %v9826_v18  ;;  %v5093_v57 = vpack.c.bf16 %v5037_v15, %v5037_v15  ;;  %v6937_v43 = vmax.f32 %v6442_v46, 0.0  ;;  %v18638_v40 = vld [vmem:[#allocation25_spill] sm:$0xff]  ;;  %v13397_v30 = vld [vmem:[%s13867_s5 + $0x478] sm:$0xff]  ;;  %v18639_v18 = vld [vmem:[#allocation19_spill] sm:$0xff] }
 0x1fb   : > { %10648 = vmatmul.msk.bf16.gmra.mxu0 %vm1022_vm2, %v13284_v10  ;;  %11432 = vmatmul.msk.bf16.gmra.mxu1 %vm1022_vm2, %v13396_v28  ;;  %v1979_v20 = vmax.f32 %v1486_v21, 0.0  ;;  %v6908_v28 = vmax.f32 %v6370_v25, 0.0  ;;  %v6909_v47 = vmax.f32 %v6372_v2, 0.0  ;;  %v8793_v36 = vadd.f32 %v14645_v53, %v18639_v18  ;;  %v18640_v21 = vld [vmem:[#allocation29_spill] sm:$0xff] }
 0x1fc   : > { %v9938_v3 = vpack.c.bf16 %v9882_v6, %v9882_v6  ;;  %11520 = vst.msk [vmem:[%s14327_s20 + $0xf8] sm:$0xf] %vm2722_vm4, %v5093_v57  ;;  %12272 = vmatmul.msk.bf16.gmra.mxu2 %vm1022_vm2, %v13508_v56  ;;  %13112 = vmatmul.msk.bf16.gmra.mxu3 %vm1022_vm2, %v13620_v52  ;;  %v3952_v56 = vadd.f32 %v14645_v53, %v18638_v40 }
 0x1fd   : > { %v2175_v61 = vmax.f32 %v1951_v50, %v1979_v20  ;;  %v7132_v26 = vmax.f32 %v6908_v28, %v6936_v16  ;;  %v8863_v52 = vadd.f32 %v14645_v53, %v14680_v11  ;;  %v7133_v41 = vmax.f32 %v6909_v47, %v6937_v43  ;;  %v18642_v20 = vld [vmem:[#allocation32_spill] sm:$0xff] }
 0x1fe   : > { %13199 = vst.msk [vmem:[%s14327_s20 + $0x2b4] sm:$0xf] %vm2722_vm4, %v9938_v3  ;;  %v2398_v24 = vld [vmem:[#allocation2 + $0x70] ss:$2 sm:$0xff]  ;;  %v2510_v19 = vld [vmem:[#allocation2 + $0x71] ss:$2 sm:$0xff]  ;;  %v3954_v6 = vadd.f32 %v14645_v53, %v18640_v21  ;;  %v8865_v11 = vadd.f32 %v14645_v53, %v14704_v58  ;;  %v1421_v60 = vadd.f32 %v14645_v53, %v18642_v20  ;;  %v1423_v2 = vadd.f32 %v14645_v53, %v18643_v49 }
 0x1ff   : > { %v2614_v13 = vmax.f32 %v2398_v24, %v2510_v19  ;;  %4821 = vst.msk [vmem:[#allocation2 + $0x70] sm:$0xff] %vm2271_vm3, %v4709_v1  ;;  %v14738_v59 = vpop.f32.mrf.mxu2  ;;  %v14740_v29 = vpop.f32.mrf.mxu3  ;;  %v18641_v3 = vld [vmem:[#allocation23_spill] sm:$0xff]  ;;  %v4515_v1 = vmax.f32 %v4022_v54, 0.0  ;;  %v9359_v39 = vmax.f32 %v8863_v52, 0.0  ;;  %v9331_v9 = vmax.f32 %v8793_v36, 0.0 }
 0x200   : > { %v7348_v27 = vld [vmem:[#allocation2 + $0x60] ss:$2 sm:$0xff]  ;;  %v7404_v31 = vld [vmem:[#allocation2 + $0x61] ss:$2 sm:$0xff]  ;;  %4822 = vst.msk [vmem:[#allocation2 + $0x78] sm:$0xff] %vm2271_vm3, %v4710_v8  ;;  %v1487_v38 = vpop.f32.mrf.mxu0  ;;  %v4023_v12 = vpop.f32.mrf.mxu1  ;;  %v8795_v5 = vadd.f32 %v14645_v53, %v18641_v3  ;;  %v4487_v8 = vmax.f32 %v3952_v56, 0.0 }
 0x201   : > { %v7460_v10 = vmax.f32 %v7348_v27, %v7404_v31  ;;  %9665 = vst.msk [vmem:[#allocation2 + $0x60] sm:$0xff] %vm2271_vm3, %v9553_v37  ;;  %v2670_v17 = vpack.c.bf16 %v2614_v13, %v2614_v13  ;;  %v1488_v42 = vadd.f32 %v14645_v53, %v1487_v38  ;;  %v4024_v15 = vadd.f32 %v14645_v53, %v4023_v12 }
 0x202   : > { %9666 = vst.msk [vmem:[#allocation2 + $0x68] sm:$0xff] %vm2271_vm3, %v9554_v23  ;;  %v4488_v33 = vmax.f32 %v3954_v6, 0.0  ;;  %v9360_v13 = vmax.f32 %v8865_v11, 0.0  ;;  %v9332_v25 = vmax.f32 %v8795_v5, 0.0  ;;  %v1953_v27 = vmax.f32 %v1421_v60, 0.0  ;;  %v13286_v11 = vld [vmem:[%s13867_s5 + $0x100] sm:$0xff] }
 0x203   : > { %v7516_v32 = vpack.c.bf16 %v7460_v10, %v7460_v10  ;;  %2730 = vst.msk [vmem:[%s14327_s20 + $0x1c] sm:$0xf] %vm2722_vm4, %v2670_v17  ;;  %v1980_v14 = vmax.f32 %v1488_v42, 0.0  ;;  %v4516_v19 = vmax.f32 %v4024_v15, 0.0  ;;  %v4711_v31 = vmax.f32 %v4487_v8, %v4515_v1 }
 0x204   : > { %2288 = vst.msk [vmem:[#allocation2 + $0x80] sm:$0xff] %vm2271_vm3, %v2175_v61  ;;  %v6445_v23 = vadd.f32 %v14645_v53, %v14738_v59  ;;  %v9555_v10 = vmax.f32 %v9331_v9, %v9359_v39  ;;  %v9556_v28 = vmax.f32 %v9332_v25, %v9360_v13  ;;  %v13510_v39 = vld [vmem:[%s13867_s5 + $0x800] sm:$0xff] }
 0x205   : > { %12360 = vst.msk [vmem:[%s14327_s20 + $0x1d8] sm:$0xf] %vm2722_vm4, %v7516_v32  ;;  %v2176_v62 = vmax.f32 %v1952_v63, %v1980_v14  ;;  %v4712_v12 = vmax.f32 %v4488_v33, %v4516_v19  ;;  %v18644_v32 = vld [vmem:[#allocation26_spill] sm:$0xff]  ;;  %v13622_v33 = vld [vmem:[%s13867_s5 + $0xb80] sm:$0xff] }
 0x206   : > { %v6375_v43 = vadd.f32 %v14645_v53, %v18644_v32  ;;  %v6938_v52 = vmax.f32 %v6445_v23, 0.0 }
 0x207   : > { %v4926_v48 = vld [vmem:[#allocation2 + $0x70] ss:$2 sm:$0xff]  ;;  %v4982_v22 = vld [vmem:[#allocation2 + $0x71] ss:$2 sm:$0xff]  ;;  %2289 = vst.msk [vmem:[#allocation2 + $0x88] sm:$0xff] %vm2271_vm3, %v2176_v62  ;;  %v6446_v7 = vpop.f32.mrf.mxu2  ;;  %v14764_v51 = vpop.f32.mrf.mxu3 }
 0x208   : > { %v5038_v57 = vmax.f32 %v4926_v48, %v4982_v22  ;;  %7244 = vst.msk [vmem:[#allocation2 + $0x70] sm:$0xff] %vm2271_vm3, %v7132_v26  ;;  %v1490_v35 = vpop.f32.mrf.mxu0  ;;  %v14774_v0 = vpop.f32.mrf.mxu1  ;;  %v6447_v42 = vadd.f32 %v14645_v53, %v6446_v7  ;;  %v18645_v26 = vld [vmem:[#allocation30_spill] sm:$0xff]  ;;  %v1954_v48 = vmax.f32 %v1423_v2, 0.0 }
 0x209   : > { %v9771_v45 = vld [vmem:[#allocation2 + $0x60] ss:$2 sm:$0xff]  ;;  %v9827_v50 = vld [vmem:[#allocation2 + $0x61] ss:$2 sm:$0xff]  ;;  %7245 = vst.msk [vmem:[#allocation2 + $0x78] sm:$0xff] %vm2271_vm3, %v7133_v41  ;;  %v1491_v44 = vadd.f32 %v14645_v53, %v1490_v35  ;;  %v6377_v15 = vadd.f32 %v14645_v53, %v18645_v26  ;;  %v4027_v36 = vadd.f32 %v14645_v53, %v14774_v0  ;;  %v18646_v35 = vld [vmem:[#allocation33_spill] sm:$0xff] }
 0x20a   : > { %v9883_v58 = vmax.f32 %v9771_v45, %v9827_v50  ;;  %v5094_v24 = vpack.c.bf16 %v5038_v57, %v5038_v57  ;;  %v6939_v41 = vmax.f32 %v6447_v42, 0.0  ;;  %v13398_v45 = vld [vmem:[%s13867_s5 + $0x480] sm:$0xff]  ;;  %v18651_v26 = vld [vmem:[#allocation44_spill] sm:$0xff] }
 0x20b   : > { %10649 = vmatmul.msk.bf16.gmra.mxu0 %vm1022_vm2, %v13285_v4  ;;  %11433 = vmatmul.msk.bf16.gmra.mxu1 %vm1022_vm2, %v13397_v30  ;;  %v1981_v46 = vmax.f32 %v1491_v44, 0.0  ;;  %v6910_v30 = vmax.f32 %v6375_v43, 0.0  ;;  %v6911_v18 = vmax.f32 %v6377_v15, 0.0  ;;  %v18647_v50 = vld [vmem:[#allocation27_spill] sm:$0xff]  ;;  %v18648_v44 = vld [vmem:[#allocation37_spill] sm:$0xff]  ;;  %v1428_v15 = vadd.f32 %v14645_v53, %v18651_v26 }
 0x20c   : > { %v9939_v37 = vpack.c.bf16 %v9883_v58, %v9883_v58  ;;  %11521 = vst.msk [vmem:[%s14327_s20 + $0xfc] sm:$0xf] %vm2722_vm4, %v5094_v24  ;;  %12273 = vmatmul.msk.bf16.gmra.mxu2 %vm1022_vm2, %v13509_v34  ;;  %13113 = vmatmul.msk.bf16.gmra.mxu3 %vm1022_vm2, %v13621_v55  ;;  %v3957_v34 = vadd.f32 %v14645_v53, %v18646_v35 }
 0x20d   : > { %v2177_v47 = vmax.f32 %v1953_v27, %v1981_v46  ;;  %v7134_v6 = vmax.f32 %v6910_v30, %v6938_v52  ;;  %v8868_v55 = vadd.f32 %v14645_v53, %v14740_v29  ;;  %v7135_v20 = vmax.f32 %v6911_v18, %v6939_v41  ;;  %v18650_v46 = vld [vmem:[#allocation40_spill] sm:$0xff] }
 0x20e   : > { %13200 = vst.msk [vmem:[%s14327_s20 + $0x2b8] sm:$0xf] %vm2722_vm4, %v9939_v37  ;;  %v2400_v61 = vld [vmem:[#allocation2 + $0x80] ss:$2 sm:$0xff]  ;;  %v2512_v38 = vld [vmem:[#allocation2 + $0x81] ss:$2 sm:$0xff]  ;;  %v8798_v1 = vadd.f32 %v14645_v53, %v18647_v50  ;;  %v3959_v58 = vadd.f32 %v14645_v53, %v18648_v44  ;;  %v8870_v29 = vadd.f32 %v14645_v53, %v14764_v51  ;;  %v1426_v9 = vadd.f32 %v14645_v53, %v18650_v46 }
 0x20f   : > { %v2615_v17 = vmax.f32 %v2400_v61, %v2512_v38  ;;  %4823 = vst.msk [vmem:[#allocation2 + $0x80] sm:$0xff] %vm2271_vm3, %v4711_v31  ;;  %v14798_v16 = vpop.f32.mrf.mxu2  ;;  %v14800_v63 = vpop.f32.mrf.mxu3  ;;  %v18649_v37 = vld [vmem:[#allocation31_spill] sm:$0xff]  ;;  %v4517_v31 = vmax.f32 %v4027_v36, 0.0  ;;  %v9361_v49 = vmax.f32 %v8868_v55, 0.0 }
 0x210   : > { %v7349_v59 = vld [vmem:[#allocation2 + $0x70] ss:$2 sm:$0xff]  ;;  %v7405_v14 = vld [vmem:[#allocation2 + $0x71] ss:$2 sm:$0xff]  ;;  %4824 = vst.msk [vmem:[#allocation2 + $0x88] sm:$0xff] %vm2271_vm3, %v4712_v12  ;;  %v1492_v54 = vpop.f32.mrf.mxu0  ;;  %v4028_v62 = vpop.f32.mrf.mxu1  ;;  %v8800_v13 = vadd.f32 %v14645_v53, %v18649_v37  ;;  %v4489_v12 = vmax.f32 %v3957_v34, 0.0 }
 0x211   : > { %v7461_v4 = vmax.f32 %v7349_v59, %v7405_v14  ;;  %9667 = vst.msk [vmem:[#allocation2 + $0x70] sm:$0xff] %vm2271_vm3, %v9555_v10  ;;  %v2671_v40 = vpack.c.bf16 %v2615_v17, %v2615_v17  ;;  %v1493_v56 = vadd.f32 %v14645_v53, %v1492_v54  ;;  %v4029_v57 = vadd.f32 %v14645_v53, %v4028_v62 }
 0x212   : > { %9668 = vst.msk [vmem:[#allocation2 + $0x78] sm:$0xff] %vm2271_vm3, %v9556_v28  ;;  %v4490_v2 = vmax.f32 %v3959_v58, 0.0  ;;  %v9362_v17 = vmax.f32 %v8870_v29, 0.0  ;;  %v9333_v32 = vmax.f32 %v8798_v1, 0.0  ;;  %v9334_v43 = vmax.f32 %v8800_v13, 0.0  ;;  %v13287_v29 = vld [vmem:[%s13867_s5 + $0x108] sm:$0xff] }
 0x213   : > { %v7517_v22 = vpack.c.bf16 %v7461_v4, %v7461_v4  ;;  %2731 = vst.msk [vmem:[%s14327_s20 + $0x20] sm:$0xf] %vm2722_vm4, %v2671_v40  ;;  %v1982_v7 = vmax.f32 %v1493_v56, 0.0  ;;  %v4518_v38 = vmax.f32 %v4029_v57, 0.0  ;;  %v1955_v59 = vmax.f32 %v1426_v9, 0.0 }
 0x214   : > { %2290 = vst.msk [vmem:[#allocation2 + $0x90] sm:$0xff] %vm2271_vm3, %v2177_v47  ;;  %v4713_v14 = vmax.f32 %v4489_v12, %v4517_v31  ;;  %v6450_v28 = vadd.f32 %v14645_v53, %v14798_v16  ;;  %v9557_v4 = vmax.f32 %v9333_v32, %v9361_v49  ;;  %v9558_v30 = vmax.f32 %v9334_v43, %v9362_v17  ;;  %v13511_v49 = vld [vmem:[%s13867_s5 + $0x808] sm:$0xff] }
 0x215   : > { %12361 = vst.msk [vmem:[%s14327_s20 + $0x1dc] sm:$0xf] %vm2722_vm4, %v7517_v22  ;;  %v2178_v21 = vmax.f32 %v1954_v48, %v1982_v7  ;;  %v4714_v62 = vmax.f32 %v4490_v2, %v4518_v38  ;;  %v18652_v22 = vld [vmem:[#allocation34_spill] sm:$0xff]  ;;  %v13623_v2 = vld [vmem:[%s13867_s5 + $0xb88] sm:$0xff] }
 0x216   : > { %v6380_v41 = vadd.f32 %v14645_v53, %v18652_v22  ;;  %v6940_v55 = vmax.f32 %v6450_v28, 0.0 }
 0x217   : > { %v4927_v3 = vld [vmem:[#allocation2 + $0x80] ss:$2 sm:$0xff]  ;;  %v4983_v5 = vld [vmem:[#allocation2 + $0x81] ss:$2 sm:$0xff]  ;;  %2291 = vst.msk [vmem:[#allocation2 + $0x98] sm:$0xff] %vm2271_vm3, %v2178_v21  ;;  %v6451_v60 = vpop.f32.mrf.mxu2  ;;  %v14824_v0 = vpop.f32.mrf.mxu3 }
 0x218   : > { %v5039_v24 = vmax.f32 %v4927_v3, %v4983_v5  ;;  %7246 = vst.msk [vmem:[#allocation2 + $0x80] sm:$0xff] %vm2271_vm3, %v7134_v6  ;;  %v1495_v19 = vpop.f32.mrf.mxu0  ;;  %v14834_v8 = vpop.f32.mrf.mxu1  ;;  %v6452_v56 = vadd.f32 %v14645_v53, %v6451_v60  ;;  %v18653_v6 = vld [vmem:[#allocation38_spill] sm:$0xff]  ;;  %v1956_v3 = vmax.f32 %v1428_v15, 0.0 }
 0x219   : > { %v9772_v25 = vld [vmem:[#allocation2 + $0x70] ss:$2 sm:$0xff]  ;;  %v9828_v27 = vld [vmem:[#allocation2 + $0x71] ss:$2 sm:$0xff]  ;;  %7247 = vst.msk [vmem:[#allocation2 + $0x88] sm:$0xff] %vm2271_vm3, %v7135_v20  ;;  %v1496_v23 = vadd.f32 %v14645_v53, %v1495_v19  ;;  %v6382_v57 = vadd.f32 %v14645_v53, %v18653_v6  ;;  %v4032_v1 = vadd.f32 %v14645_v53, %v14834_v8  ;;  %v18659_v6 = vld [vmem:[#allocation52_spill] sm:$0xff] }
 0x21a   : > { %v9884_v51 = vmax.f32 %v9772_v25, %v9828_v27  ;;  %v5095_v61 = vpack.c.bf16 %v5039_v24, %v5039_v24  ;;  %v6941_v20 = vmax.f32 %v6452_v56, 0.0  ;;  %v18654_v19 = vld [vmem:[#allocation41_spill] sm:$0xff]  ;;  %v13399_v25 = vld [vmem:[%s13867_s5 + $0x488] sm:$0xff]  ;;  %v18655_v27 = vld [vmem:[#allocation35_spill] sm:$0xff] }
 0x21b   : > { %10650 = vmatmul.msk.bf16.gmra.mxu0 %vm1022_vm2, %v13286_v11  ;;  %11434 = vmatmul.msk.bf16.gmra.mxu1 %vm1022_vm2, %v13398_v45  ;;  %v1983_v42 = vmax.f32 %v1496_v23, 0.0  ;;  %v6912_v45 = vmax.f32 %v6380_v41, 0.0  ;;  %v6913_v50 = vmax.f32 %v6382_v57, 0.0  ;;  %v8803_v31 = vadd.f32 %v14645_v53, %v18655_v27  ;;  %v18656_v23 = vld [vmem:[#allocation45_spill] sm:$0xff] }
 0x21c   : > { %v9940_v10 = vpack.c.bf16 %v9884_v51, %v9884_v51  ;;  %11522 = vst.msk [vmem:[%s14327_s20 + $0x100] sm:$0xf] %vm2722_vm4, %v5095_v61  ;;  %12274 = vmatmul.msk.bf16.gmra.mxu2 %vm1022_vm2, %v13510_v39  ;;  %13114 = vmatmul.msk.bf16.gmra.mxu3 %vm1022_vm2, %v13622_v33  ;;  %v3962_v39 = vadd.f32 %v14645_v53, %v18654_v19 }
 0x21d   : > { %v2179_v18 = vmax.f32 %v1955_v59, %v1983_v42  ;;  %v7136_v58 = vmax.f32 %v6912_v45, %v6940_v55  ;;  %v8873_v33 = vadd.f32 %v14645_v53, %v14800_v63  ;;  %v7137_v46 = vmax.f32 %v6913_v50, %v6941_v20  ;;  %v18658_v42 = vld [vmem:[#allocation48_spill] sm:$0xff] }
 0x21e   : > { %13201 = vst.msk [vmem:[%s14327_s20 + $0x2bc] sm:$0xf] %vm2722_vm4, %v9940_v10  ;;  %v2402_v47 = vld [vmem:[#allocation2 + $0x90] ss:$2 sm:$0xff]  ;;  %v2514_v54 = vld [vmem:[#allocation2 + $0x91] ss:$2 sm:$0xff]  ;;  %v3964_v51 = vadd.f32 %v14645_v53, %v18656_v23  ;;  %v8875_v63 = vadd.f32 %v14645_v53, %v14824_v0  ;;  %v1431_v32 = vadd.f32 %v14645_v53, %v18658_v42  ;;  %v1433_v57 = vadd.f32 %v14645_v53, %v18659_v6 }
 0x21f   : > { %v2616_v40 = vmax.f32 %v2402_v47, %v2514_v54  ;;  %4825 = vst.msk [vmem:[#allocation2 + $0x90] sm:$0xff] %vm2271_vm3, %v4713_v14  ;;  %v14858_v52 = vpop.f32.mrf.mxu2  ;;  %v14860_v48 = vpop.f32.mrf.mxu3  ;;  %v18657_v10 = vld [vmem:[#allocation39_spill] sm:$0xff]  ;;  %v4519_v14 = vmax.f32 %v4032_v1, 0.0  ;;  %v9363_v26 = vmax.f32 %v8873_v33, 0.0  ;;  %v9335_v22 = vmax.f32 %v8803_v31, 0.0 }
 0x220   : > { %v7350_v16 = vld [vmem:[#allocation2 + $0x80] ss:$2 sm:$0xff]  ;;  %v7406_v7 = vld [vmem:[#allocation2 + $0x81] ss:$2 sm:$0xff]  ;;  %4826 = vst.msk [vmem:[#allocation2 + $0x98] sm:$0xff] %vm2271_vm3, %v4714_v62  ;;  %v1497_v36 = vpop.f32.mrf.mxu0  ;;  %v4033_v21 = vpop.f32.mrf.mxu1  ;;  %v8805_v17 = vadd.f32 %v14645_v53, %v18657_v10  ;;  %v4491_v62 = vmax.f32 %v3962_v39, 0.0 }
 0x221   : > { %v7462_v11 = vmax.f32 %v7350_v16, %v7406_v7  ;;  %9669 = vst.msk [vmem:[#allocation2 + $0x80] sm:$0xff] %vm2271_vm3, %v9557_v4  ;;  %v2672_v35 = vpack.c.bf16 %v2616_v40, %v2616_v40  ;;  %v1498_v34 = vadd.f32 %v14645_v53, %v1497_v36  ;;  %v4034_v24 = vadd.f32 %v14645_v53, %v4033_v21 }
 0x222   : > { %9670 = vst.msk [vmem:[#allocation2 + $0x88] sm:$0xff] %vm2271_vm3, %v9558_v30  ;;  %v4492_v15 = vmax.f32 %v3964_v51, 0.0  ;;  %v9364_v40 = vmax.f32 %v8875_v63, 0.0  ;;  %v9336_v41 = vmax.f32 %v8805_v17, 0.0  ;;  %v1957_v16 = vmax.f32 %v1431_v32, 0.0  ;;  %v13288_v63 = vld [vmem:[%s13867_s5 + $0x110] sm:$0xff] }
 0x223   : > { %v7518_v5 = vpack.c.bf16 %v7462_v11, %v7462_v11  ;;  %2732 = vst.msk [vmem:[%s14327_s20 + $0x24] sm:$0xf] %vm2722_vm4, %v2672_v35  ;;  %v1984_v60 = vmax.f32 %v1498_v34, 0.0  ;;  %v4520_v54 = vmax.f32 %v4034_v24, 0.0  ;;  %v4715_v7 = vmax.f32 %v4491_v62, %v4519_v14 }
 0x224   : > { %2292 = vst.msk [vmem:[#allocation2 + $0xa0] sm:$0xff] %vm2271_vm3, %v2179_v18  ;;  %v6455_v30 = vadd.f32 %v14645_v53, %v14858_v52  ;;  %v9559_v11 = vmax.f32 %v9335_v22, %v9363_v26  ;;  %v9560_v45 = vmax.f32 %v9336_v41, %v9364_v40  ;;  %v13512_v26 = vld [vmem:[%s13867_s5 + $0x810] sm:$0xff] }
 0x225   : > { %12362 = vst.msk [vmem:[%s14327_s20 + $0x1e0] sm:$0xf] %vm2722_vm4, %v7518_v5  ;;  %v2180_v44 = vmax.f32 %v1956_v3, %v1984_v60  ;;  %v4716_v21 = vmax.f32 %v4492_v15, %v4520_v54  ;;  %v18660_v5 = vld [vmem:[#allocation42_spill] sm:$0xff]  ;;  %v13624_v15 = vld [vmem:[%s13867_s5 + $0xb90] sm:$0xff] }
 0x226   : > { %v6385_v20 = vadd.f32 %v14645_v53, %v18660_v5  ;;  %v6942_v33 = vmax.f32 %v6455_v30, 0.0 }
 0x227   : > { %v4928_v37 = vld [vmem:[#allocation2 + $0x90] ss:$2 sm:$0xff]  ;;  %v4984_v13 = vld [vmem:[#allocation2 + $0x91] ss:$2 sm:$0xff]  ;;  %2293 = vst.msk [vmem:[#allocation2 + $0xa8] sm:$0xff] %vm2271_vm3, %v2180_v44  ;;  %v6456_v9 = vpop.f32.mrf.mxu2  ;;  %v14884_v8 = vpop.f32.mrf.mxu3 }
 0x228   : > { %v5040_v61 = vmax.f32 %v4928_v37, %v4984_v13  ;;  %7248 = vst.msk [vmem:[#allocation2 + $0x90] sm:$0xff] %vm2271_vm3, %v7136_v58  ;;  %v1500_v38 = vpop.f32.mrf.mxu0  ;;  %v14894_v12 = vpop.f32.mrf.mxu1  ;;  %v6457_v34 = vadd.f32 %v14645_v53, %v6456_v9  ;;  %v18661_v58 = vld [vmem:[#allocation46_spill] sm:$0xff]  ;;  %v1958_v37 = vmax.f32 %v1433_v57, 0.0 }
 0x229   : > { %v9773_v43 = vld [vmem:[#allocation2 + $0x80] ss:$2 sm:$0xff]  ;;  %v9829_v59 = vld [vmem:[#allocation2 + $0x81] ss:$2 sm:$0xff]  ;;  %7249 = vst.msk [vmem:[#allocation2 + $0x98] sm:$0xff] %vm2271_vm3, %v7137_v46  ;;  %v1501_v28 = vadd.f32 %v14645_v53, %v1500_v38  ;;  %v6387_v24 = vadd.f32 %v14645_v53, %v18661_v58  ;;  %v4037_v31 = vadd.f32 %v14645_v53, %v14894_v12  ;;  %v18662_v38 = vld [vmem:[#allocation49_spill] sm:$0xff] }
 0x22a   : > { %v9885_v0 = vmax.f32 %v9773_v43, %v9829_v59  ;;  %v5096_v47 = vpack.c.bf16 %v5040_v61, %v5040_v61  ;;  %v6943_v46 = vmax.f32 %v6457_v34, 0.0  ;;  %v13400_v43 = vld [vmem:[%s13867_s5 + $0x490] sm:$0xff]  ;;  %v18663_v59 = vld [vmem:[#allocation43_spill] sm:$0xff]  ;;  %v18667_v58 = vld [vmem:[#allocation60_spill] sm:$0xff] }
 0x22b   : > { %10651 = vmatmul.msk.bf16.gmra.mxu0 %vm1022_vm2, %v13287_v29  ;;  %11435 = vmatmul.msk.bf16.gmra.mxu1 %vm1022_vm2, %v13399_v25  ;;  %v1985_v56 = vmax.f32 %v1501_v28, 0.0  ;;  %v6914_v25 = vmax.f32 %v6385_v20, 0.0  ;;  %v6915_v27 = vmax.f32 %v6387_v24, 0.0  ;;  %v8808_v14 = vadd.f32 %v14645_v53, %v18663_v59  ;;  %v18664_v28 = vld [vmem:[#allocation53_spill] sm:$0xff] }
 0x22c   : > { %v9941_v4 = vpack.c.bf16 %v9885_v0, %v9885_v0  ;;  %11523 = vst.msk [vmem:[%s14327_s20 + $0x104] sm:$0xf] %vm2722_vm4, %v5096_v47  ;;  %12275 = vmatmul.msk.bf16.gmra.mxu2 %vm1022_vm2, %v13511_v49  ;;  %13115 = vmatmul.msk.bf16.gmra.mxu3 %vm1022_vm2, %v13623_v2  ;;  %v3967_v49 = vadd.f32 %v14645_v53, %v18662_v38 }
 0x22d   : > { %v2181_v50 = vmax.f32 %v1957_v16, %v1985_v56  ;;  %v7138_v51 = vmax.f32 %v6914_v25, %v6942_v33  ;;  %v8878_v2 = vadd.f32 %v14645_v53, %v14860_v48  ;;  %v7139_v42 = vmax.f32 %v6915_v27, %v6943_v46  ;;  %v18666_v56 = vld [vmem:[#allocation56_spill] sm:$0xff] }
 0x22e   : > { %13202 = vst.msk [vmem:[%s14327_s20 + $0x2c0] sm:$0xf] %vm2722_vm4, %v9941_v4  ;;  %v2404_v18 = vld [vmem:[#allocation2 + $0xa0] ss:$2 sm:$0xff]  ;;  %v2516_v36 = vld [vmem:[#allocation2 + $0xa1] ss:$2 sm:$0xff]  ;;  %v3969_v0 = vadd.f32 %v14645_v53, %v18664_v28  ;;  %v8880_v48 = vadd.f32 %v14645_v53, %v14884_v8  ;;  %v1436_v22 = vadd.f32 %v14645_v53, %v18666_v56  ;;  %v1438_v24 = vadd.f32 %v14645_v53, %v18667_v58 }
 0x22f   : > { %v2617_v35 = vmax.f32 %v2404_v18, %v2516_v36  ;;  %4827 = vst.msk [vmem:[#allocation2 + $0xa0] sm:$0xff] %vm2271_vm3, %v4715_v7  ;;  %v14918_v55 = vpop.f32.mrf.mxu2  ;;  %v14920_v3 = vpop.f32.mrf.mxu3  ;;  %v18665_v4 = vld [vmem:[#allocation47_spill] sm:$0xff]  ;;  %v4521_v7 = vmax.f32 %v4037_v31, 0.0  ;;  %v9365_v6 = vmax.f32 %v8878_v2, 0.0  ;;  %v9337_v5 = vmax.f32 %v8808_v14, 0.0 }
 0x230   : > { %v7351_v52 = vld [vmem:[#allocation2 + $0x90] ss:$2 sm:$0xff]  ;;  %v7407_v60 = vld [vmem:[#allocation2 + $0x91] ss:$2 sm:$0xff]  ;;  %4828 = vst.msk [vmem:[#allocation2 + $0xa8] sm:$0xff] %vm2271_vm3, %v4716_v21  ;;  %v1502_v1 = vpop.f32.mrf.mxu0  ;;  %v4038_v44 = vpop.f32.mrf.mxu1  ;;  %v8810_v40 = vadd.f32 %v14645_v53, %v18665_v4  ;;  %v4493_v21 = vmax.f32 %v3967_v49, 0.0 }
 0x231   : > { %v7463_v29 = vmax.f32 %v7351_v52, %v7407_v60  ;;  %9671 = vst.msk [vmem:[#allocation2 + $0x90] sm:$0xff] %vm2271_vm3, %v9559_v11  ;;  %v2673_v19 = vpack.c.bf16 %v2617_v35, %v2617_v35  ;;  %v1503_v39 = vadd.f32 %v14645_v53, %v1502_v1  ;;  %v4039_v61 = vadd.f32 %v14645_v53, %v4038_v44 }
 0x232   : > { %9672 = vst.msk [vmem:[#allocation2 + $0x98] sm:$0xff] %vm2271_vm3, %v9560_v45  ;;  %v4494_v57 = vmax.f32 %v3969_v0, 0.0  ;;  %v9366_v35 = vmax.f32 %v8880_v48, 0.0  ;;  %v9338_v20 = vmax.f32 %v8810_v40, 0.0  ;;  %v1959_v52 = vmax.f32 %v1436_v22, 0.0  ;;  %v13289_v48 = vld [vmem:[%s13867_s5 + $0x118] sm:$0xff] }
 0x233   : > { %v7519_v13 = vpack.c.bf16 %v7463_v29, %v7463_v29  ;;  %2733 = vst.msk [vmem:[%s14327_s20 + $0x28] sm:$0xf] %vm2722_vm4, %v2673_v19  ;;  %v1986_v9 = vmax.f32 %v1503_v39, 0.0  ;;  %v4522_v36 = vmax.f32 %v4039_v61, 0.0  ;;  %v4717_v60 = vmax.f32 %v4493_v21, %v4521_v7 }
 0x234   : > { %2294 = vst.msk [vmem:[#allocation2 + $0xb0] sm:$0xff] %vm2271_vm3, %v2181_v50  ;;  %v6460_v45 = vadd.f32 %v14645_v53, %v14918_v55  ;;  %v9561_v29 = vmax.f32 %v9337_v5, %v9365_v6  ;;  %v9562_v25 = vmax.f32 %v9338_v20, %v9366_v35  ;;  %v13513_v6 = vld [vmem:[%s13867_s5 + $0x818] sm:$0xff]  ;;  %v18673_v35 = vld [vmem:[#allocation55_spill] sm:$0xff]  ;;  %v18674_v5 = vld [vmem:[#allocation64_spill] sm:$0xff] }
 0x235   : > { %12363 = vst.msk [vmem:[%s14327_s20 + $0x1e4] sm:$0xf] %vm2722_vm4, %v7519_v13  ;;  %v2182_v23 = vmax.f32 %v1958_v37, %v1986_v9  ;;  %v4718_v44 = vmax.f32 %v4494_v57, %v4522_v36  ;;  %v18668_v13 = vld [vmem:[#allocation50_spill] sm:$0xff] }
 0x236   : > { %v6390_v46 = vadd.f32 %v14645_v53, %v18668_v13  ;;  %v6944_v2 = vmax.f32 %v6460_v45, 0.0  ;;  %v13625_v57 = vld [vmem:[%s13867_s5 + $0xb98] sm:$0xff] }
 0x237   : > { %v4929_v10 = vld [vmem:[#allocation2 + $0xa0] ss:$2 sm:$0xff]  ;;  %v4985_v17 = vld [vmem:[#allocation2 + $0xa1] ss:$2 sm:$0xff]  ;;  %2295 = vst.msk [vmem:[#allocation2 + $0xb8] sm:$0xff] %vm2271_vm3, %v2182_v23  ;;  %v6461_v32 = vpop.f32.mrf.mxu2  ;;  %v14944_v12 = vpop.f32.mrf.mxu3 }
 0x238   : > { %v5041_v47 = vmax.f32 %v4929_v10, %v4985_v17  ;;  %7250 = vst.msk [vmem:[#allocation2 + $0xa0] sm:$0xff] %vm2271_vm3, %v7138_v51  ;;  %v1505_v54 = vpop.f32.mrf.mxu0  ;;  %v14954_v62 = vpop.f32.mrf.mxu1  ;;  %v6462_v39 = vadd.f32 %v14645_v53, %v6461_v32  ;;  %v18669_v51 = vld [vmem:[#allocation54_spill] sm:$0xff]  ;;  %v1960_v10 = vmax.f32 %v1438_v24, 0.0 }
 0x239   : > { %v9774_v41 = vld [vmem:[#allocation2 + $0x90] ss:$2 sm:$0xff]  ;;  %v9830_v16 = vld [vmem:[#allocation2 + $0x91] ss:$2 sm:$0xff]  ;;  %7251 = vst.msk [vmem:[#allocation2 + $0xa8] sm:$0xff] %vm2271_vm3, %v7139_v42  ;;  %v1506_v30 = vadd.f32 %v14645_v53, %v1505_v54  ;;  %v6392_v61 = vadd.f32 %v14645_v53, %v18669_v51  ;;  %v4042_v14 = vadd.f32 %v14645_v53, %v14954_v62  ;;  %v18675_v51 = vld [vmem:[#allocation68_spill] sm:$0xff] }
 0x23a   : > { %v9886_v8 = vmax.f32 %v9774_v41, %v9830_v16  ;;  %v5097_v18 = vpack.c.bf16 %v5041_v47, %v5041_v47  ;;  %v6945_v42 = vmax.f32 %v6462_v39, 0.0  ;;  %v18670_v54 = vld [vmem:[#allocation57_spill] sm:$0xff]  ;;  %v13401_v41 = vld [vmem:[%s13867_s5 + $0x498] sm:$0xff]  ;;  %v18671_v16 = vld [vmem:[#allocation51_spill] sm:$0xff] }
 0x23b   : > { %10652 = vmatmul.msk.bf16.gmra.mxu0 %vm1022_vm2, %v13288_v63  ;;  %11436 = vmatmul.msk.bf16.gmra.mxu1 %vm1022_vm2, %v13400_v43  ;;  %v1987_v34 = vmax.f32 %v1506_v30, 0.0  ;;  %v6916_v43 = vmax.f32 %v6390_v46, 0.0  ;;  %v6917_v59 = vmax.f32 %v6392_v61, 0.0  ;;  %v8813_v7 = vadd.f32 %v14645_v53, %v18671_v16  ;;  %v18672_v30 = vld [vmem:[#allocation61_spill] sm:$0xff] }
 0x23c   : > { %v9942_v11 = vpack.c.bf16 %v9886_v8, %v9886_v8  ;;  %11524 = vst.msk [vmem:[%s14327_s20 + $0x108] sm:$0xf] %vm2722_vm4, %v5097_v18  ;;  %12276 = vmatmul.msk.bf16.gmra.mxu2 %vm1022_vm2, %v13512_v26  ;;  %13116 = vmatmul.msk.bf16.gmra.mxu3 %vm1022_vm2, %v13624_v15  ;;  %v3972_v26 = vadd.f32 %v14645_v53, %v18670_v54 }
 0x23d   : > { %v2183_v27 = vmax.f32 %v1959_v52, %v1987_v34  ;;  %v7140_v0 = vmax.f32 %v6916_v43, %v6944_v2  ;;  %v8883_v15 = vadd.f32 %v14645_v53, %v14920_v3  ;;  %v7141_v56 = vmax.f32 %v6917_v59, %v6945_v42 }
 0x23e   : > { %13203 = vst.msk [vmem:[%s14327_s20 + $0x2c4] sm:$0xf] %vm2722_vm4, %v9942_v11  ;;  %v2406_v50 = vld [vmem:[#allocation2 + $0xb0] ss:$2 sm:$0xff]  ;;  %v2518_v1 = vld [vmem:[#allocation2 + $0xb1] ss:$2 sm:$0xff]  ;;  %v3974_v8 = vadd.f32 %v14645_v53, %v18672_v30  ;;  %v8885_v3 = vadd.f32 %v14645_v53, %v14944_v12 }
 0x23f   : > { %v2618_v19 = vmax.f32 %v2406_v50, %v2518_v1  ;;  %4829 = vst.msk [vmem:[#allocation2 + $0xb0] sm:$0xff] %vm2271_vm3, %v4717_v60  ;;  %v14978_v33 = vpop.f32.mrf.mxu2  ;;  %v14980_v37 = vpop.f32.mrf.mxu3  ;;  %v15021_v11 = vld [vmem:[%s18546_s2] ss:$0 sm:$0xff]  ;;  %v9367_v58 = vmax.f32 %v8883_v15, 0.0  ;;  %v9339_v13 = vmax.f32 %v8813_v7, 0.0 }
 0x240   : > { %v7352_v55 = vld [vmem:[#allocation2 + $0xa0] ss:$2 sm:$0xff]  ;;  %v7408_v9 = vld [vmem:[#allocation2 + $0xa1] ss:$2 sm:$0xff]  ;;  %4830 = vst.msk [vmem:[#allocation2 + $0xb8] sm:$0xff] %vm2271_vm3, %v4718_v44  ;;  %v1507_v31 = vpop.f32.mrf.mxu0  ;;  %v4043_v23 = vpop.f32.mrf.mxu1  ;;  %v8815_v34 = vadd.f32 %v15021_v11, %v18673_v35  ;;  %v1441_v20 = vadd.f32 %v15021_v11, %v18674_v5  ;;  %v4495_v44 = vmax.f32 %v3972_v26, 0.0  ;;  %v1443_v61 = vadd.f32 %v15021_v11, %v18675_v51 }
 0x241   : > { %v7464_v63 = vmax.f32 %v7352_v55, %v7408_v9  ;;  %9673 = vst.msk [vmem:[#allocation2 + $0xa0] sm:$0xff] %vm2271_vm3, %v9561_v29  ;;  %v2674_v38 = vpack.c.bf16 %v2618_v19, %v2618_v19  ;;  %v1508_v49 = vadd.f32 %v14645_v53, %v1507_v31  ;;  %v4044_v47 = vadd.f32 %v14645_v53, %v4043_v23 }
 0x242   : > { %9674 = vst.msk [vmem:[#allocation2 + $0xa8] sm:$0xff] %vm2271_vm3, %v9562_v25  ;;  %v4523_v53 = vmax.f32 %v4042_v14, 0.0  ;;  %v4496_v24 = vmax.f32 %v3974_v8, 0.0  ;;  %v9368_v19 = vmax.f32 %v8885_v3, 0.0  ;;  %v9340_v46 = vmax.f32 %v8815_v34, 0.0  ;;  %v13290_v3 = vld [vmem:[%s13867_s5 + $0x120] sm:$0xff] }
 0x243   : > { %v7520_v17 = vpack.c.bf16 %v7464_v63, %v7464_v63  ;;  %2734 = vst.msk [vmem:[%s14327_s20 + $0x2c] sm:$0xf] %vm2722_vm4, %v2674_v38  ;;  %v1988_v32 = vmax.f32 %v1508_v49, 0.0  ;;  %v4524_v1 = vmax.f32 %v4044_v47, 0.0  ;;  %v1961_v55 = vmax.f32 %v1441_v20, 0.0 }
 0x244   : > { %2296 = vst.msk [vmem:[#allocation2 + $0xc0] sm:$0xff] %vm2271_vm3, %v2183_v27  ;;  %v4719_v9 = vmax.f32 %v4495_v44, %v4523_v53  ;;  %v6465_v25 = vadd.f32 %v15021_v11, %v14978_v33  ;;  %v9563_v63 = vmax.f32 %v9339_v13, %v9367_v58  ;;  %v9564_v43 = vmax.f32 %v9340_v46, %v9368_v19  ;;  %v13626_v44 = vld [vmem:[%s13867_s5 + $0xba0] sm:$0xff] }
 0x245   : > { %12364 = vst.msk [vmem:[%s14327_s20 + $0x1e8] sm:$0xf] %vm2722_vm4, %v7520_v17  ;;  %v2184_v28 = vmax.f32 %v1960_v10, %v1988_v32  ;;  %v4720_v23 = vmax.f32 %v4496_v24, %v4524_v1  ;;  %v18676_v17 = vld [vmem:[#allocation58_spill] sm:$0xff]  ;;  %v13514_v1 = vld [vmem:[%s13867_s5 + $0x820] sm:$0xff] }
 0x246   : > { %v6395_v42 = vadd.f32 %v15021_v11, %v18676_v17  ;;  %v6946_v15 = vmax.f32 %v6465_v25, 0.0  ;;  %v18680_v58 = vld [vmem:[#allocation59_spill] sm:$0xff] }
 0x247   : > { %v4930_v4 = vld [vmem:[#allocation2 + $0xb0] ss:$2 sm:$0xff]  ;;  %v4986_v40 = vld [vmem:[#allocation2 + $0xb1] ss:$2 sm:$0xff]  ;;  %2297 = vst.msk [vmem:[#allocation2 + $0xc8] sm:$0xff] %vm2271_vm3, %v2184_v28  ;;  %v6466_v22 = vpop.f32.mrf.mxu2  ;;  %v15004_v62 = vpop.f32.mrf.mxu3  ;;  %v8818_v24 = vadd.f32 %v15021_v11, %v18680_v58 }
 0x248   : > { %v5042_v18 = vmax.f32 %v4930_v4, %v4986_v40  ;;  %7252 = vst.msk [vmem:[#allocation2 + $0xb0] sm:$0xff] %vm2271_vm3, %v7140_v0  ;;  %v1510_v36 = vpop.f32.mrf.mxu0  ;;  %v15014_v21 = vpop.f32.mrf.mxu1  ;;  %v6467_v49 = vadd.f32 %v15021_v11, %v6466_v22  ;;  %v18677_v0 = vld [vmem:[#allocation62_spill] sm:$0xff]  ;;  %v1962_v4 = vmax.f32 %v1443_v61, 0.0 }
 0x249   : > { %v9775_v52 = vld [vmem:[#allocation2 + $0xa0] ss:$2 sm:$0xff]  ;;  %v9831_v60 = vld [vmem:[#allocation2 + $0xa1] ss:$2 sm:$0xff]  ;;  %7253 = vst.msk [vmem:[#allocation2 + $0xb8] sm:$0xff] %vm2271_vm3, %v7141_v56  ;;  %v1511_v12 = vadd.f32 %v15021_v11, %v1510_v36  ;;  %v6397_v47 = vadd.f32 %v15021_v11, %v18677_v0  ;;  %v4047_v7 = vadd.f32 %v15021_v11, %v15014_v21  ;;  %v18678_v36 = vld [vmem:[#allocation65_spill] sm:$0xff] }
 0x24a   : > { %v9887_v45 = vmax.f32 %v9775_v52, %v9831_v60  ;;  %v5098_v50 = vpack.c.bf16 %v5042_v18, %v5042_v18  ;;  %v6947_v56 = vmax.f32 %v6467_v49, 0.0  ;;  %v13402_v52 = vld [vmem:[%s13867_s5 + $0x4a0] sm:$0xff]  ;;  %v18679_v60 = vld [vmem:[#allocation69_spill] sm:$0xff]  ;;  %v9341_v61 = vmax.f32 %v8818_v24, 0.0  ;;  %v18682_v0 = vld [vmem:[#allocation66_spill] sm:$0xff] }
 0x24b   : > { %10653 = vmatmul.msk.bf16.gmra.mxu0 %vm1022_vm2, %v13289_v48  ;;  %11437 = vmatmul.msk.bf16.gmra.mxu1 %vm1022_vm2, %v13401_v41  ;;  %v1989_v39 = vmax.f32 %v1511_v12, 0.0  ;;  %v6918_v41 = vmax.f32 %v6395_v42, 0.0  ;;  %v6919_v16 = vmax.f32 %v6397_v47, 0.0  ;;  %v3979_v53 = vadd.f32 %v15021_v11, %v18679_v60 }
 0x24c   : > { %v9943_v29 = vpack.c.bf16 %v9887_v45, %v9887_v45  ;;  %11525 = vst.msk [vmem:[%s14327_s20 + $0x10c] sm:$0xf] %vm2722_vm4, %v5098_v50  ;;  %12277 = vmatmul.msk.bf16.gmra.mxu2 %vm1022_vm2, %v13513_v6  ;;  %13117 = vmatmul.msk.bf16.gmra.mxu3 %vm1022_vm2, %v13625_v57  ;;  %v3977_v6 = vadd.f32 %v15021_v11, %v18678_v36  ;;  %v4525_v46 = vmax.f32 %v4047_v7, 0.0 }
 0x24d   : > { %v2185_v59 = vmax.f32 %v1961_v55, %v1989_v39  ;;  %v7142_v8 = vmax.f32 %v6918_v41, %v6946_v15  ;;  %v8888_v57 = vadd.f32 %v15021_v11, %v14980_v37  ;;  %v7143_v5 = vmax.f32 %v6919_v16, %v6947_v56 }
 0x24e   : > { %13204 = vst.msk [vmem:[%s14327_s20 + $0x2c8] sm:$0xf] %vm2722_vm4, %v9943_v29  ;;  %v2408_v27 = vld [vmem:[#allocation2 + $0xc0] ss:$2 sm:$0xff]  ;;  %v2520_v31 = vld [vmem:[#allocation2 + $0xc1] ss:$2 sm:$0xff]  ;;  %v8890_v45 = vadd.f32 %v15021_v11, %v15004_v62  ;;  %v6400_v47 = vadd.f32 %v15021_v11, %v18682_v0 }
 0x24f   : > { %v2619_v38 = vmax.f32 %v2408_v27, %v2520_v31  ;;  %4831 = vst.msk [vmem:[#allocation2 + $0xc0] sm:$0xff] %vm2271_vm3, %v4719_v9  ;;  %v15043_v2 = vpop.f32.mrf.mxu2  ;;  %v15045_v10 = vpop.f32.mrf.mxu3  ;;  %v18681_v29 = vld [vmem:[#allocation63_spill] sm:$0xff]  ;;  %v4497_v25 = vmax.f32 %v3977_v6, 0.0  ;;  %v9369_v27 = vmax.f32 %v8888_v57, 0.0  ;;  %v4498_v31 = vmax.f32 %v3979_v53, 0.0 }
 0x250   : > { %v7353_v33 = vld [vmem:[#allocation2 + $0xb0] ss:$2 sm:$0xff]  ;;  %v7409_v32 = vld [vmem:[#allocation2 + $0xb1] ss:$2 sm:$0xff]  ;;  %4832 = vst.msk [vmem:[#allocation2 + $0xc8] sm:$0xff] %vm2271_vm3, %v4720_v23  ;;  %v1512_v14 = vpop.f32.mrf.mxu0  ;;  %v4048_v28 = vpop.f32.mrf.mxu1  ;;  %v8820_v19 = vadd.f32 %v15021_v11, %v18681_v29  ;;  %v9370_v51 = vmax.f32 %v8890_v45, 0.0  ;;  %v6470_v49 = vadd.f32 %v15021_v11, %v15043_v2  ;;  %v8893_v36 = vadd.f32 %v15021_v11, %v15045_v10 }
 0x251   : > { %v7465_v48 = vmax.f32 %v7353_v33, %v7409_v32  ;;  %9675 = vst.msk [vmem:[#allocation2 + $0xb0] sm:$0xff] %vm2271_vm3, %v9563_v63  ;;  %v2675_v54 = vpack.c.bf16 %v2619_v38, %v2619_v38  ;;  %v1513_v26 = vadd.f32 %v15021_v11, %v1512_v14  ;;  %v4049_v18 = vadd.f32 %v15021_v11, %v4048_v28  ;;  %v13515_v10 = vld [vmem:[%s13867_s5 + $0x828] sm:$0xff]  ;;  %v18685_v29 = vld [vmem:[#allocation71_spill] sm:$0xff] }
 0x252   : > { %9676 = vst.msk [vmem:[#allocation2 + $0xb8] sm:$0xff] %vm2271_vm3, %v9564_v43  ;;  %v9342_v63 = vmax.f32 %v8820_v19, 0.0  ;;  %v4721_v38 = vmax.f32 %v4497_v25, %v4525_v46  ;;  %v9565_v32 = vmax.f32 %v9341_v61, %v9369_v27  ;;  %v6948_v41 = vmax.f32 %v6470_v49, 0.0  ;;  %v13627_v45 = vld [vmem:[%s13867_s5 + $0xba8] sm:$0xff] }
 0x253   : > { %v7521_v40 = vpack.c.bf16 %v7465_v48, %v7465_v48  ;;  %2735 = vst.msk [vmem:[%s14327_s20 + $0x30] sm:$0xf] %vm2722_vm4, %v2675_v54  ;;  %v1990_v22 = vmax.f32 %v1513_v26, 0.0  ;;  %v4526_v9 = vmax.f32 %v4049_v18, 0.0  ;;  %v8825_v19 = vadd.f32 %v15021_v11, %v18685_v29  ;;  %v13518_v29 = vld [vmem:[%s13867_s5 + $0x840] sm:$0xff] }
 0x254   : > { %2298 = vst.msk [vmem:[#allocation2 + $0xd0] sm:$0xff] %vm2271_vm3, %v2185_v59  ;;  %v9566_v2 = vmax.f32 %v9342_v63, %v9370_v51 }
 0x255   : > { %12365 = vst.msk [vmem:[%s14327_s20 + $0x1ec] sm:$0xf] %vm2722_vm4, %v7521_v40  ;;  %v2186_v30 = vmax.f32 %v1962_v4, %v1990_v22  ;;  %v4722_v33 = vmax.f32 %v4498_v31, %v4526_v9  ;;  %v18683_v4 = vld [vmem:[#allocation70_spill] sm:$0xff]  ;;  %v9344_v9 = vmax.f32 %v8825_v19, 0.0  ;;  %v13630_v19 = vld [vmem:[%s13867_s5 + $0xbc0] sm:$0xff] }
 0x256   : > { %v6402_v40 = vadd.f32 %v15021_v11, %v18683_v4 }
 0x257   : > { %v4931_v35 = vld [vmem:[#allocation2 + $0xc0] ss:$2 sm:$0xff]  ;;  %v4987_v34 = vld [vmem:[#allocation2 + $0xc1] ss:$2 sm:$0xff]  ;;  %2299 = vst.msk [vmem:[#allocation2 + $0xd8] sm:$0xff] %vm2271_vm3, %v2186_v30  ;;  %v6471_v20 = vpop.f32.mrf.mxu2  ;;  %v15069_v21 = vpop.f32.mrf.mxu3  ;;  %v6920_v30 = vmax.f32 %v6400_v47, 0.0 }
 0x258   : > { %v5043_v12 = vmax.f32 %v4931_v35, %v4987_v34  ;;  %7254 = vst.msk [vmem:[#allocation2 + $0xc0] sm:$0xff] %vm2271_vm3, %v7142_v8  ;;  %v15077_v50 = vpop.f32.mrf.mxu0  ;;  %v15079_v37 = vpop.f32.mrf.mxu1  ;;  %v6472_v59 = vadd.f32 %v15021_v11, %v6471_v20  ;;  %v6921_v8 = vmax.f32 %v6402_v40, 0.0  ;;  %v13403_v20 = vld [vmem:[%s13867_s5 + $0x4a8] sm:$0xff]  ;;  %v8895_v60 = vadd.f32 %v15021_v11, %v15069_v21  ;;  %v13516_v47 = vld [vmem:[%s13867_s5 + $0x830] sm:$0xff] }
 0x259   : > { %v9776_v39 = vld [vmem:[#allocation2 + $0xb0] ss:$2 sm:$0xff]  ;;  %v9832_v13 = vld [vmem:[#allocation2 + $0xb1] ss:$2 sm:$0xff]  ;;  %7255 = vst.msk [vmem:[#allocation2 + $0xc8] sm:$0xff] %vm2271_vm3, %v7143_v5  ;;  %v7144_v18 = vmax.f32 %v6920_v30, %v6948_v41 }
 0x25a   : > { %v9888_v55 = vmax.f32 %v9776_v39, %v9832_v13  ;;  %v5099_v62 = vpack.c.bf16 %v5043_v12, %v5043_v12  ;;  %v6949_v7 = vmax.f32 %v6472_v59, 0.0  ;;  %v9371_v13 = vmax.f32 %v8893_v36, 0.0 }
 0x25b   : > { %10654 = vmatmul.msk.bf16.gmra.mxu0 %vm1022_vm2, %v13290_v3  ;;  %11438 = vmatmul.msk.bf16.gmra.mxu1 %vm1022_vm2, %v13402_v52  ;;  %v13291_v3 = vld [vmem:[%s13867_s5 + $0x128] sm:$0xff] }
 0x25c   : > { %v9944_v23 = vpack.c.bf16 %v9888_v55, %v9888_v55  ;;  %11526 = vst.msk [vmem:[%s14327_s20 + $0x110] sm:$0xf] %vm2722_vm4, %v5099_v62  ;;  %12278 = vmatmul.msk.bf16.gmra.mxu2 %vm1022_vm2, %v13514_v1  ;;  %13118 = vmatmul.msk.bf16.gmra.mxu3 %vm1022_vm2, %v13626_v44  ;;  %v7145_v35 = vmax.f32 %v6921_v8, %v6949_v7  ;;  %v18684_v1 = vld [vmem:[#allocation67_spill] sm:$0xff]  ;;  %v9372_v55 = vmax.f32 %v8895_v60, 0.0  ;;  %v13293_v8 = vld [vmem:[%s13867_s5 + $0x138] sm:$0xff] }
 0x25d   : > { %v8823_v44 = vadd.f32 %v15021_v11, %v18684_v1  ;;  %v13294_v1 = vld [vmem:[%s13867_s5 + $0x140] sm:$0xff] }
 0x25e   : > { %13205 = vst.msk [vmem:[%s14327_s20 + $0x2cc] sm:$0xf] %vm2722_vm4, %v9944_v23  ;;  %v2410_v17 = vld [vmem:[#allocation2 + $0xd0] ss:$2 sm:$0xff]  ;;  %v2522_v42 = vld [vmem:[#allocation2 + $0xd1] ss:$2 sm:$0xff]  ;;  %v9568_v61 = vmax.f32 %v9344_v9, %v9372_v55 }
 0x25f   : > { %v2620_v43 = vmax.f32 %v2410_v17, %v2522_v42  ;;  %4833 = vst.msk [vmem:[#allocation2 + $0xd0] sm:$0xff] %vm2271_vm3, %v4721_v38  ;;  %v15100_v14 = vpop.f32.mrf.mxu2  ;;  %v15102_v28 = vpop.f32.mrf.mxu3  ;;  %v9343_v62 = vmax.f32 %v8823_v44, 0.0  ;;  %v13406_v44 = vld [vmem:[%s13867_s5 + $0x4c0] sm:$0xff]  ;;  %v13295_v9 = vld [vmem:[%s13867_s5 + $0x148] sm:$0xff] }
 0x260   : > { %v7354_v48 = vld [vmem:[#allocation2 + $0xc0] ss:$2 sm:$0xff]  ;;  %v7410_v54 = vld [vmem:[#allocation2 + $0xc1] ss:$2 sm:$0xff]  ;;  %4834 = vst.msk [vmem:[#allocation2 + $0xd8] sm:$0xff] %vm2271_vm3, %v4722_v33  ;;  %v15107_v26 = vpop.f32.mrf.mxu0  ;;  %v15109_v15 = vpop.f32.mrf.mxu1 }
 0x261   : > { %v7466_v56 = vmax.f32 %v7354_v48, %v7410_v54  ;;  %9677 = vst.msk [vmem:[#allocation2 + $0xc0] sm:$0xff] %vm2271_vm3, %v9565_v32  ;;  %v2676_v22 = vpack.c.bf16 %v2620_v43, %v2620_v43  ;;  %v9567_v25 = vmax.f32 %v9343_v62, %v9371_v13  ;;  %v13292_v32 = vld [vmem:[%s13867_s5 + $0x130] sm:$0xff] }
 0x262   : > { %9678 = vst.msk [vmem:[#allocation2 + $0xc8] sm:$0xff] %vm2271_vm3, %v9566_v2  ;;  %v13404_v43 = vld [vmem:[%s13867_s5 + $0x4b0] sm:$0xff] }
 0x263   : > { %v7522_v16 = vpack.c.bf16 %v7466_v56, %v7466_v56  ;;  %2736 = vst.msk [vmem:[%s14327_s20 + $0x34] sm:$0xf] %vm2722_vm4, %v2676_v22  ;;  %v13628_v48 = vld [vmem:[%s13867_s5 + $0xbb0] sm:$0xff] }
 0x265   : > { %12366 = vst.msk [vmem:[%s14327_s20 + $0x1f0] sm:$0xf] %vm2722_vm4, %v7522_v16 }
 0x267   : > { %v4932_v6 = vld [vmem:[#allocation2 + $0xd0] ss:$2 sm:$0xff]  ;;  %v4988_v57 = vld [vmem:[#allocation2 + $0xd1] ss:$2 sm:$0xff]  ;;  %v15122_v34 = vpop.f32.mrf.mxu2  ;;  %v15124_v5 = vpop.f32.mrf.mxu3 }
 0x268   : > { %v5044_v52 = vmax.f32 %v4932_v6, %v4988_v57  ;;  %7256 = vst.msk [vmem:[#allocation2 + $0xd0] sm:$0xff] %vm2271_vm3, %v7144_v18  ;;  %v15130_v53 = vpop.f32.mrf.mxu0  ;;  %v15132_v12 = vpop.f32.mrf.mxu1  ;;  %v13405_v18 = vld [vmem:[%s13867_s5 + $0x4b8] sm:$0xff] }
 0x269   : > { %v9777_v58 = vld [vmem:[#allocation2 + $0xc0] ss:$2 sm:$0xff]  ;;  %v9833_v24 = vld [vmem:[#allocation2 + $0xc1] ss:$2 sm:$0xff]  ;;  %7257 = vst.msk [vmem:[#allocation2 + $0xd8] sm:$0xff] %vm2271_vm3, %v7145_v35  ;;  %v13517_v6 = vld [vmem:[%s13867_s5 + $0x838] sm:$0xff] }
 0x26a   : > { %v9889_v39 = vmax.f32 %v9777_v58, %v9833_v24  ;;  %v5100_v21 = vpack.c.bf16 %v5044_v52, %v5044_v52  ;;  %v13629_v57 = vld [vmem:[%s13867_s5 + $0xbb8] sm:$0xff] }
 0x26b   : > { %10655 = vmatmul.msk.bf16.gmra.mxu0 %vm1022_vm2, %v13291_v3  ;;  %11439 = vmatmul.msk.bf16.gmra.mxu1 %vm1022_vm2, %v13403_v20 }
 0x26c   : > { %v9945_v46 = vpack.c.bf16 %v9889_v39, %v9889_v39  ;;  %11527 = vst.msk [vmem:[%s14327_s20 + $0x114] sm:$0xf] %vm2722_vm4, %v5100_v21  ;;  %12279 = vmatmul.msk.bf16.gmra.mxu2 %vm1022_vm2, %v13515_v10  ;;  %13119 = vmatmul.msk.bf16.gmra.mxu3 %vm1022_vm2, %v13627_v45 }
 0x26e   : > { %13206 = vst.msk [vmem:[%s14327_s20 + $0x2d0] sm:$0xf] %vm2722_vm4, %v9945_v46 }
 0x26f   : > { %v15149_v27 = vpop.f32.mrf.mxu2  ;;  %v15151_v31 = vpop.f32.mrf.mxu3 }
 0x270   : > { %v7355_v23 = vld [vmem:[#allocation2 + $0xd0] ss:$2 sm:$0xff]  ;;  %v7411_v51 = vld [vmem:[#allocation2 + $0xd1] ss:$2 sm:$0xff]  ;;  %v15153_v63 = vpop.f32.mrf.mxu0  ;;  %v15155_v38 = vpop.f32.mrf.mxu1 }
 0x271   : > { %v7467_v49 = vmax.f32 %v7355_v23, %v7411_v51  ;;  %9679 = vst.msk [vmem:[#allocation2 + $0xd0] sm:$0xff] %vm2271_vm3, %v9567_v25  ;;  %v13407_v25 = vld [vmem:[%s13867_s5 + $0x4c8] sm:$0xff] }
 0x272   : > { %9680 = vst.msk [vmem:[#allocation2 + $0xd8] sm:$0xff] %vm2271_vm3, %v9568_v61  ;;  %v13519_v61 = vld [vmem:[%s13867_s5 + $0x848] sm:$0xff] }
 0x273   : > { %v7523_v17 = vpack.c.bf16 %v7467_v49, %v7467_v49  ;;  %v13631_v49 = vld [vmem:[%s13867_s5 + $0xbc8] sm:$0xff] }
 0x275   : > { %12367 = vst.msk [vmem:[%s14327_s20 + $0x1f4] sm:$0xf] %vm2722_vm4, %v7523_v17 }
 0x277   : > { %v15161_v42 = vpop.f32.mrf.mxu2  ;;  %v15163_v33 = vpop.f32.mrf.mxu3 }
 0x278   : > { %v15167_v59 = vpop.f32.mrf.mxu0  ;;  %v15169_v0 = vpop.f32.mrf.mxu1 }
 0x279   : > { %v9778_v54 = vld [vmem:[#allocation2 + $0xd0] ss:$2 sm:$0xff]  ;;  %v9834_v2 = vld [vmem:[#allocation2 + $0xd1] ss:$2 sm:$0xff] }
 0x27a   : > { %v9890_v4 = vmax.f32 %v9778_v54, %v9834_v2  ;;  %v13296_v2 = vld [vmem:[%s13867_s5 + $0x150] sm:$0xff] }
 0x27b   : > { %10656 = vmatmul.msk.bf16.gmra.mxu0 %vm1022_vm2, %v13292_v32  ;;  %11440 = vmatmul.msk.bf16.gmra.mxu1 %vm1022_vm2, %v13404_v43 }
 0x27c   : > { %v9946_v40 = vpack.c.bf16 %v9890_v4, %v9890_v4  ;;  %12280 = vmatmul.msk.bf16.gmra.mxu2 %vm1022_vm2, %v13516_v47  ;;  %13120 = vmatmul.msk.bf16.gmra.mxu3 %vm1022_vm2, %v13628_v48  ;;  %v13408_v4 = vld [vmem:[%s13867_s5 + $0x4d0] sm:$0xff] }
 0x27e   : > { %13207 = vst.msk [vmem:[%s14327_s20 + $0x2d4] sm:$0xf] %vm2722_vm4, %v9946_v40 }
 0x27f   : > { %v15179_v56 = vpop.f32.mrf.mxu2  ;;  %v15181_v22 = vpop.f32.mrf.mxu3 }
 0x280   : > { %v15183_v41 = vpop.f32.mrf.mxu0  ;;  %v15185_v16 = vpop.f32.mrf.mxu1 }
 0x287   : > { %v15187_v7 = vpop.f32.mrf.mxu2  ;;  %v15189_v30 = vpop.f32.mrf.mxu3 }
 0x288   : > { %v15193_v3 = vpop.f32.mrf.mxu0  ;;  %v15195_v36 = vpop.f32.mrf.mxu1 }
 0x28b   : > { %10657 = vmatmul.msk.bf16.gmra.mxu0 %vm1022_vm2, %v13293_v8  ;;  %11441 = vmatmul.msk.bf16.gmra.mxu1 %vm1022_vm2, %v13405_v18  ;;  %v13520_v18 = vld [vmem:[%s13867_s5 + $0x850] sm:$0xff] }
 0x28c   : > { %12281 = vmatmul.msk.bf16.gmra.mxu2 %vm1022_vm2, %v13517_v6  ;;  %13121 = vmatmul.msk.bf16.gmra.mxu3 %vm1022_vm2, %v13629_v57  ;;  %v13632_v6 = vld [vmem:[%s13867_s5 + $0xbd0] sm:$0xff] }
 0x28f   : > { %v15203_v35 = vpop.f32.mrf.mxu2  ;;  %v15205_v20 = vpop.f32.mrf.mxu3 }
 0x290   : > { %v15207_v52 = vpop.f32.mrf.mxu0  ;;  %v15209_v60 = vpop.f32.mrf.mxu1 }
 0x297   : > { %v15211_v10 = vpop.f32.mrf.mxu2  ;;  %v15213_v45 = vpop.f32.mrf.mxu3 }
 0x298   : > { %v15217_v58 = vpop.f32.mrf.mxu0  ;;  %v15219_v24 = vpop.f32.mrf.mxu1 }
 0x29b   : > { %10658 = vmatmul.msk.bf16.gmra.mxu0 %vm1022_vm2, %v13294_v1  ;;  %11442 = vmatmul.msk.bf16.gmra.mxu1 %vm1022_vm2, %v13406_v44 }
 0x29c   : > { %12282 = vmatmul.msk.bf16.gmra.mxu2 %vm1022_vm2, %v13518_v29  ;;  %13122 = vmatmul.msk.bf16.gmra.mxu3 %vm1022_vm2, %v13630_v19 }
 0x29f   : > { %v15227_v39 = vpop.f32.mrf.mxu2  ;;  %v15229_v21 = vpop.f32.mrf.mxu3 }
 0x2a0   : > { %v15231_v13 = vpop.f32.mrf.mxu0  ;;  %v15233_v46 = vpop.f32.mrf.mxu1 }
 0x2a7   : > { %v15235_v55 = vpop.f32.mrf.mxu2  ;;  %v15237_v62 = vpop.f32.mrf.mxu3 }
 0x2a8   : > { %18686 = vst [vmem:[#allocation3_spill] sm:$0xff] %v15237_v62  ;;  %v15241_v23 = vpop.f32.mrf.mxu0  ;;  %v15243_v51 = vpop.f32.mrf.mxu1 }
 0x2ab   : > { %10659 = vmatmul.msk.bf16.gmra.mxu0 %vm1022_vm2, %v13295_v9  ;;  %11443 = vmatmul.msk.bf16.gmra.mxu1 %vm1022_vm2, %v13407_v25  ;;  %v13297_v25 = vld [vmem:[%s13867_s5 + $0x158] sm:$0xff] }
 0x2ac   : > { %12283 = vmatmul.msk.bf16.gmra.mxu2 %vm1022_vm2, %v13519_v61  ;;  %13123 = vmatmul.msk.bf16.gmra.mxu3 %vm1022_vm2, %v13631_v49  ;;  %v13409_v61 = vld [vmem:[%s13867_s5 + $0x4d8] sm:$0xff] }
 0x2af   : > { %v15251_v17 = vpop.f32.mrf.mxu2  ;;  %v15253_v32 = vpop.f32.mrf.mxu3 }
 0x2b0   : > { %18687 = vst [vmem:[#allocation8_spill] sm:$0xff] %v15251_v17  ;;  %v15255_v43 = vpop.f32.mrf.mxu0  ;;  %v15257_v47 = vpop.f32.mrf.mxu1 }
 0x2b1   : > { %18688 = vst [vmem:[#allocation12_spill] sm:$0xff] %v15253_v32 }
 0x2b2   : > { %18689 = vst [vmem:[#allocation4_spill] sm:$0xff] %v15257_v47 }
 0x2b7   : > { %v15259_v48 = vpop.f32.mrf.mxu2  ;;  %v15261_v54 = vpop.f32.mrf.mxu3 }
 0x2b8   : > { %18690 = vst [vmem:[#allocation6_spill] sm:$0xff] %v15259_v48  ;;  %v15265_v40 = vpop.f32.mrf.mxu0  ;;  %v15267_v8 = vpop.f32.mrf.mxu1 }
 0x2b9   : > { %18691 = vst [vmem:[#allocation9_spill] sm:$0xff] %v15261_v54 }
 0x2ba   : > { %18692 = vst [vmem:[#allocation5_spill] sm:$0xff] %v15265_v40 }
 0x2bb   : > { %18693 = vst [vmem:[#allocation13_spill] sm:$0xff] %v15267_v8  ;;  %10660 = vmatmul.msk.bf16.gmra.mxu0 %vm1022_vm2, %v13296_v2  ;;  %11444 = vmatmul.msk.bf16.gmra.mxu1 %vm1022_vm2, %v13408_v4  ;;  %v13521_v4 = vld [vmem:[%s13867_s5 + $0x858] sm:$0xff] }
 0x2bc   : > { %12284 = vmatmul.msk.bf16.gmra.mxu2 %vm1022_vm2, %v13520_v18  ;;  %13124 = vmatmul.msk.bf16.gmra.mxu3 %vm1022_vm2, %v13632_v6  ;;  %v13633_v18 = vld [vmem:[%s13867_s5 + $0xbd8] sm:$0xff] }
 0x2bf   : > { %v15275_v57 = vpop.f32.mrf.mxu2  ;;  %v15277_v1 = vpop.f32.mrf.mxu3 }
 0x2c0   : > { %18694 = vst [vmem:[#allocation7_spill] sm:$0xff] %v15275_v57  ;;  %v15279_v44 = vpop.f32.mrf.mxu0  ;;  %v15281_v29 = vpop.f32.mrf.mxu1 }
 0x2c1   : > { %18695 = vst [vmem:[#allocation16_spill] sm:$0xff] %v15277_v1 }
 0x2c2   : > { %18696 = vst [vmem:[#allocation20_spill] sm:$0xff] %v15279_v44 }
 0x2c3   : > { %18697 = vst [vmem:[#allocation10_spill] sm:$0xff] %v15281_v29  ;;  %v13640_v29 = vld [vmem:[%s13867_s5 + $0xc10] sm:$0xff] }
 0x2c7   : > { %v15283_v19 = vpop.f32.mrf.mxu2  ;;  %v15285_v9 = vpop.f32.mrf.mxu3 }
 0x2c8   : > { %18698 = vst [vmem:[#allocation14_spill] sm:$0xff] %v15283_v19  ;;  %v15289_v49 = vpop.f32.mrf.mxu0  ;;  %v15291_v2 = vpop.f32.mrf.mxu1 }
 0x2c9   : > { %18699 = vst [vmem:[#allocation17_spill] sm:$0xff] %v15285_v9 }
 0x2ca   : > { %18700 = vst [vmem:[#allocation11_spill] sm:$0xff] %v15289_v49  ;;  %v13298_v49 = vld [vmem:[%s13867_s5 + $0x160] sm:$0xff] }
 0x2cb   : > { %18701 = vst [vmem:[#allocation21_spill] sm:$0xff] %v15291_v2  ;;  %10661 = vmatmul.msk.bf16.gmra.mxu0 %vm1022_vm2, %v13297_v25  ;;  %11445 = vmatmul.msk.bf16.gmra.mxu1 %vm1022_vm2, %v13409_v61  ;;  %v13410_v25 = vld [vmem:[%s13867_s5 + $0x4e0] sm:$0xff] }
 0x2cc   : > { %12285 = vmatmul.msk.bf16.gmra.mxu2 %vm1022_vm2, %v13521_v4  ;;  %13125 = vmatmul.msk.bf16.gmra.mxu3 %vm1022_vm2, %v13633_v18  ;;  %v13522_v18 = vld [vmem:[%s13867_s5 + $0x860] sm:$0xff] }
 0x2cf   : > { %v15299_v6 = vpop.f32.mrf.mxu2  ;;  %v15301_v9 = vpop.f32.mrf.mxu3 }
 0x2d0   : > { %18702 = vst [vmem:[#allocation15_spill] sm:$0xff] %v15299_v6  ;;  %v15303_v1 = vpop.f32.mrf.mxu0  ;;  %v15305_v19 = vpop.f32.mrf.mxu1  ;;  %v13634_v6 = vld [vmem:[%s13867_s5 + $0xbe0] sm:$0xff] }
 0x2d1   : > { %18703 = vst [vmem:[#allocation24_spill] sm:$0xff] %v15301_v9 }
 0x2d2   : > { %18704 = vst [vmem:[#allocation28_spill] sm:$0xff] %v15303_v1  ;;  %v13299_v1 = vld [vmem:[%s13867_s5 + $0x168] sm:$0xff] }
 0x2d3   : > { %18705 = vst [vmem:[#allocation18_spill] sm:$0xff] %v15305_v19 }
 0x2d7   : > { %v15307_v2 = vpop.f32.mrf.mxu2  ;;  %v15309_v57 = vpop.f32.mrf.mxu3 }
 0x2d8   : > { %18706 = vst [vmem:[#allocation22_spill] sm:$0xff] %v15307_v2  ;;  %v15313_v61 = vpop.f32.mrf.mxu0  ;;  %v15315_v4 = vpop.f32.mrf.mxu1 }
 0x2d9   : > { %18707 = vst [vmem:[#allocation25_spill] sm:$0xff] %v15309_v57 }
 0x2da   : > { %18708 = vst [vmem:[#allocation19_spill] sm:$0xff] %v15313_v61 }
 0x2db   : > { %18709 = vst [vmem:[#allocation29_spill] sm:$0xff] %v15315_v4  ;;  %10662 = vmatmul.msk.bf16.gmra.mxu0 %vm1022_vm2, %v13298_v49  ;;  %11446 = vmatmul.msk.bf16.gmra.mxu1 %vm1022_vm2, %v13410_v25  ;;  %v13411_v49 = vld [vmem:[%s13867_s5 + $0x4e8] sm:$0xff] }
 0x2dc   : > { %12286 = vmatmul.msk.bf16.gmra.mxu2 %vm1022_vm2, %v13522_v18  ;;  %13126 = vmatmul.msk.bf16.gmra.mxu3 %vm1022_vm2, %v13634_v6  ;;  %v13523_v6 = vld [vmem:[%s13867_s5 + $0x868] sm:$0xff] }
 0x2df   : > { %v15323_v57 = vpop.f32.mrf.mxu2  ;;  %v15325_v9 = vpop.f32.mrf.mxu3 }
 0x2e0   : > { %18710 = vst [vmem:[#allocation23_spill] sm:$0xff] %v15323_v57  ;;  %v15327_v2 = vpop.f32.mrf.mxu0  ;;  %v15329_v61 = vpop.f32.mrf.mxu1  ;;  %v13635_v57 = vld [vmem:[%s13867_s5 + $0xbe8] sm:$0xff] }
 0x2e1   : > { %18711 = vst [vmem:[#allocation32_spill] sm:$0xff] %v15325_v9 }
 0x2e2   : > { %18712 = vst [vmem:[#allocation36_spill] sm:$0xff] %v15327_v2  ;;  %v13300_v2 = vld [vmem:[%s13867_s5 + $0x170] sm:$0xff] }
 0x2e3   : > { %18713 = vst [vmem:[#allocation26_spill] sm:$0xff] %v15329_v61 }
 0x2e7   : > { %v15331_v4 = vpop.f32.mrf.mxu2  ;;  %v15333_v19 = vpop.f32.mrf.mxu3 }
 0x2e8   : > { %18714 = vst [vmem:[#allocation30_spill] sm:$0xff] %v15331_v4  ;;  %v15337_v25 = vpop.f32.mrf.mxu0  ;;  %v15339_v18 = vpop.f32.mrf.mxu1 }
 0x2e9   : > { %18715 = vst [vmem:[#allocation33_spill] sm:$0xff] %v15333_v19 }
 0x2ea   : > { %18716 = vst [vmem:[#allocation27_spill] sm:$0xff] %v15337_v25 }
 0x2eb   : > { %18717 = vst [vmem:[#allocation37_spill] sm:$0xff] %v15339_v18  ;;  %10663 = vmatmul.msk.bf16.gmra.mxu0 %vm1022_vm2, %v13299_v1  ;;  %11447 = vmatmul.msk.bf16.gmra.mxu1 %vm1022_vm2, %v13411_v49  ;;  %v13412_v1 = vld [vmem:[%s13867_s5 + $0x4f0] sm:$0xff] }
 0x2ec   : > { %12287 = vmatmul.msk.bf16.gmra.mxu2 %vm1022_vm2, %v13523_v6  ;;  %13127 = vmatmul.msk.bf16.gmra.mxu3 %vm1022_vm2, %v13635_v57  ;;  %v13524_v57 = vld [vmem:[%s13867_s5 + $0x870] sm:$0xff] }
 0x2ef   : > { %v15347_v19 = vpop.f32.mrf.mxu2  ;;  %v15349_v9 = vpop.f32.mrf.mxu3 }
 0x2f0   : > { %18718 = vst [vmem:[#allocation31_spill] sm:$0xff] %v15347_v19  ;;  %v15351_v4 = vpop.f32.mrf.mxu0  ;;  %v15353_v25 = vpop.f32.mrf.mxu1  ;;  %v13636_v19 = vld [vmem:[%s13867_s5 + $0xbf0] sm:$0xff] }
 0x2f1   : > { %18719 = vst [vmem:[#allocation40_spill] sm:$0xff] %v15349_v9 }
 0x2f2   : > { %18720 = vst [vmem:[#allocation44_spill] sm:$0xff] %v15351_v4  ;;  %v13301_v4 = vld [vmem:[%s13867_s5 + $0x178] sm:$0xff] }
 0x2f3   : > { %18721 = vst [vmem:[#allocation34_spill] sm:$0xff] %v15353_v25 }
 0x2f7   : > { %v15355_v18 = vpop.f32.mrf.mxu2  ;;  %v15357_v61 = vpop.f32.mrf.mxu3 }
 0x2f8   : > { %18722 = vst [vmem:[#allocation38_spill] sm:$0xff] %v15355_v18  ;;  %v15361_v49 = vpop.f32.mrf.mxu0  ;;  %v15363_v6 = vpop.f32.mrf.mxu1 }
 0x2f9   : > { %18723 = vst [vmem:[#allocation41_spill] sm:$0xff] %v15357_v61 }
 0x2fa   : > { %18724 = vst [vmem:[#allocation35_spill] sm:$0xff] %v15361_v49 }
 0x2fb   : > { %18725 = vst [vmem:[#allocation45_spill] sm:$0xff] %v15363_v6  ;;  %10664 = vmatmul.msk.bf16.gmra.mxu0 %vm1022_vm2, %v13300_v2  ;;  %11448 = vmatmul.msk.bf16.gmra.mxu1 %vm1022_vm2, %v13412_v1  ;;  %v13413_v2 = vld [vmem:[%s13867_s5 + $0x4f8] sm:$0xff] }
 0x2fc   : > { %12288 = vmatmul.msk.bf16.gmra.mxu2 %vm1022_vm2, %v13524_v57  ;;  %13128 = vmatmul.msk.bf16.gmra.mxu3 %vm1022_vm2, %v13636_v19  ;;  %v13525_v19 = vld [vmem:[%s13867_s5 + $0x878] sm:$0xff] }
 0x2ff   : > { %v15371_v61 = vpop.f32.mrf.mxu2  ;;  %v15373_v9 = vpop.f32.mrf.mxu3 }
 0x300   : > { %18726 = vst [vmem:[#allocation39_spill] sm:$0xff] %v15371_v61  ;;  %v15375_v18 = vpop.f32.mrf.mxu0  ;;  %v15377_v49 = vpop.f32.mrf.mxu1  ;;  %v13637_v61 = vld [vmem:[%s13867_s5 + $0xbf8] sm:$0xff] }
 0x301   : > { %18727 = vst [vmem:[#allocation48_spill] sm:$0xff] %v15373_v9 }
 0x302   : > { %18728 = vst [vmem:[#allocation52_spill] sm:$0xff] %v15375_v18  ;;  %v13302_v18 = vld [vmem:[%s13867_s5 + $0x180] sm:$0xff] }
 0x303   : > { %18729 = vst [vmem:[#allocation42_spill] sm:$0xff] %v15377_v49 }
 0x307   : > { %v15379_v6 = vpop.f32.mrf.mxu2  ;;  %v15381_v25 = vpop.f32.mrf.mxu3 }
 0x308   : > { %18730 = vst [vmem:[#allocation46_spill] sm:$0xff] %v15379_v6  ;;  %v15385_v1 = vpop.f32.mrf.mxu0  ;;  %v15387_v57 = vpop.f32.mrf.mxu1 }
 0x309   : > { %18731 = vst [vmem:[#allocation49_spill] sm:$0xff] %v15381_v25 }
 0x30a   : > { %18732 = vst [vmem:[#allocation43_spill] sm:$0xff] %v15385_v1 }
 0x30b   : > { %18733 = vst [vmem:[#allocation53_spill] sm:$0xff] %v15387_v57  ;;  %10665 = vmatmul.msk.bf16.gmra.mxu0 %vm1022_vm2, %v13301_v4  ;;  %11449 = vmatmul.msk.bf16.gmra.mxu1 %vm1022_vm2, %v13413_v2  ;;  %v13414_v4 = vld [vmem:[%s13867_s5 + $0x500] sm:$0xff] }
 0x30c   : > { %12289 = vmatmul.msk.bf16.gmra.mxu2 %vm1022_vm2, %v13525_v19  ;;  %13129 = vmatmul.msk.bf16.gmra.mxu3 %vm1022_vm2, %v13637_v61  ;;  %v13526_v61 = vld [vmem:[%s13867_s5 + $0x880] sm:$0xff] }
 0x30f   : > { %v15395_v25 = vpop.f32.mrf.mxu2  ;;  %v15397_v9 = vpop.f32.mrf.mxu3 }
 0x310   : > { %18734 = vst [vmem:[#allocation47_spill] sm:$0xff] %v15395_v25  ;;  %v15399_v6 = vpop.f32.mrf.mxu0  ;;  %v15401_v1 = vpop.f32.mrf.mxu1  ;;  %v13638_v25 = vld [vmem:[%s13867_s5 + $0xc00] sm:$0xff] }
 0x311   : > { %18735 = vst [vmem:[#allocation56_spill] sm:$0xff] %v15397_v9 }
 0x312   : > { %18736 = vst [vmem:[#allocation60_spill] sm:$0xff] %v15399_v6  ;;  %v13303_v6 = vld [vmem:[%s13867_s5 + $0x188] sm:$0xff] }
 0x313   : > { %18737 = vst [vmem:[#allocation50_spill] sm:$0xff] %v15401_v1 }
 0x317   : > { %v15403_v57 = vpop.f32.mrf.mxu2  ;;  %v15405_v49 = vpop.f32.mrf.mxu3 }
 0x318   : > { %18738 = vst [vmem:[#allocation54_spill] sm:$0xff] %v15403_v57  ;;  %v15409_v2 = vpop.f32.mrf.mxu0  ;;  %v15411_v19 = vpop.f32.mrf.mxu1 }
 0x319   : > { %18739 = vst [vmem:[#allocation57_spill] sm:$0xff] %v15405_v49 }
 0x31a   : > { %18740 = vst [vmem:[#allocation51_spill] sm:$0xff] %v15409_v2 }
 0x31b   : > { %18741 = vst [vmem:[#allocation61_spill] sm:$0xff] %v15411_v19  ;;  %10666 = vmatmul.msk.bf16.gmra.mxu0 %vm1022_vm2, %v13302_v18  ;;  %11450 = vmatmul.msk.bf16.gmra.mxu1 %vm1022_vm2, %v13414_v4  ;;  %v13415_v18 = vld [vmem:[%s13867_s5 + $0x508] sm:$0xff] }
 0x31c   : > { %12290 = vmatmul.msk.bf16.gmra.mxu2 %vm1022_vm2, %v13526_v61  ;;  %13130 = vmatmul.msk.bf16.gmra.mxu3 %vm1022_vm2, %v13638_v25  ;;  %v13527_v25 = vld [vmem:[%s13867_s5 + $0x888] sm:$0xff] }
 0x31f   : > { %v15419_v49 = vpop.f32.mrf.mxu2  ;;  %v15421_v9 = vpop.f32.mrf.mxu3 }
 0x320   : > { %18742 = vst [vmem:[#allocation55_spill] sm:$0xff] %v15419_v49  ;;  %v15423_v57 = vpop.f32.mrf.mxu0  ;;  %v15425_v2 = vpop.f32.mrf.mxu1  ;;  %v13639_v49 = vld [vmem:[%s13867_s5 + $0xc08] sm:$0xff] }
 0x321   : > { %18743 = vst [vmem:[#allocation64_spill] sm:$0xff] %v15421_v9 }
 0x322   : > { %18744 = vst [vmem:[#allocation68_spill] sm:$0xff] %v15423_v57  ;;  %v13416_v57 = vld [vmem:[%s13867_s5 + $0x510] sm:$0xff] }
 0x323   : > { %18745 = vst [vmem:[#allocation58_spill] sm:$0xff] %v15425_v2 }
 0x327   : > { %v15427_v19 = vpop.f32.mrf.mxu2  ;;  %v15429_v1 = vpop.f32.mrf.mxu3 }
 0x328   : > { %18746 = vst [vmem:[#allocation62_spill] sm:$0xff] %v15427_v19  ;;  %v15433_v4 = vpop.f32.mrf.mxu0  ;;  %v15435_v61 = vpop.f32.mrf.mxu1 }
 0x329   : > { %18747 = vst [vmem:[#allocation65_spill] sm:$0xff] %v15429_v1 }
 0x32a   : > { %18748 = vst [vmem:[#allocation69_spill] sm:$0xff] %v15433_v4 }
 0x32b   : > { %18749 = vst [vmem:[#allocation59_spill] sm:$0xff] %v15435_v61  ;;  %10667 = vmatmul.msk.bf16.gmra.mxu0 %vm1022_vm2, %v13303_v6  ;;  %11451 = vmatmul.msk.bf16.gmra.mxu1 %vm1022_vm2, %v13415_v18  ;;  %v1516_v61 = vadd.f32 %v15021_v11, %v15077_v50  ;;  %v13304_v18 = vld [vmem:[%s13867_s5 + $0x190] sm:$0xff] }
 0x32c   : > { %12291 = vmatmul.msk.bf16.gmra.mxu2 %vm1022_vm2, %v13527_v25  ;;  %13131 = vmatmul.msk.bf16.gmra.mxu3 %vm1022_vm2, %v13639_v49  ;;  %v13528_v49 = vld [vmem:[%s13867_s5 + $0x890] sm:$0xff] }
 0x32f   : > { %v15443_v1 = vpop.f32.mrf.mxu2  ;;  %v15445_v9 = vpop.f32.mrf.mxu3 }
 0x330   : > { %18750 = vst [vmem:[#allocation63_spill] sm:$0xff] %v15443_v1  ;;  %v15447_v19 = vpop.f32.mrf.mxu0  ;;  %v15449_v4 = vpop.f32.mrf.mxu1 }
 0x331   : > { %18751 = vst [vmem:[#allocation66_spill] sm:$0xff] %v15445_v9  ;;  %v1991_v9 = vmax.f32 %v1516_v61, 0.0 }
 0x332   : > { %18752 = vst [vmem:[#allocation70_spill] sm:$0xff] %v15447_v19 }
 0x333   : > { %18753 = vst [vmem:[#allocation67_spill] sm:$0xff] %v15449_v4 }
 0x337   : > { %v15453_v2 = vpop.f32.mrf.mxu2  ;;  %v15455_v6 = vpop.f32.mrf.mxu3 }
 0x338   : > { %18754 = vst [vmem:[#allocation71_spill] sm:$0xff] %v15453_v2  ;;  %v1585_v25 = vpop.f32.mrf.mxu0  ;;  %v4121_v54 = vpop.f32.mrf.mxu1 }
 0x339   : > { %18755 = vst [vmem:[#allocation72_spill] sm:$0xff] %v15455_v6  ;;  %v1586_v1 = vadd.f32 %v15021_v11, %v1585_v25  ;;  %v1518_v6 = vadd.f32 %v15021_v11, %v15107_v26 }
 0x33b   : > { %v2019_v32 = vmax.f32 %v1586_v1, 0.0  ;;  %10668 = vmatmul.msk.bf16.gmra.mxu0 %vm1022_vm2, %v13304_v18  ;;  %11452 = vmatmul.msk.bf16.gmra.mxu1 %vm1022_vm2, %v13416_v57  ;;  %v1992_v57 = vmax.f32 %v1518_v6, 0.0  ;;  %v13417_v6 = vld [vmem:[%s13867_s5 + $0x518] sm:$0xff] }
 0x33c   : > { %12292 = vmatmul.msk.bf16.gmra.mxu2 %vm1022_vm2, %v13528_v49  ;;  %13132 = vmatmul.msk.bf16.gmra.mxu3 %vm1022_vm2, %v13640_v29 }
 0x33d   : > { %v2187_v50 = vmax.f32 %v1991_v9, %v2019_v32  ;;  %v4122_v32 = vadd.f32 %v15021_v11, %v4121_v54  ;;  %v4052_v9 = vadd.f32 %v15021_v11, %v15079_v37 }
 0x33f   : > { %2300 = vst.msk [vmem:[#allocation2 + $0xe0] sm:$0xff] %vm2271_vm3, %v2187_v50  ;;  %v6544_v2 = vpop.f32.mrf.mxu2  ;;  %v15469_v25 = vpop.f32.mrf.mxu3  ;;  %v1521_v50 = vadd.f32 %v15021_v11, %v15130_v53  ;;  %v4555_v8 = vmax.f32 %v4122_v32, 0.0  ;;  %v4527_v17 = vmax.f32 %v4052_v9, 0.0 }
 0x340   : > { %v1587_v1 = vpop.f32.mrf.mxu0  ;;  %v4123_v61 = vpop.f32.mrf.mxu1  ;;  %v6545_v62 = vadd.f32 %v15021_v11, %v6544_v2 }
 0x341   : > { %v1588_v18 = vadd.f32 %v15021_v11, %v1587_v1  ;;  %v4124_v26 = vadd.f32 %v15021_v11, %v4123_v61  ;;  %v13305_v1 = vld [vmem:[%s13867_s5 + $0x198] sm:$0xff]  ;;  %v1993_v53 = vmax.f32 %v1521_v50, 0.0 }
 0x342   : > { %v13641_v61 = vld [vmem:[%s13867_s5 + $0xc18] sm:$0xff]  ;;  %v6978_v2 = vmax.f32 %v6545_v62, 0.0  ;;  %v8968_v62 = vadd.f32 %v15021_v11, %v15469_v25 }
 0x343   : > { %v2020_v49 = vmax.f32 %v1588_v18, 0.0  ;;  %v4054_v18 = vadd.f32 %v15021_v11, %v15109_v15  ;;  %v4556_v48 = vmax.f32 %v4124_v26, 0.0  ;;  %v4723_v15 = vmax.f32 %v4527_v17, %v4555_v8 }
 0x344   : > { %v1523_v26 = vadd.f32 %v15021_v11, %v15153_v63  ;;  %v6475_v17 = vadd.f32 %v15021_v11, %v15100_v14  ;;  %v6477_v63 = vadd.f32 %v15021_v11, %v15122_v34 }
 0x345   : > { %v2188_v29 = vmax.f32 %v1992_v57, %v2020_v49  ;;  %v13529_v49 = vld [vmem:[%s13867_s5 + $0x898] sm:$0xff] }
 0x346   : > { %v6950_v14 = vmax.f32 %v6475_v17, 0.0  ;;  %v4059_v17 = vadd.f32 %v15021_v11, %v15155_v38  ;;  %v8900_v38 = vadd.f32 %v15021_v11, %v15124_v5 }
 0x347   : > { %2301 = vst.msk [vmem:[#allocation2 + $0xe8] sm:$0xff] %vm2271_vm3, %v2188_v29  ;;  %v6546_v4 = vpop.f32.mrf.mxu2  ;;  %v15479_v19 = vpop.f32.mrf.mxu3  ;;  %v4528_v29 = vmax.f32 %v4054_v18, 0.0 }
 0x348   : > { %v1590_v54 = vpop.f32.mrf.mxu0  ;;  %v4126_v57 = vpop.f32.mrf.mxu1  ;;  %v6547_v50 = vadd.f32 %v15021_v11, %v6546_v4  ;;  %v1994_v4 = vmax.f32 %v1523_v26, 0.0 }
 0x349   : > { %v1591_v37 = vadd.f32 %v15021_v11, %v1590_v54  ;;  %v4724_v54 = vmax.f32 %v4528_v29, %v4556_v48  ;;  %v7146_v29 = vmax.f32 %v6950_v14, %v6978_v2 }
 0x34a   : > { %v6979_v18 = vmax.f32 %v6547_v50, 0.0  ;;  %v13418_v50 = vld [vmem:[%s13867_s5 + $0x520] sm:$0xff] }
 0x34b   : > { %v2021_v44 = vmax.f32 %v1591_v37, 0.0  ;;  %10669 = vmatmul.msk.bf16.gmra.mxu0 %vm1022_vm2, %v13305_v1  ;;  %11453 = vmatmul.msk.bf16.gmra.mxu1 %vm1022_vm2, %v13417_v6  ;;  %v4127_v37 = vadd.f32 %v15021_v11, %v4126_v57 }
 0x34c   : > { %12293 = vmatmul.msk.bf16.gmra.mxu2 %vm1022_vm2, %v13529_v49  ;;  %13133 = vmatmul.msk.bf16.gmra.mxu3 %vm1022_vm2, %v13641_v61  ;;  %v6951_v61 = vmax.f32 %v6477_v63, 0.0  ;;  %v13530_v63 = vld [vmem:[%s13867_s5 + $0x8a0] sm:$0xff] }
 0x34d   : > { %v2189_v40 = vmax.f32 %v1993_v53, %v2021_v44  ;;  %v4557_v2 = vmax.f32 %v4127_v37, 0.0 }
 0x34e   : > { %v2412_v32 = vld [vmem:[#allocation2 + $0xe0] ss:$2 sm:$0xff]  ;;  %v2524_v47 = vld [vmem:[#allocation2 + $0xe1] ss:$2 sm:$0xff]  ;;  %v7147_v26 = vmax.f32 %v6951_v61, %v6979_v18  ;;  %v1526_v18 = vadd.f32 %v15021_v11, %v15167_v59  ;;  %v9401_v61 = vmax.f32 %v8968_v62, 0.0  ;;  %v9374_v59 = vmax.f32 %v8900_v38, 0.0 }
 0x34f   : > { %v2621_v9 = vmax.f32 %v2412_v32, %v2524_v47  ;;  %4835 = vst.msk [vmem:[#allocation2 + $0xe0] sm:$0xff] %vm2271_vm3, %v4723_v15  ;;  %v6549_v1 = vpop.f32.mrf.mxu2  ;;  %v15497_v6 = vpop.f32.mrf.mxu3  ;;  %v13306_v15 = vld [vmem:[%s13867_s5 + $0x1a0] sm:$0xff] }
 0x350   : > { %4836 = vst.msk [vmem:[#allocation2 + $0xe8] sm:$0xff] %vm2271_vm3, %v4724_v54  ;;  %v1592_v8 = vpop.f32.mrf.mxu0  ;;  %v4128_v44 = vpop.f32.mrf.mxu1 }
 0x351   : > { %v2677_v48 = vpack.c.bf16 %v2621_v9, %v2621_v9  ;;  %2302 = vst.msk [vmem:[#allocation2 + $0xf0] sm:$0xff] %vm2271_vm3, %v2189_v40  ;;  %v1593_v47 = vadd.f32 %v15021_v11, %v1592_v8  ;;  %v4129_v34 = vadd.f32 %v15021_v11, %v4128_v44  ;;  %v4057_v40 = vadd.f32 %v15021_v11, %v15132_v12 }
 0x352   : > { %v8970_v12 = vadd.f32 %v15021_v11, %v15479_v19 }
 0x353   : > { %2737 = vst.msk [vmem:[%s14327_s20 + $0x38] sm:$0xf] %vm2722_vm4, %v2677_v48  ;;  %v2022_v49 = vmax.f32 %v1593_v47, 0.0  ;;  %v13642_v48 = vld [vmem:[%s13867_s5 + $0xc20] sm:$0xff]  ;;  %v8898_v47 = vadd.f32 %v15021_v11, %v15102_v28  ;;  %v4529_v14 = vmax.f32 %v4057_v40, 0.0  ;;  %v4530_v28 = vmax.f32 %v4059_v17, 0.0 }
 0x354   : > { %v9402_v37 = vmax.f32 %v8970_v12, 0.0 }
 0x355   : > { %v2190_v53 = vmax.f32 %v1994_v4, %v2022_v49  ;;  %v4558_v49 = vmax.f32 %v4129_v34, 0.0  ;;  %v9373_v5 = vmax.f32 %v8898_v47, 0.0  ;;  %v6550_v34 = vadd.f32 %v15021_v11, %v6549_v1  ;;  %v15552_v1 = vld [vmem:[%s18546_s2] ss:$0 sm:$0xff] }
 0x357   : > { %v4933_v32 = vld [vmem:[#allocation2 + $0xe0] ss:$2 sm:$0xff]  ;;  %v4989_v54 = vld [vmem:[#allocation2 + $0xe1] ss:$2 sm:$0xff]  ;;  %2303 = vst.msk [vmem:[#allocation2 + $0xf8] sm:$0xff] %vm2271_vm3, %v2190_v53  ;;  %v6551_v9 = vpop.f32.mrf.mxu2  ;;  %v15516_v57 = vpop.f32.mrf.mxu3 }
 0x358   : > { %v5045_v8 = vmax.f32 %v4933_v32, %v4989_v54  ;;  %7258 = vst.msk [vmem:[#allocation2 + $0xe0] sm:$0xff] %vm2271_vm3, %v7146_v29  ;;  %v1595_v44 = vpop.f32.mrf.mxu0  ;;  %v4131_v25 = vpop.f32.mrf.mxu1  ;;  %v4725_v29 = vmax.f32 %v4529_v14, %v4557_v2  ;;  %v1995_v32 = vmax.f32 %v1526_v18, 0.0  ;;  %v1528_v54 = vadd.f32 %v15021_v11, %v15183_v41 }
 0x359   : > { %7259 = vst.msk [vmem:[#allocation2 + $0xe8] sm:$0xff] %vm2271_vm3, %v7147_v26  ;;  %v1596_v4 = vadd.f32 %v15021_v11, %v1595_v44  ;;  %v9569_v26 = vmax.f32 %v9373_v5, %v9401_v61  ;;  %v6552_v17 = vadd.f32 %v15021_v11, %v6551_v9  ;;  %v6480_v44 = vadd.f32 %v15552_v1, %v15149_v27 }
 0x35a   : > { %v5101_v19 = vpack.c.bf16 %v5045_v8, %v5045_v8  ;;  %v6482_v2 = vadd.f32 %v15552_v1, %v15161_v42  ;;  %v6980_v27 = vmax.f32 %v6550_v34, 0.0  ;;  %v8973_v34 = vadd.f32 %v15552_v1, %v15497_v6 }
 0x35b   : > { %10670 = vmatmul.msk.bf16.gmra.mxu0 %vm1022_vm2, %v13306_v15  ;;  %11454 = vmatmul.msk.bf16.gmra.mxu1 %vm1022_vm2, %v13418_v50  ;;  %v2023_v53 = vmax.f32 %v1596_v4, 0.0  ;;  %v4726_v15 = vmax.f32 %v4530_v28, %v4558_v49  ;;  %v6981_v14 = vmax.f32 %v6552_v17, 0.0  ;;  %v6952_v28 = vmax.f32 %v6480_v44, 0.0 }
 0x35c   : > { %11528 = vst.msk [vmem:[%s14327_s20 + $0x118] sm:$0xf] %vm2722_vm4, %v5101_v19  ;;  %12294 = vmatmul.msk.bf16.gmra.mxu2 %vm1022_vm2, %v13530_v63  ;;  %13134 = vmatmul.msk.bf16.gmra.mxu3 %vm1022_vm2, %v13642_v48  ;;  %v9570_v48 = vmax.f32 %v9374_v59, %v9402_v37  ;;  %v1996_v19 = vmax.f32 %v1528_v54, 0.0  ;;  %v6953_v42 = vmax.f32 %v6482_v2, 0.0  ;;  %v4132_v37 = vadd.f32 %v15552_v1, %v4131_v25  ;;  %v13307_v59 = vld [vmem:[%s13867_s5 + $0x1a8] sm:$0xff] }
 0x35d   : > { %v2191_v47 = vmax.f32 %v1995_v32, %v2023_v53  ;;  %v7148_v5 = vmax.f32 %v6952_v28, %v6980_v27  ;;  %v4062_v32 = vadd.f32 %v15552_v1, %v15169_v0  ;;  %v4064_v0 = vadd.f32 %v15552_v1, %v15185_v16 }
 0x35e   : > { %v2414_v40 = vld [vmem:[#allocation2 + $0xf0] ss:$2 sm:$0xff]  ;;  %v2526_v62 = vld [vmem:[#allocation2 + $0xf1] ss:$2 sm:$0xff]  ;;  %v8975_v6 = vadd.f32 %v15552_v1, %v15516_v57  ;;  %v9403_v27 = vmax.f32 %v8973_v34, 0.0 }
 0x35f   : > { %v2622_v50 = vmax.f32 %v2414_v40, %v2526_v62  ;;  %4837 = vst.msk [vmem:[#allocation2 + $0xf0] sm:$0xff] %vm2271_vm3, %v4725_v29  ;;  %v15545_v8 = vpop.f32.mrf.mxu2  ;;  %v15547_v12 = vpop.f32.mrf.mxu3 }
 0x360   : > { %v7356_v63 = vld [vmem:[#allocation2 + $0xe0] ss:$2 sm:$0xff]  ;;  %v7412_v41 = vld [vmem:[#allocation2 + $0xe1] ss:$2 sm:$0xff]  ;;  %4838 = vst.msk [vmem:[#allocation2 + $0xf8] sm:$0xff] %vm2271_vm3, %v4726_v15  ;;  %v1597_v11 = vpop.f32.mrf.mxu0  ;;  %v4133_v9 = vpop.f32.mrf.mxu1  ;;  %v7149_v15 = vmax.f32 %v6953_v42, %v6981_v14 }
 0x361   : > { %v7468_v4 = vmax.f32 %v7356_v63, %v7412_v41  ;;  %9681 = vst.msk [vmem:[#allocation2 + $0xe0] sm:$0xff] %vm2271_vm3, %v9569_v26  ;;  %v2678_v38 = vpack.c.bf16 %v2622_v50, %v2622_v50  ;;  %v1598_v18 = vadd.f32 %v15552_v1, %v1597_v11  ;;  %v4134_v29 = vadd.f32 %v15552_v1, %v4133_v9  ;;  %v13419_v26 = vld [vmem:[%s13867_s5 + $0x528] sm:$0xff] }
 0x362   : > { %9682 = vst.msk [vmem:[#allocation2 + $0xe8] sm:$0xff] %vm2271_vm3, %v9570_v48  ;;  %v8903_v50 = vadd.f32 %v15552_v1, %v15151_v31  ;;  %v13531_v41 = vld [vmem:[%s13867_s5 + $0x8a8] sm:$0xff]  ;;  %v1531_v31 = vadd.f32 %v15552_v1, %v15193_v3  ;;  %v4559_v9 = vmax.f32 %v4132_v37, 0.0  ;;  %v9404_v3 = vmax.f32 %v8975_v6, 0.0 }
 0x363   : > { %v7524_v49 = vpack.c.bf16 %v7468_v4, %v7468_v4  ;;  %2738 = vst.msk [vmem:[%s14327_s20 + $0x3c] sm:$0xf] %vm2722_vm4, %v2678_v38  ;;  %v2024_v61 = vmax.f32 %v1598_v18, 0.0  ;;  %v13643_v48 = vld [vmem:[%s13867_s5 + $0xc28] sm:$0xff]  ;;  %v4560_v38 = vmax.f32 %v4134_v29, 0.0  ;;  %v4531_v18 = vmax.f32 %v4062_v32, 0.0 }
 0x364   : > { %2304 = vst.msk [vmem:[#allocation2 + $0x100] sm:$0xff] %vm2271_vm3, %v2191_v47  ;;  %v8905_v47 = vadd.f32 %v15552_v1, %v15163_v33  ;;  %v4532_v33 = vmax.f32 %v4064_v0, 0.0  ;;  %v9375_v14 = vmax.f32 %v8903_v50, 0.0  ;;  %v1997_v28 = vmax.f32 %v1531_v31, 0.0 }
 0x365   : > { %12368 = vst.msk [vmem:[%s14327_s20 + $0x1f8] sm:$0xf] %vm2722_vm4, %v7524_v49  ;;  %v2192_v53 = vmax.f32 %v1996_v19, %v2024_v61  ;;  %v4727_v42 = vmax.f32 %v4531_v18, %v4559_v9  ;;  %v6555_v37 = vadd.f32 %v15552_v1, %v15545_v8  ;;  %v13308_v18 = vld [vmem:[%s13867_s5 + $0x1b0] sm:$0xff] }
 0x366   : > { %v9376_v61 = vmax.f32 %v8905_v47, 0.0  ;;  %v4728_v29 = vmax.f32 %v4532_v33, %v4560_v38  ;;  %v9571_v32 = vmax.f32 %v9375_v14, %v9403_v27  ;;  %v4067_v27 = vadd.f32 %v15552_v1, %v15195_v36 }
 0x367   : > { %v4934_v40 = vld [vmem:[#allocation2 + $0xf0] ss:$2 sm:$0xff]  ;;  %v4990_v62 = vld [vmem:[#allocation2 + $0xf1] ss:$2 sm:$0xff]  ;;  %2305 = vst.msk [vmem:[#allocation2 + $0x108] sm:$0xff] %vm2271_vm3, %v2192_v53  ;;  %v6556_v54 = vpop.f32.mrf.mxu2  ;;  %v15575_v25 = vpop.f32.mrf.mxu3  ;;  %v8978_v33 = vadd.f32 %v15552_v1, %v15547_v12  ;;  %v4069_v36 = vadd.f32 %v15552_v1, %v15209_v60 }
 0x368   : > { %v5046_v17 = vmax.f32 %v4934_v40, %v4990_v62  ;;  %7260 = vst.msk [vmem:[#allocation2 + $0xf0] sm:$0xff] %vm2271_vm3, %v7148_v5  ;;  %v1600_v44 = vpop.f32.mrf.mxu0  ;;  %v15585_v63 = vpop.f32.mrf.mxu1  ;;  %v6557_v40 = vadd.f32 %v15552_v1, %v6556_v54  ;;  %v9572_v0 = vmax.f32 %v9376_v61, %v9404_v3  ;;  %v6487_v54 = vadd.f32 %v15552_v1, %v15187_v7  ;;  %v13420_v61 = vld [vmem:[%s13867_s5 + $0x530] sm:$0xff] }
 0x369   : > { %v9779_v11 = vld [vmem:[#allocation2 + $0xe0] ss:$2 sm:$0xff]  ;;  %v9835_v16 = vld [vmem:[#allocation2 + $0xe1] ss:$2 sm:$0xff]  ;;  %7261 = vst.msk [vmem:[#allocation2 + $0xf8] sm:$0xff] %vm2271_vm3, %v7149_v15  ;;  %v1601_v2 = vadd.f32 %v15552_v1, %v1600_v44  ;;  %v8980_v12 = vadd.f32 %v15552_v1, %v15575_v25 }
 0x36a   : > { %v9891_v57 = vmax.f32 %v9779_v11, %v9835_v16  ;;  %v5102_v4 = vpack.c.bf16 %v5046_v17, %v5046_v17  ;;  %v6983_v11 = vmax.f32 %v6557_v40, 0.0  ;;  %v6955_v7 = vmax.f32 %v6487_v54, 0.0 }
 0x36b   : > { %10671 = vmatmul.msk.bf16.gmra.mxu0 %vm1022_vm2, %v13307_v59  ;;  %11455 = vmatmul.msk.bf16.gmra.mxu1 %vm1022_vm2, %v13419_v26  ;;  %v2025_v49 = vmax.f32 %v1601_v2, 0.0  ;;  %v1533_v59 = vadd.f32 %v15552_v1, %v15207_v52  ;;  %v6485_v26 = vadd.f32 %v15552_v1, %v15179_v56  ;;  %v6982_v56 = vmax.f32 %v6555_v37, 0.0 }
 0x36c   : > { %v9947_v19 = vpack.c.bf16 %v9891_v57, %v9891_v57  ;;  %11529 = vst.msk [vmem:[%s14327_s20 + $0x11c] sm:$0xf] %vm2722_vm4, %v5102_v4  ;;  %12295 = vmatmul.msk.bf16.gmra.mxu2 %vm1022_vm2, %v13531_v41  ;;  %13135 = vmatmul.msk.bf16.gmra.mxu3 %vm1022_vm2, %v13643_v48  ;;  %v4137_v2 = vadd.f32 %v15552_v1, %v15585_v63 }
 0x36d   : > { %v2193_v52 = vmax.f32 %v1997_v28, %v2025_v49  ;;  %v1998_v47 = vmax.f32 %v1533_v59, 0.0  ;;  %v6954_v9 = vmax.f32 %v6485_v26, 0.0  ;;  %v7151_v49 = vmax.f32 %v6955_v7, %v6983_v11 }
 0x36e   : > { %13208 = vst.msk [vmem:[%s14327_s20 + $0x2d8] sm:$0xf] %vm2722_vm4, %v9947_v19  ;;  %v2416_v53 = vld [vmem:[#allocation2 + $0x100] ss:$2 sm:$0xff]  ;;  %v2528_v5 = vld [vmem:[#allocation2 + $0x101] ss:$2 sm:$0xff]  ;;  %v8908_v28 = vadd.f32 %v15552_v1, %v15181_v22  ;;  %v8910_v59 = vadd.f32 %v15552_v1, %v15189_v30  ;;  %v1536_v22 = vadd.f32 %v15552_v1, %v15217_v58  ;;  %v1538_v11 = vadd.f32 %v15552_v1, %v15231_v13 }
 0x36f   : > { %v2623_v34 = vmax.f32 %v2416_v53, %v2528_v5  ;;  %4839 = vst.msk [vmem:[#allocation2 + $0x100] sm:$0xff] %vm2271_vm3, %v4727_v42  ;;  %v15609_v62 = vpop.f32.mrf.mxu2  ;;  %v15611_v15 = vpop.f32.mrf.mxu3  ;;  %v7150_v4 = vmax.f32 %v6954_v9, %v6982_v56  ;;  %v13532_v5 = vld [vmem:[%s13867_s5 + $0x8b0] sm:$0xff]  ;;  %v4534_v30 = vmax.f32 %v4069_v36, 0.0  ;;  %v9406_v58 = vmax.f32 %v8980_v12, 0.0 }
 0x370   : > { %v7357_v8 = vld [vmem:[#allocation2 + $0xf0] ss:$2 sm:$0xff]  ;;  %v7413_v50 = vld [vmem:[#allocation2 + $0xf1] ss:$2 sm:$0xff]  ;;  %4840 = vst.msk [vmem:[#allocation2 + $0x108] sm:$0xff] %vm2271_vm3, %v4728_v29  ;;  %v1602_v17 = vpop.f32.mrf.mxu0  ;;  %v4138_v6 = vpop.f32.mrf.mxu1  ;;  %v9378_v54 = vmax.f32 %v8910_v59, 0.0 }
 0x371   : > { %v7469_v44 = vmax.f32 %v7357_v8, %v7413_v50  ;;  %9683 = vst.msk [vmem:[#allocation2 + $0xf0] sm:$0xff] %vm2271_vm3, %v9571_v32  ;;  %v2679_v41 = vpack.c.bf16 %v2623_v34, %v2623_v34  ;;  %v1603_v48 = vadd.f32 %v15552_v1, %v1602_v17  ;;  %v4139_v38 = vadd.f32 %v15552_v1, %v4138_v6  ;;  %v13644_v29 = vld [vmem:[%s13867_s5 + $0xc30] sm:$0xff] }
 0x372   : > { %9684 = vst.msk [vmem:[#allocation2 + $0xf8] sm:$0xff] %vm2271_vm3, %v9572_v0  ;;  %v4561_v34 = vmax.f32 %v4137_v2, 0.0  ;;  %v4533_v50 = vmax.f32 %v4067_v27, 0.0  ;;  %v9405_v0 = vmax.f32 %v8978_v33, 0.0  ;;  %v9377_v6 = vmax.f32 %v8908_v28, 0.0 }
 0x373   : > { %v7525_v31 = vpack.c.bf16 %v7469_v44, %v7469_v44  ;;  %2739 = vst.msk [vmem:[%s14327_s20 + $0x40] sm:$0xf] %vm2722_vm4, %v2679_v41  ;;  %v2026_v16 = vmax.f32 %v1603_v48, 0.0  ;;  %v4562_v8 = vmax.f32 %v4139_v38, 0.0  ;;  %v1999_v44 = vmax.f32 %v1536_v22, 0.0  ;;  %v13309_v22 = vld [vmem:[%s13867_s5 + $0x1b8] sm:$0xff] }
 0x374   : > { %2306 = vst.msk [vmem:[#allocation2 + $0x110] sm:$0xff] %vm2271_vm3, %v2193_v52  ;;  %v4729_v41 = vmax.f32 %v4533_v50, %v4561_v34  ;;  %v6560_v48 = vadd.f32 %v15552_v1, %v15609_v62  ;;  %v8913_v50 = vadd.f32 %v15552_v1, %v15205_v20  ;;  %v1541_v20 = vadd.f32 %v15552_v1, %v15241_v23 }
 0x375   : > { %12369 = vst.msk [vmem:[%s14327_s20 + $0x1fc] sm:$0xf] %vm2722_vm4, %v7525_v31  ;;  %v2194_v57 = vmax.f32 %v1998_v47, %v2026_v16  ;;  %v4730_v31 = vmax.f32 %v4534_v30, %v4562_v8  ;;  %v9573_v16 = vmax.f32 %v9377_v6, %v9405_v0  ;;  %v13421_v8 = vld [vmem:[%s13867_s5 + $0x538] sm:$0xff]  ;;  %v8915_v6 = vadd.f32 %v15552_v1, %v15213_v45 }
 0x377   : > { %v4935_v19 = vld [vmem:[#allocation2 + $0x100] ss:$2 sm:$0xff]  ;;  %v4991_v3 = vld [vmem:[#allocation2 + $0x101] ss:$2 sm:$0xff]  ;;  %2307 = vst.msk [vmem:[#allocation2 + $0x118] sm:$0xff] %vm2271_vm3, %v2194_v57  ;;  %v6561_v14 = vpop.f32.mrf.mxu2  ;;  %v15635_v63 = vpop.f32.mrf.mxu3 }
 0x378   : > { %v5047_v42 = vmax.f32 %v4935_v19, %v4991_v3  ;;  %7262 = vst.msk [vmem:[#allocation2 + $0x100] sm:$0xff] %vm2271_vm3, %v7150_v4  ;;  %v1605_v37 = vpop.f32.mrf.mxu0  ;;  %v15645_v53 = vpop.f32.mrf.mxu1  ;;  %v6562_v7 = vadd.f32 %v15552_v1, %v6561_v14  ;;  %v6490_v4 = vadd.f32 %v15552_v1, %v15203_v35  ;;  %v6492_v19 = vadd.f32 %v15552_v1, %v15211_v10 }
 0x379   : > { %v9780_v32 = vld [vmem:[#allocation2 + $0xf0] ss:$2 sm:$0xff]  ;;  %v9836_v60 = vld [vmem:[#allocation2 + $0xf1] ss:$2 sm:$0xff]  ;;  %7263 = vst.msk [vmem:[#allocation2 + $0x108] sm:$0xff] %vm2271_vm3, %v7151_v49  ;;  %v1606_v40 = vadd.f32 %v15552_v1, %v1605_v37  ;;  %v6984_v35 = vmax.f32 %v6560_v48, 0.0  ;;  %v4142_v37 = vadd.f32 %v15552_v1, %v15645_v53 }
 0x37a   : > { %v9892_v25 = vmax.f32 %v9780_v32, %v9836_v60  ;;  %v5103_v26 = vpack.c.bf16 %v5047_v42, %v5047_v42  ;;  %v6985_v36 = vmax.f32 %v6562_v7, 0.0  ;;  %v6956_v12 = vmax.f32 %v6490_v4, 0.0 }
 0x37b   : > { %10672 = vmatmul.msk.bf16.gmra.mxu0 %vm1022_vm2, %v13308_v18  ;;  %11456 = vmatmul.msk.bf16.gmra.mxu1 %vm1022_vm2, %v13420_v61  ;;  %v2027_v17 = vmax.f32 %v1606_v40, 0.0  ;;  %v9574_v18 = vmax.f32 %v9378_v54, %v9406_v58  ;;  %v2000_v61 = vmax.f32 %v1538_v11, 0.0  ;;  %v6957_v10 = vmax.f32 %v6492_v19, 0.0  ;;  %v13533_v58 = vld [vmem:[%s13867_s5 + $0x8b8] sm:$0xff] }
 0x37c   : > { %v9948_v52 = vpack.c.bf16 %v9892_v25, %v9892_v25  ;;  %11530 = vst.msk [vmem:[%s14327_s20 + $0x120] sm:$0xf] %vm2722_vm4, %v5103_v26  ;;  %12296 = vmatmul.msk.bf16.gmra.mxu2 %vm1022_vm2, %v13532_v5  ;;  %13136 = vmatmul.msk.bf16.gmra.mxu3 %vm1022_vm2, %v13644_v29  ;;  %v7152_v29 = vmax.f32 %v6956_v12, %v6984_v35  ;;  %v9380_v7 = vmax.f32 %v8915_v6, 0.0  ;;  %v2001_v4 = vmax.f32 %v1541_v20, 0.0  ;;  %v13422_v6 = vld [vmem:[%s13867_s5 + $0x540] sm:$0xff] }
 0x37d   : > { %v2195_v13 = vmax.f32 %v1999_v44, %v2027_v17  ;;  %v4072_v32 = vadd.f32 %v15552_v1, %v15219_v24  ;;  %v8983_v60 = vadd.f32 %v15552_v1, %v15611_v15  ;;  %v7153_v25 = vmax.f32 %v6957_v10, %v6985_v36  ;;  %v13645_v17 = vld [vmem:[%s13867_s5 + $0xc38] sm:$0xff] }
 0x37e   : > { %13209 = vst.msk [vmem:[%s14327_s20 + $0x2dc] sm:$0xf] %vm2722_vm4, %v9948_v52  ;;  %v2418_v56 = vld [vmem:[#allocation2 + $0x110] ss:$2 sm:$0xff]  ;;  %v2530_v47 = vld [vmem:[#allocation2 + $0x111] ss:$2 sm:$0xff]  ;;  %v4074_v24 = vadd.f32 %v15552_v1, %v15233_v46  ;;  %v8985_v15 = vadd.f32 %v15552_v1, %v15635_v63  ;;  %v6497_v10 = vadd.f32 %v15552_v1, %v15235_v55  ;;  %v8918_v20 = vadd.f32 %v15552_v1, %v15229_v21 }
 0x37f   : > { %v2624_v9 = vmax.f32 %v2418_v56, %v2530_v47  ;;  %4841 = vst.msk [vmem:[#allocation2 + $0x110] sm:$0xff] %vm2271_vm3, %v4729_v41  ;;  %v15669_v2 = vpop.f32.mrf.mxu2  ;;  %v15671_v57 = vpop.f32.mrf.mxu3  ;;  %v4563_v44 = vmax.f32 %v4142_v37, 0.0  ;;  %v4535_v47 = vmax.f32 %v4072_v32, 0.0 }
 0x380   : > { %v7358_v62 = vld [vmem:[#allocation2 + $0x100] ss:$2 sm:$0xff]  ;;  %v7414_v38 = vld [vmem:[#allocation2 + $0x101] ss:$2 sm:$0xff]  ;;  %4842 = vst.msk [vmem:[#allocation2 + $0x118] sm:$0xff] %vm2271_vm3, %v4730_v31  ;;  %v1607_v27 = vpop.f32.mrf.mxu0  ;;  %v4143_v33 = vpop.f32.mrf.mxu1  ;;  %v9407_v31 = vmax.f32 %v8983_v60, 0.0 }
 0x381   : > { %v7470_v3 = vmax.f32 %v7358_v62, %v7414_v38  ;;  %9685 = vst.msk [vmem:[#allocation2 + $0x100] sm:$0xff] %vm2271_vm3, %v9573_v16  ;;  %v2680_v49 = vpack.c.bf16 %v2624_v9, %v2624_v9  ;;  %v1608_v14 = vadd.f32 %v15552_v1, %v1607_v27  ;;  %v4144_v59 = vadd.f32 %v15552_v1, %v4143_v33 }
 0x382   : > { %9686 = vst.msk [vmem:[#allocation2 + $0x108] sm:$0xff] %vm2271_vm3, %v9574_v18  ;;  %v4536_v45 = vmax.f32 %v4074_v24, 0.0  ;;  %v9408_v23 = vmax.f32 %v8985_v15, 0.0  ;;  %v9379_v9 = vmax.f32 %v8913_v50, 0.0  ;;  %v4731_v62 = vmax.f32 %v4535_v47, %v4563_v44  ;;  %v13310_v50 = vld [vmem:[%s13867_s5 + $0x1c0] sm:$0xff] }
 0x383   : > { %v7526_v28 = vpack.c.bf16 %v7470_v3, %v7470_v3  ;;  %2740 = vst.msk [vmem:[%s14327_s20 + $0x44] sm:$0xf] %vm2722_vm4, %v2680_v49  ;;  %v2028_v42 = vmax.f32 %v1608_v14, 0.0  ;;  %v4564_v56 = vmax.f32 %v4144_v59, 0.0  ;;  %v6565_v38 = vadd.f32 %v15552_v1, %v15669_v2 }
 0x384   : > { %2308 = vst.msk [vmem:[#allocation2 + $0x120] sm:$0xff] %vm2271_vm3, %v2195_v13  ;;  %v1543_v33 = vadd.f32 %v15552_v1, %v15255_v43  ;;  %v9575_v19 = vmax.f32 %v9379_v9, %v9407_v31  ;;  %v9576_v36 = vmax.f32 %v9380_v7, %v9408_v23  ;;  %v6959_v55 = vmax.f32 %v6497_v10, 0.0  ;;  %v18758_v31 = vld [vmem:[#allocation5_spill] sm:$0xff] }
 0x385   : > { %12370 = vst.msk [vmem:[%s14327_s20 + $0x200] sm:$0xf] %vm2722_vm4, %v7526_v28  ;;  %v2196_v5 = vmax.f32 %v2000_v61, %v2028_v42  ;;  %v4732_v27 = vmax.f32 %v4536_v45, %v4564_v56  ;;  %v6495_v61 = vadd.f32 %v15552_v1, %v15227_v39  ;;  %v6986_v39 = vmax.f32 %v6565_v38, 0.0  ;;  %v18757_v56 = vld [vmem:[#allocation3_spill] sm:$0xff] }
 0x386   : > { %v2002_v59 = vmax.f32 %v1543_v33, 0.0  ;;  %v4077_v24 = vadd.f32 %v15552_v1, %v15243_v51  ;;  %v8920_v47 = vadd.f32 %v15552_v1, %v18757_v56  ;;  %v1546_v21 = vadd.f32 %v15552_v1, %v18758_v31 }
 0x387   : > { %v4936_v34 = vld [vmem:[#allocation2 + $0x110] ss:$2 sm:$0xff]  ;;  %v4992_v40 = vld [vmem:[#allocation2 + $0x111] ss:$2 sm:$0xff]  ;;  %2309 = vst.msk [vmem:[#allocation2 + $0x128] sm:$0xff] %vm2271_vm3, %v2196_v5  ;;  %v6566_v26 = vpop.f32.mrf.mxu2  ;;  %v15695_v53 = vpop.f32.mrf.mxu3  ;;  %v9381_v33 = vmax.f32 %v8918_v20, 0.0 }
 0x388   : > { %v5048_v0 = vmax.f32 %v4936_v34, %v4992_v40  ;;  %7264 = vst.msk [vmem:[#allocation2 + $0x110] sm:$0xff] %vm2271_vm3, %v7152_v29  ;;  %v1610_v30 = vpop.f32.mrf.mxu0  ;;  %v15705_v52 = vpop.f32.mrf.mxu1  ;;  %v6567_v49 = vadd.f32 %v15552_v1, %v6566_v26  ;;  %v6958_v34 = vmax.f32 %v6495_v61, 0.0 }
 0x389   : > { %v9781_v54 = vld [vmem:[#allocation2 + $0x100] ss:$2 sm:$0xff]  ;;  %v9837_v46 = vld [vmem:[#allocation2 + $0x101] ss:$2 sm:$0xff]  ;;  %7265 = vst.msk [vmem:[#allocation2 + $0x118] sm:$0xff] %vm2271_vm3, %v7153_v25  ;;  %v1611_v41 = vadd.f32 %v15552_v1, %v1610_v30  ;;  %v4147_v40 = vadd.f32 %v15552_v1, %v15705_v52 }
 0x38a   : > { %v9893_v63 = vmax.f32 %v9781_v54, %v9837_v46  ;;  %v5104_v48 = vpack.c.bf16 %v5048_v0, %v5048_v0  ;;  %v6987_v32 = vmax.f32 %v6567_v49, 0.0  ;;  %v7154_v26 = vmax.f32 %v6958_v34, %v6986_v39  ;;  %v18756_v54 = vld [vmem:[#allocation4_spill] sm:$0xff] }
 0x38b   : > { %10673 = vmatmul.msk.bf16.gmra.mxu0 %vm1022_vm2, %v13309_v22  ;;  %11457 = vmatmul.msk.bf16.gmra.mxu1 %vm1022_vm2, %v13421_v8  ;;  %v2029_v16 = vmax.f32 %v1611_v41, 0.0  ;;  %v8988_v0 = vadd.f32 %v15552_v1, %v15671_v57  ;;  %v4079_v51 = vadd.f32 %v15552_v1, %v18756_v54  ;;  %v8990_v57 = vadd.f32 %v15552_v1, %v15695_v53  ;;  %v18760_v39 = vld [vmem:[#allocation8_spill] sm:$0xff] }
 0x38c   : > { %v9949_v11 = vpack.c.bf16 %v9893_v63, %v9893_v63  ;;  %11531 = vst.msk [vmem:[%s14327_s20 + $0x124] sm:$0xf] %vm2722_vm4, %v5104_v48  ;;  %12297 = vmatmul.msk.bf16.gmra.mxu2 %vm1022_vm2, %v13533_v58  ;;  %13137 = vmatmul.msk.bf16.gmra.mxu3 %vm1022_vm2, %v13645_v17  ;;  %v7155_v58 = vmax.f32 %v6959_v55, %v6987_v32  ;;  %v13534_v63 = vld [vmem:[%s13867_s5 + $0x8c0] sm:$0xff]  ;;  %v4565_v23 = vmax.f32 %v4147_v40, 0.0  ;;  %v18761_v40 = vld [vmem:[#allocation6_spill] sm:$0xff] }
 0x38d   : > { %v2197_v43 = vmax.f32 %v2001_v4, %v2029_v16  ;;  %v13646_v48 = vld [vmem:[%s13867_s5 + $0xc40] sm:$0xff]  ;;  %v4537_v4 = vmax.f32 %v4077_v24, 0.0  ;;  %v4538_v38 = vmax.f32 %v4079_v51, 0.0 }
 0x38e   : > { %13210 = vst.msk [vmem:[%s14327_s20 + $0x2e0] sm:$0xf] %vm2722_vm4, %v9949_v11  ;;  %v2420_v18 = vld [vmem:[#allocation2 + $0x120] ss:$2 sm:$0xff]  ;;  %v2532_v13 = vld [vmem:[#allocation2 + $0x121] ss:$2 sm:$0xff] }
 0x38f   : > { %v2625_v3 = vmax.f32 %v2420_v18, %v2532_v13  ;;  %4843 = vst.msk [vmem:[#allocation2 + $0x120] sm:$0xff] %vm2271_vm3, %v4731_v62  ;;  %v15729_v14 = vpop.f32.mrf.mxu2  ;;  %v15731_v35 = vpop.f32.mrf.mxu3  ;;  %v9409_v62 = vmax.f32 %v8988_v0, 0.0  ;;  %v9410_v13 = vmax.f32 %v8990_v57, 0.0  ;;  %v4733_v49 = vmax.f32 %v4537_v4, %v4565_v23  ;;  %v13311_v57 = vld [vmem:[%s13867_s5 + $0x1c8] sm:$0xff] }
 0x390   : > { %v7359_v2 = vld [vmem:[#allocation2 + $0x110] ss:$2 sm:$0xff]  ;;  %v7415_v28 = vld [vmem:[#allocation2 + $0x111] ss:$2 sm:$0xff]  ;;  %4844 = vst.msk [vmem:[#allocation2 + $0x128] sm:$0xff] %vm2271_vm3, %v4732_v27  ;;  %v1612_v42 = vpop.f32.mrf.mxu0  ;;  %v4148_v12 = vpop.f32.mrf.mxu1  ;;  %v6570_v61 = vadd.f32 %v15552_v1, %v15729_v14 }
 0x391   : > { %v7471_v37 = vmax.f32 %v7359_v2, %v7415_v28  ;;  %9687 = vst.msk [vmem:[#allocation2 + $0x110] sm:$0xff] %vm2271_vm3, %v9575_v19  ;;  %v2681_v5 = vpack.c.bf16 %v2625_v3, %v2625_v3  ;;  %v1613_v29 = vadd.f32 %v15552_v1, %v1612_v42  ;;  %v4149_v8 = vadd.f32 %v15552_v1, %v4148_v12 }
 0x392   : > { %9688 = vst.msk [vmem:[#allocation2 + $0x118] sm:$0xff] %vm2271_vm3, %v9576_v36  ;;  %v9382_v19 = vmax.f32 %v8920_v47, 0.0  ;;  %v2003_v3 = vmax.f32 %v1546_v21, 0.0  ;;  %v9577_v12 = vmax.f32 %v9381_v33, %v9409_v62  ;;  %v6988_v24 = vmax.f32 %v6570_v61, 0.0  ;;  %v13535_v62 = vld [vmem:[%s13867_s5 + $0x8c8] sm:$0xff] }
 0x393   : > { %v7527_v22 = vpack.c.bf16 %v7471_v37, %v7471_v37  ;;  %2741 = vst.msk [vmem:[%s14327_s20 + $0x48] sm:$0xf] %vm2722_vm4, %v2681_v5  ;;  %v2030_v60 = vmax.f32 %v1613_v29, 0.0  ;;  %v4566_v7 = vmax.f32 %v4149_v8, 0.0 }
 0x394   : > { %2310 = vst.msk [vmem:[#allocation2 + $0x130] sm:$0xff] %vm2271_vm3, %v2197_v43  ;;  %v18759_v43 = vld [vmem:[#allocation20_spill] sm:$0xff]  ;;  %v9578_v32 = vmax.f32 %v9382_v19, %v9410_v13 }
 0x395   : > { %12371 = vst.msk [vmem:[%s14327_s20 + $0x204] sm:$0xf] %vm2722_vm4, %v7527_v22  ;;  %v2198_v25 = vmax.f32 %v2002_v59, %v2030_v60  ;;  %v4734_v36 = vmax.f32 %v4538_v38, %v4566_v7  ;;  %v1548_v42 = vadd.f32 %v15552_v1, %v18759_v43  ;;  %v6500_v59 = vadd.f32 %v15552_v1, %v18760_v39  ;;  %v13647_v38 = vld [vmem:[%s13867_s5 + $0xc48] sm:$0xff] }
 0x397   : > { %v4937_v15 = vld [vmem:[#allocation2 + $0x120] ss:$2 sm:$0xff]  ;;  %v4993_v30 = vld [vmem:[#allocation2 + $0x121] ss:$2 sm:$0xff]  ;;  %2311 = vst.msk [vmem:[#allocation2 + $0x138] sm:$0xff] %vm2271_vm3, %v2198_v25  ;;  %v6571_v17 = vpop.f32.mrf.mxu2  ;;  %v15755_v52 = vpop.f32.mrf.mxu3  ;;  %v6502_v25 = vadd.f32 %v15552_v1, %v18761_v40  ;;  %v2004_v0 = vmax.f32 %v1548_v42, 0.0 }
 0x398   : > { %v5049_v46 = vmax.f32 %v4937_v15, %v4993_v30  ;;  %7266 = vst.msk [vmem:[#allocation2 + $0x120] sm:$0xff] %vm2271_vm3, %v7154_v26  ;;  %v1615_v44 = vpop.f32.mrf.mxu0  ;;  %v15765_v41 = vpop.f32.mrf.mxu1  ;;  %v6572_v37 = vadd.f32 %v15552_v1, %v6571_v17  ;;  %v6960_v17 = vmax.f32 %v6500_v59, 0.0  ;;  %v18767_v40 = vld [vmem:[#allocation28_spill] sm:$0xff] }
 0x399   : > { %v9782_v45 = vld [vmem:[#allocation2 + $0x110] ss:$2 sm:$0xff]  ;;  %v9838_v11 = vld [vmem:[#allocation2 + $0x111] ss:$2 sm:$0xff]  ;;  %7267 = vst.msk [vmem:[#allocation2 + $0x128] sm:$0xff] %vm2271_vm3, %v7155_v58  ;;  %v1616_v16 = vadd.f32 %v15552_v1, %v1615_v44  ;;  %v4152_v20 = vadd.f32 %v15552_v1, %v15765_v41 }
 0x39a   : > { %v9894_v53 = vmax.f32 %v9782_v45, %v9838_v11  ;;  %v5105_v9 = vpack.c.bf16 %v5049_v46, %v5049_v46  ;;  %v6989_v30 = vmax.f32 %v6572_v37, 0.0  ;;  %v7156_v51 = vmax.f32 %v6960_v17, %v6988_v24  ;;  %v18762_v44 = vld [vmem:[#allocation13_spill] sm:$0xff]  ;;  %v13423_v45 = vld [vmem:[%s13867_s5 + $0x548] sm:$0xff] }
 0x39b   : > { %10674 = vmatmul.msk.bf16.gmra.mxu0 %vm1022_vm2, %v13310_v50  ;;  %11458 = vmatmul.msk.bf16.gmra.mxu1 %vm1022_vm2, %v13422_v6  ;;  %v2031_v27 = vmax.f32 %v1616_v16, 0.0  ;;  %v6961_v6 = vmax.f32 %v6502_v25, 0.0  ;;  %v18763_v11 = vld [vmem:[#allocation12_spill] sm:$0xff]  ;;  %v18764_v16 = vld [vmem:[#allocation10_spill] sm:$0xff]  ;;  %v1553_v25 = vadd.f32 %v15552_v1, %v18767_v40 }
 0x39c   : > { %v9950_v18 = vpack.c.bf16 %v9894_v53, %v9894_v53  ;;  %11532 = vst.msk [vmem:[%s14327_s20 + $0x128] sm:$0xf] %vm2722_vm4, %v5105_v9  ;;  %12298 = vmatmul.msk.bf16.gmra.mxu2 %vm1022_vm2, %v13534_v63  ;;  %13138 = vmatmul.msk.bf16.gmra.mxu3 %vm1022_vm2, %v13646_v48  ;;  %v4082_v63 = vadd.f32 %v15552_v1, %v18762_v44 }
 0x39d   : > { %v2199_v60 = vmax.f32 %v2003_v3, %v2031_v27  ;;  %v8993_v48 = vadd.f32 %v15552_v1, %v15731_v35  ;;  %v7157_v31 = vmax.f32 %v6961_v6, %v6989_v30  ;;  %v8923_v23 = vadd.f32 %v15552_v1, %v18763_v11  ;;  %v18766_v27 = vld [vmem:[#allocation11_spill] sm:$0xff] }
 0x39e   : > { %13211 = vst.msk [vmem:[%s14327_s20 + $0x2e4] sm:$0xf] %vm2722_vm4, %v9950_v18  ;;  %v2422_v2 = vld [vmem:[#allocation2 + $0x130] ss:$2 sm:$0xff]  ;;  %v2534_v28 = vld [vmem:[#allocation2 + $0x131] ss:$2 sm:$0xff]  ;;  %v4084_v53 = vadd.f32 %v15552_v1, %v18764_v16  ;;  %v8995_v35 = vadd.f32 %v15552_v1, %v15755_v52  ;;  %v1551_v33 = vadd.f32 %v15552_v1, %v18766_v27 }
 0x39f   : > { %v2626_v10 = vmax.f32 %v2422_v2, %v2534_v28  ;;  %4845 = vst.msk [vmem:[#allocation2 + $0x130] sm:$0xff] %vm2271_vm3, %v4733_v49  ;;  %v15789_v5 = vpop.f32.mrf.mxu2  ;;  %v15791_v29 = vpop.f32.mrf.mxu3  ;;  %v18765_v18 = vld [vmem:[#allocation9_spill] sm:$0xff]  ;;  %v4567_v49 = vmax.f32 %v4152_v20, 0.0  ;;  %v9411_v43 = vmax.f32 %v8993_v48, 0.0  ;;  %v9383_v39 = vmax.f32 %v8923_v23, 0.0 }
 0x3a0   : > { %v7360_v14 = vld [vmem:[#allocation2 + $0x120] ss:$2 sm:$0xff]  ;;  %v7416_v22 = vld [vmem:[#allocation2 + $0x121] ss:$2 sm:$0xff]  ;;  %4846 = vst.msk [vmem:[#allocation2 + $0x138] sm:$0xff] %vm2271_vm3, %v4734_v36  ;;  %v1617_v34 = vpop.f32.mrf.mxu0  ;;  %v4153_v55 = vpop.f32.mrf.mxu1  ;;  %v8925_v13 = vadd.f32 %v15552_v1, %v18765_v18  ;;  %v4539_v36 = vmax.f32 %v4082_v63, 0.0 }
 0x3a1   : > { %v7472_v26 = vmax.f32 %v7360_v14, %v7416_v22  ;;  %9689 = vst.msk [vmem:[#allocation2 + $0x120] sm:$0xff] %vm2271_vm3, %v9577_v12  ;;  %v2682_v8 = vpack.c.bf16 %v2626_v10, %v2626_v10  ;;  %v1618_v50 = vadd.f32 %v15552_v1, %v1617_v34  ;;  %v4154_v46 = vadd.f32 %v15552_v1, %v4153_v55 }
 0x3a2   : > { %9690 = vst.msk [vmem:[#allocation2 + $0x128] sm:$0xff] %vm2271_vm3, %v9578_v32  ;;  %v4540_v42 = vmax.f32 %v4084_v53, 0.0  ;;  %v9412_v10 = vmax.f32 %v8995_v35, 0.0  ;;  %v9384_v59 = vmax.f32 %v8925_v13, 0.0  ;;  %v2005_v14 = vmax.f32 %v1551_v33, 0.0  ;;  %v13312_v35 = vld [vmem:[%s13867_s5 + $0x1d0] sm:$0xff] }
 0x3a3   : > { %v7528_v15 = vpack.c.bf16 %v7472_v26, %v7472_v26  ;;  %2742 = vst.msk [vmem:[%s14327_s20 + $0x4c] sm:$0xf] %vm2722_vm4, %v2682_v8  ;;  %v2032_v58 = vmax.f32 %v1618_v50, 0.0  ;;  %v4568_v28 = vmax.f32 %v4154_v46, 0.0  ;;  %v4735_v22 = vmax.f32 %v4539_v36, %v4567_v49 }
 0x3a4   : > { %2312 = vst.msk [vmem:[#allocation2 + $0x140] sm:$0xff] %vm2271_vm3, %v2199_v60  ;;  %v6575_v32 = vadd.f32 %v15552_v1, %v15789_v5  ;;  %v9579_v26 = vmax.f32 %v9383_v39, %v9411_v43  ;;  %v9580_v17 = vmax.f32 %v9384_v59, %v9412_v10  ;;  %v13536_v43 = vld [vmem:[%s13867_s5 + $0x8d0] sm:$0xff] }
 0x3a5   : > { %12372 = vst.msk [vmem:[%s14327_s20 + $0x208] sm:$0xf] %vm2722_vm4, %v7528_v15  ;;  %v2200_v54 = vmax.f32 %v2004_v0, %v2032_v58  ;;  %v4736_v55 = vmax.f32 %v4540_v42, %v4568_v28  ;;  %v18768_v15 = vld [vmem:[#allocation7_spill] sm:$0xff]  ;;  %v13648_v42 = vld [vmem:[%s13867_s5 + $0xc50] sm:$0xff] }
 0x3a6   : > { %v6505_v30 = vadd.f32 %v15552_v1, %v18768_v15  ;;  %v6990_v48 = vmax.f32 %v6575_v32, 0.0 }
 0x3a7   : > { %v4938_v56 = vld [vmem:[#allocation2 + $0x130] ss:$2 sm:$0xff]  ;;  %v4994_v47 = vld [vmem:[#allocation2 + $0x131] ss:$2 sm:$0xff]  ;;  %2313 = vst.msk [vmem:[#allocation2 + $0x148] sm:$0xff] %vm2271_vm3, %v2200_v54  ;;  %v6576_v21 = vpop.f32.mrf.mxu2  ;;  %v15815_v41 = vpop.f32.mrf.mxu3 }
 0x3a8   : > { %v5050_v9 = vmax.f32 %v4938_v56, %v4994_v47  ;;  %7268 = vst.msk [vmem:[#allocation2 + $0x130] sm:$0xff] %vm2271_vm3, %v7156_v51  ;;  %v1620_v7 = vpop.f32.mrf.mxu0  ;;  %v15825_v4 = vpop.f32.mrf.mxu1  ;;  %v6577_v50 = vadd.f32 %v15552_v1, %v6576_v21  ;;  %v18769_v51 = vld [vmem:[#allocation14_spill] sm:$0xff]  ;;  %v2006_v56 = vmax.f32 %v1553_v25, 0.0 }
 0x3a9   : > { %v9783_v19 = vld [vmem:[#allocation2 + $0x120] ss:$2 sm:$0xff]  ;;  %v9839_v3 = vld [vmem:[#allocation2 + $0x121] ss:$2 sm:$0xff]  ;;  %7269 = vst.msk [vmem:[#allocation2 + $0x138] sm:$0xff] %vm2271_vm3, %v7157_v31  ;;  %v1621_v61 = vadd.f32 %v15552_v1, %v1620_v7  ;;  %v6507_v46 = vadd.f32 %v15552_v1, %v18769_v51  ;;  %v4157_v23 = vadd.f32 %v15552_v1, %v15825_v4  ;;  %v18770_v7 = vld [vmem:[#allocation21_spill] sm:$0xff] }
 0x3aa   : > { %v9895_v52 = vmax.f32 %v9783_v19, %v9839_v3  ;;  %v5106_v2 = vpack.c.bf16 %v5050_v9, %v5050_v9  ;;  %v6991_v31 = vmax.f32 %v6577_v50, 0.0  ;;  %v13424_v19 = vld [vmem:[%s13867_s5 + $0x550] sm:$0xff]  ;;  %v18771_v3 = vld [vmem:[#allocation16_spill] sm:$0xff] }
 0x3ab   : > { %10675 = vmatmul.msk.bf16.gmra.mxu0 %vm1022_vm2, %v13311_v57  ;;  %11459 = vmatmul.msk.bf16.gmra.mxu1 %vm1022_vm2, %v13423_v45  ;;  %v2033_v37 = vmax.f32 %v1621_v61, 0.0  ;;  %v6962_v45 = vmax.f32 %v6505_v30, 0.0  ;;  %v6963_v11 = vmax.f32 %v6507_v46, 0.0  ;;  %v8928_v49 = vadd.f32 %v15552_v1, %v18771_v3  ;;  %v18772_v61 = vld [vmem:[#allocation18_spill] sm:$0xff]  ;;  %v18775_v51 = vld [vmem:[#allocation36_spill] sm:$0xff] }
 0x3ac   : > { %v9951_v12 = vpack.c.bf16 %v9895_v52, %v9895_v52  ;;  %11533 = vst.msk [vmem:[%s14327_s20 + $0x12c] sm:$0xf] %vm2722_vm4, %v5106_v2  ;;  %12299 = vmatmul.msk.bf16.gmra.mxu2 %vm1022_vm2, %v13535_v62  ;;  %13139 = vmatmul.msk.bf16.gmra.mxu3 %vm1022_vm2, %v13647_v38  ;;  %v4087_v62 = vadd.f32 %v15552_v1, %v18770_v7 }
 0x3ad   : > { %v2201_v6 = vmax.f32 %v2005_v14, %v2033_v37  ;;  %v7158_v53 = vmax.f32 %v6962_v45, %v6990_v48  ;;  %v8998_v38 = vadd.f32 %v15552_v1, %v15791_v29  ;;  %v7159_v27 = vmax.f32 %v6963_v11, %v6991_v31  ;;  %v18774_v37 = vld [vmem:[#allocation19_spill] sm:$0xff] }
 0x3ae   : > { %13212 = vst.msk [vmem:[%s14327_s20 + $0x2e8] sm:$0xf] %vm2722_vm4, %v9951_v12  ;;  %v2424_v60 = vld [vmem:[#allocation2 + $0x140] ss:$2 sm:$0xff]  ;;  %v2536_v34 = vld [vmem:[#allocation2 + $0x141] ss:$2 sm:$0xff]  ;;  %v4089_v52 = vadd.f32 %v15552_v1, %v18772_v61  ;;  %v9000_v29 = vadd.f32 %v15552_v1, %v15815_v41  ;;  %v1556_v39 = vadd.f32 %v15552_v1, %v18774_v37  ;;  %v1558_v46 = vadd.f32 %v15552_v1, %v18775_v51 }
 0x3af   : > { %v2627_v8 = vmax.f32 %v2424_v60, %v2536_v34  ;;  %4847 = vst.msk [vmem:[#allocation2 + $0x140] sm:$0xff] %vm2271_vm3, %v4735_v22  ;;  %v15849_v24 = vpop.f32.mrf.mxu2  ;;  %v15851_v0 = vpop.f32.mrf.mxu3  ;;  %v18773_v12 = vld [vmem:[#allocation17_spill] sm:$0xff]  ;;  %v4569_v22 = vmax.f32 %v4157_v23, 0.0  ;;  %v9413_v40 = vmax.f32 %v8998_v38, 0.0  ;;  %v9385_v15 = vmax.f32 %v8928_v49, 0.0 }
 0x3b0   : > { %v7361_v5 = vld [vmem:[#allocation2 + $0x130] ss:$2 sm:$0xff]  ;;  %v7417_v58 = vld [vmem:[#allocation2 + $0x131] ss:$2 sm:$0xff]  ;;  %4848 = vst.msk [vmem:[#allocation2 + $0x148] sm:$0xff] %vm2271_vm3, %v4736_v55  ;;  %v1622_v20 = vpop.f32.mrf.mxu0  ;;  %v4158_v54 = vpop.f32.mrf.mxu1  ;;  %v8930_v10 = vadd.f32 %v15552_v1, %v18773_v12  ;;  %v4541_v55 = vmax.f32 %v4087_v62, 0.0 }
 0x3b1   : > { %v7473_v57 = vmax.f32 %v7361_v5, %v7417_v58  ;;  %9691 = vst.msk [vmem:[#allocation2 + $0x130] sm:$0xff] %vm2271_vm3, %v9579_v26  ;;  %v2683_v44 = vpack.c.bf16 %v2627_v8, %v2627_v8  ;;  %v1623_v63 = vadd.f32 %v15552_v1, %v1622_v20  ;;  %v4159_v9 = vadd.f32 %v15552_v1, %v4158_v54 }
 0x3b2   : > { %9692 = vst.msk [vmem:[#allocation2 + $0x138] sm:$0xff] %vm2271_vm3, %v9580_v17  ;;  %v4542_v25 = vmax.f32 %v4089_v52, 0.0  ;;  %v9414_v8 = vmax.f32 %v9000_v29, 0.0  ;;  %v9386_v30 = vmax.f32 %v8930_v10, 0.0  ;;  %v2007_v5 = vmax.f32 %v1556_v39, 0.0  ;;  %v13313_v29 = vld [vmem:[%s13867_s5 + $0x1d8] sm:$0xff] }
 0x3b3   : > { %v7529_v47 = vpack.c.bf16 %v7473_v57, %v7473_v57  ;;  %2743 = vst.msk [vmem:[%s14327_s20 + $0x50] sm:$0xf] %vm2722_vm4, %v2683_v44  ;;  %v2034_v21 = vmax.f32 %v1623_v63, 0.0  ;;  %v4570_v34 = vmax.f32 %v4159_v9, 0.0  ;;  %v4737_v58 = vmax.f32 %v4541_v55, %v4569_v22  ;;  %v18777_v9 = vld [vmem:[#allocation22_spill] sm:$0xff] }
 0x3b4   : > { %2314 = vst.msk [vmem:[#allocation2 + $0x150] sm:$0xff] %vm2271_vm3, %v2201_v6  ;;  %v6580_v17 = vadd.f32 %v15552_v1, %v15849_v24  ;;  %v9581_v57 = vmax.f32 %v9385_v15, %v9413_v40  ;;  %v9582_v45 = vmax.f32 %v9386_v30, %v9414_v8  ;;  %v13537_v40 = vld [vmem:[%s13867_s5 + $0x8d8] sm:$0xff] }
 0x3b5   : > { %12373 = vst.msk [vmem:[%s14327_s20 + $0x20c] sm:$0xf] %vm2722_vm4, %v7529_v47  ;;  %v2202_v16 = vmax.f32 %v2006_v56, %v2034_v21  ;;  %v4738_v54 = vmax.f32 %v4542_v25, %v4570_v34  ;;  %v18776_v47 = vld [vmem:[#allocation15_spill] sm:$0xff]  ;;  %v13649_v25 = vld [vmem:[%s13867_s5 + $0xc58] sm:$0xff] }
 0x3b6   : > { %v6510_v31 = vadd.f32 %v15552_v1, %v18776_v47  ;;  %v6992_v38 = vmax.f32 %v6580_v17, 0.0 }
 0x3b7   : > { %v4939_v18 = vld [vmem:[#allocation2 + $0x140] ss:$2 sm:$0xff]  ;;  %v4995_v13 = vld [vmem:[#allocation2 + $0x141] ss:$2 sm:$0xff]  ;;  %2315 = vst.msk [vmem:[#allocation2 + $0x158] sm:$0xff] %vm2271_vm3, %v2202_v16  ;;  %v6581_v33 = vpop.f32.mrf.mxu2  ;;  %v15875_v4 = vpop.f32.mrf.mxu3 }
 0x3b8   : > { %v5051_v2 = vmax.f32 %v4939_v18, %v4995_v13  ;;  %7270 = vst.msk [vmem:[#allocation2 + $0x140] sm:$0xff] %vm2271_vm3, %v7158_v53  ;;  %v1625_v28 = vpop.f32.mrf.mxu0  ;;  %v15885_v36 = vpop.f32.mrf.mxu1  ;;  %v6582_v63 = vadd.f32 %v15552_v1, %v6581_v33  ;;  %v15919_v53 = vld [vmem:[%s18546_s2] ss:$0 sm:$0xff]  ;;  %v2008_v18 = vmax.f32 %v1558_v46, 0.0 }
 0x3b9   : > { %v9784_v59 = vld [vmem:[#allocation2 + $0x130] ss:$2 sm:$0xff]  ;;  %v9840_v14 = vld [vmem:[#allocation2 + $0x131] ss:$2 sm:$0xff]  ;;  %7271 = vst.msk [vmem:[#allocation2 + $0x148] sm:$0xff] %vm2271_vm3, %v7159_v27  ;;  %v1626_v32 = vadd.f32 %v15552_v1, %v1625_v28  ;;  %v4162_v49 = vadd.f32 %v15919_v53, %v15885_v36 }
 0x3ba   : > { %v9896_v41 = vmax.f32 %v9784_v59, %v9840_v14  ;;  %v5107_v60 = vpack.c.bf16 %v5051_v2, %v5051_v2  ;;  %v6993_v27 = vmax.f32 %v6582_v63, 0.0  ;;  %v18778_v28 = vld [vmem:[#allocation29_spill] sm:$0xff]  ;;  %v13425_v59 = vld [vmem:[%s13867_s5 + $0x558] sm:$0xff]  ;;  %v18779_v14 = vld [vmem:[#allocation24_spill] sm:$0xff] }
 0x3bb   : > { %10676 = vmatmul.msk.bf16.gmra.mxu0 %vm1022_vm2, %v13312_v35  ;;  %11460 = vmatmul.msk.bf16.gmra.mxu1 %vm1022_vm2, %v13424_v19  ;;  %v2035_v50 = vmax.f32 %v1626_v32, 0.0  ;;  %v6512_v35 = vadd.f32 %v15919_v53, %v18777_v9  ;;  %v6964_v19 = vmax.f32 %v6510_v31, 0.0  ;;  %v8933_v22 = vadd.f32 %v15919_v53, %v18779_v14  ;;  %v18780_v32 = vld [vmem:[#allocation26_spill] sm:$0xff]  ;;  %v18783_v9 = vld [vmem:[#allocation44_spill] sm:$0xff] }
 0x3bc   : > { %v9952_v26 = vpack.c.bf16 %v9896_v41, %v9896_v41  ;;  %11534 = vst.msk [vmem:[%s14327_s20 + $0x130] sm:$0xf] %vm2722_vm4, %v5107_v60  ;;  %12300 = vmatmul.msk.bf16.gmra.mxu2 %vm1022_vm2, %v13536_v43  ;;  %13140 = vmatmul.msk.bf16.gmra.mxu3 %vm1022_vm2, %v13648_v42  ;;  %v4092_v43 = vadd.f32 %v15919_v53, %v18778_v28 }
 0x3bd   : > { %v2203_v11 = vmax.f32 %v2007_v5, %v2035_v50  ;;  %v6965_v3 = vmax.f32 %v6512_v35, 0.0  ;;  %v7160_v52 = vmax.f32 %v6964_v19, %v6992_v38  ;;  %v9003_v42 = vadd.f32 %v15919_v53, %v15851_v0  ;;  %v18782_v50 = vld [vmem:[#allocation27_spill] sm:$0xff] }
 0x3be   : > { %13213 = vst.msk [vmem:[%s14327_s20 + $0x2ec] sm:$0xf] %vm2722_vm4, %v9952_v26  ;;  %v2426_v6 = vld [vmem:[#allocation2 + $0x150] ss:$2 sm:$0xff]  ;;  %v2538_v20 = vld [vmem:[#allocation2 + $0x151] ss:$2 sm:$0xff]  ;;  %v4094_v41 = vadd.f32 %v15919_v53, %v18780_v32  ;;  %v9005_v0 = vadd.f32 %v15919_v53, %v15875_v4  ;;  %v1561_v15 = vadd.f32 %v15919_v53, %v18782_v50  ;;  %v1563_v35 = vadd.f32 %v15919_v53, %v18783_v9 }
 0x3bf   : > { %v2628_v44 = vmax.f32 %v2426_v6, %v2538_v20  ;;  %4849 = vst.msk [vmem:[#allocation2 + $0x150] sm:$0xff] %vm2271_vm3, %v4737_v58  ;;  %v15909_v48 = vpop.f32.mrf.mxu2  ;;  %v15911_v56 = vpop.f32.mrf.mxu3  ;;  %v7161_v37 = vmax.f32 %v6965_v3, %v6993_v27  ;;  %v18781_v26 = vld [vmem:[#allocation25_spill] sm:$0xff]  ;;  %v4571_v58 = vmax.f32 %v4162_v49, 0.0  ;;  %v9415_v51 = vmax.f32 %v9003_v42, 0.0 }
 0x3c0   : > { %v7362_v24 = vld [vmem:[#allocation2 + $0x140] ss:$2 sm:$0xff]  ;;  %v7418_v21 = vld [vmem:[#allocation2 + $0x141] ss:$2 sm:$0xff]  ;;  %4850 = vst.msk [vmem:[#allocation2 + $0x158] sm:$0xff] %vm2271_vm3, %v4738_v54  ;;  %v1627_v23 = vpop.f32.mrf.mxu0  ;;  %v4163_v16 = vpop.f32.mrf.mxu1  ;;  %v8935_v8 = vadd.f32 %v15919_v53, %v18781_v26  ;;  %v4543_v54 = vmax.f32 %v4092_v43, 0.0 }
 0x3c1   : > { %v7474_v7 = vmax.f32 %v7362_v24, %v7418_v21  ;;  %9693 = vst.msk [vmem:[#allocation2 + $0x140] sm:$0xff] %vm2271_vm3, %v9581_v57  ;;  %v2684_v1 = vpack.c.bf16 %v2628_v44, %v2628_v44  ;;  %v1628_v62 = vadd.f32 %v15919_v53, %v1627_v23  ;;  %v4164_v2 = vadd.f32 %v15919_v53, %v4163_v16 }
 0x3c2   : > { %9694 = vst.msk [vmem:[#allocation2 + $0x148] sm:$0xff] %vm2271_vm3, %v9582_v45  ;;  %v4544_v46 = vmax.f32 %v4094_v41, 0.0  ;;  %v9416_v44 = vmax.f32 %v9005_v0, 0.0  ;;  %v9387_v47 = vmax.f32 %v8933_v22, 0.0  ;;  %v9388_v31 = vmax.f32 %v8935_v8, 0.0  ;;  %v13314_v0 = vld [vmem:[%s13867_s5 + $0x1e0] sm:$0xff] }
 0x3c3   : > { %v7530_v13 = vpack.c.bf16 %v7474_v7, %v7474_v7  ;;  %2744 = vst.msk [vmem:[%s14327_s20 + $0x54] sm:$0xf] %vm2722_vm4, %v2684_v1  ;;  %v2036_v33 = vmax.f32 %v1628_v62, 0.0  ;;  %v4572_v20 = vmax.f32 %v4164_v2, 0.0  ;;  %v2009_v24 = vmax.f32 %v1561_v15, 0.0 }
 0x3c4   : > { %2316 = vst.msk [vmem:[#allocation2 + $0x160] sm:$0xff] %vm2271_vm3, %v2203_v11  ;;  %v4739_v21 = vmax.f32 %v4543_v54, %v4571_v58  ;;  %v6585_v45 = vadd.f32 %v15919_v53, %v15909_v48  ;;  %v9583_v7 = vmax.f32 %v9387_v47, %v9415_v51  ;;  %v9584_v19 = vmax.f32 %v9388_v31, %v9416_v44  ;;  %v13538_v51 = vld [vmem:[%s13867_s5 + $0x8e0] sm:$0xff] }
 0x3c5   : > { %12374 = vst.msk [vmem:[%s14327_s20 + $0x210] sm:$0xf] %vm2722_vm4, %v7530_v13  ;;  %v2204_v61 = vmax.f32 %v2008_v18, %v2036_v33  ;;  %v4740_v16 = vmax.f32 %v4544_v46, %v4572_v20  ;;  %v18784_v13 = vld [vmem:[#allocation23_spill] sm:$0xff] }
 0x3c6   : > { %v6515_v27 = vadd.f32 %v15919_v53, %v18784_v13  ;;  %v6994_v42 = vmax.f32 %v6585_v45, 0.0  ;;  %v13650_v46 = vld [vmem:[%s13867_s5 + $0xc60] sm:$0xff] }
 0x3c7   : > { %v4940_v12 = vld [vmem:[#allocation2 + $0x150] ss:$2 sm:$0xff]  ;;  %v4996_v10 = vld [vmem:[#allocation2 + $0x151] ss:$2 sm:$0xff]  ;;  %2317 = vst.msk [vmem:[#allocation2 + $0x168] sm:$0xff] %vm2271_vm3, %v2204_v61  ;;  %v6586_v39 = vpop.f32.mrf.mxu2  ;;  %v15940_v36 = vpop.f32.mrf.mxu3 }
 0x3c8   : > { %v5052_v60 = vmax.f32 %v4940_v12, %v4996_v10  ;;  %7272 = vst.msk [vmem:[#allocation2 + $0x150] sm:$0xff] %vm2271_vm3, %v7160_v52  ;;  %v1630_v34 = vpop.f32.mrf.mxu0  ;;  %v15950_v55 = vpop.f32.mrf.mxu1  ;;  %v6587_v62 = vadd.f32 %v15919_v53, %v6586_v39  ;;  %v18785_v52 = vld [vmem:[#allocation30_spill] sm:$0xff]  ;;  %v2010_v12 = vmax.f32 %v1563_v35, 0.0 }
 0x3c9   : > { %v9785_v30 = vld [vmem:[#allocation2 + $0x140] ss:$2 sm:$0xff]  ;;  %v9841_v5 = vld [vmem:[#allocation2 + $0x141] ss:$2 sm:$0xff]  ;;  %7273 = vst.msk [vmem:[#allocation2 + $0x158] sm:$0xff] %vm2271_vm3, %v7161_v37  ;;  %v1631_v17 = vadd.f32 %v15919_v53, %v1630_v34  ;;  %v6517_v2 = vadd.f32 %v15919_v53, %v18785_v52  ;;  %v4167_v22 = vadd.f32 %v15919_v53, %v15950_v55  ;;  %v18786_v34 = vld [vmem:[#allocation37_spill] sm:$0xff] }
 0x3ca   : > { %v9897_v4 = vmax.f32 %v9785_v30, %v9841_v5  ;;  %v5108_v6 = vpack.c.bf16 %v5052_v60, %v5052_v60  ;;  %v6995_v37 = vmax.f32 %v6587_v62, 0.0  ;;  %v13426_v30 = vld [vmem:[%s13867_s5 + $0x560] sm:$0xff]  ;;  %v18787_v5 = vld [vmem:[#allocation32_spill] sm:$0xff] }
 0x3cb   : > { %10677 = vmatmul.msk.bf16.gmra.mxu0 %vm1022_vm2, %v13313_v29  ;;  %11461 = vmatmul.msk.bf16.gmra.mxu1 %vm1022_vm2, %v13425_v59  ;;  %v2037_v63 = vmax.f32 %v1631_v17, 0.0  ;;  %v6966_v59 = vmax.f32 %v6515_v27, 0.0  ;;  %v6967_v14 = vmax.f32 %v6517_v2, 0.0  ;;  %v8938_v58 = vadd.f32 %v15919_v53, %v18787_v5  ;;  %v18788_v17 = vld [vmem:[#allocation34_spill] sm:$0xff]  ;;  %v18791_v52 = vld [vmem:[#allocation52_spill] sm:$0xff] }
 0x3cc   : > { %v9953_v57 = vpack.c.bf16 %v9897_v4, %v9897_v4  ;;  %11535 = vst.msk [vmem:[%s14327_s20 + $0x134] sm:$0xf] %vm2722_vm4, %v5108_v6  ;;  %12301 = vmatmul.msk.bf16.gmra.mxu2 %vm1022_vm2, %v13537_v40  ;;  %13141 = vmatmul.msk.bf16.gmra.mxu3 %vm1022_vm2, %v13649_v25  ;;  %v4097_v40 = vadd.f32 %v15919_v53, %v18786_v34 }
 0x3cd   : > { %v2205_v3 = vmax.f32 %v2009_v24, %v2037_v63  ;;  %v7162_v41 = vmax.f32 %v6966_v59, %v6994_v42  ;;  %v9008_v25 = vadd.f32 %v15919_v53, %v15911_v56  ;;  %v7163_v50 = vmax.f32 %v6967_v14, %v6995_v37  ;;  %v18790_v63 = vld [vmem:[#allocation35_spill] sm:$0xff] }
 0x3ce   : > { %13214 = vst.msk [vmem:[%s14327_s20 + $0x2f0] sm:$0xf] %vm2722_vm4, %v9953_v57  ;;  %v2428_v11 = vld [vmem:[#allocation2 + $0x160] ss:$2 sm:$0xff]  ;;  %v2540_v23 = vld [vmem:[#allocation2 + $0x161] ss:$2 sm:$0xff]  ;;  %v4099_v4 = vadd.f32 %v15919_v53, %v18788_v17  ;;  %v9010_v56 = vadd.f32 %v15919_v53, %v15940_v36  ;;  %v1566_v47 = vadd.f32 %v15919_v53, %v18790_v63  ;;  %v1568_v2 = vadd.f32 %v15919_v53, %v18791_v52 }
 0x3cf   : > { %v2629_v1 = vmax.f32 %v2428_v11, %v2540_v23  ;;  %4851 = vst.msk [vmem:[#allocation2 + $0x160] sm:$0xff] %vm2271_vm3, %v4739_v21  ;;  %v15974_v38 = vpop.f32.mrf.mxu2  ;;  %v15976_v18 = vpop.f32.mrf.mxu3  ;;  %v18789_v57 = vld [vmem:[#allocation33_spill] sm:$0xff]  ;;  %v4573_v21 = vmax.f32 %v4167_v22, 0.0  ;;  %v9417_v9 = vmax.f32 %v9008_v25, 0.0  ;;  %v9389_v13 = vmax.f32 %v8938_v58, 0.0 }
 0x3d0   : > { %v7363_v48 = vld [vmem:[#allocation2 + $0x150] ss:$2 sm:$0xff]  ;;  %v7419_v33 = vld [vmem:[#allocation2 + $0x151] ss:$2 sm:$0xff]  ;;  %4852 = vst.msk [vmem:[#allocation2 + $0x168] sm:$0xff] %vm2271_vm3, %v4740_v16  ;;  %v1632_v49 = vpop.f32.mrf.mxu0  ;;  %v4168_v61 = vpop.f32.mrf.mxu1  ;;  %v8940_v44 = vadd.f32 %v15919_v53, %v18789_v57  ;;  %v4545_v16 = vmax.f32 %v4097_v40, 0.0 }
 0x3d1   : > { %v7475_v29 = vmax.f32 %v7363_v48, %v7419_v33  ;;  %9695 = vst.msk [vmem:[#allocation2 + $0x150] sm:$0xff] %vm2271_vm3, %v9583_v7  ;;  %v2685_v28 = vpack.c.bf16 %v2629_v1, %v2629_v1  ;;  %v1633_v43 = vadd.f32 %v15919_v53, %v1632_v49  ;;  %v4169_v60 = vadd.f32 %v15919_v53, %v4168_v61 }
 0x3d2   : > { %9696 = vst.msk [vmem:[#allocation2 + $0x158] sm:$0xff] %vm2271_vm3, %v9584_v19  ;;  %v4546_v35 = vmax.f32 %v4099_v4, 0.0  ;;  %v9418_v1 = vmax.f32 %v9010_v56, 0.0  ;;  %v9390_v27 = vmax.f32 %v8940_v44, 0.0  ;;  %v2011_v48 = vmax.f32 %v1566_v47, 0.0  ;;  %v13315_v56 = vld [vmem:[%s13867_s5 + $0x1e8] sm:$0xff] }
 0x3d3   : > { %v7531_v10 = vpack.c.bf16 %v7475_v29, %v7475_v29  ;;  %2745 = vst.msk [vmem:[%s14327_s20 + $0x58] sm:$0xf] %vm2722_vm4, %v2685_v28  ;;  %v2038_v39 = vmax.f32 %v1633_v43, 0.0  ;;  %v4574_v23 = vmax.f32 %v4169_v60, 0.0  ;;  %v4741_v33 = vmax.f32 %v4545_v16, %v4573_v21 }
 0x3d4   : > { %2318 = vst.msk [vmem:[#allocation2 + $0x170] sm:$0xff] %vm2271_vm3, %v2205_v3  ;;  %v6590_v19 = vadd.f32 %v15919_v53, %v15974_v38  ;;  %v9585_v29 = vmax.f32 %v9389_v13, %v9417_v9  ;;  %v9586_v59 = vmax.f32 %v9390_v27, %v9418_v1  ;;  %v13539_v9 = vld [vmem:[%s13867_s5 + $0x8e8] sm:$0xff] }
 0x3d5   : > { %12375 = vst.msk [vmem:[%s14327_s20 + $0x214] sm:$0xf] %vm2722_vm4, %v7531_v10  ;;  %v2206_v32 = vmax.f32 %v2010_v12, %v2038_v39  ;;  %v4742_v61 = vmax.f32 %v4546_v35, %v4574_v23  ;;  %v18792_v10 = vld [vmem:[#allocation31_spill] sm:$0xff]  ;;  %v13651_v35 = vld [vmem:[%s13867_s5 + $0xc68] sm:$0xff] }
 0x3d6   : > { %v6520_v37 = vadd.f32 %v15919_v53, %v18792_v10  ;;  %v6996_v25 = vmax.f32 %v6590_v19, 0.0 }
 0x3d7   : > { %v4941_v26 = vld [vmem:[#allocation2 + $0x160] ss:$2 sm:$0xff]  ;;  %v4997_v8 = vld [vmem:[#allocation2 + $0x161] ss:$2 sm:$0xff]  ;;  %2319 = vst.msk [vmem:[#allocation2 + $0x178] sm:$0xff] %vm2271_vm3, %v2206_v32  ;;  %v6591_v15 = vpop.f32.mrf.mxu2  ;;  %v16000_v55 = vpop.f32.mrf.mxu3 }
 0x3d8   : > { %v5053_v6 = vmax.f32 %v4941_v26, %v4997_v8  ;;  %7274 = vst.msk [vmem:[#allocation2 + $0x160] sm:$0xff] %vm2271_vm3, %v7162_v41  ;;  %v1635_v20 = vpop.f32.mrf.mxu0  ;;  %v16010_v54 = vpop.f32.mrf.mxu1  ;;  %v6592_v43 = vadd.f32 %v15919_v53, %v6591_v15  ;;  %v18793_v41 = vld [vmem:[#allocation38_spill] sm:$0xff]  ;;  %v2012_v26 = vmax.f32 %v1568_v2, 0.0 }
 0x3d9   : > { %v9786_v31 = vld [vmem:[#allocation2 + $0x150] ss:$2 sm:$0xff]  ;;  %v9842_v24 = vld [vmem:[#allocation2 + $0x151] ss:$2 sm:$0xff]  ;;  %7275 = vst.msk [vmem:[#allocation2 + $0x168] sm:$0xff] %vm2271_vm3, %v7163_v50  ;;  %v1636_v45 = vadd.f32 %v15919_v53, %v1635_v20  ;;  %v6522_v60 = vadd.f32 %v15919_v53, %v18793_v41  ;;  %v4172_v58 = vadd.f32 %v15919_v53, %v16010_v54  ;;  %v18799_v41 = vld [vmem:[#allocation60_spill] sm:$0xff] }
 0x3da   : > { %v9898_v36 = vmax.f32 %v9786_v31, %v9842_v24  ;;  %v5109_v11 = vpack.c.bf16 %v5053_v6, %v5053_v6  ;;  %v6997_v50 = vmax.f32 %v6592_v43, 0.0  ;;  %v18794_v20 = vld [vmem:[#allocation45_spill] sm:$0xff]  ;;  %v13427_v31 = vld [vmem:[%s13867_s5 + $0x568] sm:$0xff] }
 0x3db   : > { %10678 = vmatmul.msk.bf16.gmra.mxu0 %vm1022_vm2, %v13314_v0  ;;  %11462 = vmatmul.msk.bf16.gmra.mxu1 %vm1022_vm2, %v13426_v30  ;;  %v2039_v62 = vmax.f32 %v1636_v45, 0.0  ;;  %v6968_v30 = vmax.f32 %v6520_v37, 0.0  ;;  %v6969_v5 = vmax.f32 %v6522_v60, 0.0  ;;  %v18795_v24 = vld [vmem:[#allocation40_spill] sm:$0xff]  ;;  %v18796_v45 = vld [vmem:[#allocation42_spill] sm:$0xff]  ;;  %v1573_v60 = vadd.f32 %v15919_v53, %v18799_v41 }
 0x3dc   : > { %v9954_v7 = vpack.c.bf16 %v9898_v36, %v9898_v36  ;;  %11536 = vst.msk [vmem:[%s14327_s20 + $0x138] sm:$0xf] %vm2722_vm4, %v5109_v11  ;;  %12302 = vmatmul.msk.bf16.gmra.mxu2 %vm1022_vm2, %v13538_v51  ;;  %13142 = vmatmul.msk.bf16.gmra.mxu3 %vm1022_vm2, %v13650_v46  ;;  %v4102_v51 = vadd.f32 %v15919_v53, %v18794_v20 }
 0x3dd   : > { %v2207_v14 = vmax.f32 %v2011_v48, %v2039_v62  ;;  %v7164_v4 = vmax.f32 %v6968_v30, %v6996_v25  ;;  %v9013_v46 = vadd.f32 %v15919_v53, %v15976_v18  ;;  %v7165_v63 = vmax.f32 %v6969_v5, %v6997_v50  ;;  %v18798_v62 = vld [vmem:[#allocation43_spill] sm:$0xff] }
 0x3de   : > { %13215 = vst.msk [vmem:[%s14327_s20 + $0x2f4] sm:$0xf] %vm2722_vm4, %v9954_v7  ;;  %v2430_v3 = vld [vmem:[#allocation2 + $0x170] ss:$2 sm:$0xff]  ;;  %v2542_v49 = vld [vmem:[#allocation2 + $0x171] ss:$2 sm:$0xff]  ;;  %v8943_v21 = vadd.f32 %v15919_v53, %v18795_v24  ;;  %v4104_v36 = vadd.f32 %v15919_v53, %v18796_v45  ;;  %v9015_v18 = vadd.f32 %v15919_v53, %v16000_v55  ;;  %v1571_v13 = vadd.f32 %v15919_v53, %v18798_v62 }
 0x3df   : > { %v2630_v28 = vmax.f32 %v2430_v3, %v2542_v49  ;;  %4853 = vst.msk [vmem:[#allocation2 + $0x170] sm:$0xff] %vm2271_vm3, %v4741_v33  ;;  %v16034_v42 = vpop.f32.mrf.mxu2  ;;  %v16036_v12 = vpop.f32.mrf.mxu3  ;;  %v18797_v7 = vld [vmem:[#allocation41_spill] sm:$0xff]  ;;  %v4575_v33 = vmax.f32 %v4172_v58, 0.0  ;;  %v9419_v52 = vmax.f32 %v9013_v46, 0.0 }
 0x3e0   : > { %v7364_v38 = vld [vmem:[#allocation2 + $0x160] ss:$2 sm:$0xff]  ;;  %v7420_v39 = vld [vmem:[#allocation2 + $0x161] ss:$2 sm:$0xff]  ;;  %4854 = vst.msk [vmem:[#allocation2 + $0x178] sm:$0xff] %vm2271_vm3, %v4742_v61  ;;  %v1637_v22 = vpop.f32.mrf.mxu0  ;;  %v4173_v32 = vpop.f32.mrf.mxu1  ;;  %v8945_v1 = vadd.f32 %v15919_v53, %v18797_v7  ;;  %v4547_v61 = vmax.f32 %v4102_v51, 0.0 }
 0x3e1   : > { %v7476_v0 = vmax.f32 %v7364_v38, %v7420_v39  ;;  %9697 = vst.msk [vmem:[#allocation2 + $0x160] sm:$0xff] %vm2271_vm3, %v9585_v29  ;;  %v2686_v34 = vpack.c.bf16 %v2630_v28, %v2630_v28  ;;  %v1638_v40 = vadd.f32 %v15919_v53, %v1637_v22  ;;  %v4174_v6 = vadd.f32 %v15919_v53, %v4173_v32 }
 0x3e2   : > { %9698 = vst.msk [vmem:[#allocation2 + $0x168] sm:$0xff] %vm2271_vm3, %v9586_v59  ;;  %v4548_v2 = vmax.f32 %v4104_v36, 0.0  ;;  %v9420_v28 = vmax.f32 %v9015_v18, 0.0  ;;  %v9391_v10 = vmax.f32 %v8943_v21, 0.0  ;;  %v9392_v37 = vmax.f32 %v8945_v1, 0.0  ;;  %v13316_v18 = vld [vmem:[%s13867_s5 + $0x1f0] sm:$0xff] }
 0x3e3   : > { %v7532_v8 = vpack.c.bf16 %v7476_v0, %v7476_v0  ;;  %2746 = vst.msk [vmem:[%s14327_s20 + $0x5c] sm:$0xf] %vm2722_vm4, %v2686_v34  ;;  %v2040_v15 = vmax.f32 %v1638_v40, 0.0  ;;  %v4576_v49 = vmax.f32 %v4174_v6, 0.0  ;;  %v2013_v38 = vmax.f32 %v1571_v13, 0.0 }
 0x3e4   : > { %2320 = vst.msk [vmem:[#allocation2 + $0x180] sm:$0xff] %vm2271_vm3, %v2207_v14  ;;  %v4743_v39 = vmax.f32 %v4547_v61, %v4575_v33  ;;  %v6595_v59 = vadd.f32 %v15919_v53, %v16034_v42  ;;  %v9587_v0 = vmax.f32 %v9391_v10, %v9419_v52  ;;  %v9588_v30 = vmax.f32 %v9392_v37, %v9420_v28  ;;  %v13540_v52 = vld [vmem:[%s13867_s5 + $0x8f0] sm:$0xff] }
 0x3e5   : > { %12376 = vst.msk [vmem:[%s14327_s20 + $0x218] sm:$0xf] %vm2722_vm4, %v7532_v8  ;;  %v2208_v17 = vmax.f32 %v2012_v26, %v2040_v15  ;;  %v4744_v32 = vmax.f32 %v4548_v2, %v4576_v49  ;;  %v18800_v8 = vld [vmem:[#allocation39_spill] sm:$0xff]  ;;  %v13652_v2 = vld [vmem:[%s13867_s5 + $0xc70] sm:$0xff] }
 0x3e6   : > { %v6525_v50 = vadd.f32 %v15919_v53, %v18800_v8  ;;  %v6998_v46 = vmax.f32 %v6595_v59, 0.0 }
 0x3e7   : > { %v4942_v57 = vld [vmem:[#allocation2 + $0x170] ss:$2 sm:$0xff]  ;;  %v4998_v44 = vld [vmem:[#allocation2 + $0x171] ss:$2 sm:$0xff]  ;;  %2321 = vst.msk [vmem:[#allocation2 + $0x188] sm:$0xff] %vm2271_vm3, %v2208_v17  ;;  %v6596_v47 = vpop.f32.mrf.mxu2  ;;  %v16060_v54 = vpop.f32.mrf.mxu3 }
 0x3e8   : > { %v5054_v11 = vmax.f32 %v4942_v57, %v4998_v44  ;;  %7276 = vst.msk [vmem:[#allocation2 + $0x170] sm:$0xff] %vm2271_vm3, %v7164_v4  ;;  %v1640_v23 = vpop.f32.mrf.mxu0  ;;  %v16070_v16 = vpop.f32.mrf.mxu1  ;;  %v6597_v40 = vadd.f32 %v15919_v53, %v6596_v47  ;;  %v18801_v4 = vld [vmem:[#allocation46_spill] sm:$0xff]  ;;  %v2014_v57 = vmax.f32 %v1573_v60, 0.0 }
 0x3e9   : > { %v9787_v27 = vld [vmem:[#allocation2 + $0x160] ss:$2 sm:$0xff]  ;;  %v9843_v48 = vld [vmem:[#allocation2 + $0x161] ss:$2 sm:$0xff]  ;;  %7277 = vst.msk [vmem:[#allocation2 + $0x178] sm:$0xff] %vm2271_vm3, %v7165_v63  ;;  %v1641_v19 = vadd.f32 %v15919_v53, %v1640_v23  ;;  %v6527_v6 = vadd.f32 %v15919_v53, %v18801_v4  ;;  %v4177_v21 = vadd.f32 %v15919_v53, %v16070_v16  ;;  %v18802_v23 = vld [vmem:[#allocation53_spill] sm:$0xff] }
 0x3ea   : > { %v9899_v55 = vmax.f32 %v9787_v27, %v9843_v48  ;;  %v5110_v3 = vpack.c.bf16 %v5054_v11, %v5054_v11  ;;  %v6999_v63 = vmax.f32 %v6597_v40, 0.0  ;;  %v13428_v27 = vld [vmem:[%s13867_s5 + $0x570] sm:$0xff]  ;;  %v18803_v48 = vld [vmem:[#allocation48_spill] sm:$0xff] }
 0x3eb   : > { %10679 = vmatmul.msk.bf16.gmra.mxu0 %vm1022_vm2, %v13315_v56  ;;  %11463 = vmatmul.msk.bf16.gmra.mxu1 %vm1022_vm2, %v13427_v31  ;;  %v2041_v43 = vmax.f32 %v1641_v19, 0.0  ;;  %v6970_v31 = vmax.f32 %v6525_v50, 0.0  ;;  %v6971_v24 = vmax.f32 %v6527_v6, 0.0  ;;  %v8948_v33 = vadd.f32 %v15919_v53, %v18803_v48  ;;  %v18804_v19 = vld [vmem:[#allocation50_spill] sm:$0xff]  ;;  %v18807_v4 = vld [vmem:[#allocation68_spill] sm:$0xff] }
 0x3ec   : > { %v9955_v29 = vpack.c.bf16 %v9899_v55, %v9899_v55  ;;  %11537 = vst.msk [vmem:[%s14327_s20 + $0x13c] sm:$0xf] %vm2722_vm4, %v5110_v3  ;;  %12303 = vmatmul.msk.bf16.gmra.mxu2 %vm1022_vm2, %v13539_v9  ;;  %13143 = vmatmul.msk.bf16.gmra.mxu3 %vm1022_vm2, %v13651_v35  ;;  %v4107_v9 = vadd.f32 %v15919_v53, %v18802_v23 }
 0x3ed   : > { %v2209_v5 = vmax.f32 %v2013_v38, %v2041_v43  ;;  %v7166_v36 = vmax.f32 %v6970_v31, %v6998_v46  ;;  %v9018_v35 = vadd.f32 %v15919_v53, %v16036_v12  ;;  %v7167_v62 = vmax.f32 %v6971_v24, %v6999_v63  ;;  %v18806_v43 = vld [vmem:[#allocation51_spill] sm:$0xff] }
 0x3ee   : > { %13216 = vst.msk [vmem:[%s14327_s20 + $0x2f8] sm:$0xf] %vm2722_vm4, %v9955_v29  ;;  %v2432_v14 = vld [vmem:[#allocation2 + $0x180] ss:$2 sm:$0xff]  ;;  %v2544_v22 = vld [vmem:[#allocation2 + $0x181] ss:$2 sm:$0xff]  ;;  %v4109_v55 = vadd.f32 %v15919_v53, %v18804_v19  ;;  %v9020_v12 = vadd.f32 %v15919_v53, %v16060_v54  ;;  %v1576_v10 = vadd.f32 %v15919_v53, %v18806_v43  ;;  %v1578_v6 = vadd.f32 %v15919_v53, %v18807_v4 }
 0x3ef   : > { %v2631_v34 = vmax.f32 %v2432_v14, %v2544_v22  ;;  %4855 = vst.msk [vmem:[#allocation2 + $0x180] sm:$0xff] %vm2271_vm3, %v4743_v39  ;;  %v16094_v25 = vpop.f32.mrf.mxu2  ;;  %v16096_v26 = vpop.f32.mrf.mxu3  ;;  %v18805_v29 = vld [vmem:[#allocation49_spill] sm:$0xff]  ;;  %v4577_v39 = vmax.f32 %v4177_v21, 0.0  ;;  %v9421_v41 = vmax.f32 %v9018_v35, 0.0  ;;  %v9393_v8 = vmax.f32 %v8948_v33, 0.0 }
 0x3f0   : > { %v7365_v42 = vld [vmem:[#allocation2 + $0x170] ss:$2 sm:$0xff]  ;;  %v7421_v15 = vld [vmem:[#allocation2 + $0x171] ss:$2 sm:$0xff]  ;;  %4856 = vst.msk [vmem:[#allocation2 + $0x188] sm:$0xff] %vm2271_vm3, %v4744_v32  ;;  %v1642_v58 = vpop.f32.mrf.mxu0  ;;  %v4178_v17 = vpop.f32.mrf.mxu1  ;;  %v8950_v28 = vadd.f32 %v15919_v53, %v18805_v29  ;;  %v4549_v32 = vmax.f32 %v4107_v9, 0.0 }
 0x3f1   : > { %v7477_v56 = vmax.f32 %v7365_v42, %v7421_v15  ;;  %9699 = vst.msk [vmem:[#allocation2 + $0x170] sm:$0xff] %vm2271_vm3, %v9587_v0  ;;  %v2687_v20 = vpack.c.bf16 %v2631_v34, %v2631_v34  ;;  %v1643_v51 = vadd.f32 %v15919_v53, %v1642_v58  ;;  %v4179_v11 = vadd.f32 %v15919_v53, %v4178_v17 }
 0x3f2   : > { %9700 = vst.msk [vmem:[#allocation2 + $0x178] sm:$0xff] %vm2271_vm3, %v9588_v30  ;;  %v4550_v60 = vmax.f32 %v4109_v55, 0.0  ;;  %v9422_v34 = vmax.f32 %v9020_v12, 0.0  ;;  %v9394_v50 = vmax.f32 %v8950_v28, 0.0  ;;  %v2015_v42 = vmax.f32 %v1576_v10, 0.0  ;;  %v13317_v12 = vld [vmem:[%s13867_s5 + $0x1f8] sm:$0xff] }
 0x3f3   : > { %v7533_v44 = vpack.c.bf16 %v7477_v56, %v7477_v56  ;;  %2747 = vst.msk [vmem:[%s14327_s20 + $0x60] sm:$0xf] %vm2722_vm4, %v2687_v20  ;;  %v2042_v47 = vmax.f32 %v1643_v51, 0.0  ;;  %v4578_v22 = vmax.f32 %v4179_v11, 0.0  ;;  %v4745_v15 = vmax.f32 %v4549_v32, %v4577_v39 }
 0x3f4   : > { %2322 = vst.msk [vmem:[#allocation2 + $0x190] sm:$0xff] %vm2271_vm3, %v2209_v5  ;;  %v6600_v30 = vadd.f32 %v15919_v53, %v16094_v25  ;;  %v9589_v56 = vmax.f32 %v9393_v8, %v9421_v41  ;;  %v9590_v31 = vmax.f32 %v9394_v50, %v9422_v34  ;;  %v13541_v41 = vld [vmem:[%s13867_s5 + $0x8f8] sm:$0xff] }
 0x3f5   : > { %12377 = vst.msk [vmem:[%s14327_s20 + $0x21c] sm:$0xf] %vm2722_vm4, %v7533_v44  ;;  %v2210_v45 = vmax.f32 %v2014_v57, %v2042_v47  ;;  %v4746_v17 = vmax.f32 %v4550_v60, %v4578_v22  ;;  %v18808_v44 = vld [vmem:[#allocation47_spill] sm:$0xff]  ;;  %v13653_v60 = vld [vmem:[%s13867_s5 + $0xc78] sm:$0xff] }
 0x3f6   : > { %v6530_v63 = vadd.f32 %v15919_v53, %v18808_v44  ;;  %v7000_v35 = vmax.f32 %v6600_v30, 0.0 }
 0x3f7   : > { %v4943_v7 = vld [vmem:[#allocation2 + $0x180] ss:$2 sm:$0xff]  ;;  %v4999_v1 = vld [vmem:[#allocation2 + $0x181] ss:$2 sm:$0xff]  ;;  %2323 = vst.msk [vmem:[#allocation2 + $0x198] sm:$0xff] %vm2271_vm3, %v2210_v45  ;;  %v6601_v13 = vpop.f32.mrf.mxu2  ;;  %v16120_v16 = vpop.f32.mrf.mxu3 }
 0x3f8   : > { %v5055_v3 = vmax.f32 %v4943_v7, %v4999_v1  ;;  %7278 = vst.msk [vmem:[#allocation2 + $0x180] sm:$0xff] %vm2271_vm3, %v7166_v36  ;;  %v1645_v49 = vpop.f32.mrf.mxu0  ;;  %v16130_v61 = vpop.f32.mrf.mxu1  ;;  %v6602_v51 = vadd.f32 %v15919_v53, %v6601_v13  ;;  %v18809_v36 = vld [vmem:[#allocation54_spill] sm:$0xff]  ;;  %v2016_v7 = vmax.f32 %v1578_v6, 0.0 }
 0x3f9   : > { %v9788_v37 = vld [vmem:[#allocation2 + $0x170] ss:$2 sm:$0xff]  ;;  %v9844_v38 = vld [vmem:[#allocation2 + $0x171] ss:$2 sm:$0xff]  ;;  %7279 = vst.msk [vmem:[#allocation2 + $0x188] sm:$0xff] %vm2271_vm3, %v7167_v62  ;;  %v1646_v59 = vadd.f32 %v15919_v53, %v1645_v49  ;;  %v6532_v11 = vadd.f32 %v15919_v53, %v18809_v36  ;;  %v4182_v33 = vadd.f32 %v15919_v53, %v16130_v61 }
 0x3fa   : > { %v9900_v54 = vmax.f32 %v9788_v37, %v9844_v38  ;;  %v5111_v14 = vpack.c.bf16 %v5055_v3, %v5055_v3  ;;  %v7001_v62 = vmax.f32 %v6602_v51, 0.0  ;;  %v18810_v49 = vld [vmem:[#allocation61_spill] sm:$0xff]  ;;  %v13429_v37 = vld [vmem:[%s13867_s5 + $0x578] sm:$0xff]  ;;  %v18811_v38 = vld [vmem:[#allocation56_spill] sm:$0xff] }
 0x3fb   : > { %10680 = vmatmul.msk.bf16.gmra.mxu0 %vm1022_vm2, %v13316_v18  ;;  %11464 = vmatmul.msk.bf16.gmra.mxu1 %vm1022_vm2, %v13428_v27  ;;  %v2043_v40 = vmax.f32 %v1646_v59, 0.0  ;;  %v6972_v27 = vmax.f32 %v6530_v63, 0.0  ;;  %v6973_v48 = vmax.f32 %v6532_v11, 0.0  ;;  %v8953_v39 = vadd.f32 %v15919_v53, %v18811_v38  ;;  %v18812_v59 = vld [vmem:[#allocation58_spill] sm:$0xff] }
 0x3fc   : > { %v9956_v0 = vpack.c.bf16 %v9900_v54, %v9900_v54  ;;  %11538 = vst.msk [vmem:[%s14327_s20 + $0x140] sm:$0xf] %vm2722_vm4, %v5111_v14  ;;  %12304 = vmatmul.msk.bf16.gmra.mxu2 %vm1022_vm2, %v13540_v52  ;;  %13144 = vmatmul.msk.bf16.gmra.mxu3 %vm1022_vm2, %v13652_v2  ;;  %v4112_v52 = vadd.f32 %v15919_v53, %v18810_v49  ;;  %v18815_v36 = vld [vmem:[#allocation70_spill] sm:$0xff] }
 0x3fd   : > { %v2211_v24 = vmax.f32 %v2015_v42, %v2043_v40  ;;  %v7168_v55 = vmax.f32 %v6972_v27, %v7000_v35  ;;  %v9023_v2 = vadd.f32 %v15919_v53, %v16096_v26  ;;  %v7169_v43 = vmax.f32 %v6973_v48, %v7001_v62  ;;  %v18814_v40 = vld [vmem:[#allocation69_spill] sm:$0xff] }
 0x3fe   : > { %13217 = vst.msk [vmem:[%s14327_s20 + $0x2fc] sm:$0xf] %vm2722_vm4, %v9956_v0  ;;  %v2434_v5 = vld [vmem:[#allocation2 + $0x190] ss:$2 sm:$0xff]  ;;  %v2546_v58 = vld [vmem:[#allocation2 + $0x191] ss:$2 sm:$0xff]  ;;  %v4114_v54 = vadd.f32 %v15919_v53, %v18812_v59  ;;  %v9025_v26 = vadd.f32 %v15919_v53, %v16120_v16  ;;  %v1581_v8 = vadd.f32 %v15919_v53, %v18814_v40  ;;  %v1583_v11 = vadd.f32 %v15919_v53, %v18815_v36 }
 0x3ff   : > { %v2632_v20 = vmax.f32 %v2434_v5, %v2546_v58  ;;  %4857 = vst.msk [vmem:[#allocation2 + $0x190] sm:$0xff] %vm2271_vm3, %v4745_v15  ;;  %v16154_v46 = vpop.f32.mrf.mxu2  ;;  %v16156_v57 = vpop.f32.mrf.mxu3  ;;  %v18813_v0 = vld [vmem:[#allocation57_spill] sm:$0xff]  ;;  %v4579_v15 = vmax.f32 %v4182_v33, 0.0  ;;  %v9423_v4 = vmax.f32 %v9023_v2, 0.0  ;;  %v9395_v44 = vmax.f32 %v8953_v39, 0.0 }
 0x400   : > { %v7366_v25 = vld [vmem:[#allocation2 + $0x180] ss:$2 sm:$0xff]  ;;  %v7422_v47 = vld [vmem:[#allocation2 + $0x181] ss:$2 sm:$0xff]  ;;  %4858 = vst.msk [vmem:[#allocation2 + $0x198] sm:$0xff] %vm2271_vm3, %v4746_v17  ;;  %v1647_v21 = vpop.f32.mrf.mxu0  ;;  %v4183_v45 = vpop.f32.mrf.mxu1  ;;  %v8955_v34 = vadd.f32 %v15919_v53, %v18813_v0  ;;  %v4551_v17 = vmax.f32 %v4112_v52, 0.0 }
 0x401   : > { %v7478_v18 = vmax.f32 %v7366_v25, %v7422_v47  ;;  %9701 = vst.msk [vmem:[#allocation2 + $0x180] sm:$0xff] %vm2271_vm3, %v9589_v56  ;;  %v2688_v23 = vpack.c.bf16 %v2632_v20, %v2632_v20  ;;  %v1648_v9 = vadd.f32 %v15919_v53, %v1647_v21  ;;  %v4184_v3 = vadd.f32 %v15919_v53, %v4183_v45 }
 0x402   : > { %9702 = vst.msk [vmem:[#allocation2 + $0x188] sm:$0xff] %vm2271_vm3, %v9590_v31  ;;  %v4552_v6 = vmax.f32 %v4114_v54, 0.0  ;;  %v9424_v20 = vmax.f32 %v9025_v26, 0.0  ;;  %v9396_v63 = vmax.f32 %v8955_v34, 0.0  ;;  %v2017_v25 = vmax.f32 %v1581_v8, 0.0  ;;  %v13318_v26 = vld [vmem:[%s13867_s5 + $0x200] sm:$0xff] }
 0x403   : > { %v7534_v1 = vpack.c.bf16 %v7478_v18, %v7478_v18  ;;  %2748 = vst.msk [vmem:[%s14327_s20 + $0x64] sm:$0xf] %vm2722_vm4, %v2688_v23  ;;  %v2044_v13 = vmax.f32 %v1648_v9, 0.0  ;;  %v4580_v58 = vmax.f32 %v4184_v3, 0.0  ;;  %v4747_v47 = vmax.f32 %v4551_v17, %v4579_v15  ;;  %v13654_v17 = vld [vmem:[%s13867_s5 + $0xc80] sm:$0xff] }
 0x404   : > { %2324 = vst.msk [vmem:[#allocation2 + $0x1a0] sm:$0xff] %vm2271_vm3, %v2211_v24  ;;  %v6605_v31 = vadd.f32 %v15919_v53, %v16154_v46  ;;  %v9591_v18 = vmax.f32 %v9395_v44, %v9423_v4  ;;  %v9592_v27 = vmax.f32 %v9396_v63, %v9424_v20  ;;  %v18820_v4 = vld [vmem:[#allocation64_spill] sm:$0xff] }
 0x405   : > { %12378 = vst.msk [vmem:[%s14327_s20 + $0x220] sm:$0xf] %vm2722_vm4, %v7534_v1  ;;  %v2212_v19 = vmax.f32 %v2016_v7, %v2044_v13  ;;  %v4748_v45 = vmax.f32 %v4552_v6, %v4580_v58  ;;  %v18816_v1 = vld [vmem:[#allocation55_spill] sm:$0xff]  ;;  %v8958_v6 = vadd.f32 %v15919_v53, %v18820_v4 }
 0x406   : > { %v6535_v62 = vadd.f32 %v15919_v53, %v18816_v1  ;;  %v7002_v2 = vmax.f32 %v6605_v31, 0.0  ;;  %v13542_v58 = vld [vmem:[%s13867_s5 + $0x900] sm:$0xff] }
 0x407   : > { %v4944_v29 = vld [vmem:[#allocation2 + $0x190] ss:$2 sm:$0xff]  ;;  %v5000_v28 = vld [vmem:[#allocation2 + $0x191] ss:$2 sm:$0xff]  ;;  %2325 = vst.msk [vmem:[#allocation2 + $0x1a8] sm:$0xff] %vm2271_vm3, %v2212_v19  ;;  %v6606_v10 = vpop.f32.mrf.mxu2  ;;  %v16180_v61 = vpop.f32.mrf.mxu3 }
 0x408   : > { %v5056_v14 = vmax.f32 %v4944_v29, %v5000_v28  ;;  %7280 = vst.msk [vmem:[#allocation2 + $0x190] sm:$0xff] %vm2271_vm3, %v7168_v55  ;;  %v1650_v22 = vpop.f32.mrf.mxu0  ;;  %v16190_v32 = vpop.f32.mrf.mxu1  ;;  %v6607_v9 = vadd.f32 %v15919_v53, %v6606_v10  ;;  %v18817_v55 = vld [vmem:[#allocation62_spill] sm:$0xff]  ;;  %v2018_v29 = vmax.f32 %v1583_v11, 0.0  ;;  %v9397_v11 = vmax.f32 %v8958_v6, 0.0 }
 0x409   : > { %v9789_v50 = vld [vmem:[#allocation2 + $0x180] ss:$2 sm:$0xff]  ;;  %v9845_v42 = vld [vmem:[#allocation2 + $0x181] ss:$2 sm:$0xff]  ;;  %7281 = vst.msk [vmem:[#allocation2 + $0x198] sm:$0xff] %vm2271_vm3, %v7169_v43  ;;  %v1651_v30 = vadd.f32 %v15919_v53, %v1650_v22  ;;  %v6537_v3 = vadd.f32 %v15919_v53, %v18817_v55  ;;  %v4187_v39 = vadd.f32 %v15919_v53, %v16190_v32 }
 0x40a   : > { %v9901_v16 = vmax.f32 %v9789_v50, %v9845_v42  ;;  %v5112_v5 = vpack.c.bf16 %v5056_v14, %v5056_v14  ;;  %v7003_v43 = vmax.f32 %v6607_v9, 0.0  ;;  %v18818_v22 = vld [vmem:[#allocation59_spill] sm:$0xff] }
 0x40b   : > { %10681 = vmatmul.msk.bf16.gmra.mxu0 %vm1022_vm2, %v13317_v12  ;;  %11465 = vmatmul.msk.bf16.gmra.mxu1 %vm1022_vm2, %v13429_v37  ;;  %v2045_v51 = vmax.f32 %v1651_v30, 0.0  ;;  %v6974_v37 = vmax.f32 %v6535_v62, 0.0  ;;  %v6975_v38 = vmax.f32 %v6537_v3, 0.0  ;;  %v13430_v50 = vld [vmem:[%s13867_s5 + $0x580] sm:$0xff]  ;;  %v4581_v63 = vmax.f32 %v4187_v39, 0.0 }
 0x40c   : > { %v9957_v56 = vpack.c.bf16 %v9901_v16, %v9901_v16  ;;  %11539 = vst.msk [vmem:[%s14327_s20 + $0x144] sm:$0xf] %vm2722_vm4, %v5112_v5  ;;  %12305 = vmatmul.msk.bf16.gmra.mxu2 %vm1022_vm2, %v13541_v41  ;;  %13145 = vmatmul.msk.bf16.gmra.mxu3 %vm1022_vm2, %v13653_v60  ;;  %v4117_v41 = vadd.f32 %v15919_v53, %v18818_v22  ;;  %v18819_v42 = vld [vmem:[#allocation67_spill] sm:$0xff] }
 0x40d   : > { %v2213_v48 = vmax.f32 %v2017_v25, %v2045_v51  ;;  %v7170_v54 = vmax.f32 %v6974_v37, %v7002_v2  ;;  %v9028_v60 = vadd.f32 %v15919_v53, %v16156_v57  ;;  %v7171_v40 = vmax.f32 %v6975_v38, %v7003_v43  ;;  %v18822_v55 = vld [vmem:[#allocation63_spill] sm:$0xff] }
 0x40e   : > { %13218 = vst.msk [vmem:[%s14327_s20 + $0x300] sm:$0xf] %vm2722_vm4, %v9957_v56  ;;  %v2436_v24 = vld [vmem:[#allocation2 + $0x1a0] ss:$2 sm:$0xff]  ;;  %v2548_v21 = vld [vmem:[#allocation2 + $0x1a1] ss:$2 sm:$0xff]  ;;  %v4119_v15 = vadd.f32 %v15919_v53, %v18819_v42  ;;  %v9030_v16 = vadd.f32 %v15919_v53, %v16180_v61  ;;  %v6540_v3 = vadd.f32 %v15919_v53, %v18822_v55 }
 0x40f   : > { %v2633_v23 = vmax.f32 %v2436_v24, %v2548_v21  ;;  %4859 = vst.msk [vmem:[#allocation2 + $0x1a0] sm:$0xff] %vm2271_vm3, %v4747_v47  ;;  %v16214_v35 = vpop.f32.mrf.mxu2  ;;  %v16216_v7 = vpop.f32.mrf.mxu3  ;;  %v18821_v56 = vld [vmem:[#allocation65_spill] sm:$0xff]  ;;  %v4553_v31 = vmax.f32 %v4117_v41, 0.0  ;;  %v9425_v24 = vmax.f32 %v9028_v60, 0.0 }
 0x410   : > { %v7367_v46 = vld [vmem:[#allocation2 + $0x190] ss:$2 sm:$0xff]  ;;  %v7423_v13 = vld [vmem:[#allocation2 + $0x191] ss:$2 sm:$0xff]  ;;  %4860 = vst.msk [vmem:[#allocation2 + $0x1a8] sm:$0xff] %vm2271_vm3, %v4748_v45  ;;  %v1652_v33 = vpop.f32.mrf.mxu0  ;;  %v4188_v19 = vpop.f32.mrf.mxu1  ;;  %v8960_v20 = vadd.f32 %v15919_v53, %v18821_v56  ;;  %v4554_v21 = vmax.f32 %v4119_v15, 0.0  ;;  %v6610_v9 = vadd.f32 %v15919_v53, %v16214_v35 }
 0x411   : > { %v7479_v12 = vmax.f32 %v7367_v46, %v7423_v13  ;;  %9703 = vst.msk [vmem:[#allocation2 + $0x190] sm:$0xff] %vm2271_vm3, %v9591_v18  ;;  %v2689_v49 = vpack.c.bf16 %v2633_v23, %v2633_v23  ;;  %v1653_v52 = vadd.f32 %v15919_v53, %v1652_v33  ;;  %v4189_v14 = vadd.f32 %v15919_v53, %v4188_v19  ;;  %v18825_v56 = vld [vmem:[#allocation72_spill] sm:$0xff] }
 0x412   : > { %9704 = vst.msk [vmem:[#allocation2 + $0x198] sm:$0xff] %vm2271_vm3, %v9592_v27  ;;  %v9426_v36 = vmax.f32 %v9030_v16, 0.0  ;;  %v9398_v18 = vmax.f32 %v8960_v20, 0.0  ;;  %v4749_v23 = vmax.f32 %v4553_v31, %v4581_v63  ;;  %v9593_v13 = vmax.f32 %v9397_v11, %v9425_v24  ;;  %v13655_v16 = vld [vmem:[%s13867_s5 + $0xc88] sm:$0xff] }
 0x413   : > { %v7535_v28 = vpack.c.bf16 %v7479_v12, %v7479_v12  ;;  %2749 = vst.msk [vmem:[%s14327_s20 + $0x68] sm:$0xf] %vm2722_vm4, %v2689_v49  ;;  %v2046_v10 = vmax.f32 %v1653_v52, 0.0  ;;  %v4582_v47 = vmax.f32 %v4189_v14, 0.0  ;;  %v7004_v37 = vmax.f32 %v6610_v9, 0.0 }
 0x414   : > { %2326 = vst.msk [vmem:[#allocation2 + $0x1b0] sm:$0xff] %vm2271_vm3, %v2213_v48  ;;  %v9594_v35 = vmax.f32 %v9398_v18, %v9426_v36 }
 0x415   : > { %12379 = vst.msk [vmem:[%s14327_s20 + $0x224] sm:$0xf] %vm2722_vm4, %v7535_v28  ;;  %v2214_v59 = vmax.f32 %v2018_v29, %v2046_v10  ;;  %v4750_v46 = vmax.f32 %v4554_v21, %v4582_v47  ;;  %v18823_v29 = vld [vmem:[#allocation71_spill] sm:$0xff] }
 0x416   : > { %v6542_v28 = vadd.f32 %v15919_v53, %v18823_v29 }
 0x417   : > { %v4945_v0 = vld [vmem:[#allocation2 + $0x1a0] ss:$2 sm:$0xff]  ;;  %v5001_v34 = vld [vmem:[#allocation2 + $0x1a1] ss:$2 sm:$0xff]  ;;  %2327 = vst.msk [vmem:[#allocation2 + $0x1b8] sm:$0xff] %vm2271_vm3, %v2214_v59  ;;  %v6611_v8 = vpop.f32.mrf.mxu2  ;;  %v16240_v32 = vpop.f32.mrf.mxu3  ;;  %v6976_v59 = vmax.f32 %v6540_v3, 0.0 }
 0x418   : > { %v5057_v30 = vmax.f32 %v4945_v0, %v5001_v34  ;;  %7282 = vst.msk [vmem:[#allocation2 + $0x1a0] sm:$0xff] %vm2271_vm3, %v7170_v54  ;;  %v16248_v5 = vpop.f32.mrf.mxu0  ;;  %v16250_v57 = vpop.f32.mrf.mxu1  ;;  %v6612_v48 = vadd.f32 %v15919_v53, %v6611_v8  ;;  %v6977_v54 = vmax.f32 %v6542_v28, 0.0  ;;  %v13319_v53 = vld [vmem:[%s13867_s5 + $0x208] sm:$0xff]  ;;  %v13544_v3 = vld [vmem:[%s13867_s5 + $0x910] sm:$0xff] }
 0x419   : > { %v9790_v51 = vld [vmem:[#allocation2 + $0x190] ss:$2 sm:$0xff]  ;;  %v9846_v44 = vld [vmem:[#allocation2 + $0x191] ss:$2 sm:$0xff]  ;;  %7283 = vst.msk [vmem:[#allocation2 + $0x1a8] sm:$0xff] %vm2271_vm3, %v7171_v40  ;;  %v7172_v14 = vmax.f32 %v6976_v59, %v7004_v37  ;;  %v13431_v8 = vld [vmem:[%s13867_s5 + $0x588] sm:$0xff] }
 0x41a   : > { %v9902_v25 = vmax.f32 %v9790_v51, %v9846_v44  ;;  %v5113_v61 = vpack.c.bf16 %v5057_v30, %v5057_v30  ;;  %v7005_v39 = vmax.f32 %v6612_v48, 0.0 }
 0x41b   : > { %10682 = vmatmul.msk.bf16.gmra.mxu0 %vm1022_vm2, %v13318_v26  ;;  %11466 = vmatmul.msk.bf16.gmra.mxu1 %vm1022_vm2, %v13430_v50  ;;  %v16294_v26 = vld [vmem:[%s18546_s2] ss:$0 sm:$0xff] }
 0x41c   : > { %v9958_v45 = vpack.c.bf16 %v9902_v25, %v9902_v25  ;;  %11540 = vst.msk [vmem:[%s14327_s20 + $0x148] sm:$0xf] %vm2722_vm4, %v5113_v61  ;;  %12306 = vmatmul.msk.bf16.gmra.mxu2 %vm1022_vm2, %v13542_v58  ;;  %13146 = vmatmul.msk.bf16.gmra.mxu3 %vm1022_vm2, %v13654_v17  ;;  %v9033_v22 = vadd.f32 %v16294_v26, %v16216_v7  ;;  %v13543_v7 = vld [vmem:[%s13867_s5 + $0x908] sm:$0xff]  ;;  %v18824_v58 = vld [vmem:[#allocation66_spill] sm:$0xff] }
 0x41d   : > { %v7173_v0 = vmax.f32 %v6977_v54, %v7005_v39  ;;  %v9035_v42 = vadd.f32 %v16294_v26, %v16240_v32  ;;  %v8963_v17 = vadd.f32 %v16294_v26, %v18824_v58  ;;  %v8965_v20 = vadd.f32 %v16294_v26, %v18825_v56  ;;  %v13321_v54 = vld [vmem:[%s13867_s5 + $0x218] sm:$0xff]  ;;  %v13322_v58 = vld [vmem:[%s13867_s5 + $0x220] sm:$0xff] }
 0x41e   : > { %13219 = vst.msk [vmem:[%s14327_s20 + $0x304] sm:$0xf] %vm2722_vm4, %v9958_v45  ;;  %v2438_v1 = vld [vmem:[#allocation2 + $0x1b0] ss:$2 sm:$0xff]  ;;  %v2550_v62 = vld [vmem:[#allocation2 + $0x1b1] ss:$2 sm:$0xff] }
 0x41f   : > { %v2634_v27 = vmax.f32 %v2438_v1, %v2550_v62  ;;  %4861 = vst.msk [vmem:[#allocation2 + $0x1b0] sm:$0xff] %vm2271_vm3, %v4749_v23  ;;  %v16271_v33 = vpop.f32.mrf.mxu2  ;;  %v16273_v19 = vpop.f32.mrf.mxu3  ;;  %v9427_v44 = vmax.f32 %v9033_v22, 0.0  ;;  %v9428_v25 = vmax.f32 %v9035_v42, 0.0  ;;  %v9399_v61 = vmax.f32 %v8963_v17, 0.0  ;;  %v13434_v17 = vld [vmem:[%s13867_s5 + $0x5a0] sm:$0xff] }
 0x420   : > { %v7368_v12 = vld [vmem:[#allocation2 + $0x1a0] ss:$2 sm:$0xff]  ;;  %v7424_v49 = vld [vmem:[#allocation2 + $0x1a1] ss:$2 sm:$0xff]  ;;  %4862 = vst.msk [vmem:[#allocation2 + $0x1b8] sm:$0xff] %vm2271_vm3, %v4750_v46  ;;  %v16278_v52 = vpop.f32.mrf.mxu0  ;;  %v16280_v2 = vpop.f32.mrf.mxu1  ;;  %v9400_v47 = vmax.f32 %v8965_v20, 0.0 }
 0x421   : > { %v7480_v43 = vmax.f32 %v7368_v12, %v7424_v49  ;;  %9705 = vst.msk [vmem:[#allocation2 + $0x1a0] sm:$0xff] %vm2271_vm3, %v9593_v13  ;;  %v2690_v10 = vpack.c.bf16 %v2634_v27, %v2634_v27  ;;  %v9595_v31 = vmax.f32 %v9399_v61, %v9427_v44  ;;  %v13320_v13 = vld [vmem:[%s13867_s5 + $0x210] sm:$0xff]  ;;  %v13546_v56 = vld [vmem:[%s13867_s5 + $0x920] sm:$0xff] }
 0x422   : > { %9706 = vst.msk [vmem:[#allocation2 + $0x1a8] sm:$0xff] %vm2271_vm3, %v9594_v35  ;;  %v9596_v11 = vmax.f32 %v9400_v47, %v9428_v25  ;;  %v13432_v27 = vld [vmem:[%s13867_s5 + $0x590] sm:$0xff]  ;;  %v13658_v20 = vld [vmem:[%s13867_s5 + $0xca0] sm:$0xff]  ;;  %v13323_v47 = vld [vmem:[%s13867_s5 + $0x228] sm:$0xff] }
 0x423   : > { %v7536_v38 = vpack.c.bf16 %v7480_v43, %v7480_v43  ;;  %2750 = vst.msk [vmem:[%s14327_s20 + $0x6c] sm:$0xf] %vm2722_vm4, %v2690_v10  ;;  %v13656_v12 = vld [vmem:[%s13867_s5 + $0xc90] sm:$0xff] }
 0x425   : > { %12380 = vst.msk [vmem:[%s14327_s20 + $0x228] sm:$0xf] %vm2722_vm4, %v7536_v38 }
 0x427   : > { %v4946_v41 = vld [vmem:[#allocation2 + $0x1b0] ss:$2 sm:$0xff]  ;;  %v5002_v60 = vld [vmem:[#allocation2 + $0x1b1] ss:$2 sm:$0xff]  ;;  %v16298_v34 = vpop.f32.mrf.mxu2  ;;  %v16300_v40 = vpop.f32.mrf.mxu3 }
 0x428   : > { %v5058_v50 = vmax.f32 %v4946_v41, %v5002_v60  ;;  %7284 = vst.msk [vmem:[#allocation2 + $0x1b0] sm:$0xff] %vm2271_vm3, %v7172_v14  ;;  %v16306_v15 = vpop.f32.mrf.mxu0  ;;  %v16308_v30 = vpop.f32.mrf.mxu1  ;;  %v13433_v14 = vld [vmem:[%s13867_s5 + $0x598] sm:$0xff] }
 0x429   : > { %v9791_v4 = vld [vmem:[#allocation2 + $0x1a0] ss:$2 sm:$0xff]  ;;  %v9847_v6 = vld [vmem:[#allocation2 + $0x1a1] ss:$2 sm:$0xff]  ;;  %7285 = vst.msk [vmem:[#allocation2 + $0x1b8] sm:$0xff] %vm2271_vm3, %v7173_v0  ;;  %v13545_v41 = vld [vmem:[%s13867_s5 + $0x918] sm:$0xff] }
 0x42a   : > { %v9903_v51 = vmax.f32 %v9791_v4, %v9847_v6  ;;  %v5114_v32 = vpack.c.bf16 %v5058_v50, %v5058_v50  ;;  %v13657_v60 = vld [vmem:[%s13867_s5 + $0xc98] sm:$0xff] }
 0x42b   : > { %10683 = vmatmul.msk.bf16.gmra.mxu0 %vm1022_vm2, %v13319_v53  ;;  %11467 = vmatmul.msk.bf16.gmra.mxu1 %vm1022_vm2, %v13431_v8 }
 0x42c   : > { %v9959_v63 = vpack.c.bf16 %v9903_v51, %v9903_v51  ;;  %11541 = vst.msk [vmem:[%s14327_s20 + $0x14c] sm:$0xf] %vm2722_vm4, %v5114_v32  ;;  %12307 = vmatmul.msk.bf16.gmra.mxu2 %vm1022_vm2, %v13543_v7  ;;  %13147 = vmatmul.msk.bf16.gmra.mxu3 %vm1022_vm2, %v13655_v16 }
 0x42e   : > { %13220 = vst.msk [vmem:[%s14327_s20 + $0x308] sm:$0xf] %vm2722_vm4, %v9959_v63 }
 0x42f   : > { %v16325_v24 = vpop.f32.mrf.mxu2  ;;  %v16327_v21 = vpop.f32.mrf.mxu3 }
 0x430   : > { %v7369_v45 = vld [vmem:[#allocation2 + $0x1b0] ss:$2 sm:$0xff]  ;;  %v7425_v36 = vld [vmem:[#allocation2 + $0x1b1] ss:$2 sm:$0xff]  ;;  %v16329_v18 = vpop.f32.mrf.mxu0  ;;  %v16331_v23 = vpop.f32.mrf.mxu1 }
 0x431   : > { %v7481_v9 = vmax.f32 %v7369_v45, %v7425_v36  ;;  %9707 = vst.msk [vmem:[#allocation2 + $0x1b0] sm:$0xff] %vm2271_vm3, %v9595_v31  ;;  %v13435_v31 = vld [vmem:[%s13867_s5 + $0x5a8] sm:$0xff] }
 0x432   : > { %9708 = vst.msk [vmem:[#allocation2 + $0x1b8] sm:$0xff] %vm2271_vm3, %v9596_v11  ;;  %v13547_v11 = vld [vmem:[%s13867_s5 + $0x928] sm:$0xff] }
 0x433   : > { %v7537_v1 = vpack.c.bf16 %v7481_v9, %v7481_v9  ;;  %v13659_v9 = vld [vmem:[%s13867_s5 + $0xca8] sm:$0xff] }
 0x435   : > { %12381 = vst.msk [vmem:[%s14327_s20 + $0x22c] sm:$0xf] %vm2722_vm4, %v7537_v1 }
 0x437   : > { %v16337_v62 = vpop.f32.mrf.mxu2  ;;  %v16339_v46 = vpop.f32.mrf.mxu3 }
 0x438   : > { %v16343_v48 = vpop.f32.mrf.mxu0  ;;  %v16345_v55 = vpop.f32.mrf.mxu1 }
 0x439   : > { %v9792_v49 = vld [vmem:[#allocation2 + $0x1b0] ss:$2 sm:$0xff]  ;;  %v9848_v35 = vld [vmem:[#allocation2 + $0x1b1] ss:$2 sm:$0xff] }
 0x43a   : > { %v9904_v29 = vmax.f32 %v9792_v49, %v9848_v35  ;;  %v13324_v35 = vld [vmem:[%s13867_s5 + $0x230] sm:$0xff] }
 0x43b   : > { %10684 = vmatmul.msk.bf16.gmra.mxu0 %vm1022_vm2, %v13320_v13  ;;  %11468 = vmatmul.msk.bf16.gmra.mxu1 %vm1022_vm2, %v13432_v27 }
 0x43c   : > { %v9960_v28 = vpack.c.bf16 %v9904_v29, %v9904_v29  ;;  %12308 = vmatmul.msk.bf16.gmra.mxu2 %vm1022_vm2, %v13544_v3  ;;  %13148 = vmatmul.msk.bf16.gmra.mxu3 %vm1022_vm2, %v13656_v12  ;;  %v13436_v29 = vld [vmem:[%s13867_s5 + $0x5b0] sm:$0xff] }
 0x43e   : > { %13221 = vst.msk [vmem:[%s14327_s20 + $0x30c] sm:$0xf] %vm2722_vm4, %v9960_v28 }
 0x43f   : > { %v16355_v43 = vpop.f32.mrf.mxu2  ;;  %v16357_v10 = vpop.f32.mrf.mxu3 }
 0x440   : > { %v16359_v37 = vpop.f32.mrf.mxu0  ;;  %v16361_v38 = vpop.f32.mrf.mxu1 }
 0x447   : > { %v16363_v39 = vpop.f32.mrf.mxu2  ;;  %v16365_v59 = vpop.f32.mrf.mxu3 }
 0x448   : > { %v16369_v53 = vpop.f32.mrf.mxu0  ;;  %v16371_v22 = vpop.f32.mrf.mxu1 }
 0x44b   : > { %10685 = vmatmul.msk.bf16.gmra.mxu0 %vm1022_vm2, %v13321_v54  ;;  %11469 = vmatmul.msk.bf16.gmra.mxu1 %vm1022_vm2, %v13433_v14  ;;  %v13548_v14 = vld [vmem:[%s13867_s5 + $0x930] sm:$0xff] }
 0x44c   : > { %12309 = vmatmul.msk.bf16.gmra.mxu2 %vm1022_vm2, %v13545_v41  ;;  %13149 = vmatmul.msk.bf16.gmra.mxu3 %vm1022_vm2, %v13657_v60  ;;  %v13660_v41 = vld [vmem:[%s13867_s5 + $0xcb0] sm:$0xff] }
 0x44f   : > { %v16379_v0 = vpop.f32.mrf.mxu2  ;;  %v16381_v8 = vpop.f32.mrf.mxu3 }
 0x450   : > { %v16383_v50 = vpop.f32.mrf.mxu0  ;;  %v16385_v42 = vpop.f32.mrf.mxu1 }
 0x457   : > { %v16387_v7 = vpop.f32.mrf.mxu2  ;;  %v16389_v16 = vpop.f32.mrf.mxu3 }
 0x458   : > { %v16393_v4 = vpop.f32.mrf.mxu0  ;;  %v16395_v6 = vpop.f32.mrf.mxu1 }
 0x45b   : > { %10686 = vmatmul.msk.bf16.gmra.mxu0 %vm1022_vm2, %v13322_v58  ;;  %11470 = vmatmul.msk.bf16.gmra.mxu1 %vm1022_vm2, %v13434_v17 }
 0x45c   : > { %12310 = vmatmul.msk.bf16.gmra.mxu2 %vm1022_vm2, %v13546_v56  ;;  %13150 = vmatmul.msk.bf16.gmra.mxu3 %vm1022_vm2, %v13658_v20 }
 0x45f   : > { %v16403_v51 = vpop.f32.mrf.mxu2  ;;  %v16405_v32 = vpop.f32.mrf.mxu3 }
 0x460   : > { %v16407_v44 = vpop.f32.mrf.mxu0  ;;  %v16409_v63 = vpop.f32.mrf.mxu1 }
 0x467   : > { %v16411_v25 = vpop.f32.mrf.mxu2  ;;  %v16413_v61 = vpop.f32.mrf.mxu3 }
 0x468   : > { %18826 = vst [vmem:[#allocation4_spill] sm:$0xff] %v16413_v61  ;;  %v16417_v45 = vpop.f32.mrf.mxu0  ;;  %v16419_v36 = vpop.f32.mrf.mxu1 }
 0x46b   : > { %10687 = vmatmul.msk.bf16.gmra.mxu0 %vm1022_vm2, %v13323_v47  ;;  %11471 = vmatmul.msk.bf16.gmra.mxu1 %vm1022_vm2, %v13435_v31  ;;  %v13325_v31 = vld [vmem:[%s13867_s5 + $0x238] sm:$0xff] }
 0x46c   : > { %12311 = vmatmul.msk.bf16.gmra.mxu2 %vm1022_vm2, %v13547_v11  ;;  %13151 = vmatmul.msk.bf16.gmra.mxu3 %vm1022_vm2, %v13659_v9  ;;  %v13437_v11 = vld [vmem:[%s13867_s5 + $0x5b8] sm:$0xff] }
 0x46f   : > { %v16427_v1 = vpop.f32.mrf.mxu2  ;;  %v16429_v13 = vpop.f32.mrf.mxu3 }
 0x470   : > { %18827 = vst [vmem:[#allocation3_spill] sm:$0xff] %v16427_v1  ;;  %v16431_v27 = vpop.f32.mrf.mxu0  ;;  %v16433_v3 = vpop.f32.mrf.mxu1 }
 0x471   : > { %18828 = vst [vmem:[#allocation5_spill] sm:$0xff] %v16429_v13 }
 0x472   : > { %18829 = vst [vmem:[#allocation20_spill] sm:$0xff] %v16433_v3 }
 0x477   : > { %v16435_v12 = vpop.f32.mrf.mxu2  ;;  %v16437_v49 = vpop.f32.mrf.mxu3 }
 0x478   : > { %18830 = vst [vmem:[#allocation8_spill] sm:$0xff] %v16435_v12  ;;  %v16441_v28 = vpop.f32.mrf.mxu0  ;;  %v16443_v54 = vpop.f32.mrf.mxu1 }
 0x479   : > { %18831 = vst [vmem:[#allocation6_spill] sm:$0xff] %v16437_v49 }
 0x47a   : > { %18832 = vst [vmem:[#allocation13_spill] sm:$0xff] %v16441_v28 }
 0x47b   : > { %18833 = vst [vmem:[#allocation12_spill] sm:$0xff] %v16443_v54  ;;  %10688 = vmatmul.msk.bf16.gmra.mxu0 %vm1022_vm2, %v13324_v35  ;;  %11472 = vmatmul.msk.bf16.gmra.mxu1 %vm1022_vm2, %v13436_v29  ;;  %v13549_v29 = vld [vmem:[%s13867_s5 + $0x938] sm:$0xff] }
 0x47c   : > { %12312 = vmatmul.msk.bf16.gmra.mxu2 %vm1022_vm2, %v13548_v14  ;;  %13152 = vmatmul.msk.bf16.gmra.mxu3 %vm1022_vm2, %v13660_v41  ;;  %v13661_v14 = vld [vmem:[%s13867_s5 + $0xcb8] sm:$0xff] }
 0x47f   : > { %v16451_v60 = vpop.f32.mrf.mxu2  ;;  %v16453_v58 = vpop.f32.mrf.mxu3 }
 0x480   : > { %18834 = vst [vmem:[#allocation10_spill] sm:$0xff] %v16451_v60  ;;  %v16455_v17 = vpop.f32.mrf.mxu0  ;;  %v16457_v56 = vpop.f32.mrf.mxu1 }
 0x481   : > { %18835 = vst [vmem:[#allocation9_spill] sm:$0xff] %v16453_v58 }
 0x482   : > { %18836 = vst [vmem:[#allocation11_spill] sm:$0xff] %v16455_v17 }
 0x483   : > { %18837 = vst [vmem:[#allocation28_spill] sm:$0xff] %v16457_v56  ;;  %v13668_v56 = vld [vmem:[%s13867_s5 + $0xcf0] sm:$0xff] }
 0x487   : > { %v16459_v20 = vpop.f32.mrf.mxu2  ;;  %v16461_v47 = vpop.f32.mrf.mxu3 }
 0x488   : > { %18838 = vst [vmem:[#allocation7_spill] sm:$0xff] %v16459_v20  ;;  %v16465_v9 = vpop.f32.mrf.mxu0  ;;  %v16467_v35 = vpop.f32.mrf.mxu1 }
 0x489   : > { %18839 = vst [vmem:[#allocation14_spill] sm:$0xff] %v16461_v47 }
 0x48a   : > { %18840 = vst [vmem:[#allocation21_spill] sm:$0xff] %v16465_v9  ;;  %v13326_v9 = vld [vmem:[%s13867_s5 + $0x240] sm:$0xff] }
 0x48b   : > { %18841 = vst [vmem:[#allocation16_spill] sm:$0xff] %v16467_v35  ;;  %10689 = vmatmul.msk.bf16.gmra.mxu0 %vm1022_vm2, %v13325_v31  ;;  %11473 = vmatmul.msk.bf16.gmra.mxu1 %vm1022_vm2, %v13437_v11  ;;  %v13438_v31 = vld [vmem:[%s13867_s5 + $0x5c0] sm:$0xff] }
 0x48c   : > { %12313 = vmatmul.msk.bf16.gmra.mxu2 %vm1022_vm2, %v13549_v29  ;;  %13153 = vmatmul.msk.bf16.gmra.mxu3 %vm1022_vm2, %v13661_v14  ;;  %v13550_v14 = vld [vmem:[%s13867_s5 + $0x940] sm:$0xff] }
 0x48f   : > { %v16475_v41 = vpop.f32.mrf.mxu2  ;;  %v16477_v47 = vpop.f32.mrf.mxu3 }
 0x490   : > { %18842 = vst [vmem:[#allocation18_spill] sm:$0xff] %v16475_v41  ;;  %v16479_v58 = vpop.f32.mrf.mxu0  ;;  %v16481_v20 = vpop.f32.mrf.mxu1  ;;  %v13662_v41 = vld [vmem:[%s13867_s5 + $0xcc0] sm:$0xff] }
 0x491   : > { %18843 = vst [vmem:[#allocation17_spill] sm:$0xff] %v16477_v47 }
 0x492   : > { %18844 = vst [vmem:[#allocation19_spill] sm:$0xff] %v16479_v58  ;;  %v13327_v58 = vld [vmem:[%s13867_s5 + $0x248] sm:$0xff] }
 0x493   : > { %18845 = vst [vmem:[#allocation36_spill] sm:$0xff] %v16481_v20 }
 0x497   : > { %v16483_v35 = vpop.f32.mrf.mxu2  ;;  %v16485_v60 = vpop.f32.mrf.mxu3 }
 0x498   : > { %18846 = vst [vmem:[#allocation15_spill] sm:$0xff] %v16483_v35  ;;  %v16489_v11 = vpop.f32.mrf.mxu0  ;;  %v16491_v29 = vpop.f32.mrf.mxu1 }
 0x499   : > { %18847 = vst [vmem:[#allocation22_spill] sm:$0xff] %v16485_v60 }
 0x49a   : > { %18848 = vst [vmem:[#allocation29_spill] sm:$0xff] %v16489_v11 }
 0x49b   : > { %18849 = vst [vmem:[#allocation24_spill] sm:$0xff] %v16491_v29  ;;  %10690 = vmatmul.msk.bf16.gmra.mxu0 %vm1022_vm2, %v13326_v9  ;;  %11474 = vmatmul.msk.bf16.gmra.mxu1 %vm1022_vm2, %v13438_v31  ;;  %v13439_v9 = vld [vmem:[%s13867_s5 + $0x5c8] sm:$0xff] }
 0x49c   : > { %12314 = vmatmul.msk.bf16.gmra.mxu2 %vm1022_vm2, %v13550_v14  ;;  %13154 = vmatmul.msk.bf16.gmra.mxu3 %vm1022_vm2, %v13662_v41  ;;  %v13551_v41 = vld [vmem:[%s13867_s5 + $0x948] sm:$0xff] }
 0x49f   : > { %v16499_v60 = vpop.f32.mrf.mxu2  ;;  %v16501_v47 = vpop.f32.mrf.mxu3 }
 0x4a0   : > { %18850 = vst [vmem:[#allocation26_spill] sm:$0xff] %v16499_v60  ;;  %v16503_v35 = vpop.f32.mrf.mxu0  ;;  %v16505_v11 = vpop.f32.mrf.mxu1  ;;  %v13663_v60 = vld [vmem:[%s13867_s5 + $0xcc8] sm:$0xff] }
 0x4a1   : > { %18851 = vst [vmem:[#allocation25_spill] sm:$0xff] %v16501_v47 }
 0x4a2   : > { %18852 = vst [vmem:[#allocation27_spill] sm:$0xff] %v16503_v35  ;;  %v13328_v35 = vld [vmem:[%s13867_s5 + $0x250] sm:$0xff] }
 0x4a3   : > { %18853 = vst [vmem:[#allocation44_spill] sm:$0xff] %v16505_v11 }
 0x4a7   : > { %v16507_v29 = vpop.f32.mrf.mxu2  ;;  %v16509_v20 = vpop.f32.mrf.mxu3 }
 0x4a8   : > { %18854 = vst [vmem:[#allocation23_spill] sm:$0xff] %v16507_v29  ;;  %v16513_v31 = vpop.f32.mrf.mxu0  ;;  %v16515_v14 = vpop.f32.mrf.mxu1 }
 0x4a9   : > { %18855 = vst [vmem:[#allocation30_spill] sm:$0xff] %v16509_v20 }
 0x4aa   : > { %18856 = vst [vmem:[#allocation37_spill] sm:$0xff] %v16513_v31 }
 0x4ab   : > { %18857 = vst [vmem:[#allocation32_spill] sm:$0xff] %v16515_v14  ;;  %10691 = vmatmul.msk.bf16.gmra.mxu0 %vm1022_vm2, %v13327_v58  ;;  %11475 = vmatmul.msk.bf16.gmra.mxu1 %vm1022_vm2, %v13439_v9  ;;  %v13440_v58 = vld [vmem:[%s13867_s5 + $0x5d0] sm:$0xff] }
 0x4ac   : > { %12315 = vmatmul.msk.bf16.gmra.mxu2 %vm1022_vm2, %v13551_v41  ;;  %13155 = vmatmul.msk.bf16.gmra.mxu3 %vm1022_vm2, %v13663_v60  ;;  %v13552_v60 = vld [vmem:[%s13867_s5 + $0x950] sm:$0xff] }
 0x4af   : > { %v16523_v20 = vpop.f32.mrf.mxu2  ;;  %v16525_v47 = vpop.f32.mrf.mxu3 }
 0x4b0   : > { %18858 = vst [vmem:[#allocation34_spill] sm:$0xff] %v16523_v20  ;;  %v16527_v29 = vpop.f32.mrf.mxu0  ;;  %v16529_v31 = vpop.f32.mrf.mxu1  ;;  %v13664_v20 = vld [vmem:[%s13867_s5 + $0xcd0] sm:$0xff] }
 0x4b1   : > { %18859 = vst [vmem:[#allocation33_spill] sm:$0xff] %v16525_v47 }
 0x4b2   : > { %18860 = vst [vmem:[#allocation35_spill] sm:$0xff] %v16527_v29  ;;  %v13329_v29 = vld [vmem:[%s13867_s5 + $0x258] sm:$0xff] }
 0x4b3   : > { %18861 = vst [vmem:[#allocation52_spill] sm:$0xff] %v16529_v31 }
 0x4b7   : > { %v16531_v14 = vpop.f32.mrf.mxu2  ;;  %v16533_v11 = vpop.f32.mrf.mxu3 }
 0x4b8   : > { %18862 = vst [vmem:[#allocation31_spill] sm:$0xff] %v16531_v14  ;;  %v16537_v9 = vpop.f32.mrf.mxu0  ;;  %v16539_v41 = vpop.f32.mrf.mxu1 }
 0x4b9   : > { %18863 = vst [vmem:[#allocation38_spill] sm:$0xff] %v16533_v11 }
 0x4ba   : > { %18864 = vst [vmem:[#allocation45_spill] sm:$0xff] %v16537_v9 }
 0x4bb   : > { %18865 = vst [vmem:[#allocation40_spill] sm:$0xff] %v16539_v41  ;;  %10692 = vmatmul.msk.bf16.gmra.mxu0 %vm1022_vm2, %v13328_v35  ;;  %11476 = vmatmul.msk.bf16.gmra.mxu1 %vm1022_vm2, %v13440_v58  ;;  %v13441_v35 = vld [vmem:[%s13867_s5 + $0x5d8] sm:$0xff] }
 0x4bc   : > { %12316 = vmatmul.msk.bf16.gmra.mxu2 %vm1022_vm2, %v13552_v60  ;;  %13156 = vmatmul.msk.bf16.gmra.mxu3 %vm1022_vm2, %v13664_v20  ;;  %v13553_v20 = vld [vmem:[%s13867_s5 + $0x958] sm:$0xff] }
 0x4bf   : > { %v16547_v11 = vpop.f32.mrf.mxu2  ;;  %v16549_v47 = vpop.f32.mrf.mxu3 }
 0x4c0   : > { %18866 = vst [vmem:[#allocation42_spill] sm:$0xff] %v16547_v11  ;;  %v16551_v14 = vpop.f32.mrf.mxu0  ;;  %v16553_v9 = vpop.f32.mrf.mxu1  ;;  %v13665_v11 = vld [vmem:[%s13867_s5 + $0xcd8] sm:$0xff] }
 0x4c1   : > { %18867 = vst [vmem:[#allocation41_spill] sm:$0xff] %v16549_v47 }
 0x4c2   : > { %18868 = vst [vmem:[#allocation43_spill] sm:$0xff] %v16551_v14  ;;  %v13330_v14 = vld [vmem:[%s13867_s5 + $0x260] sm:$0xff] }
 0x4c3   : > { %18869 = vst [vmem:[#allocation60_spill] sm:$0xff] %v16553_v9 }
 0x4c7   : > { %v16555_v41 = vpop.f32.mrf.mxu2  ;;  %v16557_v31 = vpop.f32.mrf.mxu3 }
 0x4c8   : > { %18870 = vst [vmem:[#allocation39_spill] sm:$0xff] %v16555_v41  ;;  %v16561_v58 = vpop.f32.mrf.mxu0  ;;  %v16563_v60 = vpop.f32.mrf.mxu1 }
 0x4c9   : > { %18871 = vst [vmem:[#allocation46_spill] sm:$0xff] %v16557_v31 }
 0x4ca   : > { %18872 = vst [vmem:[#allocation53_spill] sm:$0xff] %v16561_v58 }
 0x4cb   : > { %18873 = vst [vmem:[#allocation48_spill] sm:$0xff] %v16563_v60  ;;  %10693 = vmatmul.msk.bf16.gmra.mxu0 %vm1022_vm2, %v13329_v29  ;;  %11477 = vmatmul.msk.bf16.gmra.mxu1 %vm1022_vm2, %v13441_v35  ;;  %v13442_v29 = vld [vmem:[%s13867_s5 + $0x5e0] sm:$0xff] }
 0x4cc   : > { %12317 = vmatmul.msk.bf16.gmra.mxu2 %vm1022_vm2, %v13553_v20  ;;  %13157 = vmatmul.msk.bf16.gmra.mxu3 %vm1022_vm2, %v13665_v11  ;;  %v13554_v11 = vld [vmem:[%s13867_s5 + $0x960] sm:$0xff] }
 0x4cf   : > { %v16571_v31 = vpop.f32.mrf.mxu2  ;;  %v16573_v47 = vpop.f32.mrf.mxu3 }
 0x4d0   : > { %18874 = vst [vmem:[#allocation50_spill] sm:$0xff] %v16571_v31  ;;  %v16575_v41 = vpop.f32.mrf.mxu0  ;;  %v16577_v58 = vpop.f32.mrf.mxu1  ;;  %v13666_v31 = vld [vmem:[%s13867_s5 + $0xce0] sm:$0xff] }
 0x4d1   : > { %18875 = vst [vmem:[#allocation49_spill] sm:$0xff] %v16573_v47 }
 0x4d2   : > { %18876 = vst [vmem:[#allocation51_spill] sm:$0xff] %v16575_v41  ;;  %v13331_v41 = vld [vmem:[%s13867_s5 + $0x268] sm:$0xff] }
 0x4d3   : > { %18877 = vst [vmem:[#allocation68_spill] sm:$0xff] %v16577_v58 }
 0x4d7   : > { %v16579_v60 = vpop.f32.mrf.mxu2  ;;  %v16581_v9 = vpop.f32.mrf.mxu3 }
 0x4d8   : > { %18878 = vst [vmem:[#allocation47_spill] sm:$0xff] %v16579_v60  ;;  %v16585_v35 = vpop.f32.mrf.mxu0  ;;  %v16587_v20 = vpop.f32.mrf.mxu1 }
 0x4d9   : > { %18879 = vst [vmem:[#allocation54_spill] sm:$0xff] %v16581_v9 }
 0x4da   : > { %18880 = vst [vmem:[#allocation61_spill] sm:$0xff] %v16585_v35 }
 0x4db   : > { %18881 = vst [vmem:[#allocation56_spill] sm:$0xff] %v16587_v20  ;;  %10694 = vmatmul.msk.bf16.gmra.mxu0 %vm1022_vm2, %v13330_v14  ;;  %11478 = vmatmul.msk.bf16.gmra.mxu1 %vm1022_vm2, %v13442_v29  ;;  %v13443_v14 = vld [vmem:[%s13867_s5 + $0x5e8] sm:$0xff] }
 0x4dc   : > { %12318 = vmatmul.msk.bf16.gmra.mxu2 %vm1022_vm2, %v13554_v11  ;;  %13158 = vmatmul.msk.bf16.gmra.mxu3 %vm1022_vm2, %v13666_v31  ;;  %v13555_v31 = vld [vmem:[%s13867_s5 + $0x968] sm:$0xff] }
 0x4df   : > { %v16595_v9 = vpop.f32.mrf.mxu2  ;;  %v16597_v47 = vpop.f32.mrf.mxu3 }
 0x4e0   : > { %18882 = vst [vmem:[#allocation58_spill] sm:$0xff] %v16595_v9  ;;  %v16599_v60 = vpop.f32.mrf.mxu0  ;;  %v16601_v35 = vpop.f32.mrf.mxu1  ;;  %v13667_v9 = vld [vmem:[%s13867_s5 + $0xce8] sm:$0xff] }
 0x4e1   : > { %18883 = vst [vmem:[#allocation57_spill] sm:$0xff] %v16597_v47 }
 0x4e2   : > { %18884 = vst [vmem:[#allocation69_spill] sm:$0xff] %v16599_v60  ;;  %v13444_v60 = vld [vmem:[%s13867_s5 + $0x5f0] sm:$0xff] }
 0x4e3   : > { %18885 = vst [vmem:[#allocation70_spill] sm:$0xff] %v16601_v35 }
 0x4e7   : > { %v16603_v20 = vpop.f32.mrf.mxu2  ;;  %v16605_v58 = vpop.f32.mrf.mxu3 }
 0x4e8   : > { %18886 = vst [vmem:[#allocation55_spill] sm:$0xff] %v16603_v20  ;;  %v16609_v29 = vpop.f32.mrf.mxu0  ;;  %v16611_v11 = vpop.f32.mrf.mxu1 }
 0x4e9   : > { %18887 = vst [vmem:[#allocation62_spill] sm:$0xff] %v16605_v58 }
 0x4ea   : > { %18888 = vst [vmem:[#allocation59_spill] sm:$0xff] %v16609_v29 }
 0x4eb   : > { %18889 = vst [vmem:[#allocation67_spill] sm:$0xff] %v16611_v11  ;;  %10695 = vmatmul.msk.bf16.gmra.mxu0 %vm1022_vm2, %v13331_v41  ;;  %11479 = vmatmul.msk.bf16.gmra.mxu1 %vm1022_vm2, %v13443_v14  ;;  %v1656_v11 = vadd.f32 %v16294_v26, %v16248_v5  ;;  %v13332_v14 = vld [vmem:[%s13867_s5 + $0x270] sm:$0xff] }
 0x4ec   : > { %12319 = vmatmul.msk.bf16.gmra.mxu2 %vm1022_vm2, %v13555_v31  ;;  %13159 = vmatmul.msk.bf16.gmra.mxu3 %vm1022_vm2, %v13667_v9  ;;  %v13556_v9 = vld [vmem:[%s13867_s5 + $0x970] sm:$0xff] }
 0x4ef   : > { %v16619_v58 = vpop.f32.mrf.mxu2  ;;  %v16621_v47 = vpop.f32.mrf.mxu3 }
 0x4f0   : > { %18890 = vst [vmem:[#allocation64_spill] sm:$0xff] %v16619_v58  ;;  %v16623_v20 = vpop.f32.mrf.mxu0  ;;  %v16625_v29 = vpop.f32.mrf.mxu1 }
 0x4f1   : > { %18891 = vst [vmem:[#allocation65_spill] sm:$0xff] %v16621_v47  ;;  %v2047_v47 = vmax.f32 %v1656_v11, 0.0 }
 0x4f2   : > { %18892 = vst [vmem:[#allocation63_spill] sm:$0xff] %v16623_v20 }
 0x4f3   : > { %18893 = vst [vmem:[#allocation71_spill] sm:$0xff] %v16625_v29 }
 0x4f7   : > { %v16629_v35 = vpop.f32.mrf.mxu2  ;;  %v16631_v41 = vpop.f32.mrf.mxu3 }
 0x4f8   : > { %18894 = vst [vmem:[#allocation66_spill] sm:$0xff] %v16629_v35  ;;  %v1725_v31 = vpop.f32.mrf.mxu0  ;;  %v4261_v49 = vpop.f32.mrf.mxu1 }
 0x4f9   : > { %18895 = vst [vmem:[#allocation72_spill] sm:$0xff] %v16631_v41  ;;  %v1726_v58 = vadd.f32 %v16294_v26, %v1725_v31  ;;  %v1658_v41 = vadd.f32 %v16294_v26, %v16278_v52 }
 0x4fb   : > { %v2075_v13 = vmax.f32 %v1726_v58, 0.0  ;;  %10696 = vmatmul.msk.bf16.gmra.mxu0 %vm1022_vm2, %v13332_v14  ;;  %11480 = vmatmul.msk.bf16.gmra.mxu1 %vm1022_vm2, %v13444_v60  ;;  %v2048_v60 = vmax.f32 %v1658_v41, 0.0  ;;  %v13445_v41 = vld [vmem:[%s13867_s5 + $0x5f8] sm:$0xff] }
 0x4fc   : > { %12320 = vmatmul.msk.bf16.gmra.mxu2 %vm1022_vm2, %v13556_v9  ;;  %13160 = vmatmul.msk.bf16.gmra.mxu3 %vm1022_vm2, %v13668_v56 }
 0x4fd   : > { %v2215_v5 = vmax.f32 %v2047_v47, %v2075_v13  ;;  %v4262_v13 = vadd.f32 %v16294_v26, %v4261_v49  ;;  %v4192_v47 = vadd.f32 %v16294_v26, %v16250_v57 }
 0x4ff   : > { %2328 = vst.msk [vmem:[#allocation2 + $0x1c0] sm:$0xff] %vm2271_vm3, %v2215_v5  ;;  %v6684_v35 = vpop.f32.mrf.mxu2  ;;  %v16645_v31 = vpop.f32.mrf.mxu3  ;;  %v1661_v5 = vadd.f32 %v16294_v26, %v16306_v15  ;;  %v4611_v54 = vmax.f32 %v4262_v13, 0.0  ;;  %v4583_v1 = vmax.f32 %v4192_v47, 0.0 }
 0x500   : > { %v1727_v58 = vpop.f32.mrf.mxu0  ;;  %v4263_v11 = vpop.f32.mrf.mxu1  ;;  %v6685_v61 = vadd.f32 %v16294_v26, %v6684_v35 }
 0x501   : > { %v1728_v14 = vadd.f32 %v16294_v26, %v1727_v58  ;;  %v4264_v52 = vadd.f32 %v16294_v26, %v4263_v11  ;;  %v13333_v58 = vld [vmem:[%s13867_s5 + $0x278] sm:$0xff]  ;;  %v2049_v15 = vmax.f32 %v1661_v5, 0.0 }
 0x502   : > { %v13669_v11 = vld [vmem:[%s13867_s5 + $0xcf8] sm:$0xff]  ;;  %v7034_v35 = vmax.f32 %v6685_v61, 0.0  ;;  %v9108_v61 = vadd.f32 %v16294_v26, %v16645_v31 }
 0x503   : > { %v2076_v9 = vmax.f32 %v1728_v14, 0.0  ;;  %v4194_v14 = vadd.f32 %v16294_v26, %v16280_v2  ;;  %v4612_v12 = vmax.f32 %v4264_v52, 0.0  ;;  %v4751_v2 = vmax.f32 %v4583_v1, %v4611_v54 }
 0x504   : > { %v1663_v52 = vadd.f32 %v16294_v26, %v16329_v18  ;;  %v6615_v1 = vadd.f32 %v16294_v26, %v16271_v33  ;;  %v6617_v18 = vadd.f32 %v16294_v26, %v16298_v34 }
 0x505   : > { %v2216_v56 = vmax.f32 %v2048_v60, %v2076_v9  ;;  %v13557_v9 = vld [vmem:[%s13867_s5 + $0x978] sm:$0xff] }
 0x506   : > { %v7006_v33 = vmax.f32 %v6615_v1, 0.0  ;;  %v4199_v1 = vadd.f32 %v16294_v26, %v16331_v23  ;;  %v9040_v23 = vadd.f32 %v16294_v26, %v16300_v40 }
 0x507   : > { %2329 = vst.msk [vmem:[#allocation2 + $0x1c8] sm:$0xff] %vm2271_vm3, %v2216_v56  ;;  %v6686_v29 = vpop.f32.mrf.mxu2  ;;  %v16655_v20 = vpop.f32.mrf.mxu3  ;;  %v4584_v56 = vmax.f32 %v4194_v14, 0.0 }
 0x508   : > { %v1730_v49 = vpop.f32.mrf.mxu0  ;;  %v4266_v60 = vpop.f32.mrf.mxu1  ;;  %v6687_v5 = vadd.f32 %v16294_v26, %v6686_v29  ;;  %v2050_v29 = vmax.f32 %v1663_v52, 0.0 }
 0x509   : > { %v1731_v57 = vadd.f32 %v16294_v26, %v1730_v49  ;;  %v4752_v49 = vmax.f32 %v4584_v56, %v4612_v12  ;;  %v7174_v56 = vmax.f32 %v7006_v33, %v7034_v35 }
 0x50a   : > { %v7035_v14 = vmax.f32 %v6687_v5, 0.0  ;;  %v13446_v5 = vld [vmem:[%s13867_s5 + $0x600] sm:$0xff] }
 0x50b   : > { %v2077_v17 = vmax.f32 %v1731_v57, 0.0  ;;  %10697 = vmatmul.msk.bf16.gmra.mxu0 %vm1022_vm2, %v13333_v58  ;;  %11481 = vmatmul.msk.bf16.gmra.mxu1 %vm1022_vm2, %v13445_v41  ;;  %v4267_v57 = vadd.f32 %v16294_v26, %v4266_v60 }
 0x50c   : > { %12321 = vmatmul.msk.bf16.gmra.mxu2 %vm1022_vm2, %v13557_v9  ;;  %13161 = vmatmul.msk.bf16.gmra.mxu3 %vm1022_vm2, %v13669_v11  ;;  %v7007_v11 = vmax.f32 %v6617_v18, 0.0  ;;  %v13558_v18 = vld [vmem:[%s13867_s5 + $0x980] sm:$0xff] }
 0x50d   : > { %v2217_v28 = vmax.f32 %v2049_v15, %v2077_v17  ;;  %v4613_v35 = vmax.f32 %v4267_v57, 0.0 }
 0x50e   : > { %v2440_v13 = vld [vmem:[#allocation2 + $0x1c0] ss:$2 sm:$0xff]  ;;  %v2552_v3 = vld [vmem:[#allocation2 + $0x1c1] ss:$2 sm:$0xff]  ;;  %v7175_v52 = vmax.f32 %v7007_v11, %v7035_v14  ;;  %v1666_v14 = vadd.f32 %v16294_v26, %v16343_v48  ;;  %v9457_v11 = vmax.f32 %v9108_v61, 0.0  ;;  %v9430_v48 = vmax.f32 %v9040_v23, 0.0 }
 0x50f   : > { %v2635_v47 = vmax.f32 %v2440_v13, %v2552_v3  ;;  %4863 = vst.msk [vmem:[#allocation2 + $0x1c0] sm:$0xff] %vm2271_vm3, %v4751_v2  ;;  %v6689_v58 = vpop.f32.mrf.mxu2  ;;  %v16673_v41 = vpop.f32.mrf.mxu3  ;;  %v13334_v2 = vld [vmem:[%s13867_s5 + $0x280] sm:$0xff] }
 0x510   : > { %4864 = vst.msk [vmem:[#allocation2 + $0x1c8] sm:$0xff] %vm2271_vm3, %v4752_v49  ;;  %v1732_v54 = vpop.f32.mrf.mxu0  ;;  %v4268_v17 = vpop.f32.mrf.mxu1 }
 0x511   : > { %v2691_v12 = vpack.c.bf16 %v2635_v47, %v2635_v47  ;;  %2330 = vst.msk [vmem:[#allocation2 + $0x1d0] sm:$0xff] %vm2271_vm3, %v2217_v28  ;;  %v1733_v3 = vadd.f32 %v16294_v26, %v1732_v54  ;;  %v4269_v34 = vadd.f32 %v16294_v26, %v4268_v17  ;;  %v4197_v28 = vadd.f32 %v16294_v26, %v16308_v30 }
 0x512   : > { %v9110_v30 = vadd.f32 %v16294_v26, %v16655_v20 }
 0x513   : > { %2751 = vst.msk [vmem:[%s14327_s20 + $0x70] sm:$0xf] %vm2722_vm4, %v2691_v12  ;;  %v2078_v9 = vmax.f32 %v1733_v3, 0.0  ;;  %v13670_v12 = vld [vmem:[%s13867_s5 + $0xd00] sm:$0xff]  ;;  %v9038_v3 = vadd.f32 %v16294_v26, %v16273_v19  ;;  %v4585_v33 = vmax.f32 %v4197_v28, 0.0  ;;  %v4586_v19 = vmax.f32 %v4199_v1, 0.0 }
 0x514   : > { %v9458_v57 = vmax.f32 %v9110_v30, 0.0 }
 0x515   : > { %v2218_v15 = vmax.f32 %v2050_v29, %v2078_v9  ;;  %v4614_v9 = vmax.f32 %v4269_v34, 0.0  ;;  %v9429_v40 = vmax.f32 %v9038_v3, 0.0  ;;  %v6690_v34 = vadd.f32 %v16294_v26, %v6689_v58 }
 0x517   : > { %v4947_v13 = vld [vmem:[#allocation2 + $0x1c0] ss:$2 sm:$0xff]  ;;  %v5003_v49 = vld [vmem:[#allocation2 + $0x1c1] ss:$2 sm:$0xff]  ;;  %2331 = vst.msk [vmem:[#allocation2 + $0x1d8] sm:$0xff] %vm2271_vm3, %v2218_v15  ;;  %v6691_v47 = vpop.f32.mrf.mxu2  ;;  %v16692_v60 = vpop.f32.mrf.mxu3 }
 0x518   : > { %v5059_v54 = vmax.f32 %v4947_v13, %v5003_v49  ;;  %7286 = vst.msk [vmem:[#allocation2 + $0x1c0] sm:$0xff] %vm2271_vm3, %v7174_v56  ;;  %v1735_v17 = vpop.f32.mrf.mxu0  ;;  %v4271_v31 = vpop.f32.mrf.mxu1  ;;  %v4753_v56 = vmax.f32 %v4585_v33, %v4613_v35  ;;  %v2051_v13 = vmax.f32 %v1666_v14, 0.0  ;;  %v1668_v49 = vadd.f32 %v16294_v26, %v16359_v37 }
 0x519   : > { %7287 = vst.msk [vmem:[#allocation2 + $0x1c8] sm:$0xff] %vm2271_vm3, %v7175_v52  ;;  %v1736_v29 = vadd.f32 %v16294_v26, %v1735_v17  ;;  %v9597_v52 = vmax.f32 %v9429_v40, %v9457_v11  ;;  %v6692_v1 = vadd.f32 %v16294_v26, %v6691_v47  ;;  %v6620_v17 = vadd.f32 %v16294_v26, %v16325_v24 }
 0x51a   : > { %v5115_v20 = vpack.c.bf16 %v5059_v54, %v5059_v54  ;;  %v6622_v47 = vadd.f32 %v16294_v26, %v16337_v62  ;;  %v7036_v24 = vmax.f32 %v6690_v34, 0.0  ;;  %v9113_v34 = vadd.f32 %v16294_v26, %v16673_v41 }
 0x51b   : > { %10698 = vmatmul.msk.bf16.gmra.mxu0 %vm1022_vm2, %v13334_v2  ;;  %11482 = vmatmul.msk.bf16.gmra.mxu1 %vm1022_vm2, %v13446_v5  ;;  %v2079_v15 = vmax.f32 %v1736_v29, 0.0  ;;  %v4754_v2 = vmax.f32 %v4586_v19, %v4614_v9  ;;  %v7037_v33 = vmax.f32 %v6692_v1, 0.0  ;;  %v7008_v19 = vmax.f32 %v6620_v17, 0.0 }
 0x51c   : > { %11542 = vst.msk [vmem:[%s14327_s20 + $0x150] sm:$0xf] %vm2722_vm4, %v5115_v20  ;;  %12322 = vmatmul.msk.bf16.gmra.mxu2 %vm1022_vm2, %v13558_v18  ;;  %13162 = vmatmul.msk.bf16.gmra.mxu3 %vm1022_vm2, %v13670_v12  ;;  %v9598_v12 = vmax.f32 %v9430_v48, %v9458_v57  ;;  %v2052_v20 = vmax.f32 %v1668_v49, 0.0  ;;  %v7009_v62 = vmax.f32 %v6622_v47, 0.0  ;;  %v4272_v57 = vadd.f32 %v16294_v26, %v4271_v31  ;;  %v13335_v48 = vld [vmem:[%s13867_s5 + $0x288] sm:$0xff] }
 0x51d   : > { %v2219_v37 = vmax.f32 %v2051_v13, %v2079_v15  ;;  %v7176_v40 = vmax.f32 %v7008_v19, %v7036_v24  ;;  %v4202_v13 = vadd.f32 %v16294_v26, %v16345_v55  ;;  %v4204_v55 = vadd.f32 %v16294_v26, %v16361_v38 }
 0x51e   : > { %v2442_v28 = vld [vmem:[#allocation2 + $0x1d0] ss:$2 sm:$0xff]  ;;  %v2554_v61 = vld [vmem:[#allocation2 + $0x1d1] ss:$2 sm:$0xff]  ;;  %v9115_v41 = vadd.f32 %v16294_v26, %v16692_v60  ;;  %v9459_v24 = vmax.f32 %v9113_v34, 0.0 }
 0x51f   : > { %v2636_v5 = vmax.f32 %v2442_v28, %v2554_v61  ;;  %4865 = vst.msk [vmem:[#allocation2 + $0x1d0] sm:$0xff] %vm2271_vm3, %v4753_v56  ;;  %v16721_v54 = vpop.f32.mrf.mxu2  ;;  %v16723_v30 = vpop.f32.mrf.mxu3 }
 0x520   : > { %v7370_v58 = vld [vmem:[#allocation2 + $0x1c0] ss:$2 sm:$0xff]  ;;  %v7426_v18 = vld [vmem:[#allocation2 + $0x1c1] ss:$2 sm:$0xff]  ;;  %4866 = vst.msk [vmem:[#allocation2 + $0x1d8] sm:$0xff] %vm2271_vm3, %v4754_v2  ;;  %v1737_v3 = vpop.f32.mrf.mxu0  ;;  %v4273_v35 = vpop.f32.mrf.mxu1  ;;  %v7177_v2 = vmax.f32 %v7009_v62, %v7037_v33 }
 0x521   : > { %v7482_v29 = vmax.f32 %v7370_v58, %v7426_v18  ;;  %9709 = vst.msk [vmem:[#allocation2 + $0x1c0] sm:$0xff] %vm2271_vm3, %v9597_v52  ;;  %v2692_v23 = vpack.c.bf16 %v2636_v5, %v2636_v5  ;;  %v1738_v14 = vadd.f32 %v16294_v26, %v1737_v3  ;;  %v4274_v56 = vadd.f32 %v16294_v26, %v4273_v35  ;;  %v13447_v52 = vld [vmem:[%s13867_s5 + $0x608] sm:$0xff] }
 0x522   : > { %9710 = vst.msk [vmem:[#allocation2 + $0x1c8] sm:$0xff] %vm2271_vm3, %v9598_v12  ;;  %v9043_v5 = vadd.f32 %v16294_v26, %v16327_v21  ;;  %v13559_v18 = vld [vmem:[%s13867_s5 + $0x988] sm:$0xff]  ;;  %v1671_v21 = vadd.f32 %v16294_v26, %v16369_v53  ;;  %v4615_v35 = vmax.f32 %v4272_v57, 0.0  ;;  %v9460_v53 = vmax.f32 %v9115_v41, 0.0 }
 0x523   : > { %v7538_v9 = vpack.c.bf16 %v7482_v29, %v7482_v29  ;;  %2752 = vst.msk [vmem:[%s14327_s20 + $0x74] sm:$0xf] %vm2722_vm4, %v2692_v23  ;;  %v2080_v11 = vmax.f32 %v1738_v14, 0.0  ;;  %v13671_v12 = vld [vmem:[%s13867_s5 + $0xd08] sm:$0xff]  ;;  %v4616_v23 = vmax.f32 %v4274_v56, 0.0  ;;  %v4587_v14 = vmax.f32 %v4202_v13, 0.0 }
 0x524   : > { %2332 = vst.msk [vmem:[#allocation2 + $0x1e0] sm:$0xff] %vm2271_vm3, %v2219_v37  ;;  %v9045_v37 = vadd.f32 %v16294_v26, %v16339_v46  ;;  %v4588_v46 = vmax.f32 %v4204_v55, 0.0  ;;  %v9431_v33 = vmax.f32 %v9043_v5, 0.0  ;;  %v2053_v19 = vmax.f32 %v1671_v21, 0.0 }
 0x525   : > { %12382 = vst.msk [vmem:[%s14327_s20 + $0x230] sm:$0xf] %vm2722_vm4, %v7538_v9  ;;  %v2220_v15 = vmax.f32 %v2052_v20, %v2080_v11  ;;  %v4755_v62 = vmax.f32 %v4587_v14, %v4615_v35  ;;  %v6695_v57 = vadd.f32 %v16294_v26, %v16721_v54  ;;  %v13336_v14 = vld [vmem:[%s13867_s5 + $0x290] sm:$0xff] }
 0x526   : > { %v9432_v11 = vmax.f32 %v9045_v37, 0.0  ;;  %v4756_v56 = vmax.f32 %v4588_v46, %v4616_v23  ;;  %v9599_v13 = vmax.f32 %v9431_v33, %v9459_v24  ;;  %v4207_v24 = vadd.f32 %v16294_v26, %v16371_v22 }
 0x527   : > { %v4948_v28 = vld [vmem:[#allocation2 + $0x1d0] ss:$2 sm:$0xff]  ;;  %v5004_v61 = vld [vmem:[#allocation2 + $0x1d1] ss:$2 sm:$0xff]  ;;  %2333 = vst.msk [vmem:[#allocation2 + $0x1e8] sm:$0xff] %vm2271_vm3, %v2220_v15  ;;  %v6696_v49 = vpop.f32.mrf.mxu2  ;;  %v16746_v31 = vpop.f32.mrf.mxu3  ;;  %v9118_v46 = vadd.f32 %v16294_v26, %v16723_v30  ;;  %v4209_v22 = vadd.f32 %v16294_v26, %v16385_v42 }
 0x528   : > { %v5060_v1 = vmax.f32 %v4948_v28, %v5004_v61  ;;  %7288 = vst.msk [vmem:[#allocation2 + $0x1d0] sm:$0xff] %vm2271_vm3, %v7176_v40  ;;  %v1740_v17 = vpop.f32.mrf.mxu0  ;;  %v16756_v58 = vpop.f32.mrf.mxu1  ;;  %v6697_v28 = vadd.f32 %v16294_v26, %v6696_v49  ;;  %v9600_v55 = vmax.f32 %v9432_v11, %v9460_v53  ;;  %v6627_v49 = vadd.f32 %v16294_v26, %v16363_v39  ;;  %v13448_v11 = vld [vmem:[%s13867_s5 + $0x610] sm:$0xff] }
 0x529   : > { %v9793_v3 = vld [vmem:[#allocation2 + $0x1c0] ss:$2 sm:$0xff]  ;;  %v9849_v38 = vld [vmem:[#allocation2 + $0x1c1] ss:$2 sm:$0xff]  ;;  %7289 = vst.msk [vmem:[#allocation2 + $0x1d8] sm:$0xff] %vm2271_vm3, %v7177_v2  ;;  %v1741_v47 = vadd.f32 %v16294_v26, %v1740_v17  ;;  %v9120_v30 = vadd.f32 %v16294_v26, %v16746_v31 }
 0x52a   : > { %v9905_v60 = vmax.f32 %v9793_v3, %v9849_v38  ;;  %v5116_v29 = vpack.c.bf16 %v5060_v1, %v5060_v1  ;;  %v7039_v3 = vmax.f32 %v6697_v28, 0.0  ;;  %v7011_v39 = vmax.f32 %v6627_v49, 0.0  ;;  %v16828_v31 = vld [vmem:[%s18546_s2] ss:$0 sm:$0xff] }
 0x52b   : > { %10699 = vmatmul.msk.bf16.gmra.mxu0 %vm1022_vm2, %v13335_v48  ;;  %11483 = vmatmul.msk.bf16.gmra.mxu1 %vm1022_vm2, %v13447_v52  ;;  %v2081_v9 = vmax.f32 %v1741_v47, 0.0  ;;  %v1673_v48 = vadd.f32 %v16294_v26, %v16383_v50  ;;  %v6625_v52 = vadd.f32 %v16294_v26, %v16355_v43  ;;  %v7038_v43 = vmax.f32 %v6695_v57, 0.0 }
 0x52c   : > { %v9961_v20 = vpack.c.bf16 %v9905_v60, %v9905_v60  ;;  %11543 = vst.msk [vmem:[%s14327_s20 + $0x154] sm:$0xf] %vm2722_vm4, %v5116_v29  ;;  %12323 = vmatmul.msk.bf16.gmra.mxu2 %vm1022_vm2, %v13559_v18  ;;  %13163 = vmatmul.msk.bf16.gmra.mxu3 %vm1022_vm2, %v13671_v12  ;;  %v4277_v47 = vadd.f32 %v16294_v26, %v16756_v58 }
 0x52d   : > { %v2221_v50 = vmax.f32 %v2053_v19, %v2081_v9  ;;  %v2054_v37 = vmax.f32 %v1673_v48, 0.0  ;;  %v7010_v35 = vmax.f32 %v6625_v52, 0.0  ;;  %v7179_v9 = vmax.f32 %v7011_v39, %v7039_v3 }
 0x52e   : > { %13222 = vst.msk [vmem:[%s14327_s20 + $0x310] sm:$0xf] %vm2722_vm4, %v9961_v20  ;;  %v2444_v15 = vld [vmem:[#allocation2 + $0x1e0] ss:$2 sm:$0xff]  ;;  %v2556_v40 = vld [vmem:[#allocation2 + $0x1e1] ss:$2 sm:$0xff]  ;;  %v9048_v19 = vadd.f32 %v16294_v26, %v16357_v10  ;;  %v9050_v48 = vadd.f32 %v16294_v26, %v16365_v59  ;;  %v1676_v10 = vadd.f32 %v16294_v26, %v16393_v4  ;;  %v1678_v3 = vadd.f32 %v16828_v31, %v16407_v44 }
 0x52f   : > { %v2637_v34 = vmax.f32 %v2444_v15, %v2556_v40  ;;  %4867 = vst.msk [vmem:[#allocation2 + $0x1e0] sm:$0xff] %vm2271_vm3, %v4755_v62  ;;  %v16780_v61 = vpop.f32.mrf.mxu2  ;;  %v16782_v2 = vpop.f32.mrf.mxu3  ;;  %v7178_v29 = vmax.f32 %v7010_v35, %v7038_v43  ;;  %v13560_v40 = vld [vmem:[%s13867_s5 + $0x990] sm:$0xff]  ;;  %v4589_v59 = vmax.f32 %v4207_v24, 0.0 }
 0x530   : > { %v7371_v54 = vld [vmem:[#allocation2 + $0x1d0] ss:$2 sm:$0xff]  ;;  %v7427_v5 = vld [vmem:[#allocation2 + $0x1d1] ss:$2 sm:$0xff]  ;;  %4868 = vst.msk [vmem:[#allocation2 + $0x1e8] sm:$0xff] %vm2271_vm3, %v4756_v56  ;;  %v1742_v1 = vpop.f32.mrf.mxu0  ;;  %v4278_v41 = vpop.f32.mrf.mxu1  ;;  %v9434_v49 = vmax.f32 %v9050_v48, 0.0 }
 0x531   : > { %v7483_v17 = vmax.f32 %v7371_v54, %v7427_v5  ;;  %9711 = vst.msk [vmem:[#allocation2 + $0x1d0] sm:$0xff] %vm2271_vm3, %v9599_v13  ;;  %v2693_v18 = vpack.c.bf16 %v2637_v34, %v2637_v34  ;;  %v1743_v12 = vadd.f32 %v16294_v26, %v1742_v1  ;;  %v4279_v23 = vadd.f32 %v16294_v26, %v4278_v41  ;;  %v13672_v56 = vld [vmem:[%s13867_s5 + $0xd10] sm:$0xff] }
 0x532   : > { %9712 = vst.msk [vmem:[#allocation2 + $0x1d8] sm:$0xff] %vm2271_vm3, %v9600_v55  ;;  %v4617_v34 = vmax.f32 %v4277_v47, 0.0  ;;  %v9461_v55 = vmax.f32 %v9118_v46, 0.0  ;;  %v4590_v26 = vmax.f32 %v4209_v22, 0.0  ;;  %v9433_v41 = vmax.f32 %v9048_v19, 0.0 }
 0x533   : > { %v7539_v21 = vpack.c.bf16 %v7483_v17, %v7483_v17  ;;  %2753 = vst.msk [vmem:[%s14327_s20 + $0x78] sm:$0xf] %vm2722_vm4, %v2693_v18  ;;  %v2082_v38 = vmax.f32 %v1743_v12, 0.0  ;;  %v4618_v5 = vmax.f32 %v4279_v23, 0.0  ;;  %v2055_v17 = vmax.f32 %v1676_v10, 0.0  ;;  %v13337_v10 = vld [vmem:[%s13867_s5 + $0x298] sm:$0xff] }
 0x534   : > { %2334 = vst.msk [vmem:[#allocation2 + $0x1f0] sm:$0xff] %vm2271_vm3, %v2221_v50  ;;  %v9462_v50 = vmax.f32 %v9120_v30, 0.0  ;;  %v4757_v18 = vmax.f32 %v4589_v59, %v4617_v34  ;;  %v6700_v12 = vadd.f32 %v16828_v31, %v16780_v61  ;;  %v9053_v59 = vadd.f32 %v16828_v31, %v16381_v8 }
 0x535   : > { %12383 = vst.msk [vmem:[%s14327_s20 + $0x234] sm:$0xf] %vm2722_vm4, %v7539_v21  ;;  %v2222_v60 = vmax.f32 %v2054_v37, %v2082_v38  ;;  %v4758_v21 = vmax.f32 %v4590_v26, %v4618_v5  ;;  %v9601_v38 = vmax.f32 %v9433_v41, %v9461_v55  ;;  %v13449_v5 = vld [vmem:[%s13867_s5 + $0x618] sm:$0xff]  ;;  %v9055_v41 = vadd.f32 %v16828_v31, %v16389_v16 }
 0x536   : > { %v1681_v8 = vadd.f32 %v16828_v31, %v16417_v45 }
 0x537   : > { %v4949_v20 = vld [vmem:[#allocation2 + $0x1e0] ss:$2 sm:$0xff]  ;;  %v5005_v53 = vld [vmem:[#allocation2 + $0x1e1] ss:$2 sm:$0xff]  ;;  %2335 = vst.msk [vmem:[#allocation2 + $0x1f8] sm:$0xff] %vm2271_vm3, %v2222_v60  ;;  %v6701_v33 = vpop.f32.mrf.mxu2  ;;  %v16806_v58 = vpop.f32.mrf.mxu3 }
 0x538   : > { %v5061_v62 = vmax.f32 %v4949_v20, %v5005_v53  ;;  %7290 = vst.msk [vmem:[#allocation2 + $0x1e0] sm:$0xff] %vm2271_vm3, %v7178_v29  ;;  %v1745_v57 = vpop.f32.mrf.mxu0  ;;  %v16816_v15 = vpop.f32.mrf.mxu1  ;;  %v6702_v39 = vadd.f32 %v16828_v31, %v6701_v33  ;;  %v6630_v29 = vadd.f32 %v16828_v31, %v16379_v0  ;;  %v6632_v20 = vadd.f32 %v16828_v31, %v16387_v7 }
 0x539   : > { %v9794_v13 = vld [vmem:[#allocation2 + $0x1d0] ss:$2 sm:$0xff]  ;;  %v9850_v42 = vld [vmem:[#allocation2 + $0x1d1] ss:$2 sm:$0xff]  ;;  %7291 = vst.msk [vmem:[#allocation2 + $0x1e8] sm:$0xff] %vm2271_vm3, %v7179_v9  ;;  %v1746_v28 = vadd.f32 %v16828_v31, %v1745_v57  ;;  %v7040_v0 = vmax.f32 %v6700_v12, 0.0  ;;  %v4282_v57 = vadd.f32 %v16828_v31, %v16816_v15 }
 0x53a   : > { %v9906_v52 = vmax.f32 %v9794_v13, %v9850_v42  ;;  %v5117_v54 = vpack.c.bf16 %v5061_v62, %v5061_v62  ;;  %v7041_v22 = vmax.f32 %v6702_v39, 0.0  ;;  %v7012_v30 = vmax.f32 %v6630_v29, 0.0 }
 0x53b   : > { %10700 = vmatmul.msk.bf16.gmra.mxu0 %vm1022_vm2, %v13336_v14  ;;  %11484 = vmatmul.msk.bf16.gmra.mxu1 %vm1022_vm2, %v13448_v11  ;;  %v2083_v1 = vmax.f32 %v1746_v28, 0.0  ;;  %v9602_v14 = vmax.f32 %v9434_v49, %v9462_v50  ;;  %v2056_v11 = vmax.f32 %v1678_v3, 0.0  ;;  %v7013_v7 = vmax.f32 %v6632_v20, 0.0  ;;  %v13561_v50 = vld [vmem:[%s13867_s5 + $0x998] sm:$0xff] }
 0x53c   : > { %v9962_v4 = vpack.c.bf16 %v9906_v52, %v9906_v52  ;;  %11544 = vst.msk [vmem:[%s14327_s20 + $0x158] sm:$0xf] %vm2722_vm4, %v5117_v54  ;;  %12324 = vmatmul.msk.bf16.gmra.mxu2 %vm1022_vm2, %v13560_v40  ;;  %13164 = vmatmul.msk.bf16.gmra.mxu3 %vm1022_vm2, %v13672_v56  ;;  %v7180_v56 = vmax.f32 %v7012_v30, %v7040_v0  ;;  %v9436_v39 = vmax.f32 %v9055_v41, 0.0  ;;  %v2057_v29 = vmax.f32 %v1681_v8, 0.0  ;;  %v13450_v41 = vld [vmem:[%s13867_s5 + $0x620] sm:$0xff] }
 0x53d   : > { %v2223_v44 = vmax.f32 %v2055_v17, %v2083_v1  ;;  %v4212_v13 = vadd.f32 %v16828_v31, %v16395_v6  ;;  %v9123_v42 = vadd.f32 %v16828_v31, %v16782_v2  ;;  %v7181_v52 = vmax.f32 %v7013_v7, %v7041_v22  ;;  %v13673_v1 = vld [vmem:[%s13867_s5 + $0xd18] sm:$0xff] }
 0x53e   : > { %13223 = vst.msk [vmem:[%s14327_s20 + $0x314] sm:$0xf] %vm2722_vm4, %v9962_v4  ;;  %v2446_v43 = vld [vmem:[#allocation2 + $0x1f0] ss:$2 sm:$0xff]  ;;  %v2558_v37 = vld [vmem:[#allocation2 + $0x1f1] ss:$2 sm:$0xff]  ;;  %v4214_v6 = vadd.f32 %v16828_v31, %v16409_v63  ;;  %v9125_v2 = vadd.f32 %v16828_v31, %v16806_v58  ;;  %v6637_v7 = vadd.f32 %v16828_v31, %v16411_v25  ;;  %v9058_v8 = vadd.f32 %v16828_v31, %v16405_v32 }
 0x53f   : > { %v2638_v35 = vmax.f32 %v2446_v43, %v2558_v37  ;;  %4869 = vst.msk [vmem:[#allocation2 + $0x1f0] sm:$0xff] %vm2271_vm3, %v4757_v18  ;;  %v16845_v47 = vpop.f32.mrf.mxu2  ;;  %v16847_v60 = vpop.f32.mrf.mxu3  ;;  %v4619_v17 = vmax.f32 %v4282_v57, 0.0  ;;  %v4591_v37 = vmax.f32 %v4212_v13, 0.0 }
 0x540   : > { %v7372_v61 = vld [vmem:[#allocation2 + $0x1e0] ss:$2 sm:$0xff]  ;;  %v7428_v23 = vld [vmem:[#allocation2 + $0x1e1] ss:$2 sm:$0xff]  ;;  %4870 = vst.msk [vmem:[#allocation2 + $0x1f8] sm:$0xff] %vm2271_vm3, %v4758_v21  ;;  %v1747_v24 = vpop.f32.mrf.mxu0  ;;  %v4283_v46 = vpop.f32.mrf.mxu1  ;;  %v9463_v21 = vmax.f32 %v9123_v42, 0.0 }
 0x541   : > { %v7484_v53 = vmax.f32 %v7372_v61, %v7428_v23  ;;  %9713 = vst.msk [vmem:[#allocation2 + $0x1e0] sm:$0xff] %vm2271_vm3, %v9601_v38  ;;  %v2694_v9 = vpack.c.bf16 %v2638_v35, %v2638_v35  ;;  %v1748_v33 = vadd.f32 %v16828_v31, %v1747_v24  ;;  %v4284_v48 = vadd.f32 %v16828_v31, %v4283_v46 }
 0x542   : > { %9714 = vst.msk [vmem:[#allocation2 + $0x1e8] sm:$0xff] %vm2271_vm3, %v9602_v14  ;;  %v4592_v16 = vmax.f32 %v4214_v6, 0.0  ;;  %v9464_v45 = vmax.f32 %v9125_v2, 0.0  ;;  %v9435_v35 = vmax.f32 %v9053_v59, 0.0  ;;  %v4759_v61 = vmax.f32 %v4591_v37, %v4619_v17  ;;  %v13338_v59 = vld [vmem:[%s13867_s5 + $0x2a0] sm:$0xff] }
 0x543   : > { %v7540_v19 = vpack.c.bf16 %v7484_v53, %v7484_v53  ;;  %2754 = vst.msk [vmem:[%s14327_s20 + $0x7c] sm:$0xf] %vm2722_vm4, %v2694_v9  ;;  %v2084_v62 = vmax.f32 %v1748_v33, 0.0  ;;  %v4620_v43 = vmax.f32 %v4284_v48, 0.0  ;;  %v6705_v23 = vadd.f32 %v16828_v31, %v16845_v47 }
 0x544   : > { %2336 = vst.msk [vmem:[#allocation2 + $0x200] sm:$0xff] %vm2271_vm3, %v2223_v44  ;;  %v1683_v46 = vadd.f32 %v16828_v31, %v16431_v27  ;;  %v9603_v20 = vmax.f32 %v9435_v35, %v9463_v21  ;;  %v9604_v22 = vmax.f32 %v9436_v39, %v9464_v45  ;;  %v7015_v25 = vmax.f32 %v6637_v7, 0.0  ;;  %v18898_v21 = vld [vmem:[#allocation13_spill] sm:$0xff] }
 0x545   : > { %12384 = vst.msk [vmem:[%s14327_s20 + $0x238] sm:$0xf] %vm2722_vm4, %v7540_v19  ;;  %v2224_v40 = vmax.f32 %v2056_v11, %v2084_v62  ;;  %v4760_v24 = vmax.f32 %v4592_v16, %v4620_v43  ;;  %v6635_v11 = vadd.f32 %v16828_v31, %v16403_v51  ;;  %v7042_v51 = vmax.f32 %v6705_v23, 0.0  ;;  %v18897_v43 = vld [vmem:[#allocation4_spill] sm:$0xff] }
 0x546   : > { %v2058_v48 = vmax.f32 %v1683_v46, 0.0  ;;  %v4217_v6 = vadd.f32 %v16828_v31, %v16419_v36  ;;  %v9060_v37 = vadd.f32 %v16828_v31, %v18897_v43  ;;  %v1686_v32 = vadd.f32 %v16828_v31, %v18898_v21 }
 0x547   : > { %v4950_v34 = vld [vmem:[#allocation2 + $0x1f0] ss:$2 sm:$0xff]  ;;  %v5006_v28 = vld [vmem:[#allocation2 + $0x1f1] ss:$2 sm:$0xff]  ;;  %2337 = vst.msk [vmem:[#allocation2 + $0x208] sm:$0xff] %vm2271_vm3, %v2224_v40  ;;  %v6706_v54 = vpop.f32.mrf.mxu2  ;;  %v16871_v15 = vpop.f32.mrf.mxu3  ;;  %v9437_v46 = vmax.f32 %v9058_v8, 0.0 }
 0x548   : > { %v5062_v55 = vmax.f32 %v4950_v34, %v5006_v28  ;;  %7292 = vst.msk [vmem:[#allocation2 + $0x1f0] sm:$0xff] %vm2271_vm3, %v7180_v56  ;;  %v1750_v26 = vpop.f32.mrf.mxu0  ;;  %v16881_v4 = vpop.f32.mrf.mxu1  ;;  %v6707_v9 = vadd.f32 %v16828_v31, %v6706_v54  ;;  %v7014_v34 = vmax.f32 %v6635_v11, 0.0 }
 0x549   : > { %v9795_v49 = vld [vmem:[#allocation2 + $0x1e0] ss:$2 sm:$0xff]  ;;  %v9851_v63 = vld [vmem:[#allocation2 + $0x1e1] ss:$2 sm:$0xff]  ;;  %7293 = vst.msk [vmem:[#allocation2 + $0x1f8] sm:$0xff] %vm2271_vm3, %v7181_v52  ;;  %v1751_v18 = vadd.f32 %v16828_v31, %v1750_v26  ;;  %v4287_v28 = vadd.f32 %v16828_v31, %v16881_v4 }
 0x54a   : > { %v9907_v58 = vmax.f32 %v9795_v49, %v9851_v63  ;;  %v5118_v12 = vpack.c.bf16 %v5062_v55, %v5062_v55  ;;  %v7043_v13 = vmax.f32 %v6707_v9, 0.0  ;;  %v7182_v54 = vmax.f32 %v7014_v34, %v7042_v51  ;;  %v18896_v49 = vld [vmem:[#allocation20_spill] sm:$0xff]  ;;  %v18900_v51 = vld [vmem:[#allocation3_spill] sm:$0xff] }
 0x54b   : > { %10701 = vmatmul.msk.bf16.gmra.mxu0 %vm1022_vm2, %v13337_v10  ;;  %11485 = vmatmul.msk.bf16.gmra.mxu1 %vm1022_vm2, %v13449_v5  ;;  %v2085_v38 = vmax.f32 %v1751_v18, 0.0  ;;  %v9128_v55 = vadd.f32 %v16828_v31, %v16847_v60  ;;  %v4219_v36 = vadd.f32 %v16828_v31, %v18896_v49  ;;  %v9130_v60 = vadd.f32 %v16828_v31, %v16871_v15 }
 0x54c   : > { %v9963_v3 = vpack.c.bf16 %v9907_v58, %v9907_v58  ;;  %11545 = vst.msk [vmem:[%s14327_s20 + $0x15c] sm:$0xf] %vm2722_vm4, %v5118_v12  ;;  %12325 = vmatmul.msk.bf16.gmra.mxu2 %vm1022_vm2, %v13561_v50  ;;  %13165 = vmatmul.msk.bf16.gmra.mxu3 %vm1022_vm2, %v13673_v1  ;;  %v7183_v50 = vmax.f32 %v7015_v25, %v7043_v13  ;;  %v13562_v58 = vld [vmem:[%s13867_s5 + $0x9a0] sm:$0xff]  ;;  %v4621_v45 = vmax.f32 %v4287_v28, 0.0  ;;  %v18901_v28 = vld [vmem:[#allocation8_spill] sm:$0xff] }
 0x54d   : > { %v2225_v27 = vmax.f32 %v2057_v29, %v2085_v38  ;;  %v13674_v12 = vld [vmem:[%s13867_s5 + $0xd20] sm:$0xff]  ;;  %v4593_v29 = vmax.f32 %v4217_v6, 0.0  ;;  %v4594_v23 = vmax.f32 %v4219_v36, 0.0 }
 0x54e   : > { %13224 = vst.msk [vmem:[%s14327_s20 + $0x318] sm:$0xf] %vm2722_vm4, %v9963_v3  ;;  %v2448_v14 = vld [vmem:[#allocation2 + $0x200] ss:$2 sm:$0xff]  ;;  %v2560_v44 = vld [vmem:[#allocation2 + $0x201] ss:$2 sm:$0xff] }
 0x54f   : > { %v2639_v53 = vmax.f32 %v2448_v14, %v2560_v44  ;;  %4871 = vst.msk [vmem:[#allocation2 + $0x200] sm:$0xff] %vm2271_vm3, %v4759_v61  ;;  %v16905_v33 = vpop.f32.mrf.mxu2  ;;  %v16907_v0 = vpop.f32.mrf.mxu3  ;;  %v9465_v61 = vmax.f32 %v9128_v55, 0.0  ;;  %v9466_v44 = vmax.f32 %v9130_v60, 0.0  ;;  %v4761_v9 = vmax.f32 %v4593_v29, %v4621_v45  ;;  %v13339_v60 = vld [vmem:[%s13867_s5 + $0x2a8] sm:$0xff] }
 0x550   : > { %v7373_v47 = vld [vmem:[#allocation2 + $0x1f0] ss:$2 sm:$0xff]  ;;  %v7429_v19 = vld [vmem:[#allocation2 + $0x1f1] ss:$2 sm:$0xff]  ;;  %4872 = vst.msk [vmem:[#allocation2 + $0x208] sm:$0xff] %vm2271_vm3, %v4760_v24  ;;  %v1752_v62 = vpop.f32.mrf.mxu0  ;;  %v4288_v30 = vpop.f32.mrf.mxu1  ;;  %v6710_v11 = vadd.f32 %v16828_v31, %v16905_v33 }
 0x551   : > { %v7485_v57 = vmax.f32 %v7373_v47, %v7429_v19  ;;  %9715 = vst.msk [vmem:[#allocation2 + $0x1f0] sm:$0xff] %vm2271_vm3, %v9603_v20  ;;  %v2695_v40 = vpack.c.bf16 %v2639_v53, %v2639_v53  ;;  %v1753_v56 = vadd.f32 %v16828_v31, %v1752_v62  ;;  %v4289_v5 = vadd.f32 %v16828_v31, %v4288_v30 }
 0x552   : > { %9716 = vst.msk [vmem:[#allocation2 + $0x1f8] sm:$0xff] %vm2271_vm3, %v9604_v22  ;;  %v9438_v20 = vmax.f32 %v9060_v37, 0.0  ;;  %v2059_v53 = vmax.f32 %v1686_v32, 0.0  ;;  %v9605_v30 = vmax.f32 %v9437_v46, %v9465_v61  ;;  %v7044_v6 = vmax.f32 %v6710_v11, 0.0  ;;  %v13563_v61 = vld [vmem:[%s13867_s5 + $0x9a8] sm:$0xff] }
 0x553   : > { %v7541_v10 = vpack.c.bf16 %v7485_v57, %v7485_v57  ;;  %2755 = vst.msk [vmem:[%s14327_s20 + $0x80] sm:$0xf] %vm2722_vm4, %v2695_v40  ;;  %v2086_v42 = vmax.f32 %v1753_v56, 0.0  ;;  %v4622_v39 = vmax.f32 %v4289_v5, 0.0 }
 0x554   : > { %2338 = vst.msk [vmem:[#allocation2 + $0x210] sm:$0xff] %vm2271_vm3, %v2225_v27  ;;  %v18899_v27 = vld [vmem:[#allocation11_spill] sm:$0xff]  ;;  %v9606_v13 = vmax.f32 %v9438_v20, %v9466_v44 }
 0x555   : > { %12385 = vst.msk [vmem:[%s14327_s20 + $0x23c] sm:$0xf] %vm2722_vm4, %v7541_v10  ;;  %v2226_v52 = vmax.f32 %v2058_v48, %v2086_v42  ;;  %v4762_v22 = vmax.f32 %v4594_v23, %v4622_v39  ;;  %v1688_v62 = vadd.f32 %v16828_v31, %v18899_v27  ;;  %v6640_v48 = vadd.f32 %v16828_v31, %v18900_v51  ;;  %v13675_v23 = vld [vmem:[%s13867_s5 + $0xd28] sm:$0xff] }
 0x557   : > { %v4951_v2 = vld [vmem:[#allocation2 + $0x200] ss:$2 sm:$0xff]  ;;  %v5007_v26 = vld [vmem:[#allocation2 + $0x201] ss:$2 sm:$0xff]  ;;  %2339 = vst.msk [vmem:[#allocation2 + $0x218] sm:$0xff] %vm2271_vm3, %v2226_v52  ;;  %v6711_v1 = vpop.f32.mrf.mxu2  ;;  %v16931_v4 = vpop.f32.mrf.mxu3  ;;  %v6642_v52 = vadd.f32 %v16828_v31, %v18901_v28  ;;  %v2060_v55 = vmax.f32 %v1688_v62, 0.0 }
 0x558   : > { %v5063_v63 = vmax.f32 %v4951_v2, %v5007_v26  ;;  %7294 = vst.msk [vmem:[#allocation2 + $0x200] sm:$0xff] %vm2271_vm3, %v7182_v54  ;;  %v1755_v17 = vpop.f32.mrf.mxu0  ;;  %v16941_v18 = vpop.f32.mrf.mxu1  ;;  %v6712_v57 = vadd.f32 %v16828_v31, %v6711_v1  ;;  %v7016_v1 = vmax.f32 %v6640_v48, 0.0  ;;  %v18907_v28 = vld [vmem:[#allocation19_spill] sm:$0xff] }
 0x559   : > { %v9796_v16 = vld [vmem:[#allocation2 + $0x1f0] ss:$2 sm:$0xff]  ;;  %v9852_v3 = vld [vmem:[#allocation2 + $0x1f1] ss:$2 sm:$0xff]  ;;  %7295 = vst.msk [vmem:[#allocation2 + $0x208] sm:$0xff] %vm2271_vm3, %v7183_v50  ;;  %v1756_v38 = vadd.f32 %v16828_v31, %v1755_v17  ;;  %v4292_v8 = vadd.f32 %v16828_v31, %v16941_v18  ;;  %v18902_v17 = vld [vmem:[#allocation12_spill] sm:$0xff] }
 0x55a   : > { %v9908_v15 = vmax.f32 %v9796_v16, %v9852_v3  ;;  %v5119_v35 = vpack.c.bf16 %v5063_v63, %v5063_v63  ;;  %v7045_v26 = vmax.f32 %v6712_v57, 0.0  ;;  %v7184_v36 = vmax.f32 %v7016_v1, %v7044_v6  ;;  %v13451_v16 = vld [vmem:[%s13867_s5 + $0x628] sm:$0xff]  ;;  %v18903_v3 = vld [vmem:[#allocation5_spill] sm:$0xff] }
 0x55b   : > { %10702 = vmatmul.msk.bf16.gmra.mxu0 %vm1022_vm2, %v13338_v59  ;;  %11486 = vmatmul.msk.bf16.gmra.mxu1 %vm1022_vm2, %v13450_v41  ;;  %v2087_v24 = vmax.f32 %v1756_v38, 0.0  ;;  %v7017_v41 = vmax.f32 %v6642_v52, 0.0  ;;  %v9063_v45 = vadd.f32 %v16828_v31, %v18903_v3  ;;  %v18904_v38 = vld [vmem:[#allocation28_spill] sm:$0xff]  ;;  %v1693_v52 = vadd.f32 %v16828_v31, %v18907_v28 }
 0x55c   : > { %v9964_v14 = vpack.c.bf16 %v9908_v15, %v9908_v15  ;;  %11546 = vst.msk [vmem:[%s14327_s20 + $0x160] sm:$0xf] %vm2722_vm4, %v5119_v35  ;;  %12326 = vmatmul.msk.bf16.gmra.mxu2 %vm1022_vm2, %v13562_v58  ;;  %13166 = vmatmul.msk.bf16.gmra.mxu3 %vm1022_vm2, %v13674_v12  ;;  %v4222_v58 = vadd.f32 %v16828_v31, %v18902_v17 }
 0x55d   : > { %v2227_v42 = vmax.f32 %v2059_v53, %v2087_v24  ;;  %v9133_v12 = vadd.f32 %v16828_v31, %v16907_v0  ;;  %v7185_v21 = vmax.f32 %v7017_v41, %v7045_v26  ;;  %v4224_v15 = vadd.f32 %v16828_v31, %v18904_v38  ;;  %v18906_v24 = vld [vmem:[#allocation21_spill] sm:$0xff] }
 0x55e   : > { %13225 = vst.msk [vmem:[%s14327_s20 + $0x31c] sm:$0xf] %vm2722_vm4, %v9964_v14  ;;  %v2450_v47 = vld [vmem:[#allocation2 + $0x210] ss:$2 sm:$0xff]  ;;  %v2562_v19 = vld [vmem:[#allocation2 + $0x211] ss:$2 sm:$0xff]  ;;  %v9135_v0 = vadd.f32 %v16828_v31, %v16931_v4  ;;  %v1691_v46 = vadd.f32 %v16828_v31, %v18906_v24 }
 0x55f   : > { %v2640_v7 = vmax.f32 %v2450_v47, %v2562_v19  ;;  %4873 = vst.msk [vmem:[#allocation2 + $0x210] sm:$0xff] %vm2271_vm3, %v4761_v9  ;;  %v16965_v40 = vpop.f32.mrf.mxu2  ;;  %v16967_v56 = vpop.f32.mrf.mxu3  ;;  %v18905_v14 = vld [vmem:[#allocation6_spill] sm:$0xff]  ;;  %v4623_v9 = vmax.f32 %v4292_v8, 0.0  ;;  %v9467_v27 = vmax.f32 %v9133_v12, 0.0  ;;  %v4596_v62 = vmax.f32 %v4224_v15, 0.0 }
 0x560   : > { %v7374_v33 = vld [vmem:[#allocation2 + $0x200] ss:$2 sm:$0xff]  ;;  %v7430_v10 = vld [vmem:[#allocation2 + $0x201] ss:$2 sm:$0xff]  ;;  %4874 = vst.msk [vmem:[#allocation2 + $0x218] sm:$0xff] %vm2271_vm3, %v4762_v22  ;;  %v1757_v34 = vpop.f32.mrf.mxu0  ;;  %v4293_v25 = vpop.f32.mrf.mxu1  ;;  %v9065_v44 = vadd.f32 %v16828_v31, %v18905_v14  ;;  %v4595_v22 = vmax.f32 %v4222_v58, 0.0 }
 0x561   : > { %v7486_v54 = vmax.f32 %v7374_v33, %v7430_v10  ;;  %9717 = vst.msk [vmem:[#allocation2 + $0x200] sm:$0xff] %vm2271_vm3, %v9605_v30  ;;  %v2696_v5 = vpack.c.bf16 %v2640_v7, %v2640_v7  ;;  %v1758_v59 = vadd.f32 %v16828_v31, %v1757_v34  ;;  %v4294_v63 = vadd.f32 %v16828_v31, %v4293_v25 }
 0x562   : > { %9718 = vst.msk [vmem:[#allocation2 + $0x208] sm:$0xff] %vm2271_vm3, %v9606_v13  ;;  %v9468_v7 = vmax.f32 %v9135_v0, 0.0  ;;  %v9439_v51 = vmax.f32 %v9063_v45, 0.0  ;;  %v9440_v48 = vmax.f32 %v9065_v44, 0.0  ;;  %v2061_v33 = vmax.f32 %v1691_v46, 0.0  ;;  %v13340_v0 = vld [vmem:[%s13867_s5 + $0x2b0] sm:$0xff] }
 0x563   : > { %v7542_v2 = vpack.c.bf16 %v7486_v54, %v7486_v54  ;;  %2756 = vst.msk [vmem:[%s14327_s20 + $0x84] sm:$0xf] %vm2722_vm4, %v2696_v5  ;;  %v2088_v50 = vmax.f32 %v1758_v59, 0.0  ;;  %v4624_v19 = vmax.f32 %v4294_v63, 0.0  ;;  %v4763_v10 = vmax.f32 %v4595_v22, %v4623_v9 }
 0x564   : > { %2340 = vst.msk [vmem:[#allocation2 + $0x220] sm:$0xff] %vm2271_vm3, %v2227_v42  ;;  %v6715_v13 = vadd.f32 %v16828_v31, %v16965_v40  ;;  %v9607_v54 = vmax.f32 %v9439_v51, %v9467_v27  ;;  %v9608_v1 = vmax.f32 %v9440_v48, %v9468_v7  ;;  %v13564_v27 = vld [vmem:[%s13867_s5 + $0x9b0] sm:$0xff] }
 0x565   : > { %12386 = vst.msk [vmem:[%s14327_s20 + $0x240] sm:$0xf] %vm2722_vm4, %v7542_v2  ;;  %v2228_v49 = vmax.f32 %v2060_v55, %v2088_v50  ;;  %v4764_v25 = vmax.f32 %v4596_v62, %v4624_v19  ;;  %v18908_v2 = vld [vmem:[#allocation10_spill] sm:$0xff]  ;;  %v13676_v62 = vld [vmem:[%s13867_s5 + $0xd30] sm:$0xff] }
 0x566   : > { %v6645_v26 = vadd.f32 %v16828_v31, %v18908_v2  ;;  %v7046_v12 = vmax.f32 %v6715_v13, 0.0 }
 0x567   : > { %v4952_v43 = vld [vmem:[#allocation2 + $0x210] ss:$2 sm:$0xff]  ;;  %v5008_v37 = vld [vmem:[#allocation2 + $0x211] ss:$2 sm:$0xff]  ;;  %2341 = vst.msk [vmem:[#allocation2 + $0x228] sm:$0xff] %vm2271_vm3, %v2228_v49  ;;  %v6716_v32 = vpop.f32.mrf.mxu2  ;;  %v16991_v18 = vpop.f32.mrf.mxu3 }
 0x568   : > { %v5064_v35 = vmax.f32 %v4952_v43, %v5008_v37  ;;  %7296 = vst.msk [vmem:[#allocation2 + $0x210] sm:$0xff] %vm2271_vm3, %v7184_v36  ;;  %v1760_v39 = vpop.f32.mrf.mxu0  ;;  %v17001_v29 = vpop.f32.mrf.mxu1  ;;  %v6717_v59 = vadd.f32 %v16828_v31, %v6716_v32  ;;  %v18909_v36 = vld [vmem:[#allocation7_spill] sm:$0xff]  ;;  %v2062_v43 = vmax.f32 %v1693_v52, 0.0 }
 0x569   : > { %v9797_v20 = vld [vmem:[#allocation2 + $0x200] ss:$2 sm:$0xff]  ;;  %v9853_v53 = vld [vmem:[#allocation2 + $0x201] ss:$2 sm:$0xff]  ;;  %7297 = vst.msk [vmem:[#allocation2 + $0x218] sm:$0xff] %vm2271_vm3, %v7185_v21  ;;  %v1761_v11 = vadd.f32 %v16828_v31, %v1760_v39  ;;  %v6647_v63 = vadd.f32 %v16828_v31, %v18909_v36  ;;  %v4297_v45 = vadd.f32 %v16828_v31, %v17001_v29 }
 0x56a   : > { %v9909_v4 = vmax.f32 %v9797_v20, %v9853_v53  ;;  %v5120_v47 = vpack.c.bf16 %v5064_v35, %v5064_v35  ;;  %v7047_v21 = vmax.f32 %v6717_v59, 0.0  ;;  %v18910_v39 = vld [vmem:[#allocation16_spill] sm:$0xff]  ;;  %v13452_v20 = vld [vmem:[%s13867_s5 + $0x630] sm:$0xff]  ;;  %v18915_v36 = vld [vmem:[#allocation27_spill] sm:$0xff] }
 0x56b   : > { %10703 = vmatmul.msk.bf16.gmra.mxu0 %vm1022_vm2, %v13339_v60  ;;  %11487 = vmatmul.msk.bf16.gmra.mxu1 %vm1022_vm2, %v13451_v16  ;;  %v2089_v57 = vmax.f32 %v1761_v11, 0.0  ;;  %v7018_v16 = vmax.f32 %v6645_v26, 0.0  ;;  %v7019_v3 = vmax.f32 %v6647_v63, 0.0  ;;  %v18911_v53 = vld [vmem:[#allocation9_spill] sm:$0xff]  ;;  %v18912_v11 = vld [vmem:[#allocation36_spill] sm:$0xff]  ;;  %v1698_v63 = vadd.f32 %v16828_v31, %v18915_v36 }
 0x56c   : > { %v9965_v30 = vpack.c.bf16 %v9909_v4, %v9909_v4  ;;  %11547 = vst.msk [vmem:[%s14327_s20 + $0x164] sm:$0xf] %vm2722_vm4, %v5120_v47  ;;  %12327 = vmatmul.msk.bf16.gmra.mxu2 %vm1022_vm2, %v13563_v61  ;;  %13167 = vmatmul.msk.bf16.gmra.mxu3 %vm1022_vm2, %v13675_v23  ;;  %v4227_v61 = vadd.f32 %v16828_v31, %v18910_v39 }
 0x56d   : > { %v2229_v41 = vmax.f32 %v2061_v33, %v2089_v57  ;;  %v7186_v15 = vmax.f32 %v7018_v16, %v7046_v12  ;;  %v9138_v23 = vadd.f32 %v16828_v31, %v16967_v56  ;;  %v7187_v24 = vmax.f32 %v7019_v3, %v7047_v21  ;;  %v18914_v57 = vld [vmem:[#allocation29_spill] sm:$0xff] }
 0x56e   : > { %13226 = vst.msk [vmem:[%s14327_s20 + $0x320] sm:$0xf] %vm2722_vm4, %v9965_v30  ;;  %v2452_v42 = vld [vmem:[#allocation2 + $0x220] ss:$2 sm:$0xff]  ;;  %v2564_v34 = vld [vmem:[#allocation2 + $0x221] ss:$2 sm:$0xff]  ;;  %v9068_v9 = vadd.f32 %v16828_v31, %v18911_v53  ;;  %v4229_v4 = vadd.f32 %v16828_v31, %v18912_v11  ;;  %v9140_v56 = vadd.f32 %v16828_v31, %v16991_v18  ;;  %v1696_v51 = vadd.f32 %v16828_v31, %v18914_v57 }
 0x56f   : > { %v2641_v5 = vmax.f32 %v2452_v42, %v2564_v34  ;;  %4875 = vst.msk [vmem:[#allocation2 + $0x220] sm:$0xff] %vm2271_vm3, %v4763_v10  ;;  %v17025_v6 = vpop.f32.mrf.mxu2  ;;  %v17027_v55 = vpop.f32.mrf.mxu3  ;;  %v18913_v30 = vld [vmem:[#allocation14_spill] sm:$0xff]  ;;  %v4625_v10 = vmax.f32 %v4297_v45, 0.0  ;;  %v9469_v28 = vmax.f32 %v9138_v23, 0.0 }
 0x570   : > { %v7375_v40 = vld [vmem:[#allocation2 + $0x210] ss:$2 sm:$0xff]  ;;  %v7431_v50 = vld [vmem:[#allocation2 + $0x211] ss:$2 sm:$0xff]  ;;  %4876 = vst.msk [vmem:[#allocation2 + $0x228] sm:$0xff] %vm2271_vm3, %v4764_v25  ;;  %v1762_v8 = vpop.f32.mrf.mxu0  ;;  %v4298_v49 = vpop.f32.mrf.mxu1  ;;  %v9070_v7 = vadd.f32 %v16828_v31, %v18913_v30  ;;  %v4597_v25 = vmax.f32 %v4227_v61, 0.0 }
 0x571   : > { %v7487_v60 = vmax.f32 %v7375_v40, %v7431_v50  ;;  %9719 = vst.msk [vmem:[#allocation2 + $0x210] sm:$0xff] %vm2271_vm3, %v9607_v54  ;;  %v2697_v17 = vpack.c.bf16 %v2641_v5, %v2641_v5  ;;  %v1763_v58 = vadd.f32 %v16828_v31, %v1762_v8  ;;  %v4299_v35 = vadd.f32 %v16828_v31, %v4298_v49 }
 0x572   : > { %9720 = vst.msk [vmem:[#allocation2 + $0x218] sm:$0xff] %vm2271_vm3, %v9608_v1  ;;  %v4598_v52 = vmax.f32 %v4229_v4, 0.0  ;;  %v9470_v5 = vmax.f32 %v9140_v56, 0.0  ;;  %v9441_v2 = vmax.f32 %v9068_v9, 0.0  ;;  %v9442_v26 = vmax.f32 %v9070_v7, 0.0  ;;  %v13341_v56 = vld [vmem:[%s13867_s5 + $0x2b8] sm:$0xff] }
 0x573   : > { %v7543_v37 = vpack.c.bf16 %v7487_v60, %v7487_v60  ;;  %2757 = vst.msk [vmem:[%s14327_s20 + $0x88] sm:$0xf] %vm2722_vm4, %v2697_v17  ;;  %v2090_v32 = vmax.f32 %v1763_v58, 0.0  ;;  %v4626_v34 = vmax.f32 %v4299_v35, 0.0  ;;  %v2063_v40 = vmax.f32 %v1696_v51, 0.0 }
 0x574   : > { %2342 = vst.msk [vmem:[#allocation2 + $0x230] sm:$0xff] %vm2271_vm3, %v2229_v41  ;;  %v4765_v50 = vmax.f32 %v4597_v25, %v4625_v10  ;;  %v6720_v1 = vadd.f32 %v16828_v31, %v17025_v6  ;;  %v9609_v60 = vmax.f32 %v9441_v2, %v9469_v28  ;;  %v9610_v16 = vmax.f32 %v9442_v26, %v9470_v5  ;;  %v13565_v28 = vld [vmem:[%s13867_s5 + $0x9b8] sm:$0xff] }
 0x575   : > { %12387 = vst.msk [vmem:[%s14327_s20 + $0x244] sm:$0xf] %vm2722_vm4, %v7543_v37  ;;  %v2230_v38 = vmax.f32 %v2062_v43, %v2090_v32  ;;  %v4766_v49 = vmax.f32 %v4598_v52, %v4626_v34  ;;  %v18916_v37 = vld [vmem:[#allocation18_spill] sm:$0xff] }
 0x576   : > { %v6650_v21 = vadd.f32 %v16828_v31, %v18916_v37  ;;  %v7048_v23 = vmax.f32 %v6720_v1, 0.0  ;;  %v13677_v52 = vld [vmem:[%s13867_s5 + $0xd38] sm:$0xff] }
 0x577   : > { %v4953_v14 = vld [vmem:[#allocation2 + $0x220] ss:$2 sm:$0xff]  ;;  %v5009_v44 = vld [vmem:[#allocation2 + $0x221] ss:$2 sm:$0xff]  ;;  %2343 = vst.msk [vmem:[#allocation2 + $0x238] sm:$0xff] %vm2271_vm3, %v2230_v38  ;;  %v6721_v46 = vpop.f32.mrf.mxu2  ;;  %v17051_v29 = vpop.f32.mrf.mxu3 }
 0x578   : > { %v5065_v47 = vmax.f32 %v4953_v14, %v5009_v44  ;;  %7298 = vst.msk [vmem:[#allocation2 + $0x220] sm:$0xff] %vm2271_vm3, %v7186_v15  ;;  %v1765_v19 = vpop.f32.mrf.mxu0  ;;  %v17061_v22 = vpop.f32.mrf.mxu1  ;;  %v6722_v58 = vadd.f32 %v16828_v31, %v6721_v46  ;;  %v18917_v15 = vld [vmem:[#allocation15_spill] sm:$0xff]  ;;  %v2064_v14 = vmax.f32 %v1698_v63, 0.0 }
 0x579   : > { %v9798_v48 = vld [vmem:[#allocation2 + $0x210] ss:$2 sm:$0xff]  ;;  %v9854_v33 = vld [vmem:[#allocation2 + $0x211] ss:$2 sm:$0xff]  ;;  %7299 = vst.msk [vmem:[#allocation2 + $0x228] sm:$0xff] %vm2271_vm3, %v7187_v24  ;;  %v1766_v13 = vadd.f32 %v16828_v31, %v1765_v19  ;;  %v6652_v35 = vadd.f32 %v16828_v31, %v18917_v15  ;;  %v4302_v9 = vadd.f32 %v16828_v31, %v17061_v22  ;;  %v18918_v19 = vld [vmem:[#allocation24_spill] sm:$0xff] }
 0x57a   : > { %v9910_v18 = vmax.f32 %v9798_v48, %v9854_v33  ;;  %v5121_v42 = vpack.c.bf16 %v5065_v47, %v5065_v47  ;;  %v7049_v24 = vmax.f32 %v6722_v58, 0.0  ;;  %v13453_v48 = vld [vmem:[%s13867_s5 + $0x638] sm:$0xff]  ;;  %v18919_v33 = vld [vmem:[#allocation17_spill] sm:$0xff]  ;;  %v18923_v15 = vld [vmem:[#allocation35_spill] sm:$0xff] }
 0x57b   : > { %10704 = vmatmul.msk.bf16.gmra.mxu0 %vm1022_vm2, %v13340_v0  ;;  %11488 = vmatmul.msk.bf16.gmra.mxu1 %vm1022_vm2, %v13452_v20  ;;  %v2091_v59 = vmax.f32 %v1766_v13, 0.0  ;;  %v7020_v20 = vmax.f32 %v6650_v21, 0.0  ;;  %v7021_v53 = vmax.f32 %v6652_v35, 0.0  ;;  %v9073_v10 = vadd.f32 %v16828_v31, %v18919_v33  ;;  %v18920_v13 = vld [vmem:[#allocation44_spill] sm:$0xff] }
 0x57c   : > { %v9966_v54 = vpack.c.bf16 %v9910_v18, %v9910_v18  ;;  %11548 = vst.msk [vmem:[%s14327_s20 + $0x168] sm:$0xf] %vm2722_vm4, %v5121_v42  ;;  %12328 = vmatmul.msk.bf16.gmra.mxu2 %vm1022_vm2, %v13564_v27  ;;  %13168 = vmatmul.msk.bf16.gmra.mxu3 %vm1022_vm2, %v13676_v62  ;;  %v4232_v27 = vadd.f32 %v16828_v31, %v18918_v19 }
 0x57d   : > { %v2231_v3 = vmax.f32 %v2063_v40, %v2091_v59  ;;  %v7188_v4 = vmax.f32 %v7020_v20, %v7048_v23  ;;  %v9143_v62 = vadd.f32 %v16828_v31, %v17027_v55  ;;  %v7189_v57 = vmax.f32 %v7021_v53, %v7049_v24  ;;  %v18922_v59 = vld [vmem:[#allocation37_spill] sm:$0xff] }
 0x57e   : > { %13227 = vst.msk [vmem:[%s14327_s20 + $0x324] sm:$0xf] %vm2722_vm4, %v9966_v54  ;;  %v2454_v41 = vld [vmem:[#allocation2 + $0x230] ss:$2 sm:$0xff]  ;;  %v2566_v8 = vld [vmem:[#allocation2 + $0x231] ss:$2 sm:$0xff]  ;;  %v4234_v18 = vadd.f32 %v16828_v31, %v18920_v13  ;;  %v9145_v55 = vadd.f32 %v16828_v31, %v17051_v29  ;;  %v1701_v2 = vadd.f32 %v16828_v31, %v18922_v59  ;;  %v1703_v35 = vadd.f32 %v16828_v31, %v18923_v15 }
 0x57f   : > { %v2642_v17 = vmax.f32 %v2454_v41, %v2566_v8  ;;  %4877 = vst.msk [vmem:[#allocation2 + $0x230] sm:$0xff] %vm2271_vm3, %v4765_v50  ;;  %v17085_v12 = vpop.f32.mrf.mxu2  ;;  %v17087_v43 = vpop.f32.mrf.mxu3  ;;  %v18921_v54 = vld [vmem:[#allocation22_spill] sm:$0xff]  ;;  %v4627_v50 = vmax.f32 %v4302_v9, 0.0  ;;  %v9471_v36 = vmax.f32 %v9143_v62, 0.0  ;;  %v9443_v37 = vmax.f32 %v9073_v10, 0.0 }
 0x580   : > { %v7376_v6 = vld [vmem:[#allocation2 + $0x220] ss:$2 sm:$0xff]  ;;  %v7432_v32 = vld [vmem:[#allocation2 + $0x221] ss:$2 sm:$0xff]  ;;  %4878 = vst.msk [vmem:[#allocation2 + $0x238] sm:$0xff] %vm2271_vm3, %v4766_v49  ;;  %v1767_v45 = vpop.f32.mrf.mxu0  ;;  %v4303_v38 = vpop.f32.mrf.mxu1  ;;  %v9075_v5 = vadd.f32 %v16828_v31, %v18921_v54  ;;  %v4599_v49 = vmax.f32 %v4232_v27, 0.0 }
 0x581   : > { %v7488_v0 = vmax.f32 %v7376_v6, %v7432_v32  ;;  %9721 = vst.msk [vmem:[#allocation2 + $0x220] sm:$0xff] %vm2271_vm3, %v9609_v60  ;;  %v2698_v39 = vpack.c.bf16 %v2642_v17, %v2642_v17  ;;  %v1768_v61 = vadd.f32 %v16828_v31, %v1767_v45  ;;  %v4304_v47 = vadd.f32 %v16828_v31, %v4303_v38 }
 0x582   : > { %9722 = vst.msk [vmem:[#allocation2 + $0x228] sm:$0xff] %vm2271_vm3, %v9610_v16  ;;  %v4600_v63 = vmax.f32 %v4234_v18, 0.0  ;;  %v9472_v17 = vmax.f32 %v9145_v55, 0.0  ;;  %v9444_v21 = vmax.f32 %v9075_v5, 0.0  ;;  %v2065_v6 = vmax.f32 %v1701_v2, 0.0  ;;  %v13342_v55 = vld [vmem:[%s13867_s5 + $0x2c0] sm:$0xff] }
 0x583   : > { %v7544_v44 = vpack.c.bf16 %v7488_v0, %v7488_v0  ;;  %2758 = vst.msk [vmem:[%s14327_s20 + $0x8c] sm:$0xf] %vm2722_vm4, %v2698_v39  ;;  %v2092_v46 = vmax.f32 %v1768_v61, 0.0  ;;  %v4628_v8 = vmax.f32 %v4304_v47, 0.0  ;;  %v4767_v32 = vmax.f32 %v4599_v49, %v4627_v50 }
 0x584   : > { %2344 = vst.msk [vmem:[#allocation2 + $0x240] sm:$0xff] %vm2271_vm3, %v2231_v3  ;;  %v6725_v16 = vadd.f32 %v16828_v31, %v17085_v12  ;;  %v9611_v0 = vmax.f32 %v9443_v37, %v9471_v36  ;;  %v9612_v20 = vmax.f32 %v9444_v21, %v9472_v17  ;;  %v13566_v36 = vld [vmem:[%s13867_s5 + $0x9c0] sm:$0xff] }
 0x585   : > { %12388 = vst.msk [vmem:[%s14327_s20 + $0x248] sm:$0xf] %vm2722_vm4, %v7544_v44  ;;  %v2232_v11 = vmax.f32 %v2064_v14, %v2092_v46  ;;  %v4768_v38 = vmax.f32 %v4600_v63, %v4628_v8  ;;  %v18924_v44 = vld [vmem:[#allocation26_spill] sm:$0xff]  ;;  %v13678_v63 = vld [vmem:[%s13867_s5 + $0xd40] sm:$0xff] }
 0x586   : > { %v6655_v24 = vadd.f32 %v16828_v31, %v18924_v44  ;;  %v7050_v62 = vmax.f32 %v6725_v16, 0.0 }
 0x587   : > { %v4954_v30 = vld [vmem:[#allocation2 + $0x230] ss:$2 sm:$0xff]  ;;  %v5010_v7 = vld [vmem:[#allocation2 + $0x231] ss:$2 sm:$0xff]  ;;  %2345 = vst.msk [vmem:[#allocation2 + $0x248] sm:$0xff] %vm2271_vm3, %v2232_v11  ;;  %v6726_v51 = vpop.f32.mrf.mxu2  ;;  %v17111_v22 = vpop.f32.mrf.mxu3 }
 0x588   : > { %v5066_v42 = vmax.f32 %v4954_v30, %v5010_v7  ;;  %7300 = vst.msk [vmem:[#allocation2 + $0x230] sm:$0xff] %vm2271_vm3, %v7188_v4  ;;  %v1770_v34 = vpop.f32.mrf.mxu0  ;;  %v17121_v25 = vpop.f32.mrf.mxu1  ;;  %v6727_v61 = vadd.f32 %v16828_v31, %v6726_v51  ;;  %v18925_v4 = vld [vmem:[#allocation23_spill] sm:$0xff]  ;;  %v2066_v30 = vmax.f32 %v1703_v35, 0.0 }
 0x589   : > { %v9799_v26 = vld [vmem:[#allocation2 + $0x220] ss:$2 sm:$0xff]  ;;  %v9855_v40 = vld [vmem:[#allocation2 + $0x221] ss:$2 sm:$0xff]  ;;  %7301 = vst.msk [vmem:[#allocation2 + $0x238] sm:$0xff] %vm2271_vm3, %v7189_v57  ;;  %v1771_v1 = vadd.f32 %v16828_v31, %v1770_v34  ;;  %v6657_v47 = vadd.f32 %v16828_v31, %v18925_v4  ;;  %v4307_v10 = vadd.f32 %v16828_v31, %v17121_v25 }
 0x58a   : > { %v9911_v29 = vmax.f32 %v9799_v26, %v9855_v40  ;;  %v5122_v41 = vpack.c.bf16 %v5066_v42, %v5066_v42  ;;  %v7051_v57 = vmax.f32 %v6727_v61, 0.0  ;;  %v18926_v34 = vld [vmem:[#allocation32_spill] sm:$0xff]  ;;  %v13454_v26 = vld [vmem:[%s13867_s5 + $0x640] sm:$0xff]  ;;  %v18927_v40 = vld [vmem:[#allocation25_spill] sm:$0xff] }
 0x58b   : > { %10705 = vmatmul.msk.bf16.gmra.mxu0 %vm1022_vm2, %v13341_v56  ;;  %11489 = vmatmul.msk.bf16.gmra.mxu1 %vm1022_vm2, %v13453_v48  ;;  %v2093_v58 = vmax.f32 %v1771_v1, 0.0  ;;  %v7022_v48 = vmax.f32 %v6655_v24, 0.0  ;;  %v7023_v33 = vmax.f32 %v6657_v47, 0.0  ;;  %v9078_v50 = vadd.f32 %v16828_v31, %v18927_v40  ;;  %v18928_v1 = vld [vmem:[#allocation52_spill] sm:$0xff]  ;;  %v18931_v4 = vld [vmem:[#allocation43_spill] sm:$0xff] }
 0x58c   : > { %v9967_v60 = vpack.c.bf16 %v9911_v29, %v9911_v29  ;;  %11549 = vst.msk [vmem:[%s14327_s20 + $0x16c] sm:$0xf] %vm2722_vm4, %v5122_v41  ;;  %12329 = vmatmul.msk.bf16.gmra.mxu2 %vm1022_vm2, %v13565_v28  ;;  %13169 = vmatmul.msk.bf16.gmra.mxu3 %vm1022_vm2, %v13677_v52  ;;  %v4237_v28 = vadd.f32 %v16828_v31, %v18926_v34 }
 0x58d   : > { %v2233_v53 = vmax.f32 %v2065_v6, %v2093_v58  ;;  %v7190_v18 = vmax.f32 %v7022_v48, %v7050_v62  ;;  %v9148_v52 = vadd.f32 %v16828_v31, %v17087_v43  ;;  %v7191_v59 = vmax.f32 %v7023_v33, %v7051_v57  ;;  %v18930_v58 = vld [vmem:[#allocation45_spill] sm:$0xff] }
 0x58e   : > { %13228 = vst.msk [vmem:[%s14327_s20 + $0x328] sm:$0xf] %vm2722_vm4, %v9967_v60  ;;  %v2456_v3 = vld [vmem:[#allocation2 + $0x240] ss:$2 sm:$0xff]  ;;  %v2568_v45 = vld [vmem:[#allocation2 + $0x241] ss:$2 sm:$0xff]  ;;  %v4239_v29 = vadd.f32 %v16828_v31, %v18928_v1  ;;  %v9150_v43 = vadd.f32 %v16828_v31, %v17111_v22  ;;  %v1706_v37 = vadd.f32 %v16828_v31, %v18930_v58 }
 0x58f   : > { %v2643_v39 = vmax.f32 %v2456_v3, %v2568_v45  ;;  %4879 = vst.msk [vmem:[#allocation2 + $0x240] sm:$0xff] %vm2271_vm3, %v4767_v32  ;;  %v17145_v23 = vpop.f32.mrf.mxu2  ;;  %v17147_v14 = vpop.f32.mrf.mxu3  ;;  %v18929_v60 = vld [vmem:[#allocation30_spill] sm:$0xff]  ;;  %v4629_v32 = vmax.f32 %v4307_v10, 0.0  ;;  %v9473_v15 = vmax.f32 %v9148_v52, 0.0 }
 0x590   : > { %v7377_v12 = vld [vmem:[#allocation2 + $0x230] ss:$2 sm:$0xff]  ;;  %v7433_v46 = vld [vmem:[#allocation2 + $0x231] ss:$2 sm:$0xff]  ;;  %4880 = vst.msk [vmem:[#allocation2 + $0x248] sm:$0xff] %vm2271_vm3, %v4768_v38  ;;  %v1772_v9 = vpop.f32.mrf.mxu0  ;;  %v4308_v11 = vpop.f32.mrf.mxu1  ;;  %v9080_v17 = vadd.f32 %v16828_v31, %v18929_v60  ;;  %v4601_v38 = vmax.f32 %v4237_v28, 0.0 }
 0x591   : > { %v7489_v56 = vmax.f32 %v7377_v12, %v7433_v46  ;;  %9723 = vst.msk [vmem:[#allocation2 + $0x230] sm:$0xff] %vm2271_vm3, %v9611_v0  ;;  %v2699_v19 = vpack.c.bf16 %v2643_v39, %v2643_v39  ;;  %v1773_v27 = vadd.f32 %v16828_v31, %v1772_v9  ;;  %v4309_v42 = vadd.f32 %v16828_v31, %v4308_v11  ;;  %v17202_v46 = vld [vmem:[%s18546_s2] ss:$0 sm:$0xff] }
 0x592   : > { %9724 = vst.msk [vmem:[#allocation2 + $0x238] sm:$0xff] %vm2271_vm3, %v9612_v20  ;;  %v4602_v35 = vmax.f32 %v4239_v29, 0.0  ;;  %v9474_v39 = vmax.f32 %v9150_v43, 0.0  ;;  %v9446_v44 = vmax.f32 %v9080_v17, 0.0  ;;  %v2067_v24 = vmax.f32 %v1706_v37, 0.0  ;;  %v13343_v43 = vld [vmem:[%s13867_s5 + $0x2c8] sm:$0xff] }
 0x593   : > { %v7545_v7 = vpack.c.bf16 %v7489_v56, %v7489_v56  ;;  %2759 = vst.msk [vmem:[%s14327_s20 + $0x90] sm:$0xf] %vm2722_vm4, %v2699_v19  ;;  %v2094_v51 = vmax.f32 %v1773_v27, 0.0  ;;  %v4630_v45 = vmax.f32 %v4309_v42, 0.0  ;;  %v4769_v12 = vmax.f32 %v4601_v38, %v4629_v32 }
 0x594   : > { %2346 = vst.msk [vmem:[#allocation2 + $0x250] sm:$0xff] %vm2271_vm3, %v2233_v53  ;;  %v6730_v20 = vadd.f32 %v17202_v46, %v17145_v23  ;;  %v1708_v47 = vadd.f32 %v17202_v46, %v18931_v4  ;;  %v9614_v48 = vmax.f32 %v9446_v44, %v9474_v39 }
 0x595   : > { %12389 = vst.msk [vmem:[%s14327_s20 + $0x24c] sm:$0xf] %vm2722_vm4, %v7545_v7  ;;  %v2234_v13 = vmax.f32 %v2066_v30, %v2094_v51  ;;  %v4770_v11 = vmax.f32 %v4602_v35, %v4630_v45  ;;  %v18932_v7 = vld [vmem:[#allocation34_spill] sm:$0xff]  ;;  %v13679_v35 = vld [vmem:[%s13867_s5 + $0xd48] sm:$0xff] }
 0x596   : > { %v6660_v57 = vadd.f32 %v17202_v46, %v18932_v7  ;;  %v7052_v52 = vmax.f32 %v6730_v20, 0.0 }
 0x597   : > { %v4955_v54 = vld [vmem:[#allocation2 + $0x240] ss:$2 sm:$0xff]  ;;  %v5011_v5 = vld [vmem:[#allocation2 + $0x241] ss:$2 sm:$0xff]  ;;  %2347 = vst.msk [vmem:[#allocation2 + $0x258] sm:$0xff] %vm2271_vm3, %v2234_v13  ;;  %v6731_v2 = vpop.f32.mrf.mxu2  ;;  %v17171_v25 = vpop.f32.mrf.mxu3 }
 0x598   : > { %v5067_v41 = vmax.f32 %v4955_v54, %v5011_v5  ;;  %7302 = vst.msk [vmem:[#allocation2 + $0x240] sm:$0xff] %vm2271_vm3, %v7190_v18  ;;  %v1775_v8 = vpop.f32.mrf.mxu0  ;;  %v17181_v49 = vpop.f32.mrf.mxu1  ;;  %v6732_v27 = vadd.f32 %v17202_v46, %v6731_v2  ;;  %v18933_v18 = vld [vmem:[#allocation31_spill] sm:$0xff]  ;;  %v2068_v54 = vmax.f32 %v1708_v47, 0.0 }
 0x599   : > { %v9800_v21 = vld [vmem:[#allocation2 + $0x230] ss:$2 sm:$0xff]  ;;  %v9856_v6 = vld [vmem:[#allocation2 + $0x231] ss:$2 sm:$0xff]  ;;  %7303 = vst.msk [vmem:[#allocation2 + $0x248] sm:$0xff] %vm2271_vm3, %v7191_v59  ;;  %v1776_v16 = vadd.f32 %v16828_v31, %v1775_v8  ;;  %v9445_v31 = vmax.f32 %v9078_v50, 0.0  ;;  %v6662_v42 = vadd.f32 %v17202_v46, %v18933_v18  ;;  %v4312_v50 = vadd.f32 %v17202_v46, %v17181_v49 }
 0x59a   : > { %v9912_v22 = vmax.f32 %v9800_v21, %v9856_v6  ;;  %v5123_v3 = vpack.c.bf16 %v5067_v41, %v5067_v41  ;;  %v7053_v59 = vmax.f32 %v6732_v27, 0.0  ;;  %v18934_v8 = vld [vmem:[#allocation40_spill] sm:$0xff]  ;;  %v18935_v6 = vld [vmem:[#allocation33_spill] sm:$0xff]  ;;  %v18939_v18 = vld [vmem:[#allocation51_spill] sm:$0xff] }
 0x59b   : > { %10706 = vmatmul.msk.bf16.gmra.mxu0 %vm1022_vm2, %v13342_v55  ;;  %11490 = vmatmul.msk.bf16.gmra.mxu1 %vm1022_vm2, %v13454_v26  ;;  %v2095_v61 = vmax.f32 %v1776_v16, 0.0  ;;  %v9613_v56 = vmax.f32 %v9445_v31, %v9473_v15  ;;  %v7024_v26 = vmax.f32 %v6660_v57, 0.0  ;;  %v7025_v40 = vmax.f32 %v6662_v42, 0.0  ;;  %v13455_v21 = vld [vmem:[%s13867_s5 + $0x648] sm:$0xff] }
 0x59c   : > { %v9968_v0 = vpack.c.bf16 %v9912_v22, %v9912_v22  ;;  %11550 = vst.msk [vmem:[%s14327_s20 + $0x170] sm:$0xf] %vm2722_vm4, %v5123_v3  ;;  %12330 = vmatmul.msk.bf16.gmra.mxu2 %vm1022_vm2, %v13566_v36  ;;  %13170 = vmatmul.msk.bf16.gmra.mxu3 %vm1022_vm2, %v13678_v63  ;;  %v4242_v36 = vadd.f32 %v17202_v46, %v18934_v8  ;;  %v18936_v16 = vld [vmem:[#allocation60_spill] sm:$0xff] }
 0x59d   : > { %v2235_v33 = vmax.f32 %v2067_v24, %v2095_v61  ;;  %v7192_v29 = vmax.f32 %v7024_v26, %v7052_v52  ;;  %v9153_v63 = vadd.f32 %v17202_v46, %v17147_v14  ;;  %v7193_v58 = vmax.f32 %v7025_v40, %v7053_v59  ;;  %v13567_v15 = vld [vmem:[%s13867_s5 + $0x9c8] sm:$0xff]  ;;  %v18938_v61 = vld [vmem:[#allocation53_spill] sm:$0xff] }
 0x59e   : > { %13229 = vst.msk [vmem:[%s14327_s20 + $0x32c] sm:$0xf] %vm2722_vm4, %v9968_v0  ;;  %v2458_v53 = vld [vmem:[#allocation2 + $0x250] ss:$2 sm:$0xff]  ;;  %v2570_v9 = vld [vmem:[#allocation2 + $0x251] ss:$2 sm:$0xff]  ;;  %v9083_v32 = vadd.f32 %v17202_v46, %v18935_v6  ;;  %v4244_v22 = vadd.f32 %v17202_v46, %v18936_v16  ;;  %v9155_v14 = vadd.f32 %v17202_v46, %v17171_v25  ;;  %v1711_v31 = vadd.f32 %v17202_v46, %v18938_v61 }
 0x59f   : > { %v2644_v19 = vmax.f32 %v2458_v53, %v2570_v9  ;;  %4881 = vst.msk [vmem:[#allocation2 + $0x250] sm:$0xff] %vm2271_vm3, %v4769_v12  ;;  %v17210_v62 = vpop.f32.mrf.mxu2  ;;  %v17212_v30 = vpop.f32.mrf.mxu3  ;;  %v18937_v0 = vld [vmem:[#allocation38_spill] sm:$0xff]  ;;  %v4631_v12 = vmax.f32 %v4312_v50, 0.0  ;;  %v9475_v4 = vmax.f32 %v9153_v63, 0.0  ;;  %v1713_v42 = vadd.f32 %v17202_v46, %v18939_v18 }
 0x5a0   : > { %v7378_v23 = vld [vmem:[#allocation2 + $0x240] ss:$2 sm:$0xff]  ;;  %v7434_v51 = vld [vmem:[#allocation2 + $0x241] ss:$2 sm:$0xff]  ;;  %4882 = vst.msk [vmem:[#allocation2 + $0x258] sm:$0xff] %vm2271_vm3, %v4770_v11  ;;  %v1777_v10 = vpop.f32.mrf.mxu0  ;;  %v4313_v13 = vpop.f32.mrf.mxu1  ;;  %v9085_v39 = vadd.f32 %v17202_v46, %v18937_v0  ;;  %v4603_v11 = vmax.f32 %v4242_v36, 0.0 }
 0x5a1   : > { %v7490_v55 = vmax.f32 %v7378_v23, %v7434_v51  ;;  %9725 = vst.msk [vmem:[#allocation2 + $0x240] sm:$0xff] %vm2271_vm3, %v9613_v56  ;;  %v2700_v34 = vpack.c.bf16 %v2644_v19, %v2644_v19  ;;  %v1778_v28 = vadd.f32 %v17202_v46, %v1777_v10  ;;  %v4314_v41 = vadd.f32 %v17202_v46, %v4313_v13 }
 0x5a2   : > { %9726 = vst.msk [vmem:[#allocation2 + $0x248] sm:$0xff] %vm2271_vm3, %v9614_v48  ;;  %v4604_v47 = vmax.f32 %v4244_v22, 0.0  ;;  %v9476_v19 = vmax.f32 %v9155_v14, 0.0  ;;  %v9447_v7 = vmax.f32 %v9083_v32, 0.0  ;;  %v9448_v57 = vmax.f32 %v9085_v39, 0.0  ;;  %v13344_v14 = vld [vmem:[%s13867_s5 + $0x2d0] sm:$0xff] }
 0x5a3   : > { %v7546_v5 = vpack.c.bf16 %v7490_v55, %v7490_v55  ;;  %2760 = vst.msk [vmem:[%s14327_s20 + $0x94] sm:$0xf] %vm2722_vm4, %v2700_v34  ;;  %v2096_v2 = vmax.f32 %v1778_v28, 0.0  ;;  %v4632_v9 = vmax.f32 %v4314_v41, 0.0  ;;  %v2069_v23 = vmax.f32 %v1711_v31, 0.0 }
 0x5a4   : > { %2348 = vst.msk [vmem:[#allocation2 + $0x260] sm:$0xff] %vm2271_vm3, %v2235_v33  ;;  %v4771_v51 = vmax.f32 %v4603_v11, %v4631_v12  ;;  %v6735_v48 = vadd.f32 %v17202_v46, %v17210_v62  ;;  %v9615_v55 = vmax.f32 %v9447_v7, %v9475_v4  ;;  %v9616_v26 = vmax.f32 %v9448_v57, %v9476_v19  ;;  %v13568_v4 = vld [vmem:[%s13867_s5 + $0x9d0] sm:$0xff] }
 0x5a5   : > { %12390 = vst.msk [vmem:[%s14327_s20 + $0x250] sm:$0xf] %vm2722_vm4, %v7546_v5  ;;  %v2236_v1 = vmax.f32 %v2068_v54, %v2096_v2  ;;  %v4772_v13 = vmax.f32 %v4604_v47, %v4632_v9  ;;  %v18940_v5 = vld [vmem:[#allocation42_spill] sm:$0xff]  ;;  %v13680_v47 = vld [vmem:[%s13867_s5 + $0xd50] sm:$0xff] }
 0x5a6   : > { %v6665_v59 = vadd.f32 %v17202_v46, %v18940_v5  ;;  %v7054_v63 = vmax.f32 %v6735_v48, 0.0 }
 0x5a7   : > { %v4956_v60 = vld [vmem:[#allocation2 + $0x250] ss:$2 sm:$0xff]  ;;  %v5012_v17 = vld [vmem:[#allocation2 + $0x251] ss:$2 sm:$0xff]  ;;  %2349 = vst.msk [vmem:[#allocation2 + $0x268] sm:$0xff] %vm2271_vm3, %v2236_v1  ;;  %v6736_v37 = vpop.f32.mrf.mxu2  ;;  %v17236_v49 = vpop.f32.mrf.mxu3 }
 0x5a8   : > { %v5068_v3 = vmax.f32 %v4956_v60, %v5012_v17  ;;  %7304 = vst.msk [vmem:[#allocation2 + $0x250] sm:$0xff] %vm2271_vm3, %v7192_v29  ;;  %v1780_v45 = vpop.f32.mrf.mxu0  ;;  %v17246_v38 = vpop.f32.mrf.mxu1  ;;  %v6737_v28 = vadd.f32 %v17202_v46, %v6736_v37  ;;  %v18941_v29 = vld [vmem:[#allocation39_spill] sm:$0xff]  ;;  %v2070_v60 = vmax.f32 %v1713_v42, 0.0 }
 0x5a9   : > { %v9801_v44 = vld [vmem:[#allocation2 + $0x240] ss:$2 sm:$0xff]  ;;  %v9857_v24 = vld [vmem:[#allocation2 + $0x241] ss:$2 sm:$0xff]  ;;  %7305 = vst.msk [vmem:[#allocation2 + $0x258] sm:$0xff] %vm2271_vm3, %v7193_v58  ;;  %v1781_v20 = vadd.f32 %v17202_v46, %v1780_v45  ;;  %v6667_v41 = vadd.f32 %v17202_v46, %v18941_v29  ;;  %v4317_v32 = vadd.f32 %v17202_v46, %v17246_v38  ;;  %v18947_v29 = vld [vmem:[#allocation69_spill] sm:$0xff] }
 0x5aa   : > { %v9913_v25 = vmax.f32 %v9801_v44, %v9857_v24  ;;  %v5124_v53 = vpack.c.bf16 %v5068_v3, %v5068_v3  ;;  %v7055_v58 = vmax.f32 %v6737_v28, 0.0  ;;  %v18942_v45 = vld [vmem:[#allocation48_spill] sm:$0xff]  ;;  %v13456_v44 = vld [vmem:[%s13867_s5 + $0x650] sm:$0xff] }
 0x5ab   : > { %10707 = vmatmul.msk.bf16.gmra.mxu0 %vm1022_vm2, %v13343_v43  ;;  %11491 = vmatmul.msk.bf16.gmra.mxu1 %vm1022_vm2, %v13455_v21  ;;  %v2097_v27 = vmax.f32 %v1781_v20, 0.0  ;;  %v7026_v21 = vmax.f32 %v6665_v59, 0.0  ;;  %v7027_v6 = vmax.f32 %v6667_v41, 0.0  ;;  %v18943_v24 = vld [vmem:[#allocation41_spill] sm:$0xff]  ;;  %v18944_v20 = vld [vmem:[#allocation68_spill] sm:$0xff]  ;;  %v1718_v41 = vadd.f32 %v17202_v46, %v18947_v29 }
 0x5ac   : > { %v9969_v56 = vpack.c.bf16 %v9913_v25, %v9913_v25  ;;  %11551 = vst.msk [vmem:[%s14327_s20 + $0x174] sm:$0xf] %vm2722_vm4, %v5124_v53  ;;  %12331 = vmatmul.msk.bf16.gmra.mxu2 %vm1022_vm2, %v13567_v15  ;;  %13171 = vmatmul.msk.bf16.gmra.mxu3 %vm1022_vm2, %v13679_v35  ;;  %v4247_v15 = vadd.f32 %v17202_v46, %v18942_v45 }
 0x5ad   : > { %v2237_v40 = vmax.f32 %v2069_v23, %v2097_v27  ;;  %v7194_v22 = vmax.f32 %v7026_v21, %v7054_v63  ;;  %v9158_v35 = vadd.f32 %v17202_v46, %v17212_v30  ;;  %v7195_v61 = vmax.f32 %v7027_v6, %v7055_v58  ;;  %v18946_v27 = vld [vmem:[#allocation61_spill] sm:$0xff] }
 0x5ae   : > { %13230 = vst.msk [vmem:[%s14327_s20 + $0x330] sm:$0xf] %vm2722_vm4, %v9969_v56  ;;  %v2460_v33 = vld [vmem:[#allocation2 + $0x260] ss:$2 sm:$0xff]  ;;  %v2572_v10 = vld [vmem:[#allocation2 + $0x261] ss:$2 sm:$0xff]  ;;  %v9088_v12 = vadd.f32 %v17202_v46, %v18943_v24  ;;  %v4249_v25 = vadd.f32 %v17202_v46, %v18944_v20  ;;  %v9160_v30 = vadd.f32 %v17202_v46, %v17236_v49  ;;  %v1716_v7 = vadd.f32 %v17202_v46, %v18946_v27 }
 0x5af   : > { %v2645_v34 = vmax.f32 %v2460_v33, %v2572_v10  ;;  %4883 = vst.msk [vmem:[#allocation2 + $0x260] sm:$0xff] %vm2271_vm3, %v4771_v51  ;;  %v17270_v52 = vpop.f32.mrf.mxu2  ;;  %v17272_v54 = vpop.f32.mrf.mxu3  ;;  %v18945_v56 = vld [vmem:[#allocation46_spill] sm:$0xff]  ;;  %v4633_v51 = vmax.f32 %v4317_v32, 0.0  ;;  %v9477_v18 = vmax.f32 %v9158_v35, 0.0 }
 0x5b0   : > { %v7379_v62 = vld [vmem:[#allocation2 + $0x250] ss:$2 sm:$0xff]  ;;  %v7435_v2 = vld [vmem:[#allocation2 + $0x251] ss:$2 sm:$0xff]  ;;  %4884 = vst.msk [vmem:[#allocation2 + $0x268] sm:$0xff] %vm2271_vm3, %v4772_v13  ;;  %v1782_v50 = vpop.f32.mrf.mxu0  ;;  %v4318_v1 = vpop.f32.mrf.mxu1  ;;  %v9090_v19 = vadd.f32 %v17202_v46, %v18945_v56  ;;  %v4605_v13 = vmax.f32 %v4247_v15, 0.0 }
 0x5b1   : > { %v7491_v43 = vmax.f32 %v7379_v62, %v7435_v2  ;;  %9727 = vst.msk [vmem:[#allocation2 + $0x250] sm:$0xff] %vm2271_vm3, %v9615_v55  ;;  %v2701_v8 = vpack.c.bf16 %v2645_v34, %v2645_v34  ;;  %v1783_v36 = vadd.f32 %v17202_v46, %v1782_v50  ;;  %v4319_v3 = vadd.f32 %v17202_v46, %v4318_v1 }
 0x5b2   : > { %9728 = vst.msk [vmem:[#allocation2 + $0x258] sm:$0xff] %vm2271_vm3, %v9616_v26  ;;  %v4606_v42 = vmax.f32 %v4249_v25, 0.0  ;;  %v9478_v34 = vmax.f32 %v9160_v30, 0.0  ;;  %v9449_v5 = vmax.f32 %v9088_v12, 0.0  ;;  %v9450_v59 = vmax.f32 %v9090_v19, 0.0  ;;  %v13345_v30 = vld [vmem:[%s13867_s5 + $0x2d8] sm:$0xff] }
 0x5b3   : > { %v7547_v17 = vpack.c.bf16 %v7491_v43, %v7491_v43  ;;  %2761 = vst.msk [vmem:[%s14327_s20 + $0x98] sm:$0xf] %vm2722_vm4, %v2701_v8  ;;  %v2098_v37 = vmax.f32 %v1783_v36, 0.0  ;;  %v4634_v10 = vmax.f32 %v4319_v3, 0.0  ;;  %v2071_v62 = vmax.f32 %v1716_v7, 0.0 }
 0x5b4   : > { %2350 = vst.msk [vmem:[#allocation2 + $0x270] sm:$0xff] %vm2271_vm3, %v2237_v40  ;;  %v4773_v2 = vmax.f32 %v4605_v13, %v4633_v51  ;;  %v6740_v26 = vadd.f32 %v17202_v46, %v17270_v52  ;;  %v9617_v43 = vmax.f32 %v9449_v5, %v9477_v18  ;;  %v9618_v21 = vmax.f32 %v9450_v59, %v9478_v34  ;;  %v13569_v18 = vld [vmem:[%s13867_s5 + $0x9d8] sm:$0xff] }
 0x5b5   : > { %12391 = vst.msk [vmem:[%s14327_s20 + $0x254] sm:$0xf] %vm2722_vm4, %v7547_v17  ;;  %v2238_v16 = vmax.f32 %v2070_v60, %v2098_v37  ;;  %v4774_v1 = vmax.f32 %v4606_v42, %v4634_v10  ;;  %v18948_v17 = vld [vmem:[#allocation50_spill] sm:$0xff] }
 0x5b6   : > { %v6670_v58 = vadd.f32 %v17202_v46, %v18948_v17  ;;  %v7056_v35 = vmax.f32 %v6740_v26, 0.0  ;;  %v13681_v42 = vld [vmem:[%s13867_s5 + $0xd58] sm:$0xff] }
 0x5b7   : > { %v4957_v0 = vld [vmem:[#allocation2 + $0x260] ss:$2 sm:$0xff]  ;;  %v5013_v39 = vld [vmem:[#allocation2 + $0x261] ss:$2 sm:$0xff]  ;;  %2351 = vst.msk [vmem:[#allocation2 + $0x278] sm:$0xff] %vm2271_vm3, %v2238_v16  ;;  %v6741_v31 = vpop.f32.mrf.mxu2  ;;  %v17296_v38 = vpop.f32.mrf.mxu3 }
 0x5b8   : > { %v5069_v53 = vmax.f32 %v4957_v0, %v5013_v39  ;;  %7306 = vst.msk [vmem:[#allocation2 + $0x260] sm:$0xff] %vm2271_vm3, %v7194_v22  ;;  %v1785_v9 = vpop.f32.mrf.mxu0  ;;  %v17306_v11 = vpop.f32.mrf.mxu1  ;;  %v6742_v36 = vadd.f32 %v17202_v46, %v6741_v31  ;;  %v18949_v22 = vld [vmem:[#allocation47_spill] sm:$0xff]  ;;  %v2072_v0 = vmax.f32 %v1718_v41, 0.0 }
 0x5b9   : > { %v9802_v57 = vld [vmem:[#allocation2 + $0x250] ss:$2 sm:$0xff]  ;;  %v9858_v23 = vld [vmem:[#allocation2 + $0x251] ss:$2 sm:$0xff]  ;;  %7307 = vst.msk [vmem:[#allocation2 + $0x268] sm:$0xff] %vm2271_vm3, %v7195_v61  ;;  %v1786_v48 = vadd.f32 %v17202_v46, %v1785_v9  ;;  %v6672_v3 = vadd.f32 %v17202_v46, %v18949_v22  ;;  %v4322_v12 = vadd.f32 %v17202_v46, %v17306_v11  ;;  %v18950_v9 = vld [vmem:[#allocation56_spill] sm:$0xff] }
 0x5ba   : > { %v9914_v49 = vmax.f32 %v9802_v57, %v9858_v23  ;;  %v5125_v33 = vpack.c.bf16 %v5069_v53, %v5069_v53  ;;  %v7057_v61 = vmax.f32 %v6742_v36, 0.0  ;;  %v13457_v57 = vld [vmem:[%s13867_s5 + $0x658] sm:$0xff]  ;;  %v18951_v23 = vld [vmem:[#allocation49_spill] sm:$0xff]  ;;  %v18955_v22 = vld [vmem:[#allocation63_spill] sm:$0xff] }
 0x5bb   : > { %10708 = vmatmul.msk.bf16.gmra.mxu0 %vm1022_vm2, %v13344_v14  ;;  %11492 = vmatmul.msk.bf16.gmra.mxu1 %vm1022_vm2, %v13456_v44  ;;  %v2099_v28 = vmax.f32 %v1786_v48, 0.0  ;;  %v7028_v44 = vmax.f32 %v6670_v58, 0.0  ;;  %v7029_v24 = vmax.f32 %v6672_v3, 0.0  ;;  %v9093_v51 = vadd.f32 %v17202_v46, %v18951_v23  ;;  %v18952_v48 = vld [vmem:[#allocation70_spill] sm:$0xff] }
 0x5bc   : > { %v9970_v55 = vpack.c.bf16 %v9914_v49, %v9914_v49  ;;  %11552 = vst.msk [vmem:[%s14327_s20 + $0x178] sm:$0xf] %vm2722_vm4, %v5125_v33  ;;  %12332 = vmatmul.msk.bf16.gmra.mxu2 %vm1022_vm2, %v13568_v4  ;;  %13172 = vmatmul.msk.bf16.gmra.mxu3 %vm1022_vm2, %v13680_v47  ;;  %v4252_v4 = vadd.f32 %v17202_v46, %v18950_v9 }
 0x5bd   : > { %v2239_v6 = vmax.f32 %v2071_v62, %v2099_v28  ;;  %v7196_v25 = vmax.f32 %v7028_v44, %v7056_v35  ;;  %v9163_v47 = vadd.f32 %v17202_v46, %v17272_v54  ;;  %v7197_v27 = vmax.f32 %v7029_v24, %v7057_v61  ;;  %v18954_v28 = vld [vmem:[#allocation59_spill] sm:$0xff] }
 0x5be   : > { %13231 = vst.msk [vmem:[%s14327_s20 + $0x334] sm:$0xf] %vm2722_vm4, %v9970_v55  ;;  %v2462_v40 = vld [vmem:[#allocation2 + $0x270] ss:$2 sm:$0xff]  ;;  %v2574_v50 = vld [vmem:[#allocation2 + $0x271] ss:$2 sm:$0xff]  ;;  %v4254_v49 = vadd.f32 %v17202_v46, %v18952_v48  ;;  %v9165_v54 = vadd.f32 %v17202_v46, %v17296_v38  ;;  %v1721_v5 = vadd.f32 %v17202_v46, %v18954_v28  ;;  %v1723_v3 = vadd.f32 %v17202_v46, %v18955_v22 }
 0x5bf   : > { %v2646_v8 = vmax.f32 %v2462_v40, %v2574_v50  ;;  %4885 = vst.msk [vmem:[#allocation2 + $0x270] sm:$0xff] %vm2271_vm3, %v4773_v2  ;;  %v17330_v63 = vpop.f32.mrf.mxu2  ;;  %v17332_v60 = vpop.f32.mrf.mxu3  ;;  %v18953_v55 = vld [vmem:[#allocation54_spill] sm:$0xff]  ;;  %v4635_v2 = vmax.f32 %v4322_v12, 0.0  ;;  %v9479_v29 = vmax.f32 %v9163_v47, 0.0  ;;  %v9451_v17 = vmax.f32 %v9093_v51, 0.0 }
 0x5c0   : > { %v7380_v52 = vld [vmem:[#allocation2 + $0x260] ss:$2 sm:$0xff]  ;;  %v7436_v37 = vld [vmem:[#allocation2 + $0x261] ss:$2 sm:$0xff]  ;;  %4886 = vst.msk [vmem:[#allocation2 + $0x278] sm:$0xff] %vm2271_vm3, %v4774_v1  ;;  %v1787_v32 = vpop.f32.mrf.mxu0  ;;  %v4323_v16 = vpop.f32.mrf.mxu1  ;;  %v9095_v34 = vadd.f32 %v17202_v46, %v18953_v55  ;;  %v4607_v1 = vmax.f32 %v4252_v4, 0.0 }
 0x5c1   : > { %v7492_v14 = vmax.f32 %v7380_v52, %v7436_v37  ;;  %9729 = vst.msk [vmem:[#allocation2 + $0x260] sm:$0xff] %vm2271_vm3, %v9617_v43  ;;  %v2702_v45 = vpack.c.bf16 %v2646_v8, %v2646_v8  ;;  %v1788_v15 = vadd.f32 %v17202_v46, %v1787_v32  ;;  %v4324_v53 = vadd.f32 %v17202_v46, %v4323_v16 }
 0x5c2   : > { %9730 = vst.msk [vmem:[#allocation2 + $0x268] sm:$0xff] %vm2271_vm3, %v9618_v21  ;;  %v4608_v41 = vmax.f32 %v4254_v49, 0.0  ;;  %v9480_v8 = vmax.f32 %v9165_v54, 0.0  ;;  %v9452_v58 = vmax.f32 %v9095_v34, 0.0  ;;  %v2073_v52 = vmax.f32 %v1721_v5, 0.0  ;;  %v13346_v54 = vld [vmem:[%s13867_s5 + $0x2e0] sm:$0xff] }
 0x5c3   : > { %v7548_v39 = vpack.c.bf16 %v7492_v14, %v7492_v14  ;;  %2762 = vst.msk [vmem:[%s14327_s20 + $0x9c] sm:$0xf] %vm2722_vm4, %v2702_v45  ;;  %v2100_v31 = vmax.f32 %v1788_v15, 0.0  ;;  %v4636_v50 = vmax.f32 %v4324_v53, 0.0  ;;  %v4775_v37 = vmax.f32 %v4607_v1, %v4635_v2  ;;  %v13682_v1 = vld [vmem:[%s13867_s5 + $0xd60] sm:$0xff] }
 0x5c4   : > { %2352 = vst.msk [vmem:[#allocation2 + $0x280] sm:$0xff] %vm2271_vm3, %v2239_v6  ;;  %v6745_v21 = vadd.f32 %v17202_v46, %v17330_v63  ;;  %v9619_v14 = vmax.f32 %v9451_v17, %v9479_v29  ;;  %v9620_v44 = vmax.f32 %v9452_v58, %v9480_v8  ;;  %v18960_v29 = vld [vmem:[#allocation57_spill] sm:$0xff] }
 0x5c5   : > { %12392 = vst.msk [vmem:[%s14327_s20 + $0x258] sm:$0xf] %vm2722_vm4, %v7548_v39  ;;  %v2240_v20 = vmax.f32 %v2072_v0, %v2100_v31  ;;  %v4776_v16 = vmax.f32 %v4608_v41, %v4636_v50  ;;  %v18956_v39 = vld [vmem:[#allocation58_spill] sm:$0xff]  ;;  %v13570_v50 = vld [vmem:[%s13867_s5 + $0x9e0] sm:$0xff]  ;;  %v9098_v41 = vadd.f32 %v17202_v46, %v18960_v29 }
 0x5c6   : > { %v6675_v61 = vadd.f32 %v17202_v46, %v18956_v39  ;;  %v7058_v47 = vmax.f32 %v6745_v21, 0.0 }
 0x5c7   : > { %v4958_v56 = vld [vmem:[#allocation2 + $0x270] ss:$2 sm:$0xff]  ;;  %v5014_v19 = vld [vmem:[#allocation2 + $0x271] ss:$2 sm:$0xff]  ;;  %2353 = vst.msk [vmem:[#allocation2 + $0x288] sm:$0xff] %vm2271_vm3, %v2240_v20  ;;  %v6746_v7 = vpop.f32.mrf.mxu2  ;;  %v17356_v11 = vpop.f32.mrf.mxu3 }
 0x5c8   : > { %v5070_v33 = vmax.f32 %v4958_v56, %v5014_v19  ;;  %7308 = vst.msk [vmem:[#allocation2 + $0x270] sm:$0xff] %vm2271_vm3, %v7196_v25  ;;  %v1790_v10 = vpop.f32.mrf.mxu0  ;;  %v17366_v13 = vpop.f32.mrf.mxu1  ;;  %v6747_v15 = vadd.f32 %v17202_v46, %v6746_v7  ;;  %v18957_v25 = vld [vmem:[#allocation55_spill] sm:$0xff]  ;;  %v2074_v56 = vmax.f32 %v1723_v3, 0.0  ;;  %v9453_v3 = vmax.f32 %v9098_v41, 0.0 }
 0x5c9   : > { %v9803_v59 = vld [vmem:[#allocation2 + $0x260] ss:$2 sm:$0xff]  ;;  %v9859_v62 = vld [vmem:[#allocation2 + $0x261] ss:$2 sm:$0xff]  ;;  %7309 = vst.msk [vmem:[#allocation2 + $0x278] sm:$0xff] %vm2271_vm3, %v7197_v27  ;;  %v1791_v26 = vadd.f32 %v17202_v46, %v1790_v10  ;;  %v6677_v53 = vadd.f32 %v17202_v46, %v18957_v25  ;;  %v4327_v51 = vadd.f32 %v17202_v46, %v17366_v13 }
 0x5ca   : > { %v9915_v38 = vmax.f32 %v9803_v59, %v9859_v62  ;;  %v5126_v40 = vpack.c.bf16 %v5070_v33, %v5070_v33  ;;  %v7059_v27 = vmax.f32 %v6747_v15, 0.0  ;;  %v18958_v10 = vld [vmem:[#allocation67_spill] sm:$0xff]  ;;  %v18962_v25 = vld [vmem:[#allocation64_spill] sm:$0xff] }
 0x5cb   : > { %10709 = vmatmul.msk.bf16.gmra.mxu0 %vm1022_vm2, %v13345_v30  ;;  %11493 = vmatmul.msk.bf16.gmra.mxu1 %vm1022_vm2, %v13457_v57  ;;  %v2101_v36 = vmax.f32 %v1791_v26, 0.0  ;;  %v7030_v57 = vmax.f32 %v6675_v61, 0.0  ;;  %v7031_v23 = vmax.f32 %v6677_v53, 0.0  ;;  %v13458_v59 = vld [vmem:[%s13867_s5 + $0x660] sm:$0xff]  ;;  %v4637_v58 = vmax.f32 %v4327_v51, 0.0 }
 0x5cc   : > { %v9971_v43 = vpack.c.bf16 %v9915_v38, %v9915_v38  ;;  %11553 = vst.msk [vmem:[%s14327_s20 + $0x17c] sm:$0xf] %vm2722_vm4, %v5126_v40  ;;  %12333 = vmatmul.msk.bf16.gmra.mxu2 %vm1022_vm2, %v13569_v18  ;;  %13173 = vmatmul.msk.bf16.gmra.mxu3 %vm1022_vm2, %v13681_v42  ;;  %v4257_v18 = vadd.f32 %v17202_v46, %v18958_v10  ;;  %v18959_v62 = vld [vmem:[#allocation71_spill] sm:$0xff] }
 0x5cd   : > { %v2241_v24 = vmax.f32 %v2073_v52, %v2101_v36  ;;  %v7198_v49 = vmax.f32 %v7030_v57, %v7058_v47  ;;  %v9168_v42 = vadd.f32 %v17202_v46, %v17332_v60  ;;  %v7199_v28 = vmax.f32 %v7031_v23, %v7059_v27 }
 0x5ce   : > { %13232 = vst.msk [vmem:[%s14327_s20 + $0x338] sm:$0xf] %vm2722_vm4, %v9971_v43  ;;  %v2464_v6 = vld [vmem:[#allocation2 + $0x280] ss:$2 sm:$0xff]  ;;  %v2576_v32 = vld [vmem:[#allocation2 + $0x281] ss:$2 sm:$0xff]  ;;  %v4259_v2 = vadd.f32 %v17202_v46, %v18959_v62  ;;  %v9170_v38 = vadd.f32 %v17202_v46, %v17356_v11  ;;  %v6680_v53 = vadd.f32 %v17202_v46, %v18962_v25 }
 0x5cf   : > { %v2647_v45 = vmax.f32 %v2464_v6, %v2576_v32  ;;  %4887 = vst.msk [vmem:[#allocation2 + $0x280] sm:$0xff] %vm2271_vm3, %v4775_v37  ;;  %v17390_v35 = vpop.f32.mrf.mxu2  ;;  %v17392_v0 = vpop.f32.mrf.mxu3  ;;  %v18961_v43 = vld [vmem:[#allocation62_spill] sm:$0xff]  ;;  %v4609_v21 = vmax.f32 %v4257_v18, 0.0  ;;  %v9481_v6 = vmax.f32 %v9168_v42, 0.0  ;;  %v13572_v25 = vld [vmem:[%s13867_s5 + $0x9f0] sm:$0xff] }
 0x5d0   : > { %v7381_v63 = vld [vmem:[#allocation2 + $0x270] ss:$2 sm:$0xff]  ;;  %v7437_v31 = vld [vmem:[#allocation2 + $0x271] ss:$2 sm:$0xff]  ;;  %4888 = vst.msk [vmem:[#allocation2 + $0x288] sm:$0xff] %vm2271_vm3, %v4776_v16  ;;  %v1792_v12 = vpop.f32.mrf.mxu0  ;;  %v4328_v20 = vpop.f32.mrf.mxu1  ;;  %v9100_v8 = vadd.f32 %v17202_v46, %v18961_v43  ;;  %v4610_v32 = vmax.f32 %v4259_v2, 0.0  ;;  %v6750_v15 = vadd.f32 %v17202_v46, %v17390_v35  ;;  %v9173_v10 = vadd.f32 %v17202_v46, %v17392_v0 }
 0x5d1   : > { %v7493_v30 = vmax.f32 %v7381_v63, %v7437_v31  ;;  %9731 = vst.msk [vmem:[#allocation2 + $0x270] sm:$0xff] %vm2271_vm3, %v9619_v14  ;;  %v2703_v9 = vpack.c.bf16 %v2647_v45, %v2647_v45  ;;  %v1793_v4 = vadd.f32 %v17202_v46, %v1792_v12  ;;  %v4329_v33 = vadd.f32 %v17202_v46, %v4328_v20  ;;  %v13571_v0 = vld [vmem:[%s13867_s5 + $0x9e8] sm:$0xff] }
 0x5d2   : > { %9732 = vst.msk [vmem:[#allocation2 + $0x278] sm:$0xff] %vm2271_vm3, %v9620_v44  ;;  %v9482_v22 = vmax.f32 %v9170_v38, 0.0  ;;  %v9454_v14 = vmax.f32 %v9100_v8, 0.0  ;;  %v4777_v45 = vmax.f32 %v4609_v21, %v4637_v58  ;;  %v9621_v31 = vmax.f32 %v9453_v3, %v9481_v6  ;;  %v13683_v38 = vld [vmem:[%s13867_s5 + $0xd68] sm:$0xff] }
 0x5d3   : > { %v7549_v19 = vpack.c.bf16 %v7493_v30, %v7493_v30  ;;  %2763 = vst.msk [vmem:[%s14327_s20 + $0xa0] sm:$0xf] %vm2722_vm4, %v2703_v9  ;;  %v2102_v7 = vmax.f32 %v1793_v4, 0.0  ;;  %v4638_v37 = vmax.f32 %v4329_v33, 0.0  ;;  %v7060_v57 = vmax.f32 %v6750_v15, 0.0  ;;  %v18965_v43 = vld [vmem:[#allocation72_spill] sm:$0xff] }
 0x5d4   : > { %2354 = vst.msk [vmem:[#allocation2 + $0x290] sm:$0xff] %vm2271_vm3, %v2241_v24  ;;  %v9622_v35 = vmax.f32 %v9454_v14, %v9482_v22  ;;  %v9105_v8 = vadd.f32 %v17202_v46, %v18965_v43  ;;  %v13686_v43 = vld [vmem:[%s13867_s5 + $0xd80] sm:$0xff] }
 0x5d5   : > { %12393 = vst.msk [vmem:[%s14327_s20 + $0x25c] sm:$0xf] %vm2722_vm4, %v7549_v19  ;;  %v2242_v48 = vmax.f32 %v2074_v56, %v2102_v7  ;;  %v4778_v63 = vmax.f32 %v4610_v32, %v4638_v37  ;;  %v18963_v56 = vld [vmem:[#allocation66_spill] sm:$0xff] }
 0x5d6   : > { %v6682_v19 = vadd.f32 %v17202_v46, %v18963_v56  ;;  %v9456_v37 = vmax.f32 %v9105_v8, 0.0 }
 0x5d7   : > { %v4959_v55 = vld [vmem:[#allocation2 + $0x280] ss:$2 sm:$0xff]  ;;  %v5015_v34 = vld [vmem:[#allocation2 + $0x281] ss:$2 sm:$0xff]  ;;  %2355 = vst.msk [vmem:[#allocation2 + $0x298] sm:$0xff] %vm2271_vm3, %v2242_v48  ;;  %v6751_v5 = vpop.f32.mrf.mxu2  ;;  %v17416_v13 = vpop.f32.mrf.mxu3  ;;  %v7032_v48 = vmax.f32 %v6680_v53, 0.0 }
 0x5d8   : > { %v5071_v26 = vmax.f32 %v4959_v55, %v5015_v34  ;;  %7310 = vst.msk [vmem:[#allocation2 + $0x280] sm:$0xff] %vm2271_vm3, %v7198_v49  ;;  %v17424_v40 = vpop.f32.mrf.mxu0  ;;  %v17426_v60 = vpop.f32.mrf.mxu1  ;;  %v6752_v24 = vadd.f32 %v17202_v46, %v6751_v5  ;;  %v7033_v49 = vmax.f32 %v6682_v19, 0.0  ;;  %v13459_v5 = vld [vmem:[%s13867_s5 + $0x668] sm:$0xff]  ;;  %v9175_v62 = vadd.f32 %v17202_v46, %v17416_v13  ;;  %v13684_v53 = vld [vmem:[%s13867_s5 + $0xd70] sm:$0xff] }
 0x5d9   : > { %v9804_v36 = vld [vmem:[#allocation2 + $0x270] ss:$2 sm:$0xff]  ;;  %v9860_v17 = vld [vmem:[#allocation2 + $0x271] ss:$2 sm:$0xff]  ;;  %7311 = vst.msk [vmem:[#allocation2 + $0x288] sm:$0xff] %vm2271_vm3, %v7199_v28  ;;  %v7200_v33 = vmax.f32 %v7032_v48, %v7060_v57 }
 0x5da   : > { %v9916_v52 = vmax.f32 %v9804_v36, %v9860_v17  ;;  %v5127_v11 = vpack.c.bf16 %v5071_v26, %v5071_v26  ;;  %v7061_v51 = vmax.f32 %v6752_v24, 0.0  ;;  %v9483_v17 = vmax.f32 %v9173_v10, 0.0  ;;  %v13349_v48 = vld [vmem:[%s13867_s5 + $0x2f8] sm:$0xff] }
 0x5db   : > { %10710 = vmatmul.msk.bf16.gmra.mxu0 %vm1022_vm2, %v13346_v54  ;;  %11494 = vmatmul.msk.bf16.gmra.mxu1 %vm1022_vm2, %v13458_v59  ;;  %v13347_v54 = vld [vmem:[%s13867_s5 + $0x2e8] sm:$0xff]  ;;  %v13573_v10 = vld [vmem:[%s13867_s5 + $0x9f8] sm:$0xff] }
 0x5dc   : > { %v9972_v16 = vpack.c.bf16 %v9916_v52, %v9916_v52  ;;  %11554 = vst.msk [vmem:[%s14327_s20 + $0x180] sm:$0xf] %vm2722_vm4, %v5127_v11  ;;  %12334 = vmatmul.msk.bf16.gmra.mxu2 %vm1022_vm2, %v13570_v50  ;;  %13174 = vmatmul.msk.bf16.gmra.mxu3 %vm1022_vm2, %v13682_v1  ;;  %v7201_v55 = vmax.f32 %v7033_v49, %v7061_v51  ;;  %v18964_v50 = vld [vmem:[#allocation65_spill] sm:$0xff]  ;;  %v9484_v52 = vmax.f32 %v9175_v62, 0.0  ;;  %v13461_v49 = vld [vmem:[%s13867_s5 + $0x678] sm:$0xff] }
 0x5dd   : > { %v9103_v1 = vadd.f32 %v17202_v46, %v18964_v50  ;;  %v13462_v50 = vld [vmem:[%s13867_s5 + $0x680] sm:$0xff] }
 0x5de   : > { %13233 = vst.msk [vmem:[%s14327_s20 + $0x33c] sm:$0xf] %vm2722_vm4, %v9972_v16  ;;  %v2466_v39 = vld [vmem:[#allocation2 + $0x290] ss:$2 sm:$0xff]  ;;  %v2578_v61 = vld [vmem:[#allocation2 + $0x291] ss:$2 sm:$0xff]  ;;  %v9624_v22 = vmax.f32 %v9456_v37, %v9484_v52 }
 0x5df   : > { %v2648_v44 = vmax.f32 %v2466_v39, %v2578_v61  ;;  %4889 = vst.msk [vmem:[#allocation2 + $0x290] sm:$0xff] %vm2271_vm3, %v4777_v45  ;;  %v17447_v12 = vpop.f32.mrf.mxu2  ;;  %v17449_v20 = vpop.f32.mrf.mxu3  ;;  %v9455_v11 = vmax.f32 %v9103_v1, 0.0  ;;  %v13463_v37 = vld [vmem:[%s13867_s5 + $0x688] sm:$0xff] }
 0x5e0   : > { %v7382_v30 = vld [vmem:[#allocation2 + $0x280] ss:$2 sm:$0xff]  ;;  %v7438_v9 = vld [vmem:[#allocation2 + $0x281] ss:$2 sm:$0xff]  ;;  %4890 = vst.msk [vmem:[#allocation2 + $0x298] sm:$0xff] %vm2271_vm3, %v4778_v63  ;;  %v17454_v4 = vpop.f32.mrf.mxu0  ;;  %v17456_v47 = vpop.f32.mrf.mxu1  ;;  %v13348_v63 = vld [vmem:[%s13867_s5 + $0x2f0] sm:$0xff] }
 0x5e1   : > { %v7494_v27 = vmax.f32 %v7382_v30, %v7438_v9  ;;  %9733 = vst.msk [vmem:[#allocation2 + $0x280] sm:$0xff] %vm2271_vm3, %v9621_v31  ;;  %v2704_v7 = vpack.c.bf16 %v2648_v44, %v2648_v44  ;;  %v9623_v46 = vmax.f32 %v9455_v11, %v9483_v17  ;;  %v13460_v31 = vld [vmem:[%s13867_s5 + $0x670] sm:$0xff]  ;;  %v13351_v11 = vld [vmem:[%s13867_s5 + $0x308] sm:$0xff] }
 0x5e2   : > { %9734 = vst.msk [vmem:[#allocation2 + $0x288] sm:$0xff] %vm2271_vm3, %v9622_v35 }
 0x5e3   : > { %v7550_v23 = vpack.c.bf16 %v7494_v27, %v7494_v27  ;;  %2764 = vst.msk [vmem:[%s14327_s20 + $0xa4] sm:$0xf] %vm2722_vm4, %v2704_v7 }
 0x5e5   : > { %12394 = vst.msk [vmem:[%s14327_s20 + $0x260] sm:$0xf] %vm2722_vm4, %v7550_v23 }
 0x5e7   : > { %v4960_v18 = vld [vmem:[#allocation2 + $0x290] ss:$2 sm:$0xff]  ;;  %v5016_v42 = vld [vmem:[#allocation2 + $0x291] ss:$2 sm:$0xff]  ;;  %v17469_v34 = vpop.f32.mrf.mxu2  ;;  %v17471_v28 = vpop.f32.mrf.mxu3 }
 0x5e8   : > { %v5072_v59 = vmax.f32 %v4960_v18, %v5016_v42  ;;  %7312 = vst.msk [vmem:[#allocation2 + $0x290] sm:$0xff] %vm2271_vm3, %v7200_v33  ;;  %v17477_v2 = vpop.f32.mrf.mxu0  ;;  %v17479_v26 = vpop.f32.mrf.mxu1  ;;  %v13685_v18 = vld [vmem:[%s13867_s5 + $0xd78] sm:$0xff] }
 0x5e9   : > { %v9805_v29 = vld [vmem:[#allocation2 + $0x280] ss:$2 sm:$0xff]  ;;  %v9861_v41 = vld [vmem:[#allocation2 + $0x281] ss:$2 sm:$0xff]  ;;  %7313 = vst.msk [vmem:[#allocation2 + $0x298] sm:$0xff] %vm2271_vm3, %v7201_v55 }
 0x5ea   : > { %v9917_v36 = vmax.f32 %v9805_v29, %v9861_v41  ;;  %v5128_v13 = vpack.c.bf16 %v5072_v59, %v5072_v59  ;;  %v13574_v41 = vld [vmem:[%s13867_s5 + $0xa00] sm:$0xff] }
 0x5eb   : > { %10711 = vmatmul.msk.bf16.gmra.mxu0 %vm1022_vm2, %v13347_v54  ;;  %11495 = vmatmul.msk.bf16.gmra.mxu1 %vm1022_vm2, %v13459_v5 }
 0x5ec   : > { %v9973_v58 = vpack.c.bf16 %v9917_v36, %v9917_v36  ;;  %11555 = vst.msk [vmem:[%s14327_s20 + $0x184] sm:$0xf] %vm2722_vm4, %v5128_v13  ;;  %12335 = vmatmul.msk.bf16.gmra.mxu2 %vm1022_vm2, %v13571_v0  ;;  %13175 = vmatmul.msk.bf16.gmra.mxu3 %vm1022_vm2, %v13683_v38  ;;  %v13350_v38 = vld [vmem:[%s13867_s5 + $0x300] sm:$0xff] }
 0x5ee   : > { %13234 = vst.msk [vmem:[%s14327_s20 + $0x340] sm:$0xf] %vm2722_vm4, %v9973_v58 }
 0x5ef   : > { %v17496_v21 = vpop.f32.mrf.mxu2  ;;  %v17498_v6 = vpop.f32.mrf.mxu3 }
 0x5f0   : > { %v7383_v32 = vld [vmem:[#allocation2 + $0x290] ss:$2 sm:$0xff]  ;;  %v7439_v16 = vld [vmem:[#allocation2 + $0x291] ss:$2 sm:$0xff]  ;;  %v17500_v3 = vpop.f32.mrf.mxu0  ;;  %v17502_v14 = vpop.f32.mrf.mxu1 }
 0x5f1   : > { %v7495_v45 = vmax.f32 %v7383_v32, %v7439_v16  ;;  %9735 = vst.msk [vmem:[#allocation2 + $0x290] sm:$0xff] %vm2271_vm3, %v9623_v46  ;;  %v13575_v16 = vld [vmem:[%s13867_s5 + $0xa08] sm:$0xff] }
 0x5f2   : > { %9736 = vst.msk [vmem:[#allocation2 + $0x298] sm:$0xff] %vm2271_vm3, %v9624_v22  ;;  %v13687_v22 = vld [vmem:[%s13867_s5 + $0xd88] sm:$0xff] }
 0x5f3   : > { %v7551_v15 = vpack.c.bf16 %v7495_v45, %v7495_v45 }
 0x5f5   : > { %12395 = vst.msk [vmem:[%s14327_s20 + $0x264] sm:$0xf] %vm2722_vm4, %v7551_v15 }
 0x5f7   : > { %v17508_v39 = vpop.f32.mrf.mxu2  ;;  %v17510_v61 = vpop.f32.mrf.mxu3 }
 0x5f8   : > { %v17514_v44 = vpop.f32.mrf.mxu0  ;;  %v17516_v24 = vpop.f32.mrf.mxu1 }
 0x5f9   : > { %v9806_v30 = vld [vmem:[#allocation2 + $0x290] ss:$2 sm:$0xff]  ;;  %v9862_v9 = vld [vmem:[#allocation2 + $0x291] ss:$2 sm:$0xff] }
 0x5fa   : > { %v9918_v35 = vmax.f32 %v9806_v30, %v9862_v9  ;;  %v13352_v30 = vld [vmem:[%s13867_s5 + $0x310] sm:$0xff] }
 0x5fb   : > { %10712 = vmatmul.msk.bf16.gmra.mxu0 %vm1022_vm2, %v13348_v63  ;;  %11496 = vmatmul.msk.bf16.gmra.mxu1 %vm1022_vm2, %v13460_v31  ;;  %v13464_v9 = vld [vmem:[%s13867_s5 + $0x690] sm:$0xff] }
 0x5fc   : > { %v9974_v56 = vpack.c.bf16 %v9918_v35, %v9918_v35  ;;  %12336 = vmatmul.msk.bf16.gmra.mxu2 %vm1022_vm2, %v13572_v25  ;;  %13176 = vmatmul.msk.bf16.gmra.mxu3 %vm1022_vm2, %v13684_v53 }
 0x5fe   : > { %13235 = vst.msk [vmem:[%s14327_s20 + $0x344] sm:$0xf] %vm2722_vm4, %v9974_v56 }
 0x5ff   : > { %v17526_v19 = vpop.f32.mrf.mxu2  ;;  %v17528_v27 = vpop.f32.mrf.mxu3 }
 0x600   : > { %v17530_v7 = vpop.f32.mrf.mxu0  ;;  %v17532_v57 = vpop.f32.mrf.mxu1 }
 0x607   : > { %v17534_v23 = vpop.f32.mrf.mxu2  ;;  %v17536_v51 = vpop.f32.mrf.mxu3 }
 0x608   : > { %v17540_v33 = vpop.f32.mrf.mxu0  ;;  %v17542_v54 = vpop.f32.mrf.mxu1 }
 0x60b   : > { %10713 = vmatmul.msk.bf16.gmra.mxu0 %vm1022_vm2, %v13349_v48  ;;  %11497 = vmatmul.msk.bf16.gmra.mxu1 %vm1022_vm2, %v13461_v49  ;;  %v13576_v48 = vld [vmem:[%s13867_s5 + $0xa10] sm:$0xff] }
 0x60c   : > { %12337 = vmatmul.msk.bf16.gmra.mxu2 %vm1022_vm2, %v13573_v10  ;;  %13177 = vmatmul.msk.bf16.gmra.mxu3 %vm1022_vm2, %v13685_v18  ;;  %v13688_v49 = vld [vmem:[%s13867_s5 + $0xd90] sm:$0xff] }
 0x60f   : > { %v17550_v42 = vpop.f32.mrf.mxu2  ;;  %v17552_v55 = vpop.f32.mrf.mxu3 }
 0x610   : > { %v17554_v5 = vpop.f32.mrf.mxu0  ;;  %v17556_v59 = vpop.f32.mrf.mxu1 }
 0x617   : > { %v17558_v62 = vpop.f32.mrf.mxu2  ;;  %v17560_v0 = vpop.f32.mrf.mxu3 }
 0x618   : > { %v17564_v1 = vpop.f32.mrf.mxu0  ;;  %v17566_v29 = vpop.f32.mrf.mxu1 }
 0x61b   : > { %10714 = vmatmul.msk.bf16.gmra.mxu0 %vm1022_vm2, %v13350_v38  ;;  %11498 = vmatmul.msk.bf16.gmra.mxu1 %vm1022_vm2, %v13462_v50 }
 0x61c   : > { %12338 = vmatmul.msk.bf16.gmra.mxu2 %vm1022_vm2, %v13574_v41  ;;  %13178 = vmatmul.msk.bf16.gmra.mxu3 %vm1022_vm2, %v13686_v43 }
 0x61f   : > { %v17574_v8 = vpop.f32.mrf.mxu2  ;;  %v17576_v36 = vpop.f32.mrf.mxu3 }
 0x620   : > { %v17578_v13 = vpop.f32.mrf.mxu0  ;;  %v17580_v17 = vpop.f32.mrf.mxu1 }
 0x627   : > { %v17582_v58 = vpop.f32.mrf.mxu2  ;;  %v17584_v52 = vpop.f32.mrf.mxu3 }
 0x628   : > { %18966 = vst [vmem:[#allocation20_spill] sm:$0xff] %v17584_v52  ;;  %v17588_v46 = vpop.f32.mrf.mxu0  ;;  %v17590_v32 = vpop.f32.mrf.mxu1 }
 0x62b   : > { %10715 = vmatmul.msk.bf16.gmra.mxu0 %vm1022_vm2, %v13351_v11  ;;  %11499 = vmatmul.msk.bf16.gmra.mxu1 %vm1022_vm2, %v13463_v37  ;;  %v13353_v11 = vld [vmem:[%s13867_s5 + $0x318] sm:$0xff] }
 0x62c   : > { %12339 = vmatmul.msk.bf16.gmra.mxu2 %vm1022_vm2, %v13575_v16  ;;  %13179 = vmatmul.msk.bf16.gmra.mxu3 %vm1022_vm2, %v13687_v22  ;;  %v13465_v37 = vld [vmem:[%s13867_s5 + $0x698] sm:$0xff] }
 0x62f   : > { %v17598_v45 = vpop.f32.mrf.mxu2  ;;  %v17600_v15 = vpop.f32.mrf.mxu3 }
 0x630   : > { %18967 = vst [vmem:[#allocation4_spill] sm:$0xff] %v17598_v45  ;;  %v17602_v63 = vpop.f32.mrf.mxu0  ;;  %v17604_v31 = vpop.f32.mrf.mxu1 }
 0x631   : > { %18968 = vst [vmem:[#allocation13_spill] sm:$0xff] %v17600_v15 }
 0x632   : > { %18969 = vst [vmem:[#allocation11_spill] sm:$0xff] %v17604_v31 }
 0x637   : > { %v17606_v25 = vpop.f32.mrf.mxu2  ;;  %v17608_v53 = vpop.f32.mrf.mxu3 }
 0x638   : > { %18970 = vst [vmem:[#allocation3_spill] sm:$0xff] %v17606_v25  ;;  %v17612_v35 = vpop.f32.mrf.mxu0  ;;  %v17614_v56 = vpop.f32.mrf.mxu1 }
 0x639   : > { %18971 = vst [vmem:[#allocation8_spill] sm:$0xff] %v17608_v53 }
 0x63a   : > { %18972 = vst [vmem:[#allocation12_spill] sm:$0xff] %v17612_v35 }
 0x63b   : > { %18973 = vst [vmem:[#allocation5_spill] sm:$0xff] %v17614_v56  ;;  %10716 = vmatmul.msk.bf16.gmra.mxu0 %vm1022_vm2, %v13352_v30  ;;  %11500 = vmatmul.msk.bf16.gmra.mxu1 %vm1022_vm2, %v13464_v9  ;;  %v13577_v30 = vld [vmem:[%s13867_s5 + $0xa18] sm:$0xff] }
 0x63c   : > { %12340 = vmatmul.msk.bf16.gmra.mxu2 %vm1022_vm2, %v13576_v48  ;;  %13180 = vmatmul.msk.bf16.gmra.mxu3 %vm1022_vm2, %v13688_v49  ;;  %v13689_v9 = vld [vmem:[%s13867_s5 + $0xd98] sm:$0xff] }
 0x63f   : > { %v17622_v10 = vpop.f32.mrf.mxu2  ;;  %v17624_v18 = vpop.f32.mrf.mxu3 }
 0x640   : > { %18974 = vst [vmem:[#allocation28_spill] sm:$0xff] %v17622_v10  ;;  %v17626_v38 = vpop.f32.mrf.mxu0  ;;  %v17628_v50 = vpop.f32.mrf.mxu1  ;;  %v13354_v10 = vld [vmem:[%s13867_s5 + $0x320] sm:$0xff] }
 0x641   : > { %18975 = vst [vmem:[#allocation6_spill] sm:$0xff] %v17624_v18 }
 0x642   : > { %18976 = vst [vmem:[#allocation21_spill] sm:$0xff] %v17626_v38 }
 0x643   : > { %18977 = vst [vmem:[#allocation19_spill] sm:$0xff] %v17628_v50 }
 0x647   : > { %v17630_v41 = vpop.f32.mrf.mxu2  ;;  %v17632_v43 = vpop.f32.mrf.mxu3 }
 0x648   : > { %18978 = vst [vmem:[#allocation10_spill] sm:$0xff] %v17630_v41  ;;  %v17636_v16 = vpop.f32.mrf.mxu0  ;;  %v17638_v22 = vpop.f32.mrf.mxu1 }
 0x649   : > { %18979 = vst [vmem:[#allocation7_spill] sm:$0xff] %v17632_v43 }
 0x64a   : > { %18980 = vst [vmem:[#allocation16_spill] sm:$0xff] %v17636_v16 }
 0x64b   : > { %18981 = vst [vmem:[#allocation9_spill] sm:$0xff] %v17638_v22  ;;  %10717 = vmatmul.msk.bf16.gmra.mxu0 %vm1022_vm2, %v13353_v11  ;;  %11501 = vmatmul.msk.bf16.gmra.mxu1 %vm1022_vm2, %v13465_v37  ;;  %v13466_v11 = vld [vmem:[%s13867_s5 + $0x6a0] sm:$0xff] }
 0x64c   : > { %12341 = vmatmul.msk.bf16.gmra.mxu2 %vm1022_vm2, %v13577_v30  ;;  %13181 = vmatmul.msk.bf16.gmra.mxu3 %vm1022_vm2, %v13689_v9  ;;  %v13578_v9 = vld [vmem:[%s13867_s5 + $0xa20] sm:$0xff] }
 0x64f   : > { %v17646_v48 = vpop.f32.mrf.mxu2  ;;  %v17648_v49 = vpop.f32.mrf.mxu3 }
 0x650   : > { %18982 = vst [vmem:[#allocation36_spill] sm:$0xff] %v17646_v48  ;;  %v17650_v43 = vpop.f32.mrf.mxu0  ;;  %v17652_v18 = vpop.f32.mrf.mxu1  ;;  %v13690_v48 = vld [vmem:[%s13867_s5 + $0xda0] sm:$0xff] }
 0x651   : > { %18983 = vst [vmem:[#allocation14_spill] sm:$0xff] %v17648_v49 }
 0x652   : > { %18984 = vst [vmem:[#allocation29_spill] sm:$0xff] %v17650_v43  ;;  %v13355_v43 = vld [vmem:[%s13867_s5 + $0x328] sm:$0xff] }
 0x653   : > { %18985 = vst [vmem:[#allocation27_spill] sm:$0xff] %v17652_v18 }
 0x657   : > { %v17654_v22 = vpop.f32.mrf.mxu2  ;;  %v17656_v41 = vpop.f32.mrf.mxu3 }
 0x658   : > { %18986 = vst [vmem:[#allocation18_spill] sm:$0xff] %v17654_v22  ;;  %v17660_v37 = vpop.f32.mrf.mxu0  ;;  %v17662_v30 = vpop.f32.mrf.mxu1 }
 0x659   : > { %18987 = vst [vmem:[#allocation15_spill] sm:$0xff] %v17656_v41 }
 0x65a   : > { %18988 = vst [vmem:[#allocation24_spill] sm:$0xff] %v17660_v37 }
 0x65b   : > { %18989 = vst [vmem:[#allocation17_spill] sm:$0xff] %v17662_v30  ;;  %10718 = vmatmul.msk.bf16.gmra.mxu0 %vm1022_vm2, %v13354_v10  ;;  %11502 = vmatmul.msk.bf16.gmra.mxu1 %vm1022_vm2, %v13466_v11  ;;  %v13467_v10 = vld [vmem:[%s13867_s5 + $0x6a8] sm:$0xff] }
 0x65c   : > { %12342 = vmatmul.msk.bf16.gmra.mxu2 %vm1022_vm2, %v13578_v9  ;;  %13182 = vmatmul.msk.bf16.gmra.mxu3 %vm1022_vm2, %v13690_v48  ;;  %v13579_v48 = vld [vmem:[%s13867_s5 + $0xa28] sm:$0xff] }
 0x65f   : > { %v17670_v41 = vpop.f32.mrf.mxu2  ;;  %v17672_v49 = vpop.f32.mrf.mxu3 }
 0x660   : > { %18990 = vst [vmem:[#allocation44_spill] sm:$0xff] %v17670_v41  ;;  %v17674_v22 = vpop.f32.mrf.mxu0  ;;  %v17676_v37 = vpop.f32.mrf.mxu1  ;;  %v13691_v41 = vld [vmem:[%s13867_s5 + $0xda8] sm:$0xff] }
 0x661   : > { %18991 = vst [vmem:[#allocation22_spill] sm:$0xff] %v17672_v49 }
 0x662   : > { %18992 = vst [vmem:[#allocation37_spill] sm:$0xff] %v17674_v22  ;;  %v13356_v22 = vld [vmem:[%s13867_s5 + $0x330] sm:$0xff] }
 0x663   : > { %18993 = vst [vmem:[#allocation35_spill] sm:$0xff] %v17676_v37 }
 0x667   : > { %v17678_v30 = vpop.f32.mrf.mxu2  ;;  %v17680_v18 = vpop.f32.mrf.mxu3 }
 0x668   : > { %18994 = vst [vmem:[#allocation26_spill] sm:$0xff] %v17678_v30  ;;  %v17684_v11 = vpop.f32.mrf.mxu0  ;;  %v17686_v9 = vpop.f32.mrf.mxu1 }
 0x669   : > { %18995 = vst [vmem:[#allocation23_spill] sm:$0xff] %v17680_v18 }
 0x66a   : > { %18996 = vst [vmem:[#allocation32_spill] sm:$0xff] %v17684_v11 }
 0x66b   : > { %18997 = vst [vmem:[#allocation25_spill] sm:$0xff] %v17686_v9  ;;  %10719 = vmatmul.msk.bf16.gmra.mxu0 %vm1022_vm2, %v13355_v43  ;;  %11503 = vmatmul.msk.bf16.gmra.mxu1 %vm1022_vm2, %v13467_v10  ;;  %v13468_v43 = vld [vmem:[%s13867_s5 + $0x6b0] sm:$0xff] }
 0x66c   : > { %12343 = vmatmul.msk.bf16.gmra.mxu2 %vm1022_vm2, %v13579_v48  ;;  %13183 = vmatmul.msk.bf16.gmra.mxu3 %vm1022_vm2, %v13691_v41  ;;  %v13580_v41 = vld [vmem:[%s13867_s5 + $0xa30] sm:$0xff] }
 0x66f   : > { %v17694_v18 = vpop.f32.mrf.mxu2  ;;  %v17696_v49 = vpop.f32.mrf.mxu3 }
 0x670   : > { %18998 = vst [vmem:[#allocation52_spill] sm:$0xff] %v17694_v18  ;;  %v17698_v30 = vpop.f32.mrf.mxu0  ;;  %v17700_v11 = vpop.f32.mrf.mxu1  ;;  %v13692_v18 = vld [vmem:[%s13867_s5 + $0xdb0] sm:$0xff] }
 0x671   : > { %18999 = vst [vmem:[#allocation30_spill] sm:$0xff] %v17696_v49 }
 0x672   : > { %19000 = vst [vmem:[#allocation45_spill] sm:$0xff] %v17698_v30  ;;  %v13357_v30 = vld [vmem:[%s13867_s5 + $0x338] sm:$0xff] }
 0x673   : > { %19001 = vst [vmem:[#allocation43_spill] sm:$0xff] %v17700_v11 }
 0x677   : > { %v17702_v9 = vpop.f32.mrf.mxu2  ;;  %v17704_v37 = vpop.f32.mrf.mxu3 }
 0x678   : > { %19002 = vst [vmem:[#allocation34_spill] sm:$0xff] %v17702_v9  ;;  %v17708_v10 = vpop.f32.mrf.mxu0  ;;  %v17710_v48 = vpop.f32.mrf.mxu1 }
 0x679   : > { %19003 = vst [vmem:[#allocation31_spill] sm:$0xff] %v17704_v37 }
 0x67a   : > { %19004 = vst [vmem:[#allocation40_spill] sm:$0xff] %v17708_v10 }
 0x67b   : > { %19005 = vst [vmem:[#allocation33_spill] sm:$0xff] %v17710_v48  ;;  %10720 = vmatmul.msk.bf16.gmra.mxu0 %vm1022_vm2, %v13356_v22  ;;  %11504 = vmatmul.msk.bf16.gmra.mxu1 %vm1022_vm2, %v13468_v43  ;;  %v13469_v22 = vld [vmem:[%s13867_s5 + $0x6b8] sm:$0xff] }
 0x67c   : > { %12344 = vmatmul.msk.bf16.gmra.mxu2 %vm1022_vm2, %v13580_v41  ;;  %13184 = vmatmul.msk.bf16.gmra.mxu3 %vm1022_vm2, %v13692_v18  ;;  %v13581_v18 = vld [vmem:[%s13867_s5 + $0xa38] sm:$0xff] }
 0x67f   : > { %v17718_v37 = vpop.f32.mrf.mxu2  ;;  %v17720_v49 = vpop.f32.mrf.mxu3 }
 0x680   : > { %19006 = vst [vmem:[#allocation60_spill] sm:$0xff] %v17718_v37  ;;  %v17722_v9 = vpop.f32.mrf.mxu0  ;;  %v17724_v10 = vpop.f32.mrf.mxu1  ;;  %v13693_v37 = vld [vmem:[%s13867_s5 + $0xdb8] sm:$0xff] }
 0x681   : > { %19007 = vst [vmem:[#allocation38_spill] sm:$0xff] %v17720_v49 }
 0x682   : > { %19008 = vst [vmem:[#allocation53_spill] sm:$0xff] %v17722_v9  ;;  %v13358_v9 = vld [vmem:[%s13867_s5 + $0x340] sm:$0xff] }
 0x683   : > { %19009 = vst [vmem:[#allocation51_spill] sm:$0xff] %v17724_v10 }
 0x687   : > { %v17726_v48 = vpop.f32.mrf.mxu2  ;;  %v17728_v11 = vpop.f32.mrf.mxu3 }
 0x688   : > { %19010 = vst [vmem:[#allocation42_spill] sm:$0xff] %v17726_v48  ;;  %v17732_v43 = vpop.f32.mrf.mxu0  ;;  %v17734_v41 = vpop.f32.mrf.mxu1 }
 0x689   : > { %19011 = vst [vmem:[#allocation39_spill] sm:$0xff] %v17728_v11 }
 0x68a   : > { %19012 = vst [vmem:[#allocation48_spill] sm:$0xff] %v17732_v43 }
 0x68b   : > { %19013 = vst [vmem:[#allocation41_spill] sm:$0xff] %v17734_v41  ;;  %10721 = vmatmul.msk.bf16.gmra.mxu0 %vm1022_vm2, %v13357_v30  ;;  %11505 = vmatmul.msk.bf16.gmra.mxu1 %vm1022_vm2, %v13469_v22  ;;  %v13470_v30 = vld [vmem:[%s13867_s5 + $0x6c0] sm:$0xff] }
 0x68c   : > { %12345 = vmatmul.msk.bf16.gmra.mxu2 %vm1022_vm2, %v13581_v18  ;;  %13185 = vmatmul.msk.bf16.gmra.mxu3 %vm1022_vm2, %v13693_v37  ;;  %v13582_v37 = vld [vmem:[%s13867_s5 + $0xa40] sm:$0xff] }
 0x68f   : > { %v17742_v11 = vpop.f32.mrf.mxu2  ;;  %v17744_v49 = vpop.f32.mrf.mxu3 }
 0x690   : > { %19014 = vst [vmem:[#allocation68_spill] sm:$0xff] %v17742_v11  ;;  %v17746_v48 = vpop.f32.mrf.mxu0  ;;  %v17748_v43 = vpop.f32.mrf.mxu1  ;;  %v13694_v11 = vld [vmem:[%s13867_s5 + $0xdc0] sm:$0xff] }
 0x691   : > { %19015 = vst [vmem:[#allocation46_spill] sm:$0xff] %v17744_v49 }
 0x692   : > { %19016 = vst [vmem:[#allocation61_spill] sm:$0xff] %v17746_v48  ;;  %v13359_v48 = vld [vmem:[%s13867_s5 + $0x348] sm:$0xff] }
 0x693   : > { %19017 = vst [vmem:[#allocation69_spill] sm:$0xff] %v17748_v43 }
 0x697   : > { %v17750_v41 = vpop.f32.mrf.mxu2  ;;  %v17752_v10 = vpop.f32.mrf.mxu3 }
 0x698   : > { %19018 = vst [vmem:[#allocation50_spill] sm:$0xff] %v17750_v41  ;;  %v17756_v22 = vpop.f32.mrf.mxu0  ;;  %v17758_v18 = vpop.f32.mrf.mxu1 }
 0x699   : > { %19019 = vst [vmem:[#allocation47_spill] sm:$0xff] %v17752_v10 }
 0x69a   : > { %19020 = vst [vmem:[#allocation56_spill] sm:$0xff] %v17756_v22 }
 0x69b   : > { %19021 = vst [vmem:[#allocation49_spill] sm:$0xff] %v17758_v18  ;;  %10722 = vmatmul.msk.bf16.gmra.mxu0 %vm1022_vm2, %v13358_v9  ;;  %11506 = vmatmul.msk.bf16.gmra.mxu1 %vm1022_vm2, %v13470_v30  ;;  %v13471_v9 = vld [vmem:[%s13867_s5 + $0x6c8] sm:$0xff] }
 0x69c   : > { %12346 = vmatmul.msk.bf16.gmra.mxu2 %vm1022_vm2, %v13582_v37  ;;  %13186 = vmatmul.msk.bf16.gmra.mxu3 %vm1022_vm2, %v13694_v11  ;;  %v13583_v11 = vld [vmem:[%s13867_s5 + $0xa48] sm:$0xff] }
 0x69d   : > { %v13695_v37 = vld [vmem:[%s13867_s5 + $0xdc8] sm:$0xff] }
 0x69f   : > { %v17766_v10 = vpop.f32.mrf.mxu2  ;;  %v17768_v49 = vpop.f32.mrf.mxu3 }
 0x6a0   : > { %19022 = vst [vmem:[#allocation70_spill] sm:$0xff] %v17766_v10  ;;  %v17770_v41 = vpop.f32.mrf.mxu0  ;;  %v17772_v22 = vpop.f32.mrf.mxu1 }
 0x6a1   : > { %19023 = vst [vmem:[#allocation54_spill] sm:$0xff] %v17768_v49 }
 0x6a2   : > { %19024 = vst [vmem:[#allocation59_spill] sm:$0xff] %v17770_v41 }
 0x6a3   : > { %19025 = vst [vmem:[#allocation63_spill] sm:$0xff] %v17772_v22  ;;  %v13584_v22 = vld [vmem:[%s13867_s5 + $0xa50] sm:$0xff] }
 0x6a7   : > { %v17774_v18 = vpop.f32.mrf.mxu2  ;;  %v17776_v43 = vpop.f32.mrf.mxu3 }
 0x6a8   : > { %19026 = vst [vmem:[#allocation58_spill] sm:$0xff] %v17774_v18  ;;  %v17780_v16 = vpop.f32.mrf.mxu0  ;;  %v17782_v30 = vpop.f32.mrf.mxu1 }
 0x6a9   : > { %19027 = vst [vmem:[#allocation55_spill] sm:$0xff] %v17776_v43 }
 0x6aa   : > { %19028 = vst [vmem:[#allocation67_spill] sm:$0xff] %v17780_v16 }
 0x6ab   : > { %19029 = vst [vmem:[#allocation71_spill] sm:$0xff] %v17782_v30  ;;  %10723 = vmatmul.msk.bf16.gmra.mxu0 %vm1022_vm2, %v13359_v48  ;;  %11507 = vmatmul.msk.bf16.gmra.mxu1 %vm1022_vm2, %v13471_v9  ;;  %v17801_v48 = vld [vmem:[%s18546_s2] ss:$0 sm:$0xff] }
 0x6ac   : > { %12347 = vmatmul.msk.bf16.gmra.mxu2 %vm1022_vm2, %v13583_v11  ;;  %13187 = vmatmul.msk.bf16.gmra.mxu3 %vm1022_vm2, %v13695_v37  ;;  %v1796_v9 = vadd.f32 %v17801_v48, %v17424_v40  ;;  %v13360_v37 = vld [vmem:[%s13867_s5 + $0x350] sm:$0xff] }
 0x6ae   : > { %v2103_v41 = vmax.f32 %v1796_v9, 0.0 }
 0x6af   : > { %v17790_v43 = vpop.f32.mrf.mxu2  ;;  %v17792_v49 = vpop.f32.mrf.mxu3 }
 0x6b0   : > { %19030 = vst [vmem:[#allocation57_spill] sm:$0xff] %v17790_v43  ;;  %v17794_v18 = vpop.f32.mrf.mxu0  ;;  %v17796_v30 = vpop.f32.mrf.mxu1  ;;  %v13472_v43 = vld [vmem:[%s13867_s5 + $0x6d0] sm:$0xff] }
 0x6b1   : > { %19031 = vst [vmem:[#allocation62_spill] sm:$0xff] %v17792_v49 }
 0x6b2   : > { %19032 = vst [vmem:[#allocation64_spill] sm:$0xff] %v17794_v18  ;;  %v13696_v18 = vld [vmem:[%s13867_s5 + $0xdd0] sm:$0xff] }
 0x6b3   : > { %19033 = vst [vmem:[#allocation66_spill] sm:$0xff] %v17796_v30 }
 0x6b7   : > { %v17805_v10 = vpop.f32.mrf.mxu2  ;;  %v17807_v11 = vpop.f32.mrf.mxu3 }
 0x6b8   : > { %19034 = vst [vmem:[#allocation65_spill] sm:$0xff] %v17805_v10  ;;  %v1865_v16 = vpop.f32.mrf.mxu0  ;;  %v4401_v49 = vpop.f32.mrf.mxu1 }
 0x6b9   : > { %19035 = vst [vmem:[#allocation72_spill] sm:$0xff] %v17807_v11  ;;  %v1866_v30 = vadd.f32 %v17801_v48, %v1865_v16  ;;  %v1798_v11 = vadd.f32 %v17801_v48, %v17454_v4 }
 0x6bb   : > { %v2131_v53 = vmax.f32 %v1866_v30, 0.0  ;;  %10724 = vmatmul.msk.bf16.gmra.mxu0 %vm1022_vm2, %v13360_v37  ;;  %11508 = vmatmul.msk.bf16.gmra.mxu1 %vm1022_vm2, %v13472_v43  ;;  %v2104_v43 = vmax.f32 %v1798_v11, 0.0  ;;  %v13473_v11 = vld [vmem:[%s13867_s5 + $0x6d8] sm:$0xff] }
 0x6bc   : > { %12348 = vmatmul.msk.bf16.gmra.mxu2 %vm1022_vm2, %v13584_v22  ;;  %13188 = vmatmul.msk.bf16.gmra.mxu3 %vm1022_vm2, %v13696_v18  ;;  %v4332_v18 = vadd.f32 %v17801_v48, %v17426_v60 }
 0x6bd   : > { %v2243_v40 = vmax.f32 %v2103_v41, %v2131_v53  ;;  %v4402_v53 = vadd.f32 %v17801_v48, %v4401_v49 }
 0x6be   : > { %v4639_v45 = vmax.f32 %v4332_v18, 0.0 }
 0x6bf   : > { %2356 = vst.msk [vmem:[#allocation2 + $0x2a0] sm:$0xff] %vm2271_vm3, %v2243_v40  ;;  %v6824_v10 = vpop.f32.mrf.mxu2  ;;  %v17821_v16 = vpop.f32.mrf.mxu3  ;;  %v1801_v40 = vadd.f32 %v17801_v48, %v17477_v2  ;;  %v4667_v56 = vmax.f32 %v4402_v53, 0.0 }
 0x6c0   : > { %v1867_v30 = vpop.f32.mrf.mxu0  ;;  %v4403_v9 = vpop.f32.mrf.mxu1  ;;  %v6825_v52 = vadd.f32 %v17801_v48, %v6824_v10 }
 0x6c1   : > { %v1868_v37 = vadd.f32 %v17801_v48, %v1867_v30  ;;  %v4404_v4 = vadd.f32 %v17801_v48, %v4403_v9  ;;  %v13361_v30 = vld [vmem:[%s13867_s5 + $0x358] sm:$0xff]  ;;  %v2105_v2 = vmax.f32 %v1801_v40, 0.0 }
 0x6c2   : > { %v13697_v9 = vld [vmem:[%s13867_s5 + $0xdd8] sm:$0xff] }
 0x6c3   : > { %v2132_v22 = vmax.f32 %v1868_v37, 0.0  ;;  %v4334_v37 = vadd.f32 %v17801_v48, %v17456_v47  ;;  %v4668_v25 = vmax.f32 %v4404_v4, 0.0  ;;  %v4779_v47 = vmax.f32 %v4639_v45, %v4667_v56 }
 0x6c4   : > { %v1803_v4 = vadd.f32 %v17801_v48, %v17500_v3  ;;  %v6755_v45 = vadd.f32 %v17801_v48, %v17447_v12  ;;  %v6757_v3 = vadd.f32 %v17801_v48, %v17469_v34 }
 0x6c5   : > { %v2244_v41 = vmax.f32 %v2104_v43, %v2132_v22  ;;  %v13585_v22 = vld [vmem:[%s13867_s5 + $0xa58] sm:$0xff] }
 0x6c6   : > { %v2106_v10 = vmax.f32 %v1803_v4, 0.0  ;;  %v7062_v12 = vmax.f32 %v6755_v45, 0.0  ;;  %v4339_v45 = vadd.f32 %v17801_v48, %v17502_v14  ;;  %v9180_v14 = vadd.f32 %v17801_v48, %v17471_v28 }
 0x6c7   : > { %2357 = vst.msk [vmem:[#allocation2 + $0x2a8] sm:$0xff] %vm2271_vm3, %v2244_v41  ;;  %v6826_v50 = vpop.f32.mrf.mxu2  ;;  %v17831_v15 = vpop.f32.mrf.mxu3  ;;  %v4640_v41 = vmax.f32 %v4334_v37, 0.0 }
 0x6c8   : > { %v1870_v49 = vpop.f32.mrf.mxu0  ;;  %v4406_v43 = vpop.f32.mrf.mxu1  ;;  %v6827_v40 = vadd.f32 %v17801_v48, %v6826_v50  ;;  %v7090_v50 = vmax.f32 %v6825_v52, 0.0  ;;  %v9248_v52 = vadd.f32 %v17801_v48, %v17821_v16 }
 0x6c9   : > { %v1871_v60 = vadd.f32 %v17801_v48, %v1870_v49  ;;  %v4780_v49 = vmax.f32 %v4640_v41, %v4668_v25 }
 0x6ca   : > { %v7091_v37 = vmax.f32 %v6827_v40, 0.0  ;;  %v7202_v41 = vmax.f32 %v7062_v12, %v7090_v50  ;;  %v13474_v40 = vld [vmem:[%s13867_s5 + $0x6e0] sm:$0xff] }
 0x6cb   : > { %v2133_v38 = vmax.f32 %v1871_v60, 0.0  ;;  %10725 = vmatmul.msk.bf16.gmra.mxu0 %vm1022_vm2, %v13361_v30  ;;  %11509 = vmatmul.msk.bf16.gmra.mxu1 %vm1022_vm2, %v13473_v11  ;;  %v4407_v60 = vadd.f32 %v17801_v48, %v4406_v43 }
 0x6cc   : > { %12349 = vmatmul.msk.bf16.gmra.mxu2 %vm1022_vm2, %v13585_v22  ;;  %13189 = vmatmul.msk.bf16.gmra.mxu3 %vm1022_vm2, %v13697_v9  ;;  %v7063_v9 = vmax.f32 %v6757_v3, 0.0  ;;  %v13586_v3 = vld [vmem:[%s13867_s5 + $0xa60] sm:$0xff] }
 0x6cd   : > { %v2245_v35 = vmax.f32 %v2105_v2, %v2133_v38  ;;  %v4669_v50 = vmax.f32 %v4407_v60, 0.0 }
 0x6ce   : > { %v2468_v53 = vld [vmem:[#allocation2 + $0x2a0] ss:$2 sm:$0xff]  ;;  %v2580_v31 = vld [vmem:[#allocation2 + $0x2a1] ss:$2 sm:$0xff]  ;;  %v7203_v4 = vmax.f32 %v7063_v9, %v7091_v37  ;;  %v1806_v37 = vadd.f32 %v17801_v48, %v17514_v44  ;;  %v9513_v9 = vmax.f32 %v9248_v52, 0.0  ;;  %v9486_v44 = vmax.f32 %v9180_v14, 0.0 }
 0x6cf   : > { %v2649_v18 = vmax.f32 %v2468_v53, %v2580_v31  ;;  %4891 = vst.msk [vmem:[#allocation2 + $0x2a0] sm:$0xff] %vm2271_vm3, %v4779_v47  ;;  %v6829_v30 = vpop.f32.mrf.mxu2  ;;  %v17849_v11 = vpop.f32.mrf.mxu3  ;;  %v13362_v47 = vld [vmem:[%s13867_s5 + $0x360] sm:$0xff] }
 0x6d0   : > { %4892 = vst.msk [vmem:[#allocation2 + $0x2a8] sm:$0xff] %vm2271_vm3, %v4780_v49  ;;  %v1872_v56 = vpop.f32.mrf.mxu0  ;;  %v4408_v38 = vpop.f32.mrf.mxu1 }
 0x6d1   : > { %v2705_v25 = vpack.c.bf16 %v2649_v18, %v2649_v18  ;;  %2358 = vst.msk [vmem:[#allocation2 + $0x2b0] sm:$0xff] %vm2271_vm3, %v2245_v35  ;;  %v1873_v31 = vadd.f32 %v17801_v48, %v1872_v56  ;;  %v4409_v34 = vadd.f32 %v17801_v48, %v4408_v38  ;;  %v4337_v35 = vadd.f32 %v17801_v48, %v17479_v26 }
 0x6d2   : > { %v9250_v26 = vadd.f32 %v17801_v48, %v17831_v15 }
 0x6d3   : > { %2765 = vst.msk [vmem:[%s14327_s20 + $0xa8] sm:$0xf] %vm2722_vm4, %v2705_v25  ;;  %v2134_v22 = vmax.f32 %v1873_v31, 0.0  ;;  %v13698_v25 = vld [vmem:[%s13867_s5 + $0xde0] sm:$0xff]  ;;  %v9178_v31 = vadd.f32 %v17801_v48, %v17449_v20  ;;  %v4641_v12 = vmax.f32 %v4337_v35, 0.0  ;;  %v4642_v20 = vmax.f32 %v4339_v45, 0.0 }
 0x6d4   : > { %v9514_v60 = vmax.f32 %v9250_v26, 0.0 }
 0x6d5   : > { %v2246_v2 = vmax.f32 %v2106_v10, %v2134_v22  ;;  %v4670_v22 = vmax.f32 %v4409_v34, 0.0  ;;  %v9485_v28 = vmax.f32 %v9178_v31, 0.0  ;;  %v6830_v34 = vadd.f32 %v17801_v48, %v6829_v30 }
 0x6d7   : > { %v4961_v53 = vld [vmem:[#allocation2 + $0x2a0] ss:$2 sm:$0xff]  ;;  %v5017_v49 = vld [vmem:[#allocation2 + $0x2a1] ss:$2 sm:$0xff]  ;;  %2359 = vst.msk [vmem:[#allocation2 + $0x2b8] sm:$0xff] %vm2271_vm3, %v2246_v2  ;;  %v6831_v18 = vpop.f32.mrf.mxu2  ;;  %v17868_v43 = vpop.f32.mrf.mxu3 }
 0x6d8   : > { %v5073_v56 = vmax.f32 %v4961_v53, %v5017_v49  ;;  %7314 = vst.msk [vmem:[#allocation2 + $0x2a0] sm:$0xff] %vm2271_vm3, %v7202_v41  ;;  %v1875_v38 = vpop.f32.mrf.mxu0  ;;  %v4411_v16 = vpop.f32.mrf.mxu1  ;;  %v4781_v41 = vmax.f32 %v4641_v12, %v4669_v50  ;;  %v2107_v53 = vmax.f32 %v1806_v37, 0.0  ;;  %v1808_v49 = vadd.f32 %v17801_v48, %v17530_v7 }
 0x6d9   : > { %7315 = vst.msk [vmem:[#allocation2 + $0x2a8] sm:$0xff] %vm2271_vm3, %v7203_v4  ;;  %v1876_v10 = vadd.f32 %v17801_v48, %v1875_v38  ;;  %v9625_v4 = vmax.f32 %v9485_v28, %v9513_v9  ;;  %v6832_v45 = vadd.f32 %v17801_v48, %v6831_v18  ;;  %v6760_v38 = vadd.f32 %v17801_v48, %v17496_v21 }
 0x6da   : > { %v5129_v15 = vpack.c.bf16 %v5073_v56, %v5073_v56  ;;  %v6762_v18 = vadd.f32 %v17801_v48, %v17508_v39  ;;  %v7092_v21 = vmax.f32 %v6830_v34, 0.0  ;;  %v9253_v34 = vadd.f32 %v17801_v48, %v17849_v11 }
 0x6db   : > { %10726 = vmatmul.msk.bf16.gmra.mxu0 %vm1022_vm2, %v13362_v47  ;;  %11510 = vmatmul.msk.bf16.gmra.mxu1 %vm1022_vm2, %v13474_v40  ;;  %v2135_v2 = vmax.f32 %v1876_v10, 0.0  ;;  %v4782_v47 = vmax.f32 %v4642_v20, %v4670_v22  ;;  %v7093_v12 = vmax.f32 %v6832_v45, 0.0  ;;  %v7064_v20 = vmax.f32 %v6760_v38, 0.0 }
 0x6dc   : > { %11556 = vst.msk [vmem:[%s14327_s20 + $0x188] sm:$0xf] %vm2722_vm4, %v5129_v15  ;;  %12350 = vmatmul.msk.bf16.gmra.mxu2 %vm1022_vm2, %v13586_v3  ;;  %13190 = vmatmul.msk.bf16.gmra.mxu3 %vm1022_vm2, %v13698_v25  ;;  %v9626_v25 = vmax.f32 %v9486_v44, %v9514_v60  ;;  %v2108_v15 = vmax.f32 %v1808_v49, 0.0  ;;  %v7065_v39 = vmax.f32 %v6762_v18, 0.0  ;;  %v4412_v60 = vadd.f32 %v17801_v48, %v4411_v16  ;;  %v13363_v44 = vld [vmem:[%s13867_s5 + $0x368] sm:$0xff] }
 0x6dd   : > { %v2247_v7 = vmax.f32 %v2107_v53, %v2135_v2  ;;  %v7204_v28 = vmax.f32 %v7064_v20, %v7092_v21  ;;  %v4342_v53 = vadd.f32 %v17801_v48, %v17516_v24  ;;  %v4344_v24 = vadd.f32 %v17801_v48, %v17532_v57 }
 0x6de   : > { %v2470_v35 = vld [vmem:[#allocation2 + $0x2b0] ss:$2 sm:$0xff]  ;;  %v2582_v52 = vld [vmem:[#allocation2 + $0x2b1] ss:$2 sm:$0xff]  ;;  %v9255_v11 = vadd.f32 %v17801_v48, %v17868_v43  ;;  %v9515_v21 = vmax.f32 %v9253_v34, 0.0 }
 0x6df   : > { %v2650_v40 = vmax.f32 %v2470_v35, %v2582_v52  ;;  %4893 = vst.msk [vmem:[#allocation2 + $0x2b0] sm:$0xff] %vm2271_vm3, %v4781_v41  ;;  %v17897_v56 = vpop.f32.mrf.mxu2  ;;  %v17899_v26 = vpop.f32.mrf.mxu3 }
 0x6e0   : > { %v7384_v30 = vld [vmem:[#allocation2 + $0x2a0] ss:$2 sm:$0xff]  ;;  %v7440_v3 = vld [vmem:[#allocation2 + $0x2a1] ss:$2 sm:$0xff]  ;;  %4894 = vst.msk [vmem:[#allocation2 + $0x2b8] sm:$0xff] %vm2271_vm3, %v4782_v47  ;;  %v1877_v31 = vpop.f32.mrf.mxu0  ;;  %v4413_v50 = vpop.f32.mrf.mxu1  ;;  %v7205_v47 = vmax.f32 %v7065_v39, %v7093_v12 }
 0x6e1   : > { %v7496_v10 = vmax.f32 %v7384_v30, %v7440_v3  ;;  %9737 = vst.msk [vmem:[#allocation2 + $0x2a0] sm:$0xff] %vm2271_vm3, %v9625_v4  ;;  %v2706_v14 = vpack.c.bf16 %v2650_v40, %v2650_v40  ;;  %v1878_v37 = vadd.f32 %v17801_v48, %v1877_v31  ;;  %v4414_v41 = vadd.f32 %v17801_v48, %v4413_v50  ;;  %v13475_v4 = vld [vmem:[%s13867_s5 + $0x6e8] sm:$0xff] }
 0x6e2   : > { %9738 = vst.msk [vmem:[#allocation2 + $0x2a8] sm:$0xff] %vm2271_vm3, %v9626_v25  ;;  %v9183_v40 = vadd.f32 %v17801_v48, %v17498_v6  ;;  %v13587_v3 = vld [vmem:[%s13867_s5 + $0xa68] sm:$0xff]  ;;  %v1811_v6 = vadd.f32 %v17801_v48, %v17540_v33  ;;  %v4671_v50 = vmax.f32 %v4412_v60, 0.0  ;;  %v9516_v33 = vmax.f32 %v9255_v11, 0.0 }
 0x6e3   : > { %v7552_v22 = vpack.c.bf16 %v7496_v10, %v7496_v10  ;;  %2766 = vst.msk [vmem:[%s14327_s20 + $0xac] sm:$0xf] %vm2722_vm4, %v2706_v14  ;;  %v2136_v9 = vmax.f32 %v1878_v37, 0.0  ;;  %v13699_v25 = vld [vmem:[%s13867_s5 + $0xde8] sm:$0xff]  ;;  %v4672_v14 = vmax.f32 %v4414_v41, 0.0  ;;  %v4643_v37 = vmax.f32 %v4342_v53, 0.0 }
 0x6e4   : > { %2360 = vst.msk [vmem:[#allocation2 + $0x2c0] sm:$0xff] %vm2271_vm3, %v2247_v7  ;;  %v9185_v7 = vadd.f32 %v17801_v48, %v17510_v61  ;;  %v4644_v61 = vmax.f32 %v4344_v24, 0.0  ;;  %v9487_v12 = vmax.f32 %v9183_v40, 0.0  ;;  %v2109_v20 = vmax.f32 %v1811_v6, 0.0 }
 0x6e5   : > { %12396 = vst.msk [vmem:[%s14327_s20 + $0x268] sm:$0xf] %vm2722_vm4, %v7552_v22  ;;  %v2248_v2 = vmax.f32 %v2108_v15, %v2136_v9  ;;  %v4783_v39 = vmax.f32 %v4643_v37, %v4671_v50  ;;  %v6835_v60 = vadd.f32 %v17801_v48, %v17897_v56  ;;  %v13364_v37 = vld [vmem:[%s13867_s5 + $0x370] sm:$0xff] }
 0x6e6   : > { %v9488_v9 = vmax.f32 %v9185_v7, 0.0  ;;  %v4784_v41 = vmax.f32 %v4644_v61, %v4672_v14  ;;  %v9627_v53 = vmax.f32 %v9487_v12, %v9515_v21  ;;  %v4347_v21 = vadd.f32 %v17801_v48, %v17542_v54 }
 0x6e7   : > { %v4962_v35 = vld [vmem:[#allocation2 + $0x2b0] ss:$2 sm:$0xff]  ;;  %v5018_v52 = vld [vmem:[#allocation2 + $0x2b1] ss:$2 sm:$0xff]  ;;  %2361 = vst.msk [vmem:[#allocation2 + $0x2c8] sm:$0xff] %vm2271_vm3, %v2248_v2  ;;  %v6836_v49 = vpop.f32.mrf.mxu2  ;;  %v17922_v16 = vpop.f32.mrf.mxu3  ;;  %v9258_v61 = vadd.f32 %v17801_v48, %v17899_v26  ;;  %v4349_v54 = vadd.f32 %v17801_v48, %v17556_v59 }
 0x6e8   : > { %v5074_v45 = vmax.f32 %v4962_v35, %v5018_v52  ;;  %7316 = vst.msk [vmem:[#allocation2 + $0x2b0] sm:$0xff] %vm2271_vm3, %v7204_v28  ;;  %v1880_v38 = vpop.f32.mrf.mxu0  ;;  %v17932_v30 = vpop.f32.mrf.mxu1  ;;  %v6837_v35 = vadd.f32 %v17801_v48, %v6836_v49  ;;  %v9628_v24 = vmax.f32 %v9488_v9, %v9516_v33  ;;  %v6767_v49 = vadd.f32 %v17801_v48, %v17534_v23  ;;  %v13476_v9 = vld [vmem:[%s13867_s5 + $0x6f0] sm:$0xff] }
 0x6e9   : > { %v9807_v31 = vld [vmem:[#allocation2 + $0x2a0] ss:$2 sm:$0xff]  ;;  %v9863_v57 = vld [vmem:[#allocation2 + $0x2a1] ss:$2 sm:$0xff]  ;;  %7317 = vst.msk [vmem:[#allocation2 + $0x2b8] sm:$0xff] %vm2271_vm3, %v7205_v47  ;;  %v1881_v18 = vadd.f32 %v17801_v48, %v1880_v38  ;;  %v9260_v26 = vadd.f32 %v17801_v48, %v17922_v16 }
 0x6ea   : > { %v9919_v43 = vmax.f32 %v9807_v31, %v9863_v57  ;;  %v5130_v10 = vpack.c.bf16 %v5074_v45, %v5074_v45  ;;  %v7095_v31 = vmax.f32 %v6837_v35, 0.0  ;;  %v7067_v23 = vmax.f32 %v6767_v49, 0.0 }
 0x6eb   : > { %10727 = vmatmul.msk.bf16.gmra.mxu0 %vm1022_vm2, %v13363_v44  ;;  %11511 = vmatmul.msk.bf16.gmra.mxu1 %vm1022_vm2, %v13475_v4  ;;  %v2137_v22 = vmax.f32 %v1881_v18, 0.0  ;;  %v1813_v44 = vadd.f32 %v17801_v48, %v17554_v5  ;;  %v6765_v4 = vadd.f32 %v17801_v48, %v17526_v19  ;;  %v7094_v19 = vmax.f32 %v6835_v60, 0.0 }
 0x6ec   : > { %v9975_v15 = vpack.c.bf16 %v9919_v43, %v9919_v43  ;;  %11557 = vst.msk [vmem:[%s14327_s20 + $0x18c] sm:$0xf] %vm2722_vm4, %v5130_v10  ;;  %12351 = vmatmul.msk.bf16.gmra.mxu2 %vm1022_vm2, %v13587_v3  ;;  %13191 = vmatmul.msk.bf16.gmra.mxu3 %vm1022_vm2, %v13699_v25  ;;  %v4417_v18 = vadd.f32 %v17801_v48, %v17932_v30 }
 0x6ed   : > { %v2249_v5 = vmax.f32 %v2109_v20, %v2137_v22  ;;  %v2110_v7 = vmax.f32 %v1813_v44, 0.0  ;;  %v7066_v50 = vmax.f32 %v6765_v4, 0.0  ;;  %v7207_v22 = vmax.f32 %v7067_v23, %v7095_v31 }
 0x6ee   : > { %13236 = vst.msk [vmem:[%s14327_s20 + $0x348] sm:$0xf] %vm2722_vm4, %v9975_v15  ;;  %v2472_v2 = vld [vmem:[#allocation2 + $0x2c0] ss:$2 sm:$0xff]  ;;  %v2584_v28 = vld [vmem:[#allocation2 + $0x2c1] ss:$2 sm:$0xff]  ;;  %v9188_v20 = vadd.f32 %v17801_v48, %v17528_v27  ;;  %v9190_v44 = vadd.f32 %v17801_v48, %v17536_v51  ;;  %v1816_v27 = vadd.f32 %v17801_v48, %v17564_v1  ;;  %v1818_v31 = vadd.f32 %v17801_v48, %v17578_v13 }
 0x6ef   : > { %v2651_v34 = vmax.f32 %v2472_v2, %v2584_v28  ;;  %4895 = vst.msk [vmem:[#allocation2 + $0x2c0] sm:$0xff] %vm2271_vm3, %v4783_v39  ;;  %v17956_v52 = vpop.f32.mrf.mxu2  ;;  %v17958_v47 = vpop.f32.mrf.mxu3  ;;  %v7206_v10 = vmax.f32 %v7066_v50, %v7094_v19  ;;  %v13588_v28 = vld [vmem:[%s13867_s5 + $0xa70] sm:$0xff]  ;;  %v4646_v51 = vmax.f32 %v4349_v54, 0.0  ;;  %v9518_v1 = vmax.f32 %v9260_v26, 0.0 }
 0x6f0   : > { %v7385_v56 = vld [vmem:[#allocation2 + $0x2b0] ss:$2 sm:$0xff]  ;;  %v7441_v40 = vld [vmem:[#allocation2 + $0x2b1] ss:$2 sm:$0xff]  ;;  %4896 = vst.msk [vmem:[#allocation2 + $0x2c8] sm:$0xff] %vm2271_vm3, %v4784_v41  ;;  %v1882_v45 = vpop.f32.mrf.mxu0  ;;  %v4418_v11 = vpop.f32.mrf.mxu1  ;;  %v9490_v49 = vmax.f32 %v9190_v44, 0.0 }
 0x6f1   : > { %v7497_v38 = vmax.f32 %v7385_v56, %v7441_v40  ;;  %9739 = vst.msk [vmem:[#allocation2 + $0x2b0] sm:$0xff] %vm2271_vm3, %v9627_v53  ;;  %v2707_v3 = vpack.c.bf16 %v2651_v34, %v2651_v34  ;;  %v1883_v25 = vadd.f32 %v17801_v48, %v1882_v45  ;;  %v4419_v14 = vadd.f32 %v17801_v48, %v4418_v11  ;;  %v13700_v41 = vld [vmem:[%s13867_s5 + $0xdf0] sm:$0xff] }
 0x6f2   : > { %9740 = vst.msk [vmem:[#allocation2 + $0x2b8] sm:$0xff] %vm2271_vm3, %v9628_v24  ;;  %v4673_v34 = vmax.f32 %v4417_v18, 0.0  ;;  %v4645_v40 = vmax.f32 %v4347_v21, 0.0  ;;  %v9517_v24 = vmax.f32 %v9258_v61, 0.0  ;;  %v9489_v11 = vmax.f32 %v9188_v20, 0.0 }
 0x6f3   : > { %v7553_v6 = vpack.c.bf16 %v7497_v38, %v7497_v38  ;;  %2767 = vst.msk [vmem:[%s14327_s20 + $0xb0] sm:$0xf] %vm2722_vm4, %v2707_v3  ;;  %v2138_v57 = vmax.f32 %v1883_v25, 0.0  ;;  %v4674_v56 = vmax.f32 %v4419_v14, 0.0  ;;  %v2111_v38 = vmax.f32 %v1816_v27, 0.0  ;;  %v13365_v27 = vld [vmem:[%s13867_s5 + $0x378] sm:$0xff] }
 0x6f4   : > { %2362 = vst.msk [vmem:[#allocation2 + $0x2d0] sm:$0xff] %vm2271_vm3, %v2249_v5  ;;  %v4785_v3 = vmax.f32 %v4645_v40, %v4673_v34  ;;  %v6840_v25 = vadd.f32 %v17801_v48, %v17956_v52  ;;  %v9193_v40 = vadd.f32 %v17801_v48, %v17552_v55  ;;  %v1821_v55 = vadd.f32 %v17801_v48, %v17588_v46 }
 0x6f5   : > { %12397 = vst.msk [vmem:[%s14327_s20 + $0x26c] sm:$0xf] %vm2722_vm4, %v7553_v6  ;;  %v2250_v43 = vmax.f32 %v2110_v7, %v2138_v57  ;;  %v4786_v6 = vmax.f32 %v4646_v51, %v4674_v56  ;;  %v9629_v57 = vmax.f32 %v9489_v11, %v9517_v24  ;;  %v13477_v56 = vld [vmem:[%s13867_s5 + $0x6f8] sm:$0xff]  ;;  %v9195_v11 = vadd.f32 %v17801_v48, %v17560_v0 }
 0x6f7   : > { %v4963_v15 = vld [vmem:[#allocation2 + $0x2c0] ss:$2 sm:$0xff]  ;;  %v5019_v33 = vld [vmem:[#allocation2 + $0x2c1] ss:$2 sm:$0xff]  ;;  %2363 = vst.msk [vmem:[#allocation2 + $0x2d8] sm:$0xff] %vm2271_vm3, %v2250_v43  ;;  %v6841_v12 = vpop.f32.mrf.mxu2  ;;  %v17982_v30 = vpop.f32.mrf.mxu3 }
 0x6f8   : > { %v5075_v39 = vmax.f32 %v4963_v15, %v5019_v33  ;;  %7318 = vst.msk [vmem:[#allocation2 + $0x2c0] sm:$0xff] %vm2271_vm3, %v7206_v10  ;;  %v1885_v60 = vpop.f32.mrf.mxu0  ;;  %v17992_v2 = vpop.f32.mrf.mxu1  ;;  %v6842_v23 = vadd.f32 %v17801_v48, %v6841_v12  ;;  %v6770_v10 = vadd.f32 %v17801_v48, %v17550_v42  ;;  %v6772_v15 = vadd.f32 %v17801_v48, %v17558_v62 }
 0x6f9   : > { %v9808_v53 = vld [vmem:[#allocation2 + $0x2b0] ss:$2 sm:$0xff]  ;;  %v9864_v59 = vld [vmem:[#allocation2 + $0x2b1] ss:$2 sm:$0xff]  ;;  %7319 = vst.msk [vmem:[#allocation2 + $0x2c8] sm:$0xff] %vm2271_vm3, %v7207_v22  ;;  %v1886_v35 = vadd.f32 %v17801_v48, %v1885_v60  ;;  %v7096_v42 = vmax.f32 %v6840_v25, 0.0  ;;  %v4422_v60 = vadd.f32 %v17801_v48, %v17992_v2 }
 0x6fa   : > { %v9920_v16 = vmax.f32 %v9808_v53, %v9864_v59  ;;  %v5131_v4 = vpack.c.bf16 %v5075_v39, %v5075_v39  ;;  %v7097_v54 = vmax.f32 %v6842_v23, 0.0  ;;  %v7068_v26 = vmax.f32 %v6770_v10, 0.0 }
 0x6fb   : > { %10728 = vmatmul.msk.bf16.gmra.mxu0 %vm1022_vm2, %v13364_v37  ;;  %11512 = vmatmul.msk.bf16.gmra.mxu1 %vm1022_vm2, %v13476_v9  ;;  %v2139_v45 = vmax.f32 %v1886_v35, 0.0  ;;  %v9630_v37 = vmax.f32 %v9490_v49, %v9518_v1  ;;  %v2112_v9 = vmax.f32 %v1818_v31, 0.0  ;;  %v7069_v62 = vmax.f32 %v6772_v15, 0.0  ;;  %v13589_v1 = vld [vmem:[%s13867_s5 + $0xa78] sm:$0xff] }
 0x6fc   : > { %v9976_v5 = vpack.c.bf16 %v9920_v16, %v9920_v16  ;;  %11558 = vst.msk [vmem:[%s14327_s20 + $0x190] sm:$0xf] %vm2722_vm4, %v5131_v4  ;;  %12352 = vmatmul.msk.bf16.gmra.mxu2 %vm1022_vm2, %v13588_v28  ;;  %13192 = vmatmul.msk.bf16.gmra.mxu3 %vm1022_vm2, %v13700_v41  ;;  %v7208_v41 = vmax.f32 %v7068_v26, %v7096_v42  ;;  %v9492_v23 = vmax.f32 %v9195_v11, 0.0  ;;  %v2113_v10 = vmax.f32 %v1821_v55, 0.0  ;;  %v19036_v11 = vld [vmem:[#allocation11_spill] sm:$0xff] }
 0x6fd   : > { %v2251_v13 = vmax.f32 %v2111_v38, %v2139_v45  ;;  %v4352_v53 = vadd.f32 %v17801_v48, %v17566_v29  ;;  %v9263_v59 = vadd.f32 %v17801_v48, %v17958_v47  ;;  %v7209_v16 = vmax.f32 %v7069_v62, %v7097_v54  ;;  %v13701_v45 = vld [vmem:[%s13867_s5 + $0xdf8] sm:$0xff] }
 0x6fe   : > { %13237 = vst.msk [vmem:[%s14327_s20 + $0x34c] sm:$0xf] %vm2722_vm4, %v9976_v5  ;;  %v2474_v19 = vld [vmem:[#allocation2 + $0x2d0] ss:$2 sm:$0xff]  ;;  %v2586_v7 = vld [vmem:[#allocation2 + $0x2d1] ss:$2 sm:$0xff]  ;;  %v4354_v29 = vadd.f32 %v17801_v48, %v17580_v17  ;;  %v9265_v47 = vadd.f32 %v17801_v48, %v17982_v30  ;;  %v6777_v62 = vadd.f32 %v17801_v48, %v17582_v58  ;;  %v4359_v55 = vadd.f32 %v17801_v48, %v19036_v11 }
 0x6ff   : > { %v2652_v50 = vmax.f32 %v2474_v19, %v2586_v7  ;;  %4897 = vst.msk [vmem:[#allocation2 + $0x2d0] sm:$0xff] %vm2271_vm3, %v4785_v3  ;;  %v18016_v18 = vpop.f32.mrf.mxu2  ;;  %v18018_v43 = vpop.f32.mrf.mxu3  ;;  %v4675_v38 = vmax.f32 %v4422_v60, 0.0  ;;  %v4647_v7 = vmax.f32 %v4352_v53, 0.0 }
 0x700   : > { %v7386_v52 = vld [vmem:[#allocation2 + $0x2c0] ss:$2 sm:$0xff]  ;;  %v7442_v14 = vld [vmem:[#allocation2 + $0x2c1] ss:$2 sm:$0xff]  ;;  %4898 = vst.msk [vmem:[#allocation2 + $0x2d8] sm:$0xff] %vm2271_vm3, %v4786_v6  ;;  %v1887_v21 = vpop.f32.mrf.mxu0  ;;  %v4423_v61 = vpop.f32.mrf.mxu1  ;;  %v9519_v6 = vmax.f32 %v9263_v59, 0.0 }
 0x701   : > { %v7498_v33 = vmax.f32 %v7386_v52, %v7442_v14  ;;  %9741 = vst.msk [vmem:[#allocation2 + $0x2c0] sm:$0xff] %vm2271_vm3, %v9629_v57  ;;  %v2708_v22 = vpack.c.bf16 %v2652_v50, %v2652_v50  ;;  %v1888_v12 = vadd.f32 %v17801_v48, %v1887_v21  ;;  %v4424_v44 = vadd.f32 %v17801_v48, %v4423_v61 }
 0x702   : > { %9742 = vst.msk [vmem:[#allocation2 + $0x2c8] sm:$0xff] %vm2271_vm3, %v9630_v37  ;;  %v4648_v0 = vmax.f32 %v4354_v29, 0.0  ;;  %v9520_v46 = vmax.f32 %v9265_v47, 0.0  ;;  %v9491_v50 = vmax.f32 %v9193_v40, 0.0  ;;  %v4787_v52 = vmax.f32 %v4647_v7, %v4675_v38  ;;  %v19037_v38 = vld [vmem:[#allocation20_spill] sm:$0xff] }
 0x703   : > { %v7554_v20 = vpack.c.bf16 %v7498_v33, %v7498_v33  ;;  %2768 = vst.msk [vmem:[%s14327_s20 + $0xb4] sm:$0xf] %vm2722_vm4, %v2708_v22  ;;  %v2140_v39 = vmax.f32 %v1888_v12, 0.0  ;;  %v4676_v19 = vmax.f32 %v4424_v44, 0.0  ;;  %v6845_v14 = vadd.f32 %v17801_v48, %v18016_v18 }
 0x704   : > { %2364 = vst.msk [vmem:[#allocation2 + $0x2e0] sm:$0xff] %vm2271_vm3, %v2251_v13  ;;  %v1823_v61 = vadd.f32 %v17801_v48, %v17602_v63  ;;  %v9631_v15 = vmax.f32 %v9491_v50, %v9519_v6  ;;  %v9632_v54 = vmax.f32 %v9492_v23, %v9520_v46  ;;  %v4357_v40 = vadd.f32 %v17801_v48, %v17590_v32 }
 0x705   : > { %12398 = vst.msk [vmem:[%s14327_s20 + $0x270] sm:$0xf] %vm2722_vm4, %v7554_v20  ;;  %v2252_v28 = vmax.f32 %v2112_v9, %v2140_v39  ;;  %v4788_v21 = vmax.f32 %v4648_v0, %v4676_v19  ;;  %v6775_v9 = vadd.f32 %v17801_v48, %v17574_v8  ;;  %v7098_v8 = vmax.f32 %v6845_v14, 0.0 }
 0x706   : > { %v2114_v44 = vmax.f32 %v1823_v61, 0.0  ;;  %v9268_v29 = vadd.f32 %v17801_v48, %v18018_v43  ;;  %v4649_v46 = vmax.f32 %v4357_v40, 0.0  ;;  %v4650_v50 = vmax.f32 %v4359_v55, 0.0  ;;  %v19042_v55 = vld [vmem:[#allocation5_spill] sm:$0xff] }
 0x707   : > { %v4964_v34 = vld [vmem:[#allocation2 + $0x2d0] ss:$2 sm:$0xff]  ;;  %v5020_v35 = vld [vmem:[#allocation2 + $0x2d1] ss:$2 sm:$0xff]  ;;  %2365 = vst.msk [vmem:[#allocation2 + $0x2e8] sm:$0xff] %vm2271_vm3, %v2252_v28  ;;  %v6846_v4 = vpop.f32.mrf.mxu2  ;;  %v18042_v2 = vpop.f32.mrf.mxu3 }
 0x708   : > { %v5076_v24 = vmax.f32 %v4964_v34, %v5020_v35  ;;  %7320 = vst.msk [vmem:[#allocation2 + $0x2d0] sm:$0xff] %vm2271_vm3, %v7208_v41  ;;  %v1890_v51 = vpop.f32.mrf.mxu0  ;;  %v18052_v5 = vpop.f32.mrf.mxu1  ;;  %v6847_v22 = vadd.f32 %v17801_v48, %v6846_v4  ;;  %v7070_v34 = vmax.f32 %v6775_v9, 0.0  ;;  %v7071_v35 = vmax.f32 %v6777_v62, 0.0  ;;  %v19039_v9 = vld [vmem:[#allocation21_spill] sm:$0xff]  ;;  %v19040_v62 = vld [vmem:[#allocation4_spill] sm:$0xff] }
 0x709   : > { %v9809_v49 = vld [vmem:[#allocation2 + $0x2c0] ss:$2 sm:$0xff]  ;;  %v9865_v17 = vld [vmem:[#allocation2 + $0x2c1] ss:$2 sm:$0xff]  ;;  %7321 = vst.msk [vmem:[#allocation2 + $0x2d8] sm:$0xff] %vm2271_vm3, %v7209_v16  ;;  %v1891_v3 = vadd.f32 %v17801_v48, %v1890_v51  ;;  %v4427_v58 = vadd.f32 %v17801_v48, %v18052_v5  ;;  %v9198_v5 = vadd.f32 %v17801_v48, %v17576_v36  ;;  %v9270_v32 = vadd.f32 %v17801_v48, %v18042_v2 }
 0x70a   : > { %v9921_v30 = vmax.f32 %v9809_v49, %v9865_v17  ;;  %v5132_v25 = vpack.c.bf16 %v5076_v24, %v5076_v24  ;;  %v7099_v53 = vmax.f32 %v6847_v22, 0.0  ;;  %v7210_v4 = vmax.f32 %v7070_v34, %v7098_v8 }
 0x70b   : > { %10729 = vmatmul.msk.bf16.gmra.mxu0 %vm1022_vm2, %v13365_v27  ;;  %11513 = vmatmul.msk.bf16.gmra.mxu1 %vm1022_vm2, %v13477_v56  ;;  %v2141_v57 = vmax.f32 %v1891_v3, 0.0  ;;  %v9200_v3 = vadd.f32 %v17801_v48, %v19037_v38  ;;  %v4677_v7 = vmax.f32 %v4427_v58, 0.0  ;;  %v9493_v14 = vmax.f32 %v9198_v5, 0.0 }
 0x70c   : > { %v9977_v31 = vpack.c.bf16 %v9921_v30, %v9921_v30  ;;  %11559 = vst.msk [vmem:[%s14327_s20 + $0x194] sm:$0xf] %vm2722_vm4, %v5132_v25  ;;  %12353 = vmatmul.msk.bf16.gmra.mxu2 %vm1022_vm2, %v13589_v1  ;;  %13193 = vmatmul.msk.bf16.gmra.mxu3 %vm1022_vm2, %v13701_v45  ;;  %v7211_v51 = vmax.f32 %v7071_v35, %v7099_v53  ;;  %v19038_v30 = vld [vmem:[#allocation12_spill] sm:$0xff]  ;;  %v19041_v53 = vld [vmem:[#allocation3_spill] sm:$0xff] }
 0x70d   : > { %v2253_v63 = vmax.f32 %v2113_v10, %v2141_v57  ;;  %v1826_v25 = vadd.f32 %v17801_v48, %v19038_v30  ;;  %v9521_v57 = vmax.f32 %v9268_v29, 0.0  ;;  %v9522_v10 = vmax.f32 %v9270_v32, 0.0 }
 0x70e   : > { %13238 = vst.msk [vmem:[%s14327_s20 + $0x350] sm:$0xf] %vm2722_vm4, %v9977_v31  ;;  %v2476_v37 = vld [vmem:[#allocation2 + $0x2e0] ss:$2 sm:$0xff]  ;;  %v2588_v13 = vld [vmem:[#allocation2 + $0x2e1] ss:$2 sm:$0xff] }
 0x70f   : > { %v2653_v33 = vmax.f32 %v2476_v37, %v2588_v13  ;;  %4899 = vst.msk [vmem:[#allocation2 + $0x2e0] sm:$0xff] %vm2271_vm3, %v4787_v52  ;;  %v18076_v12 = vpop.f32.mrf.mxu2  ;;  %v18078_v42 = vpop.f32.mrf.mxu3  ;;  %v9494_v37 = vmax.f32 %v9200_v3, 0.0  ;;  %v2115_v13 = vmax.f32 %v1826_v25, 0.0 }
 0x710   : > { %v7387_v18 = vld [vmem:[#allocation2 + $0x2d0] ss:$2 sm:$0xff]  ;;  %v7443_v20 = vld [vmem:[#allocation2 + $0x2d1] ss:$2 sm:$0xff]  ;;  %4900 = vst.msk [vmem:[#allocation2 + $0x2e8] sm:$0xff] %vm2271_vm3, %v4788_v21  ;;  %v1892_v39 = vpop.f32.mrf.mxu0  ;;  %v4428_v26 = vpop.f32.mrf.mxu1  ;;  %v4789_v21 = vmax.f32 %v4649_v46, %v4677_v7  ;;  %v6850_v61 = vadd.f32 %v17801_v48, %v18076_v12  ;;  %v9273_v32 = vadd.f32 %v17801_v48, %v18078_v42 }
 0x711   : > { %v7499_v60 = vmax.f32 %v7387_v18, %v7443_v20  ;;  %9743 = vst.msk [vmem:[#allocation2 + $0x2d0] sm:$0xff] %vm2271_vm3, %v9631_v15  ;;  %v2709_v28 = vpack.c.bf16 %v2653_v33, %v2653_v33  ;;  %v1893_v41 = vadd.f32 %v17801_v48, %v1892_v39  ;;  %v4429_v56 = vadd.f32 %v17801_v48, %v4428_v26 }
 0x712   : > { %9744 = vst.msk [vmem:[#allocation2 + $0x2d8] sm:$0xff] %vm2271_vm3, %v9632_v54  ;;  %v1828_v18 = vadd.f32 %v17801_v48, %v19039_v9  ;;  %v9633_v20 = vmax.f32 %v9493_v14, %v9521_v57  ;;  %v19046_v57 = vld [vmem:[#allocation16_spill] sm:$0xff] }
 0x713   : > { %v7555_v27 = vpack.c.bf16 %v7499_v60, %v7499_v60  ;;  %2769 = vst.msk [vmem:[%s14327_s20 + $0xb8] sm:$0xf] %vm2722_vm4, %v2709_v28  ;;  %v2142_v59 = vmax.f32 %v1893_v41, 0.0  ;;  %v4678_v2 = vmax.f32 %v4429_v56, 0.0  ;;  %v6780_v60 = vadd.f32 %v17801_v48, %v19040_v62 }
 0x714   : > { %2366 = vst.msk [vmem:[#allocation2 + $0x2f0] sm:$0xff] %vm2271_vm3, %v2253_v63  ;;  %v9634_v41 = vmax.f32 %v9494_v37, %v9522_v10 }
 0x715   : > { %12399 = vst.msk [vmem:[%s14327_s20 + $0x274] sm:$0xf] %vm2722_vm4, %v7555_v27  ;;  %v2254_v16 = vmax.f32 %v2114_v44, %v2142_v59  ;;  %v4790_v22 = vmax.f32 %v4650_v50, %v4678_v2  ;;  %v6782_v59 = vadd.f32 %v17801_v48, %v19041_v53  ;;  %v19045_v2 = vld [vmem:[#allocation8_spill] sm:$0xff]  ;;  %v1831_v50 = vadd.f32 %v17801_v48, %v19046_v57 }
 0x716   : > { %v9205_v46 = vadd.f32 %v17801_v48, %v19045_v2 }
 0x717   : > { %v4965_v24 = vld [vmem:[#allocation2 + $0x2e0] ss:$2 sm:$0xff]  ;;  %v5021_v47 = vld [vmem:[#allocation2 + $0x2e1] ss:$2 sm:$0xff]  ;;  %2367 = vst.msk [vmem:[#allocation2 + $0x2f8] sm:$0xff] %vm2271_vm3, %v2254_v16  ;;  %v6851_v1 = vpop.f32.mrf.mxu2  ;;  %v18101_v45 = vpop.f32.mrf.mxu3  ;;  %v7100_v16 = vmax.f32 %v6850_v61, 0.0 }
 0x718   : > { %v5077_v49 = vmax.f32 %v4965_v24, %v5021_v47  ;;  %7322 = vst.msk [vmem:[#allocation2 + $0x2e0] sm:$0xff] %vm2271_vm3, %v7210_v4  ;;  %v1895_v43 = vpop.f32.mrf.mxu0  ;;  %v4431_v17 = vpop.f32.mrf.mxu1  ;;  %v6852_v63 = vadd.f32 %v17801_v48, %v6851_v1  ;;  %v2116_v4 = vmax.f32 %v1828_v18, 0.0  ;;  %v7072_v24 = vmax.f32 %v6780_v60, 0.0 }
 0x719   : > { %v9810_v19 = vld [vmem:[#allocation2 + $0x2d0] ss:$2 sm:$0xff]  ;;  %v9866_v36 = vld [vmem:[#allocation2 + $0x2d1] ss:$2 sm:$0xff]  ;;  %7323 = vst.msk [vmem:[#allocation2 + $0x2e8] sm:$0xff] %vm2271_vm3, %v7211_v51  ;;  %v1896_v6 = vadd.f32 %v17801_v48, %v1895_v43  ;;  %v7073_v47 = vmax.f32 %v6782_v59, 0.0  ;;  %v4432_v51 = vadd.f32 %v17801_v48, %v4431_v17  ;;  %v9275_v42 = vadd.f32 %v17801_v48, %v18101_v45 }
 0x71a   : > { %v9922_v0 = vmax.f32 %v9810_v19, %v9866_v36  ;;  %v5133_v31 = vpack.c.bf16 %v5077_v49, %v5077_v49  ;;  %v7101_v40 = vmax.f32 %v6852_v63, 0.0  ;;  %v7212_v5 = vmax.f32 %v7072_v24, %v7100_v16  ;;  %v19043_v19 = vld [vmem:[#allocation13_spill] sm:$0xff]  ;;  %v19044_v36 = vld [vmem:[#allocation19_spill] sm:$0xff]  ;;  %v19049_v24 = vld [vmem:[#allocation10_spill] sm:$0xff] }
 0x71b   : > { %v2143_v52 = vmax.f32 %v1896_v6, 0.0  ;;  %v4362_v49 = vadd.f32 %v17801_v48, %v19042_v55  ;;  %v9203_v17 = vadd.f32 %v17801_v48, %v19043_v19  ;;  %v4364_v7 = vadd.f32 %v17801_v48, %v19044_v36 }
 0x71c   : > { %v9978_v23 = vpack.c.bf16 %v9922_v0, %v9922_v0  ;;  %11560 = vst.msk [vmem:[%s14327_s20 + $0x198] sm:$0xf] %vm2722_vm4, %v5133_v31  ;;  %v7213_v3 = vmax.f32 %v7073_v47, %v7101_v40  ;;  %v9523_v61 = vmax.f32 %v9273_v32, 0.0 }
 0x71d   : > { %v2255_v8 = vmax.f32 %v2115_v13, %v2143_v52  ;;  %v4679_v52 = vmax.f32 %v4432_v51, 0.0  ;;  %v9495_v18 = vmax.f32 %v9203_v17, 0.0 }
 0x71e   : > { %13239 = vst.msk [vmem:[%s14327_s20 + $0x354] sm:$0xf] %vm2722_vm4, %v9978_v23  ;;  %v2478_v15 = vld [vmem:[#allocation2 + $0x2f0] ss:$2 sm:$0xff]  ;;  %v2590_v33 = vld [vmem:[#allocation2 + $0x2f1] ss:$2 sm:$0xff] }
 0x71f   : > { %v2654_v54 = vmax.f32 %v2478_v15, %v2590_v33  ;;  %4901 = vst.msk [vmem:[#allocation2 + $0x2f0] sm:$0xff] %vm2271_vm3, %v4789_v21  ;;  %v18126_v39 = vpop.f32.mrf.mxu2  ;;  %v18128_v26 = vpop.f32.mrf.mxu3  ;;  %v4651_v21 = vmax.f32 %v4362_v49, 0.0  ;;  %v4652_v15 = vmax.f32 %v4364_v7, 0.0  ;;  %v19050_v7 = vld [vmem:[#allocation9_spill] sm:$0xff] }
 0x720   : > { %v7388_v12 = vld [vmem:[#allocation2 + $0x2e0] ss:$2 sm:$0xff]  ;;  %v7444_v28 = vld [vmem:[#allocation2 + $0x2e1] ss:$2 sm:$0xff]  ;;  %4902 = vst.msk [vmem:[#allocation2 + $0x2f8] sm:$0xff] %vm2271_vm3, %v4790_v22  ;;  %v1897_v44 = vpop.f32.mrf.mxu0  ;;  %v4433_v27 = vpop.f32.mrf.mxu1  ;;  %v9524_v22 = vmax.f32 %v9275_v42, 0.0 }
 0x721   : > { %v7500_v34 = vmax.f32 %v7388_v12, %v7444_v28  ;;  %9745 = vst.msk [vmem:[#allocation2 + $0x2e0] sm:$0xff] %vm2271_vm3, %v9633_v20  ;;  %v2710_v35 = vpack.c.bf16 %v2654_v54, %v2654_v54  ;;  %v1898_v58 = vadd.f32 %v17801_v48, %v1897_v44  ;;  %v4434_v11 = vadd.f32 %v17801_v48, %v4433_v27 }
 0x722   : > { %9746 = vst.msk [vmem:[#allocation2 + $0x2e8] sm:$0xff] %vm2271_vm3, %v9634_v41  ;;  %v9496_v20 = vmax.f32 %v9205_v46, 0.0  ;;  %v2117_v54 = vmax.f32 %v1831_v50, 0.0  ;;  %v4791_v63 = vmax.f32 %v4651_v21, %v4679_v52  ;;  %v19047_v41 = vld [vmem:[#allocation29_spill] sm:$0xff]  ;;  %v9635_v44 = vmax.f32 %v9495_v18, %v9523_v61  ;;  %v19054_v61 = vld [vmem:[#allocation24_spill] sm:$0xff] }
 0x723   : > { %v7556_v56 = vpack.c.bf16 %v7500_v34, %v7500_v34  ;;  %2770 = vst.msk [vmem:[%s14327_s20 + $0xbc] sm:$0xf] %vm2722_vm4, %v2710_v35  ;;  %v2144_v29 = vmax.f32 %v1898_v58, 0.0  ;;  %v4680_v45 = vmax.f32 %v4434_v11, 0.0  ;;  %v19048_v35 = vld [vmem:[#allocation28_spill] sm:$0xff] }
 0x724   : > { %2368 = vst.msk [vmem:[#allocation2 + $0x300] sm:$0xff] %vm2271_vm3, %v2255_v8 }
 0x725   : > { %12400 = vst.msk [vmem:[%s14327_s20 + $0x278] sm:$0xf] %vm2722_vm4, %v7556_v56  ;;  %v2256_v1 = vmax.f32 %v2116_v4, %v2144_v29  ;;  %v4792_v28 = vmax.f32 %v4652_v15, %v4680_v45  ;;  %v9636_v4 = vmax.f32 %v9496_v20, %v9524_v22  ;;  %v19053_v45 = vld [vmem:[#allocation7_spill] sm:$0xff] }
 0x727   : > { %v4966_v43 = vld [vmem:[#allocation2 + $0x2f0] ss:$2 sm:$0xff]  ;;  %v5022_v38 = vld [vmem:[#allocation2 + $0x2f1] ss:$2 sm:$0xff]  ;;  %2369 = vst.msk [vmem:[#allocation2 + $0x308] sm:$0xff] %vm2271_vm3, %v2256_v1  ;;  %v6856_v30 = vpop.f32.mrf.mxu2  ;;  %v18150_v25 = vpop.f32.mrf.mxu3 }
 0x728   : > { %v5078_v6 = vmax.f32 %v4966_v43, %v5022_v38  ;;  %7324 = vst.msk [vmem:[#allocation2 + $0x2f0] sm:$0xff] %vm2271_vm3, %v7212_v5  ;;  %v1900_v0 = vpop.f32.mrf.mxu0  ;;  %v4436_v31 = vpop.f32.mrf.mxu1 }
 0x729   : > { %v9811_v23 = vld [vmem:[#allocation2 + $0x2e0] ss:$2 sm:$0xff]  ;;  %v9867_v10 = vld [vmem:[#allocation2 + $0x2e1] ss:$2 sm:$0xff]  ;;  %7325 = vst.msk [vmem:[#allocation2 + $0x2f8] sm:$0xff] %vm2271_vm3, %v7213_v3  ;;  %v1901_v14 = vadd.f32 %v17801_v48, %v1900_v0 }
 0x72a   : > { %v9923_v37 = vmax.f32 %v9811_v23, %v9867_v10  ;;  %v5134_v13 = vpack.c.bf16 %v5078_v6, %v5078_v6  ;;  %v18172_v48 = vld [vmem:[%s18546_s2] ss:$0 sm:$0xff]  ;;  %v19051_v23 = vld [vmem:[#allocation6_spill] sm:$0xff] }
 0x72b   : > { %v2145_v9 = vmax.f32 %v1901_v14, 0.0  ;;  %v6855_v62 = vadd.f32 %v18172_v48, %v18126_v39  ;;  %v1833_v8 = vadd.f32 %v18172_v48, %v19047_v41  ;;  %v6857_v53 = vadd.f32 %v18172_v48, %v6856_v30  ;;  %v19052_v10 = vld [vmem:[#allocation27_spill] sm:$0xff] }
 0x72c   : > { %v9979_v33 = vpack.c.bf16 %v9923_v37, %v9923_v37  ;;  %11561 = vst.msk [vmem:[%s14327_s20 + $0x19c] sm:$0xf] %vm2722_vm4, %v5134_v13  ;;  %v6785_v58 = vadd.f32 %v18172_v48, %v19048_v35  ;;  %v6787_v47 = vadd.f32 %v18172_v48, %v19049_v24  ;;  %v4437_v30 = vadd.f32 %v18172_v48, %v4436_v31 }
 0x72d   : > { %v2257_v56 = vmax.f32 %v2117_v54, %v2145_v9  ;;  %v7102_v11 = vmax.f32 %v6855_v62, 0.0  ;;  %v2118_v55 = vmax.f32 %v1833_v8, 0.0  ;;  %v7103_v32 = vmax.f32 %v6857_v53, 0.0 }
 0x72e   : > { %13240 = vst.msk [vmem:[%s14327_s20 + $0x358] sm:$0xf] %vm2722_vm4, %v9979_v33  ;;  %v2480_v60 = vld [vmem:[#allocation2 + $0x300] ss:$2 sm:$0xff]  ;;  %v2592_v12 = vld [vmem:[#allocation2 + $0x301] ss:$2 sm:$0xff]  ;;  %v4367_v6 = vadd.f32 %v18172_v48, %v19050_v7  ;;  %v9278_v42 = vadd.f32 %v18172_v48, %v18128_v26  ;;  %v9208_v31 = vadd.f32 %v18172_v48, %v19051_v23  ;;  %v4369_v52 = vadd.f32 %v18172_v48, %v19052_v10 }
 0x72f   : > { %v2655_v27 = vmax.f32 %v2480_v60, %v2592_v12  ;;  %4903 = vst.msk [vmem:[#allocation2 + $0x300] sm:$0xff] %vm2271_vm3, %v4791_v63  ;;  %v18180_v59 = vpop.f32.mrf.mxu2  ;;  %v18182_v34 = vpop.f32.mrf.mxu3  ;;  %v7074_v38 = vmax.f32 %v6785_v58, 0.0  ;;  %v7075_v3 = vmax.f32 %v6787_v47, 0.0  ;;  %v9280_v26 = vadd.f32 %v18172_v48, %v18150_v25 }
 0x730   : > { %v7389_v39 = vld [vmem:[#allocation2 + $0x2f0] ss:$2 sm:$0xff]  ;;  %v7445_v16 = vld [vmem:[#allocation2 + $0x2f1] ss:$2 sm:$0xff]  ;;  %4904 = vst.msk [vmem:[#allocation2 + $0x308] sm:$0xff] %vm2271_vm3, %v4792_v28  ;;  %v1902_v40 = vpop.f32.mrf.mxu0  ;;  %v4438_v29 = vpop.f32.mrf.mxu1  ;;  %v9210_v21 = vadd.f32 %v18172_v48, %v19053_v45  ;;  %v1836_v15 = vadd.f32 %v18172_v48, %v19054_v61  ;;  %v4681_v9 = vmax.f32 %v4437_v30, 0.0  ;;  %v6860_v35 = vadd.f32 %v18172_v48, %v18180_v59 }
 0x731   : > { %v7501_v51 = vmax.f32 %v7389_v39, %v7445_v16  ;;  %9747 = vst.msk [vmem:[#allocation2 + $0x2f0] sm:$0xff] %vm2271_vm3, %v9635_v44  ;;  %v2711_v1 = vpack.c.bf16 %v2655_v27, %v2655_v27  ;;  %v1903_v5 = vadd.f32 %v18172_v48, %v1902_v40  ;;  %v7214_v17 = vmax.f32 %v7074_v38, %v7102_v11  ;;  %v19057_v38 = vld [vmem:[#allocation18_spill] sm:$0xff] }
 0x732   : > { %9748 = vst.msk [vmem:[#allocation2 + $0x2f8] sm:$0xff] %vm2271_vm3, %v9636_v4  ;;  %v4439_v36 = vadd.f32 %v18172_v48, %v4438_v29  ;;  %v7215_v46 = vmax.f32 %v7075_v3, %v7103_v32  ;;  %v4653_v63 = vmax.f32 %v4367_v6, 0.0  ;;  %v9525_v62 = vmax.f32 %v9278_v42, 0.0  ;;  %v19055_v4 = vld [vmem:[#allocation37_spill] sm:$0xff] }
 0x733   : > { %v7557_v49 = vpack.c.bf16 %v7501_v51, %v7501_v51  ;;  %2771 = vst.msk [vmem:[%s14327_s20 + $0xc0] sm:$0xf] %vm2722_vm4, %v2711_v1  ;;  %v2146_v43 = vmax.f32 %v1903_v5, 0.0  ;;  %v4654_v60 = vmax.f32 %v4369_v52, 0.0  ;;  %v9526_v28 = vmax.f32 %v9280_v26, 0.0  ;;  %v19056_v1 = vld [vmem:[#allocation36_spill] sm:$0xff] }
 0x734   : > { %2370 = vst.msk [vmem:[#allocation2 + $0x310] sm:$0xff] %vm2271_vm3, %v2257_v56  ;;  %v4682_v25 = vmax.f32 %v4439_v36, 0.0  ;;  %v9497_v8 = vmax.f32 %v9208_v31, 0.0  ;;  %v9498_v44 = vmax.f32 %v9210_v21, 0.0  ;;  %v2119_v27 = vmax.f32 %v1836_v15, 0.0  ;;  %v19058_v52 = vld [vmem:[#allocation17_spill] sm:$0xff] }
 0x735   : > { %12401 = vst.msk [vmem:[%s14327_s20 + $0x27c] sm:$0xf] %vm2722_vm4, %v7557_v49  ;;  %v2258_v19 = vmax.f32 %v2118_v55, %v2146_v43  ;;  %v4793_v53 = vmax.f32 %v4653_v63, %v4681_v9  ;;  %v1838_v56 = vadd.f32 %v18172_v48, %v19055_v4  ;;  %v6790_v5 = vadd.f32 %v18172_v48, %v19056_v1 }
 0x736   : > { %v4794_v16 = vmax.f32 %v4654_v60, %v4682_v25  ;;  %v9637_v40 = vmax.f32 %v9497_v8, %v9525_v62  ;;  %v9638_v55 = vmax.f32 %v9498_v44, %v9526_v28  ;;  %v6792_v3 = vadd.f32 %v18172_v48, %v19057_v38  ;;  %v19061_v25 = vld [vmem:[#allocation15_spill] sm:$0xff]  ;;  %v19062_v62 = vld [vmem:[#allocation32_spill] sm:$0xff] }
 0x737   : > { %v4967_v0 = vld [vmem:[#allocation2 + $0x300] ss:$2 sm:$0xff]  ;;  %v5023_v2 = vld [vmem:[#allocation2 + $0x301] ss:$2 sm:$0xff]  ;;  %2371 = vst.msk [vmem:[#allocation2 + $0x318] sm:$0xff] %vm2271_vm3, %v2258_v19  ;;  %v6861_v57 = vpop.f32.mrf.mxu2  ;;  %v18204_v50 = vpop.f32.mrf.mxu3  ;;  %v7104_v36 = vmax.f32 %v6860_v35, 0.0  ;;  %v9283_v26 = vadd.f32 %v18172_v48, %v18182_v34  ;;  %v9215_v63 = vadd.f32 %v18172_v48, %v19061_v25  ;;  %v1841_v60 = vadd.f32 %v18172_v48, %v19062_v62 }
 0x738   : > { %v5079_v14 = vmax.f32 %v4967_v0, %v5023_v2  ;;  %7326 = vst.msk [vmem:[#allocation2 + $0x300] sm:$0xff] %vm2271_vm3, %v7214_v17  ;;  %v1905_v37 = vpop.f32.mrf.mxu0  ;;  %v4441_v13 = vpop.f32.mrf.mxu1  ;;  %v6862_v24 = vadd.f32 %v18172_v48, %v6861_v57  ;;  %v2120_v7 = vmax.f32 %v1838_v56, 0.0  ;;  %v7076_v2 = vmax.f32 %v6790_v5, 0.0 }
 0x739   : > { %v9812_v33 = vld [vmem:[#allocation2 + $0x2f0] ss:$2 sm:$0xff]  ;;  %v9868_v22 = vld [vmem:[#allocation2 + $0x2f1] ss:$2 sm:$0xff]  ;;  %7327 = vst.msk [vmem:[#allocation2 + $0x308] sm:$0xff] %vm2271_vm3, %v7215_v46  ;;  %v1906_v18 = vadd.f32 %v18172_v48, %v1905_v37  ;;  %v7077_v46 = vmax.f32 %v6792_v3, 0.0  ;;  %v4442_v57 = vadd.f32 %v18172_v48, %v4441_v13  ;;  %v9285_v34 = vadd.f32 %v18172_v48, %v18204_v50 }
 0x73a   : > { %v9924_v20 = vmax.f32 %v9812_v33, %v9868_v22  ;;  %v5135_v54 = vpack.c.bf16 %v5079_v14, %v5079_v14  ;;  %v7105_v42 = vmax.f32 %v6862_v24, 0.0  ;;  %v7216_v31 = vmax.f32 %v7076_v2, %v7104_v36  ;;  %v19059_v33 = vld [vmem:[#allocation14_spill] sm:$0xff]  ;;  %v19060_v22 = vld [vmem:[#allocation35_spill] sm:$0xff] }
 0x73b   : > { %v2147_v41 = vmax.f32 %v1906_v18, 0.0  ;;  %v4372_v14 = vadd.f32 %v18172_v48, %v19058_v52  ;;  %v9213_v13 = vadd.f32 %v18172_v48, %v19059_v33  ;;  %v4374_v9 = vadd.f32 %v18172_v48, %v19060_v22  ;;  %v19065_v2 = vld [vmem:[#allocation26_spill] sm:$0xff] }
 0x73c   : > { %v9980_v12 = vpack.c.bf16 %v9924_v20, %v9924_v20  ;;  %11562 = vst.msk [vmem:[%s14327_s20 + $0x1a0] sm:$0xf] %vm2722_vm4, %v5135_v54  ;;  %v7217_v21 = vmax.f32 %v7077_v46, %v7105_v42  ;;  %v9527_v35 = vmax.f32 %v9283_v26, 0.0  ;;  %v6797_v46 = vadd.f32 %v18172_v48, %v19065_v2 }
 0x73d   : > { %v2259_v49 = vmax.f32 %v2119_v27, %v2147_v41  ;;  %v4683_v41 = vmax.f32 %v4442_v57, 0.0  ;;  %v9499_v56 = vmax.f32 %v9213_v13, 0.0 }
 0x73e   : > { %13241 = vst.msk [vmem:[%s14327_s20 + $0x35c] sm:$0xf] %vm2722_vm4, %v9980_v12  ;;  %v2482_v58 = vld [vmem:[#allocation2 + $0x310] ss:$2 sm:$0xff]  ;;  %v2594_v39 = vld [vmem:[#allocation2 + $0x311] ss:$2 sm:$0xff] }
 0x73f   : > { %v2656_v29 = vmax.f32 %v2482_v58, %v2594_v39  ;;  %4905 = vst.msk [vmem:[#allocation2 + $0x310] sm:$0xff] %vm2271_vm3, %v4793_v53  ;;  %v18229_v47 = vpop.f32.mrf.mxu2  ;;  %v18231_v51 = vpop.f32.mrf.mxu3  ;;  %v4655_v53 = vmax.f32 %v4372_v14, 0.0  ;;  %v4656_v58 = vmax.f32 %v4374_v9, 0.0  ;;  %v19066_v9 = vld [vmem:[#allocation25_spill] sm:$0xff] }
 0x740   : > { %v7390_v59 = vld [vmem:[#allocation2 + $0x300] ss:$2 sm:$0xff]  ;;  %v7446_v11 = vld [vmem:[#allocation2 + $0x301] ss:$2 sm:$0xff]  ;;  %4906 = vst.msk [vmem:[#allocation2 + $0x318] sm:$0xff] %vm2271_vm3, %v4794_v16  ;;  %v1907_v32 = vpop.f32.mrf.mxu0  ;;  %v4443_v43 = vpop.f32.mrf.mxu1  ;;  %v9528_v16 = vmax.f32 %v9285_v34, 0.0  ;;  %v6865_v1 = vadd.f32 %v18172_v48, %v18229_v47  ;;  %v9288_v34 = vadd.f32 %v18172_v48, %v18231_v51 }
 0x741   : > { %v7502_v30 = vmax.f32 %v7390_v59, %v7446_v11  ;;  %9749 = vst.msk [vmem:[#allocation2 + $0x300] sm:$0xff] %vm2271_vm3, %v9637_v40  ;;  %v2712_v19 = vpack.c.bf16 %v2656_v29, %v2656_v29  ;;  %v1908_v17 = vadd.f32 %v18172_v48, %v1907_v32  ;;  %v4444_v10 = vadd.f32 %v18172_v48, %v4443_v43 }
 0x742   : > { %9750 = vst.msk [vmem:[#allocation2 + $0x308] sm:$0xff] %vm2271_vm3, %v9638_v55  ;;  %v9500_v40 = vmax.f32 %v9215_v63, 0.0  ;;  %v2121_v29 = vmax.f32 %v1841_v60, 0.0  ;;  %v4795_v24 = vmax.f32 %v4655_v53, %v4683_v41  ;;  %v19063_v55 = vld [vmem:[#allocation45_spill] sm:$0xff]  ;;  %v9639_v32 = vmax.f32 %v9499_v56, %v9527_v35  ;;  %v19070_v35 = vld [vmem:[#allocation40_spill] sm:$0xff] }
 0x743   : > { %v7558_v6 = vpack.c.bf16 %v7502_v30, %v7502_v30  ;;  %2772 = vst.msk [vmem:[%s14327_s20 + $0xc4] sm:$0xf] %vm2722_vm4, %v2712_v19  ;;  %v2148_v0 = vmax.f32 %v1908_v17, 0.0  ;;  %v4684_v50 = vmax.f32 %v4444_v10, 0.0  ;;  %v19064_v19 = vld [vmem:[#allocation44_spill] sm:$0xff]  ;;  %v7106_v10 = vmax.f32 %v6865_v1, 0.0 }
 0x744   : > { %2372 = vst.msk [vmem:[#allocation2 + $0x320] sm:$0xff] %vm2271_vm3, %v2259_v49  ;;  %v1843_v49 = vadd.f32 %v18172_v48, %v19063_v55  ;;  %v6795_v17 = vadd.f32 %v18172_v48, %v19064_v19  ;;  %v9529_v1 = vmax.f32 %v9288_v34, 0.0 }
 0x745   : > { %12402 = vst.msk [vmem:[%s14327_s20 + $0x280] sm:$0xf] %vm2722_vm4, %v7558_v6  ;;  %v2260_v23 = vmax.f32 %v2120_v7, %v2148_v0  ;;  %v4796_v11 = vmax.f32 %v4656_v58, %v4684_v50  ;;  %v9640_v7 = vmax.f32 %v9500_v40, %v9528_v16  ;;  %v19069_v50 = vld [vmem:[#allocation23_spill] sm:$0xff]  ;;  %v1846_v58 = vadd.f32 %v18172_v48, %v19070_v35 }
 0x746   : > { %v2122_v52 = vmax.f32 %v1843_v49, 0.0  ;;  %v9220_v53 = vadd.f32 %v18172_v48, %v19069_v50 }
 0x747   : > { %v4968_v37 = vld [vmem:[#allocation2 + $0x310] ss:$2 sm:$0xff]  ;;  %v5024_v45 = vld [vmem:[#allocation2 + $0x311] ss:$2 sm:$0xff]  ;;  %2373 = vst.msk [vmem:[#allocation2 + $0x328] sm:$0xff] %vm2271_vm3, %v2260_v23  ;;  %v6866_v61 = vpop.f32.mrf.mxu2  ;;  %v18253_v15 = vpop.f32.mrf.mxu3 }
 0x748   : > { %v5080_v18 = vmax.f32 %v4968_v37, %v5024_v45  ;;  %7328 = vst.msk [vmem:[#allocation2 + $0x310] sm:$0xff] %vm2271_vm3, %v7216_v31  ;;  %v1910_v20 = vpop.f32.mrf.mxu0  ;;  %v4446_v54 = vpop.f32.mrf.mxu1  ;;  %v6867_v38 = vadd.f32 %v18172_v48, %v6866_v61  ;;  %v7078_v45 = vmax.f32 %v6795_v17, 0.0  ;;  %v9290_v51 = vadd.f32 %v18172_v48, %v18253_v15 }
 0x749   : > { %v9813_v12 = vld [vmem:[#allocation2 + $0x300] ss:$2 sm:$0xff]  ;;  %v9869_v28 = vld [vmem:[#allocation2 + $0x301] ss:$2 sm:$0xff]  ;;  %7329 = vst.msk [vmem:[#allocation2 + $0x318] sm:$0xff] %vm2271_vm3, %v7217_v21  ;;  %v1911_v8 = vadd.f32 %v18172_v48, %v1910_v20  ;;  %v7079_v21 = vmax.f32 %v6797_v46, 0.0  ;;  %v4447_v61 = vadd.f32 %v18172_v48, %v4446_v54 }
 0x74a   : > { %v9925_v44 = vmax.f32 %v9813_v12, %v9869_v28  ;;  %v5136_v27 = vpack.c.bf16 %v5080_v18, %v5080_v18  ;;  %v7107_v26 = vmax.f32 %v6867_v38, 0.0  ;;  %v7218_v13 = vmax.f32 %v7078_v45, %v7106_v10  ;;  %v19067_v12 = vld [vmem:[#allocation22_spill] sm:$0xff]  ;;  %v19068_v28 = vld [vmem:[#allocation43_spill] sm:$0xff] }
 0x74b   : > { %v2149_v4 = vmax.f32 %v1911_v8, 0.0  ;;  %v4377_v18 = vadd.f32 %v18172_v48, %v19066_v9  ;;  %v9218_v54 = vadd.f32 %v18172_v48, %v19067_v12  ;;  %v4379_v41 = vadd.f32 %v18172_v48, %v19068_v28  ;;  %v19073_v45 = vld [vmem:[#allocation34_spill] sm:$0xff] }
 0x74c   : > { %v9981_v39 = vpack.c.bf16 %v9925_v44, %v9925_v44  ;;  %11563 = vst.msk [vmem:[%s14327_s20 + $0x1a4] sm:$0xf] %vm2722_vm4, %v5136_v27  ;;  %v7219_v63 = vmax.f32 %v7079_v21, %v7107_v26  ;;  %v6802_v21 = vadd.f32 %v18172_v48, %v19073_v45 }
 0x74d   : > { %v2261_v6 = vmax.f32 %v2121_v29, %v2149_v4  ;;  %v4685_v4 = vmax.f32 %v4447_v61, 0.0  ;;  %v9501_v49 = vmax.f32 %v9218_v54, 0.0 }
 0x74e   : > { %13242 = vst.msk [vmem:[%s14327_s20 + $0x360] sm:$0xf] %vm2722_vm4, %v9981_v39  ;;  %v2484_v5 = vld [vmem:[#allocation2 + $0x320] ss:$2 sm:$0xff]  ;;  %v2596_v59 = vld [vmem:[#allocation2 + $0x321] ss:$2 sm:$0xff] }
 0x74f   : > { %v2657_v43 = vmax.f32 %v2484_v5, %v2596_v59  ;;  %4907 = vst.msk [vmem:[#allocation2 + $0x320] sm:$0xff] %vm2271_vm3, %v4795_v24  ;;  %v18278_v3 = vpop.f32.mrf.mxu2  ;;  %v18280_v30 = vpop.f32.mrf.mxu3  ;;  %v4657_v24 = vmax.f32 %v4377_v18, 0.0  ;;  %v4658_v5 = vmax.f32 %v4379_v41, 0.0  ;;  %v19074_v41 = vld [vmem:[#allocation33_spill] sm:$0xff] }
 0x750   : > { %v7391_v47 = vld [vmem:[#allocation2 + $0x310] ss:$2 sm:$0xff]  ;;  %v7447_v36 = vld [vmem:[#allocation2 + $0x311] ss:$2 sm:$0xff]  ;;  %4908 = vst.msk [vmem:[#allocation2 + $0x328] sm:$0xff] %vm2271_vm3, %v4796_v11  ;;  %v1912_v42 = vpop.f32.mrf.mxu0  ;;  %v4448_v0 = vpop.f32.mrf.mxu1  ;;  %v9530_v11 = vmax.f32 %v9290_v51, 0.0  ;;  %v6870_v19 = vadd.f32 %v18172_v48, %v18278_v3  ;;  %v9293_v51 = vadd.f32 %v18172_v48, %v18280_v30 }
 0x751   : > { %v7503_v57 = vmax.f32 %v7391_v47, %v7447_v36  ;;  %9751 = vst.msk [vmem:[#allocation2 + $0x310] sm:$0xff] %vm2271_vm3, %v9639_v32  ;;  %v2713_v23 = vpack.c.bf16 %v2657_v43, %v2657_v43  ;;  %v1913_v31 = vadd.f32 %v18172_v48, %v1912_v42  ;;  %v4449_v22 = vadd.f32 %v18172_v48, %v4448_v0 }
 0x752   : > { %9752 = vst.msk [vmem:[#allocation2 + $0x318] sm:$0xff] %vm2271_vm3, %v9640_v7  ;;  %v9502_v32 = vmax.f32 %v9220_v53, 0.0  ;;  %v2123_v43 = vmax.f32 %v1846_v58, 0.0  ;;  %v4797_v38 = vmax.f32 %v4657_v24, %v4685_v4  ;;  %v19071_v7 = vld [vmem:[#allocation53_spill] sm:$0xff]  ;;  %v9641_v42 = vmax.f32 %v9501_v49, %v9529_v1  ;;  %v19075_v58 = vld [vmem:[#allocation30_spill] sm:$0xff]  ;;  %v19078_v24 = vld [vmem:[#allocation48_spill] sm:$0xff] }
 0x753   : > { %v7559_v14 = vpack.c.bf16 %v7503_v57, %v7503_v57  ;;  %2773 = vst.msk [vmem:[%s14327_s20 + $0xc8] sm:$0xf] %vm2722_vm4, %v2713_v23  ;;  %v2150_v37 = vmax.f32 %v1913_v31, 0.0  ;;  %v4686_v15 = vmax.f32 %v4449_v22, 0.0  ;;  %v19072_v23 = vld [vmem:[#allocation52_spill] sm:$0xff]  ;;  %v7108_v22 = vmax.f32 %v6870_v19, 0.0 }
 0x754   : > { %2374 = vst.msk [vmem:[#allocation2 + $0x330] sm:$0xff] %vm2271_vm3, %v2261_v6  ;;  %v1848_v6 = vadd.f32 %v18172_v48, %v19071_v7  ;;  %v6800_v31 = vadd.f32 %v18172_v48, %v19072_v23  ;;  %v1851_v1 = vadd.f32 %v18172_v48, %v19078_v24  ;;  %v9531_v19 = vmax.f32 %v9293_v51, 0.0 }
 0x755   : > { %12403 = vst.msk [vmem:[%s14327_s20 + $0x284] sm:$0xf] %vm2722_vm4, %v7559_v14  ;;  %v2262_v33 = vmax.f32 %v2122_v52, %v2150_v37  ;;  %v4798_v36 = vmax.f32 %v4658_v5, %v4686_v15  ;;  %v9642_v52 = vmax.f32 %v9502_v32, %v9530_v11 }
 0x756   : > { %v2124_v9 = vmax.f32 %v1848_v6, 0.0 }
 0x757   : > { %v4969_v20 = vld [vmem:[#allocation2 + $0x320] ss:$2 sm:$0xff]  ;;  %v5025_v25 = vld [vmem:[#allocation2 + $0x321] ss:$2 sm:$0xff]  ;;  %2375 = vst.msk [vmem:[#allocation2 + $0x338] sm:$0xff] %vm2271_vm3, %v2262_v33  ;;  %v6871_v62 = vpop.f32.mrf.mxu2  ;;  %v18302_v60 = vpop.f32.mrf.mxu3 }
 0x758   : > { %v5081_v8 = vmax.f32 %v4969_v20, %v5025_v25  ;;  %7330 = vst.msk [vmem:[#allocation2 + $0x320] sm:$0xff] %vm2271_vm3, %v7218_v13  ;;  %v1915_v44 = vpop.f32.mrf.mxu0  ;;  %v4451_v27 = vpop.f32.mrf.mxu1  ;;  %v6872_v2 = vadd.f32 %v18172_v48, %v6871_v62  ;;  %v7080_v25 = vmax.f32 %v6800_v31, 0.0 }
 0x759   : > { %v9814_v39 = vld [vmem:[#allocation2 + $0x310] ss:$2 sm:$0xff]  ;;  %v9870_v16 = vld [vmem:[#allocation2 + $0x311] ss:$2 sm:$0xff]  ;;  %7331 = vst.msk [vmem:[#allocation2 + $0x328] sm:$0xff] %vm2271_vm3, %v7219_v63  ;;  %v1916_v56 = vadd.f32 %v18172_v48, %v1915_v44  ;;  %v7081_v63 = vmax.f32 %v6802_v21, 0.0  ;;  %v4452_v62 = vadd.f32 %v18172_v48, %v4451_v27 }
 0x75a   : > { %v9926_v40 = vmax.f32 %v9814_v39, %v9870_v16  ;;  %v5137_v29 = vpack.c.bf16 %v5081_v8, %v5081_v8  ;;  %v7109_v34 = vmax.f32 %v6872_v2, 0.0  ;;  %v7220_v54 = vmax.f32 %v7080_v25, %v7108_v22  ;;  %v19076_v27 = vld [vmem:[#allocation51_spill] sm:$0xff] }
 0x75b   : > { %v2151_v55 = vmax.f32 %v1916_v56, 0.0  ;;  %v4382_v8 = vadd.f32 %v18172_v48, %v19074_v41  ;;  %v9223_v39 = vadd.f32 %v18172_v48, %v19075_v58  ;;  %v4384_v16 = vadd.f32 %v18172_v48, %v19076_v27 }
 0x75c   : > { %v9982_v59 = vpack.c.bf16 %v9926_v40, %v9926_v40  ;;  %11564 = vst.msk [vmem:[%s14327_s20 + $0x1a8] sm:$0xf] %vm2722_vm4, %v5137_v29  ;;  %v7221_v53 = vmax.f32 %v7081_v63, %v7109_v34  ;;  %v9295_v56 = vadd.f32 %v18172_v48, %v18302_v60  ;;  %v19077_v29 = vld [vmem:[#allocation31_spill] sm:$0xff]  ;;  %v4687_v11 = vmax.f32 %v4452_v62, 0.0 }
 0x75d   : > { %v2263_v14 = vmax.f32 %v2123_v43, %v2151_v55  ;;  %v9225_v15 = vadd.f32 %v18172_v48, %v19077_v29  ;;  %v9503_v6 = vmax.f32 %v9223_v39, 0.0 }
 0x75e   : > { %13243 = vst.msk [vmem:[%s14327_s20 + $0x364] sm:$0xf] %vm2722_vm4, %v9982_v59  ;;  %v2486_v17 = vld [vmem:[#allocation2 + $0x330] ss:$2 sm:$0xff]  ;;  %v2598_v47 = vld [vmem:[#allocation2 + $0x331] ss:$2 sm:$0xff] }
 0x75f   : > { %v2658_v0 = vmax.f32 %v2486_v17, %v2598_v47  ;;  %4909 = vst.msk [vmem:[#allocation2 + $0x330] sm:$0xff] %vm2271_vm3, %v4797_v38  ;;  %v18327_v46 = vpop.f32.mrf.mxu2  ;;  %v18329_v57 = vpop.f32.mrf.mxu3  ;;  %v4659_v38 = vmax.f32 %v4382_v8, 0.0  ;;  %v4660_v17 = vmax.f32 %v4384_v16, 0.0  ;;  %v19082_v16 = vld [vmem:[#allocation41_spill] sm:$0xff] }
 0x760   : > { %v7392_v3 = vld [vmem:[#allocation2 + $0x320] ss:$2 sm:$0xff]  ;;  %v7448_v10 = vld [vmem:[#allocation2 + $0x321] ss:$2 sm:$0xff]  ;;  %4910 = vst.msk [vmem:[#allocation2 + $0x338] sm:$0xff] %vm2271_vm3, %v4798_v36  ;;  %v1917_v26 = vpop.f32.mrf.mxu0  ;;  %v4453_v37 = vpop.f32.mrf.mxu1  ;;  %v9532_v36 = vmax.f32 %v9295_v56, 0.0  ;;  %v6875_v23 = vadd.f32 %v18172_v48, %v18327_v46  ;;  %v9298_v56 = vadd.f32 %v18172_v48, %v18329_v57 }
 0x761   : > { %v7504_v61 = vmax.f32 %v7392_v3, %v7448_v10  ;;  %9753 = vst.msk [vmem:[#allocation2 + $0x320] sm:$0xff] %vm2271_vm3, %v9641_v42  ;;  %v2714_v33 = vpack.c.bf16 %v2658_v0, %v2658_v0  ;;  %v1918_v13 = vadd.f32 %v18172_v48, %v1917_v26  ;;  %v4454_v28 = vadd.f32 %v18172_v48, %v4453_v37 }
 0x762   : > { %9754 = vst.msk [vmem:[#allocation2 + $0x328] sm:$0xff] %vm2271_vm3, %v9642_v52  ;;  %v9504_v42 = vmax.f32 %v9225_v15, 0.0  ;;  %v2125_v0 = vmax.f32 %v1851_v1, 0.0  ;;  %v4799_v2 = vmax.f32 %v4659_v38, %v4687_v11  ;;  %v19079_v52 = vld [vmem:[#allocation61_spill] sm:$0xff]  ;;  %v9643_v26 = vmax.f32 %v9503_v6, %v9531_v19  ;;  %v19083_v1 = vld [vmem:[#allocation38_spill] sm:$0xff]  ;;  %v19086_v38 = vld [vmem:[#allocation56_spill] sm:$0xff] }
 0x763   : > { %v7560_v18 = vpack.c.bf16 %v7504_v61, %v7504_v61  ;;  %2774 = vst.msk [vmem:[%s14327_s20 + $0xcc] sm:$0xf] %vm2722_vm4, %v2714_v33  ;;  %v2152_v20 = vmax.f32 %v1918_v13, 0.0  ;;  %v4688_v43 = vmax.f32 %v4454_v28, 0.0  ;;  %v19080_v61 = vld [vmem:[#allocation60_spill] sm:$0xff]  ;;  %v1856_v19 = vadd.f32 %v18172_v48, %v19086_v38  ;;  %v19091_v38 = vld [vmem:[#allocation46_spill] sm:$0xff] }
 0x764   : > { %2376 = vst.msk [vmem:[#allocation2 + $0x340] sm:$0xff] %vm2271_vm3, %v2263_v14  ;;  %v1853_v14 = vadd.f32 %v18172_v48, %v19079_v52  ;;  %v6805_v33 = vadd.f32 %v18172_v48, %v19080_v61  ;;  %v9644_v22 = vmax.f32 %v9504_v42, %v9532_v36 }
 0x765   : > { %12404 = vst.msk [vmem:[%s14327_s20 + $0x288] sm:$0xf] %vm2722_vm4, %v7560_v18  ;;  %v2264_v12 = vmax.f32 %v2124_v9, %v2152_v20  ;;  %v4800_v10 = vmax.f32 %v4660_v17, %v4688_v43  ;;  %v19081_v20 = vld [vmem:[#allocation42_spill] sm:$0xff] }
 0x766   : > { %v6807_v25 = vadd.f32 %v18172_v48, %v19081_v20  ;;  %v2126_v28 = vmax.f32 %v1853_v14, 0.0 }
 0x767   : > { %v4970_v44 = vld [vmem:[#allocation2 + $0x330] ss:$2 sm:$0xff]  ;;  %v5026_v50 = vld [vmem:[#allocation2 + $0x331] ss:$2 sm:$0xff]  ;;  %2377 = vst.msk [vmem:[#allocation2 + $0x348] sm:$0xff] %vm2271_vm3, %v2264_v12  ;;  %v6876_v35 = vpop.f32.mrf.mxu2  ;;  %v18363_v55 = vpop.f32.mrf.mxu3 }
 0x768   : > { %v5082_v4 = vmax.f32 %v4970_v44, %v5026_v50  ;;  %7332 = vst.msk [vmem:[#allocation2 + $0x330] sm:$0xff] %vm2271_vm3, %v7220_v54  ;;  %v1920_v40 = vpop.f32.mrf.mxu0  ;;  %v4456_v30 = vpop.f32.mrf.mxu1  ;;  %v6877_v45 = vadd.f32 %v18172_v48, %v6876_v35  ;;  %v7110_v54 = vmax.f32 %v6875_v23, 0.0  ;;  %v7082_v50 = vmax.f32 %v6805_v33, 0.0 }
 0x769   : > { %v9815_v5 = vld [vmem:[#allocation2 + $0x320] ss:$2 sm:$0xff]  ;;  %v9871_v59 = vld [vmem:[#allocation2 + $0x321] ss:$2 sm:$0xff]  ;;  %7333 = vst.msk [vmem:[#allocation2 + $0x338] sm:$0xff] %vm2271_vm3, %v7221_v53  ;;  %v1921_v49 = vadd.f32 %v18172_v48, %v1920_v40  ;;  %v7083_v53 = vmax.f32 %v6807_v25, 0.0  ;;  %v4457_v35 = vadd.f32 %v18172_v48, %v4456_v30 }
 0x76a   : > { %v9927_v60 = vmax.f32 %v9815_v5, %v9871_v59  ;;  %v5138_v32 = vpack.c.bf16 %v5082_v4, %v5082_v4  ;;  %v7111_v8 = vmax.f32 %v6877_v45, 0.0  ;;  %v7222_v39 = vmax.f32 %v7082_v50, %v7110_v54  ;;  %v19084_v30 = vld [vmem:[#allocation69_spill] sm:$0xff] }
 0x76b   : > { %v2153_v7 = vmax.f32 %v1921_v49, 0.0  ;;  %v4387_v4 = vadd.f32 %v18172_v48, %v19082_v16  ;;  %v9228_v5 = vadd.f32 %v18172_v48, %v19083_v1  ;;  %v4389_v59 = vadd.f32 %v18172_v48, %v19084_v30  ;;  %v19090_v30 = vld [vmem:[#allocation49_spill] sm:$0xff] }
 0x76c   : > { %v9983_v47 = vpack.c.bf16 %v9927_v60, %v9927_v60  ;;  %11565 = vst.msk [vmem:[%s14327_s20 + $0x1ac] sm:$0xf] %vm2722_vm4, %v5138_v32  ;;  %v7223_v15 = vmax.f32 %v7083_v53, %v7111_v8  ;;  %v9300_v49 = vadd.f32 %v18172_v48, %v18363_v55  ;;  %v19085_v32 = vld [vmem:[#allocation39_spill] sm:$0xff]  ;;  %v4689_v36 = vmax.f32 %v4457_v35, 0.0 }
 0x76d   : > { %v2265_v9 = vmax.f32 %v2125_v0, %v2153_v7  ;;  %v9230_v43 = vadd.f32 %v18172_v48, %v19085_v32  ;;  %v4661_v0 = vmax.f32 %v4387_v4, 0.0  ;;  %v4662_v23 = vmax.f32 %v4389_v59, 0.0 }
 0x76e   : > { %13244 = vst.msk [vmem:[%s14327_s20 + $0x368] sm:$0xf] %vm2722_vm4, %v9983_v47  ;;  %v2488_v31 = vld [vmem:[#allocation2 + $0x340] ss:$2 sm:$0xff]  ;;  %v2600_v3 = vld [vmem:[#allocation2 + $0x341] ss:$2 sm:$0xff]  ;;  %v4392_v59 = vadd.f32 %v18172_v48, %v19090_v30 }
 0x76f   : > { %v2659_v37 = vmax.f32 %v2488_v31, %v2600_v3  ;;  %4911 = vst.msk [vmem:[#allocation2 + $0x340] sm:$0xff] %vm2271_vm3, %v4799_v2  ;;  %v18376_v21 = vpop.f32.mrf.mxu2  ;;  %v18388_v51 = vpop.f32.mrf.mxu3  ;;  %v9533_v2 = vmax.f32 %v9298_v56, 0.0  ;;  %v9534_v3 = vmax.f32 %v9300_v49, 0.0  ;;  %v9505_v52 = vmax.f32 %v9228_v5, 0.0 }
 0x770   : > { %v7393_v13 = vld [vmem:[#allocation2 + $0x330] ss:$2 sm:$0xff]  ;;  %v7449_v46 = vld [vmem:[#allocation2 + $0x331] ss:$2 sm:$0xff]  ;;  %4912 = vst.msk [vmem:[#allocation2 + $0x348] sm:$0xff] %vm2271_vm3, %v4800_v10  ;;  %v1922_v18 = vpop.f32.mrf.mxu0  ;;  %v4458_v34 = vpop.f32.mrf.mxu1  ;;  %v9506_v14 = vmax.f32 %v9230_v43, 0.0  ;;  %v6880_v61 = vadd.f32 %v18172_v48, %v18376_v21 }
 0x771   : > { %v7505_v63 = vmax.f32 %v7393_v13, %v7449_v46  ;;  %9755 = vst.msk [vmem:[#allocation2 + $0x330] sm:$0xff] %vm2271_vm3, %v9643_v26  ;;  %v2715_v62 = vpack.c.bf16 %v2659_v37, %v2659_v37  ;;  %v1923_v12 = vadd.f32 %v18172_v48, %v1922_v18  ;;  %v4459_v27 = vadd.f32 %v18172_v48, %v4458_v34 }
 0x772   : > { %9756 = vst.msk [vmem:[#allocation2 + $0x338] sm:$0xff] %vm2271_vm3, %v9644_v22  ;;  %v2127_v26 = vmax.f32 %v1856_v19, 0.0  ;;  %v4801_v37 = vmax.f32 %v4661_v0, %v4689_v36  ;;  %v19087_v22 = vld [vmem:[#allocation59_spill] sm:$0xff]  ;;  %v9645_v18 = vmax.f32 %v9505_v52, %v9533_v2  ;;  %v9646_v54 = vmax.f32 %v9506_v14, %v9534_v3 }
 0x773   : > { %v7561_v41 = vpack.c.bf16 %v7505_v63, %v7505_v63  ;;  %2775 = vst.msk [vmem:[%s14327_s20 + $0xd0] sm:$0xf] %vm2722_vm4, %v2715_v62  ;;  %v2154_v44 = vmax.f32 %v1923_v12, 0.0  ;;  %v4690_v55 = vmax.f32 %v4459_v27, 0.0  ;;  %v19088_v63 = vld [vmem:[#allocation68_spill] sm:$0xff]  ;;  %v19092_v19 = vld [vmem:[#allocation63_spill] sm:$0xff] }
 0x774   : > { %2378 = vst.msk [vmem:[#allocation2 + $0x350] sm:$0xff] %vm2271_vm3, %v2265_v9  ;;  %v1858_v9 = vadd.f32 %v18172_v48, %v19087_v22  ;;  %v6810_v62 = vadd.f32 %v18172_v48, %v19088_v63 }
 0x775   : > { %12405 = vst.msk [vmem:[%s14327_s20 + $0x28c] sm:$0xf] %vm2722_vm4, %v7561_v41  ;;  %v2266_v58 = vmax.f32 %v2126_v28, %v2154_v44  ;;  %v4802_v46 = vmax.f32 %v4662_v23, %v4690_v55  ;;  %v19089_v44 = vld [vmem:[#allocation50_spill] sm:$0xff]  ;;  %v19094_v55 = vld [vmem:[#allocation67_spill] sm:$0xff] }
 0x776   : > { %v6812_v50 = vadd.f32 %v18172_v48, %v19089_v44  ;;  %v2128_v27 = vmax.f32 %v1858_v9, 0.0  ;;  %v1861_v0 = vadd.f32 %v18172_v48, %v19094_v55  ;;  %v19096_v44 = vld [vmem:[#allocation70_spill] sm:$0xff] }
 0x777   : > { %v4971_v40 = vld [vmem:[#allocation2 + $0x340] ss:$2 sm:$0xff]  ;;  %v5027_v29 = vld [vmem:[#allocation2 + $0x341] ss:$2 sm:$0xff]  ;;  %2379 = vst.msk [vmem:[#allocation2 + $0x358] sm:$0xff] %vm2271_vm3, %v2266_v58  ;;  %v6881_v24 = vpop.f32.mrf.mxu2  ;;  %v9304_v45 = vpop.f32.mrf.mxu3 }
 0x778   : > { %v5083_v11 = vmax.f32 %v4971_v40, %v5027_v29  ;;  %7334 = vst.msk [vmem:[#allocation2 + $0x340] sm:$0xff] %vm2271_vm3, %v7222_v39  ;;  %v1925_v60 = vpop.f32.mrf.mxu0  ;;  %v4461_v57 = vpop.f32.mrf.mxu1  ;;  %v6882_v20 = vadd.f32 %v18172_v48, %v6881_v24  ;;  %v7112_v39 = vmax.f32 %v6880_v61, 0.0  ;;  %v7084_v40 = vmax.f32 %v6810_v62, 0.0 }
 0x779   : > { %v9816_v17 = vld [vmem:[#allocation2 + $0x330] ss:$2 sm:$0xff]  ;;  %v9872_v47 = vld [vmem:[#allocation2 + $0x331] ss:$2 sm:$0xff]  ;;  %7335 = vst.msk [vmem:[#allocation2 + $0x348] sm:$0xff] %vm2271_vm3, %v7223_v15  ;;  %v1926_v7 = vadd.f32 %v18172_v48, %v1925_v60  ;;  %v7085_v29 = vmax.f32 %v6812_v50, 0.0  ;;  %v4462_v15 = vadd.f32 %v18172_v48, %v4461_v57  ;;  %v9233_v57 = vadd.f32 %v18172_v48, %v19091_v38 }
 0x77a   : > { %v9928_v6 = vmax.f32 %v9816_v17, %v9872_v47  ;;  %v5139_v42 = vpack.c.bf16 %v5083_v11, %v5083_v11  ;;  %v7113_v4 = vmax.f32 %v6882_v20, 0.0  ;;  %v7224_v1 = vmax.f32 %v7084_v40, %v7112_v39 }
 0x77b   : > { %v2155_v10 = vmax.f32 %v1926_v7, 0.0  ;;  %v9303_v11 = vadd.f32 %v18172_v48, %v18388_v51  ;;  %v4394_v17 = vadd.f32 %v18172_v48, %v19092_v19  ;;  %v9305_v36 = vadd.f32 %v18172_v48, %v9304_v45 }
 0x77c   : > { %v9984_v31 = vpack.c.bf16 %v9928_v6, %v9928_v6  ;;  %11566 = vst.msk [vmem:[%s14327_s20 + $0x1b0] sm:$0xf] %vm2722_vm4, %v5139_v42  ;;  %v7225_v32 = vmax.f32 %v7085_v29, %v7113_v4  ;;  %v19093_v6 = vld [vmem:[#allocation47_spill] sm:$0xff]  ;;  %v9507_v22 = vmax.f32 %v9233_v57, 0.0  ;;  %v6815_v50 = vadd.f32 %v18172_v48, %v19096_v44  ;;  %v19102_v44 = vld [vmem:[#allocation57_spill] sm:$0xff] }
 0x77d   : > { %v2267_v28 = vmax.f32 %v2127_v26, %v2155_v10  ;;  %v9235_v42 = vadd.f32 %v18172_v48, %v19093_v6  ;;  %v9535_v45 = vmax.f32 %v9303_v11, 0.0  ;;  %v4664_v61 = vmax.f32 %v4394_v17, 0.0  ;;  %v19098_v17 = vld [vmem:[#allocation71_spill] sm:$0xff] }
 0x77e   : > { %13245 = vst.msk [vmem:[%s14327_s20 + $0x36c] sm:$0xf] %vm2722_vm4, %v9984_v31  ;;  %v2490_v33 = vld [vmem:[#allocation2 + $0x350] ss:$2 sm:$0xff]  ;;  %v2602_v13 = vld [vmem:[#allocation2 + $0x351] ss:$2 sm:$0xff] }
 0x77f   : > { %v2660_v34 = vmax.f32 %v2490_v33, %v2602_v13  ;;  %4913 = vst.msk [vmem:[#allocation2 + $0x350] sm:$0xff] %vm2271_vm3, %v4801_v37  ;;  %v18423_v25 = vpop.f32.mrf.mxu2  ;;  %v18444_v43 = vpop.f32.mrf.mxu3  ;;  %v4691_v31 = vmax.f32 %v4462_v15, 0.0  ;;  %v4663_v37 = vmax.f32 %v4392_v59, 0.0  ;;  %v9536_v13 = vmax.f32 %v9305_v36, 0.0 }
 0x780   : > { %v7394_v12 = vld [vmem:[#allocation2 + $0x340] ss:$2 sm:$0xff]  ;;  %v7450_v21 = vld [vmem:[#allocation2 + $0x341] ss:$2 sm:$0xff]  ;;  %4914 = vst.msk [vmem:[#allocation2 + $0x358] sm:$0xff] %vm2271_vm3, %v4802_v46  ;;  %v1927_v41 = vpop.f32.mrf.mxu0  ;;  %v4463_v8 = vpop.f32.mrf.mxu1  ;;  %v9508_v9 = vmax.f32 %v9235_v42, 0.0  ;;  %v6885_v20 = vadd.f32 %v18172_v48, %v18423_v25  ;;  %v9308_v36 = vadd.f32 %v18172_v48, %v18444_v43 }
 0x781   : > { %v7506_v53 = vmax.f32 %v7394_v12, %v7450_v21  ;;  %9757 = vst.msk [vmem:[#allocation2 + $0x340] sm:$0xff] %vm2271_vm3, %v9645_v18  ;;  %v2716_v35 = vpack.c.bf16 %v2660_v34, %v2660_v34  ;;  %v1928_v58 = vadd.f32 %v18172_v48, %v1927_v41  ;;  %v4464_v5 = vadd.f32 %v18172_v48, %v4463_v8  ;;  %v19095_v21 = vld [vmem:[#allocation64_spill] sm:$0xff]  ;;  %v19099_v42 = vld [vmem:[#allocation66_spill] sm:$0xff] }
 0x782   : > { %9758 = vst.msk [vmem:[#allocation2 + $0x348] sm:$0xff] %vm2271_vm3, %v9646_v54  ;;  %v2129_v18 = vmax.f32 %v1861_v0, 0.0  ;;  %v4803_v34 = vmax.f32 %v4663_v37, %v4691_v31  ;;  %v1863_v54 = vadd.f32 %v18172_v48, %v19095_v21  ;;  %v7114_v15 = vmax.f32 %v6885_v20, 0.0 }
 0x783   : > { %v7562_v16 = vpack.c.bf16 %v7506_v53, %v7506_v53  ;;  %2776 = vst.msk [vmem:[%s14327_s20 + $0xd4] sm:$0xf] %vm2722_vm4, %v2716_v35  ;;  %v2156_v56 = vmax.f32 %v1928_v58, 0.0  ;;  %v4692_v26 = vmax.f32 %v4464_v5, 0.0  ;;  %v9648_v58 = vmax.f32 %v9508_v9, %v9536_v13 }
 0x784   : > { %2380 = vst.msk [vmem:[#allocation2 + $0x360] sm:$0xff] %vm2271_vm3, %v2267_v28  ;;  %v9647_v28 = vmax.f32 %v9507_v22, %v9535_v45  ;;  %v4399_v55 = vadd.f32 %v18172_v48, %v19099_v42 }
 0x785   : > { %12406 = vst.msk [vmem:[%s14327_s20 + $0x290] sm:$0xf] %vm2722_vm4, %v7562_v16  ;;  %v2268_v24 = vmax.f32 %v2128_v27, %v2156_v56  ;;  %v4804_v12 = vmax.f32 %v4664_v61, %v4692_v26  ;;  %v19097_v27 = vld [vmem:[#allocation58_spill] sm:$0xff] }
 0x786   : > { %v6817_v16 = vadd.f32 %v18172_v48, %v19097_v27 }
 0x787   : > { %v4972_v49 = vld [vmem:[#allocation2 + $0x350] ss:$2 sm:$0xff]  ;;  %v5028_v60 = vld [vmem:[#allocation2 + $0x351] ss:$2 sm:$0xff]  ;;  %2381 = vst.msk [vmem:[#allocation2 + $0x368] sm:$0xff] %vm2271_vm3, %v2268_v24  ;;  %v6886_v7 = vpop.f32.mrf.mxu2  ;;  %v9309_v40 = vpop.f32.mrf.mxu3 }
 0x788   : > { %v5084_v47 = vmax.f32 %v4972_v49, %v5028_v60  ;;  %7336 = vst.msk [vmem:[#allocation2 + $0x350] sm:$0xff] %vm2271_vm3, %v7224_v1  ;;  %v1930_v51 = vpop.f32.mrf.mxu0  ;;  %v4466_v10 = vpop.f32.mrf.mxu1  ;;  %v6887_v8 = vadd.f32 %v18172_v48, %v6886_v7  ;;  %v2130_v1 = vmax.f32 %v1863_v54, 0.0  ;;  %v7086_v49 = vmax.f32 %v6815_v50, 0.0 }
 0x789   : > { %v9817_v2 = vld [vmem:[#allocation2 + $0x340] ss:$2 sm:$0xff]  ;;  %v9873_v23 = vld [vmem:[#allocation2 + $0x341] ss:$2 sm:$0xff]  ;;  %7337 = vst.msk [vmem:[#allocation2 + $0x358] sm:$0xff] %vm2271_vm3, %v7225_v32  ;;  %v1931_v3 = vadd.f32 %v18172_v48, %v1930_v51  ;;  %v7087_v60 = vmax.f32 %v6817_v16, 0.0  ;;  %v4467_v32 = vadd.f32 %v18172_v48, %v4466_v10 }
 0x78a   : > { %v9929_v52 = vmax.f32 %v9817_v2, %v9873_v23  ;;  %v5140_v14 = vpack.c.bf16 %v5084_v47, %v5084_v47  ;;  %v7115_v30 = vmax.f32 %v6887_v8, 0.0  ;;  %v7226_v57 = vmax.f32 %v7086_v49, %v7114_v15  ;;  %v19100_v23 = vld [vmem:[#allocation54_spill] sm:$0xff] }
 0x78b   : > { %v2157_v46 = vmax.f32 %v1931_v3, 0.0  ;;  %v4397_v47 = vadd.f32 %v18172_v48, %v19098_v17  ;;  %v9310_v2 = vadd.f32 %v18172_v48, %v9309_v40  ;;  %v9238_v31 = vadd.f32 %v18172_v48, %v19100_v23  ;;  %v19101_v3 = vld [vmem:[#allocation55_spill] sm:$0xff]  ;;  %v19105_v17 = vld [vmem:[#allocation72_spill] sm:$0xff] }
 0x78c   : > { %v9985_v33 = vpack.c.bf16 %v9929_v52, %v9929_v52  ;;  %11567 = vst.msk [vmem:[%s14327_s20 + $0x1b4] sm:$0xf] %vm2722_vm4, %v5140_v14  ;;  %v7227_v6 = vmax.f32 %v7087_v60, %v7115_v30  ;;  %v9240_v43 = vadd.f32 %v18172_v48, %v19101_v3  ;;  %v4693_v14 = vmax.f32 %v4467_v32, 0.0  ;;  %v19104_v32 = vld [vmem:[#allocation62_spill] sm:$0xff] }
 0x78d   : > { %v2269_v25 = vmax.f32 %v2129_v18, %v2157_v46  ;;  %v4665_v61 = vmax.f32 %v4397_v47, 0.0  ;;  %v4666_v46 = vmax.f32 %v4399_v55, 0.0  ;;  %v9538_v9 = vmax.f32 %v9310_v2, 0.0 }
 0x78e   : > { %13246 = vst.msk [vmem:[%s14327_s20 + $0x370] sm:$0xf] %vm2722_vm4, %v9985_v33  ;;  %v2492_v63 = vld [vmem:[#allocation2 + $0x360] ss:$2 sm:$0xff]  ;;  %v2604_v62 = vld [vmem:[#allocation2 + $0x361] ss:$2 sm:$0xff] }
 0x78f   : > { %v2661_v41 = vmax.f32 %v2492_v63, %v2604_v62  ;;  %4915 = vst.msk [vmem:[#allocation2 + $0x360] sm:$0xff] %vm2271_vm3, %v4803_v34  ;;  %v6889_v24 = vpop.f32.mrf.mxu2  ;;  %v9537_v33 = vmax.f32 %v9308_v36, 0.0  ;;  %v9312_v13 = vpop.f32.mrf.mxu3  ;;  %v9509_v34 = vmax.f32 %v9238_v31, 0.0  ;;  %v4805_v20 = vmax.f32 %v4665_v61, %v4693_v14  ;;  %v13757_v63 = vld [vmem:[%s18546_s2] ss:$0 sm:$0xff] }
 0x790   : > { %v7395_v53 = vld [vmem:[#allocation2 + $0x350] ss:$2 sm:$0xff]  ;;  %v7451_v35 = vld [vmem:[#allocation2 + $0x351] ss:$2 sm:$0xff]  ;;  %4916 = vst.msk [vmem:[#allocation2 + $0x368] sm:$0xff] %vm2271_vm3, %v4804_v12  ;;  %v1932_v39 = vpop.f32.mrf.mxu0  ;;  %v4468_v11 = vpop.f32.mrf.mxu1  ;;  %v6890_v62 = vadd.f32 %v13757_v63, %v6889_v24  ;;  %v6820_v50 = vadd.f32 %v13757_v63, %v19102_v44  ;;  %v9245_v47 = vadd.f32 %v13757_v63, %v19105_v17 }
 0x791   : > { %v7507_v4 = vmax.f32 %v7395_v53, %v7451_v35  ;;  %9759 = vst.msk [vmem:[#allocation2 + $0x350] sm:$0xff] %vm2271_vm3, %v9647_v28  ;;  %v2717_v56 = vpack.c.bf16 %v2661_v41, %v2661_v41  ;;  %v1933_v29 = vadd.f32 %v18172_v48, %v1932_v39  ;;  %v4469_v19 = vadd.f32 %v18172_v48, %v4468_v11 }
 0x792   : > { %9760 = vst.msk [vmem:[#allocation2 + $0x358] sm:$0xff] %vm2271_vm3, %v9648_v58  ;;  %v9510_v48 = vmax.f32 %v9240_v43, 0.0  ;;  %v9649_v28 = vmax.f32 %v9509_v34, %v9537_v33 }
 0x793   : > { %v7563_v5 = vpack.c.bf16 %v7507_v4, %v7507_v4  ;;  %2777 = vst.msk [vmem:[%s14327_s20 + $0xd8] sm:$0xf] %vm2722_vm4, %v2717_v56  ;;  %v2158_v59 = vmax.f32 %v1933_v29, 0.0  ;;  %v4694_v45 = vmax.f32 %v4469_v19, 0.0  ;;  %v7116_v4 = vmax.f32 %v6890_v62, 0.0 }
 0x794   : > { %2382 = vst.msk [vmem:[#allocation2 + $0x370] sm:$0xff] %vm2271_vm3, %v2269_v25  ;;  %v9650_v58 = vmax.f32 %v9510_v48, %v9538_v9  ;;  %v19103_v25 = vld [vmem:[#allocation65_spill] sm:$0xff]  ;;  %v7088_v29 = vmax.f32 %v6820_v50, 0.0 }
 0x795   : > { %12407 = vst.msk [vmem:[%s14327_s20 + $0x294] sm:$0xf] %vm2722_vm4, %v7563_v5  ;;  %v2270_v38 = vmax.f32 %v2130_v1, %v2158_v59  ;;  %v4806_v54 = vmax.f32 %v4666_v46, %v4694_v45  ;;  %v6822_v39 = vadd.f32 %v13757_v63, %v19103_v25  ;;  %v9313_v5 = vadd.f32 %v13757_v63, %v9312_v13 }
 0x796   : > { %v7228_v1 = vmax.f32 %v7088_v29, %v7116_v4 }
 0x797   : > { %v4973_v7 = vld [vmem:[#allocation2 + $0x360] ss:$2 sm:$0xff]  ;;  %v5029_v51 = vld [vmem:[#allocation2 + $0x361] ss:$2 sm:$0xff]  ;;  %2383 = vst.msk [vmem:[#allocation2 + $0x378] sm:$0xff] %vm2271_vm3, %v2270_v38  ;;  %v6891_v18 = vpop.f32.mrf.mxu2  ;;  %v7089_v15 = vmax.f32 %v6822_v39, 0.0  ;;  %v9314_v24 = vpop.f32.mrf.mxu3  ;;  %v9243_v38 = vadd.f32 %v13757_v63, %v19104_v32 }
 0x798   : > { %v5085_v0 = vmax.f32 %v4973_v7, %v5029_v51  ;;  %7338 = vst.msk [vmem:[#allocation2 + $0x360] sm:$0xff] %vm2271_vm3, %v7226_v57  ;;  %v6892_v8 = vadd.f32 %v13757_v63, %v6891_v18  ;;  %v9315_v60 = vadd.f32 %v13757_v63, %v9314_v24  ;;  %v9539_v51 = vmax.f32 %v9313_v5, 0.0 }
 0x799   : > { %v9818_v10 = vld [vmem:[#allocation2 + $0x350] ss:$2 sm:$0xff]  ;;  %v9874_v52 = vld [vmem:[#allocation2 + $0x351] ss:$2 sm:$0xff]  ;;  %7339 = vst.msk [vmem:[#allocation2 + $0x368] sm:$0xff] %vm2271_vm3, %v7227_v6  ;;  %v9511_v55 = vmax.f32 %v9243_v38, 0.0 }
 0x79a   : > { %v9930_v26 = vmax.f32 %v9818_v10, %v9874_v52  ;;  %v5141_v37 = vpack.c.bf16 %v5085_v0, %v5085_v0  ;;  %v7117_v40 = vmax.f32 %v6892_v8, 0.0  ;;  %v9540_v42 = vmax.f32 %v9315_v60, 0.0 }
 0x79b   : > { %v9512_v0 = vmax.f32 %v9245_v47, 0.0  ;;  %v9651_v2 = vmax.f32 %v9511_v55, %v9539_v51 }
 0x79c   : > { %v9986_v22 = vpack.c.bf16 %v9930_v26, %v9930_v26  ;;  %11568 = vst.msk [vmem:[%s14327_s20 + $0x1b8] sm:$0xf] %vm2722_vm4, %v5141_v37  ;;  %v7229_v11 = vmax.f32 %v7089_v15, %v7117_v40 }
 0x79d   : > { %v9652_v3 = vmax.f32 %v9512_v0, %v9540_v42 }
 0x79e   : > { %13247 = vst.msk [vmem:[%s14327_s20 + $0x374] sm:$0xf] %vm2722_vm4, %v9986_v22  ;;  %v2494_v12 = vld [vmem:[#allocation2 + $0x370] ss:$2 sm:$0xff]  ;;  %v2606_v21 = vld [vmem:[#allocation2 + $0x371] ss:$2 sm:$0xff] }
 0x79f   : > { %v2662_v41 = vmax.f32 %v2494_v12, %v2606_v21  ;;  %4917 = vst.msk [vmem:[#allocation2 + $0x370] sm:$0xff] %vm2271_vm3, %v4805_v20 }
 0x7a0   : > { %v7396_v53 = vld [vmem:[#allocation2 + $0x360] ss:$2 sm:$0xff]  ;;  %v7452_v35 = vld [vmem:[#allocation2 + $0x361] ss:$2 sm:$0xff]  ;;  %4918 = vst.msk [vmem:[#allocation2 + $0x378] sm:$0xff] %vm2271_vm3, %v4806_v54 }
 0x7a1   : > { %v7508_v27 = vmax.f32 %v7396_v53, %v7452_v35  ;;  %9761 = vst.msk [vmem:[#allocation2 + $0x360] sm:$0xff] %vm2271_vm3, %v9649_v28  ;;  %v2718_v16 = vpack.c.bf16 %v2662_v41, %v2662_v41 }
 0x7a2   : > { %9762 = vst.msk [vmem:[#allocation2 + $0x368] sm:$0xff] %vm2271_vm3, %v9650_v58 }
 0x7a3   : > { %v7564_v56 = vpack.c.bf16 %v7508_v27, %v7508_v27  ;;  %2778 = vst.msk [vmem:[%s14327_s20 + $0xdc] sm:$0xf] %vm2722_vm4, %v2718_v16 }
 0x7a5   : > { %12408 = vst.msk [vmem:[%s14327_s20 + $0x298] sm:$0xf] %vm2722_vm4, %v7564_v56 }
 0x7a7   : > { %v4974_v30 = vld [vmem:[#allocation2 + $0x370] ss:$2 sm:$0xff]  ;;  %v5030_v59 = vld [vmem:[#allocation2 + $0x371] ss:$2 sm:$0xff] }
 0x7a8   : > { %v5086_v49 = vmax.f32 %v4974_v30, %v5030_v59  ;;  %7340 = vst.msk [vmem:[#allocation2 + $0x370] sm:$0xff] %vm2271_vm3, %v7228_v1 }
 0x7a9   : > { %v9819_v57 = vld [vmem:[#allocation2 + $0x360] ss:$2 sm:$0xff]  ;;  %v9875_v19 = vld [vmem:[#allocation2 + $0x361] ss:$2 sm:$0xff]  ;;  %7341 = vst.msk [vmem:[#allocation2 + $0x378] sm:$0xff] %vm2271_vm3, %v7229_v11 }
 0x7aa   : > { %v9931_v36 = vmax.f32 %v9819_v57, %v9875_v19  ;;  %v5142_v7 = vpack.c.bf16 %v5086_v49, %v5086_v49 }
 0x7ac   : > { %v9987_v6 = vpack.c.bf16 %v9931_v36, %v9931_v36  ;;  %11569 = vst.msk [vmem:[%s14327_s20 + $0x1bc] sm:$0xf] %vm2722_vm4, %v5142_v7 }
 0x7ae   : > { %13248 = vst.msk [vmem:[%s14327_s20 + $0x378] sm:$0xf] %vm2722_vm4, %v9987_v6 }
 0x7b0   : > { %v7397_v23 = vld [vmem:[#allocation2 + $0x370] ss:$2 sm:$0xff]  ;;  %v7453_v31 = vld [vmem:[#allocation2 + $0x371] ss:$2 sm:$0xff] }
 0x7b1   : > { %v7509_v43 = vmax.f32 %v7397_v23, %v7453_v31  ;;  %9763 = vst.msk [vmem:[#allocation2 + $0x370] sm:$0xff] %vm2271_vm3, %v9651_v2 }
 0x7b2   : > { %9764 = vst.msk [vmem:[#allocation2 + $0x378] sm:$0xff] %vm2271_vm3, %v9652_v3 }
 0x7b3   : > { %v7565_v10 = vpack.c.bf16 %v7509_v43, %v7509_v43 }
 0x7b5   : > { %12409 = vst.msk [vmem:[%s14327_s20 + $0x29c] sm:$0xf] %vm2722_vm4, %v7565_v10 }
 0x7b9   : > { %v9820_v52 = vld [vmem:[#allocation2 + $0x370] ss:$2 sm:$0xff]  ;;  %v9876_v14 = vld [vmem:[#allocation2 + $0x371] ss:$2 sm:$0xff] }
 0x7ba   : > { %v9932_v26 = vmax.f32 %v9820_v52, %v9876_v14 }
 0x7bc   : > { %v9988_v37 = vpack.c.bf16 %v9932_v26, %v9932_v26 }
 0x7be   : > { %13249 = vst.msk [vmem:[%s14327_s20 + $0x37c] sm:$0xf] %vm2722_vm4, %v9988_v37 }
 0x7bf PF: > { %s13_s16 = sadd.s32 1, %s13796_s16   ;;  %s19106_s12 = smov %s13788_s14 }
 0x7c0   : > { %p10_p8 = scmp.ge.s32.totalorder %s13_s16, 16   ;;  %s19107_s13 = smov %s13792_s15 }
 0x7c1   : > { %s19108_s14 = smov %s19111_s17  ;;  %s19109_s15 = smov %s19115_s18 }
 0x7c2   :  { %12 = sbr.rel (!%p10_p8) target bundleno = 3 (0x3), region = 181 }

</bundles_post_ra>
